<compile_context>
chip_gen: v7x
topology: tpu7x:2x2x1
jax: 0.10.0
libtpu: 0.0.40
codegen_flags: <defaults>
</compile_context>

<pallas_src>
import functools

import numpy as np
import jax
import jax.numpy as jnp
from jax.experimental import pallas as pl
from jax.experimental.pallas import tpu as pltpu


# ----------------------------------------------------------------------------
# Static problem geometry (single-image inference; fmap2roi squeezes batch)
# ----------------------------------------------------------------------------
H_IN = W_IN = 16
C_IN = 3
C1 = 16                      # backbone width
C2 = 32                      # downsampled / RPN width
A = 3                        # anchors per feature-map position
HF = WF = 8                  # feature map after stride-2 downsample
N_ANCH = HF * WF * A         # 192 anchors
NPAD = 256                   # anchors padded to a multiple of 128 lanes
N_HEAD = 15                  # 3 score + 6 ctr + 6 size channels
HEAD_PAD = 128               # lane-dense fused-head output width
BOX_CLAMP = float(np.log(1000.0 / 16.0))   # clamp for exp(log-size) deltas


# ----------------------------------------------------------------------------
# In-kernel helpers (traced & unrolled; everything stays in VMEM / vregs)
# ----------------------------------------------------------------------------
def _pad1_hw(x3d):
    """Zero-pad an (H, W, C) value by 1 on both spatial dims (no HBM traffic)."""
    H, W, C = x3d.shape
    zc = jnp.zeros((H, 1, C), x3d.dtype)
    xw = jnp.concatenate([zc, x3d, zc], axis=1)          # (H, W+2, C)
    zr = jnp.zeros((1, W + 2, C), x3d.dtype)
    return jnp.concatenate([zr, xw, zr], axis=0)         # (H+2, W+2, C)


def _im2col3x3(xpad, Ho, Wo):
    """(Ho+2, Wo+2, C) padded value -> (Ho*Wo, 9*C) im2col matrix (stride 1)."""
    C = xpad.shape[-1]
    cols = []
    for kh in range(3):
        for kw in range(3):
            cols.append(xpad[kh:kh + Ho, kw:kw + Wo, :].reshape(Ho * Wo, C))
    return jnp.concatenate(cols, axis=-1)


def _mm(x, w_ref, b, act=None):
    """bf16 MXU matmul, f32 accumulation, f32 epilogue (bias + optional relu)."""
    acc = jnp.dot(x.astype(jnp.bfloat16), w_ref[...],
                  preferred_element_type=jnp.float32) + b
    if act == "relu":
        acc = jnp.maximum(acc, 0.0)
    return acc


# ----------------------------------------------------------------------------
# Kernel 1: fused backbone stage 1 (conv1 + basic block + fused residual relu)
# ----------------------------------------------------------------------------
def _backbone_stage1_kernel(x_ref, w1_ref, b1_ref, wa_ref, ba_ref,
                            wb_ref, bb_ref, h2p_ref):
    xp = _pad1_hw(x_ref[...])                                             # (18,18,3)
    h1 = _mm(_im2col3x3(xp, H_IN, W_IN), w1_ref, b1_ref[...], "relu")     # (256,16)
    hap = _pad1_hw(h1.reshape(H_IN, W_IN, C1))
    ha = _mm(_im2col3x3(hap, H_IN, W_IN), wa_ref, ba_ref[...], "relu")
    hbp = _pad1_hw(ha.reshape(H_IN, W_IN, C1))
    hb = _mm(_im2col3x3(hbp, H_IN, W_IN), wb_ref, bb_ref[...], None)
    h2 = jnp.maximum(hb + h1, 0.0)                    # fused residual add + relu
    # Emit h2 already zero-padded by 1 so the wrapper's stride-2 im2col is a
    # pure strided slice of this single output.
    h2p_ref[...] = _pad1_hw(h2.reshape(H_IN, W_IN, C1))                   # (18,18,16)


# ----------------------------------------------------------------------------
# Kernel 2: stride-2 downsample conv + RPN 3x3 conv + fused lane-dense heads
# ----------------------------------------------------------------------------
def _rpn_stage2_kernel(colsd_ref, wd_ref, bd_ref, wr_ref, br_ref,
                       wh_ref, bh_ref, heads_ref):
    fd = _mm(colsd_ref[...], wd_ref, bd_ref[...], "relu")                 # (64,32)
    fdp = _pad1_hw(fd.reshape(HF, WF, C2))                                # (10,10,32)
    r = _mm(_im2col3x3(fdp, HF, WF), wr_ref, br_ref[...], "relu")         # (64,32)
    heads = _mm(r, wh_ref, bh_ref[...], None)                             # (64,128)
    lane = jax.lax.broadcasted_iota(jnp.int32, heads.shape, 1)
    # sigmoid only on the score lanes (first A columns of the fused head)
    heads_ref[...] = jnp.where(lane < A, jax.nn.sigmoid(heads), heads)


# ----------------------------------------------------------------------------
# Kernel 3: fmap2roi decode + score thresholding + greedy NMS (lane-major)
# ----------------------------------------------------------------------------
def _decode_nms_kernel(order_ref, pred_ref, score_ref, anc_ref,
                       boxes_ref, wh_ref, valid_ref, keep_ref,
                       *, sx, sy, score_threshold, iou_threshold):
    # ---- box decode: attributes on sublanes, NPAD anchors on lanes ----------
    p = pred_ref[...]
    a = anc_ref[...]
    pcx, pcy, pw, ph = p[0:1, :], p[1:2, :], p[2:3, :], p[3:4, :]
    gx, gy, aw, ah = a[0:1, :], a[1:2, :], a[2:3, :], a[3:4, :]
    cx = (gx + pcx) * sx
    cy = (gy + pcy) * sy
    w = aw * jnp.exp(jnp.minimum(pw, BOX_CLAMP))      # clamped log-size deltas
    h = ah * jnp.exp(jnp.minimum(ph, BOX_CLAMP))
    x1 = cx - 0.5 * w
    y1 = cy - 0.5 * h
    x2 = cx + 0.5 * w
    y2 = cy + 0.5 * h
    boxes_ref[...] = jnp.concatenate([x1, y1, x2, y2], axis=0)            # (4,NPAD)
    wh_ref[...] = jnp.concatenate([w, h], axis=0)                         # (2,NPAD)

    # ---- score thresholding (fixed N + mask) ---------------------------------
    valid = score_ref[...] > score_threshold                              # (1,NPAD)
    valid_ref[...] = valid.astype(jnp.float32)

    # ---- greedy NMS: iterate score order (SMEM), vectorized row suppression --
    area = w * h
    coords = jnp.concatenate([x1, y1, x2, y2, area], axis=0)              # (5,NPAD)
    lane = jax.lax.broadcasted_iota(jnp.int32, (1, NPAD), 1)

    def body(t, keep):
        i = order_ref[t]                                # scalar anchor id from SMEM
        mf = (lane == i).astype(jnp.float32)            # one-hot (1,NPAD)
        sel = jnp.sum(coords * mf, axis=1, keepdims=True)        # (5,1) candidate
        x1i, y1i = sel[0:1, :], sel[1:2, :]
        x2i, y2i, ai = sel[2:3, :], sel[3:4, :], sel[4:5, :]
        iw = jnp.maximum(jnp.minimum(x2, x2i) - jnp.maximum(x1, x1i), 0.0)
        ih = jnp.maximum(jnp.minimum(y2, y2i) - jnp.maximum(y1, y1i), 0.0)
        inter = iw * ih
        iou_row = inter / (area + ai - inter + 1e-8)              # (1,NPAD)
        sup = jnp.max(jnp.where(keep > 0.5, iou_row, 0.0), axis=1, keepdims=True)
        keep_i = (sup <= iou_threshold).astype(jnp.float32)       # (1,1)
        return jnp.where((lane == i) & valid, keep_i, keep)

    keep = jax.lax.fori_loop(0, NPAD, body, jnp.zeros((1, NPAD), jnp.float32))
    keep_ref[...] = keep


# ----------------------------------------------------------------------------
# Deterministic synthetic parameters (structure mirrors the PyTorch module)
# ----------------------------------------------------------------------------
def _winit(key, shape, scale=0.1):
    return scale * jax.random.normal(key, shape, jnp.float32)


def init_params(key, num_anchors=A):
    ks = jax.random.split(key, 8)
    na = num_anchors
    return {
        # backbone (abbreviated ResNet34-style: stem + basic block + downsample)
        "conv1_w": _winit(ks[0], (9 * C_IN, C1)), "conv1_b": jnp.zeros((C1,), jnp.float32),
        "blk_a_w": _winit(ks[1], (9 * C1, C1)), "blk_a_b": jnp.zeros((C1,), jnp.float32),
        "blk_b_w": _winit(ks[2], (9 * C1, C1)), "blk_b_b": jnp.zeros((C1,), jnp.float32),
        "down_w": _winit(ks[3], (9 * C1, C2)), "down_b": jnp.zeros((C2,), jnp.float32),
        # RPN
        "rpn_w": _winit(ks[4], (9 * C2, C2)), "rpn_b": jnp.zeros((C2,), jnp.float32),
        "score_w": _winit(ks[5], (C2, na)), "score_b": jnp.zeros((na,), jnp.float32),
        "ctr_w": _winit(ks[6], (C2, 2 * na)), "ctr_b": jnp.zeros((2 * na,), jnp.float32),
        "size_w": _winit(ks[7], (C2, 2 * na)), "size_b": jnp.zeros((2 * na,), jnp.float32),
    }


def _full_spec(shape):
    n = len(shape)
    return pl.BlockSpec(shape, lambda i: (0,) * n)


# ----------------------------------------------------------------------------
# Forward pass
# ----------------------------------------------------------------------------
def detector_forward(params, x_nchw, iou_threshold=0.5, score_threshold=0.7):
    # NCHW (PyTorch) -> NHWC, batch squeezed (fmap2roi squeezes batch => B == 1).
    x = jnp.transpose(x_nchw[0], (1, 2, 0)).astype(jnp.float32)           # (16,16,3)

    bf, f32 = jnp.bfloat16, jnp.float32
    as_w = lambda name: params[name].astype(bf)
    as_b = lambda name: params[name].reshape(1, -1).astype(f32)

    # --- kernel 1: fused backbone stage 1 (weights + activations in VMEM) ----
    stage1 = pl.pallas_call(
        _backbone_stage1_kernel,
        out_shape=jax.ShapeDtypeStruct((H_IN + 2, W_IN + 2, C1), f32),
        grid=(1,),
        in_specs=[_full_spec((H_IN, W_IN, C_IN)),
                  _full_spec((9 * C_IN, C1)), _full_spec((1, C1)),
                  _full_spec((9 * C1, C1)), _full_spec((1, C1)),
                  _full_spec((9 * C1, C1)), _full_spec((1, C1))],
        out_specs=_full_spec((H_IN + 2, W_IN + 2, C1)),
        compiler_params=pltpu.CompilerParams(dimension_semantics=("arbitrary",)),
        cost_estimate=pl.CostEstimate(
            flops=2 * 256 * (27 * C1 + 2 * 144 * C1),
            transcendentals=0, bytes_accessed=40_000),
    )(x, as_w("conv1_w"), as_b("conv1_b"), as_w("blk_a_w"), as_b("blk_a_b"),
      as_w("blk_b_w"), as_b("blk_b_b"))

    # --- stride-2 im2col of the (pre-padded) stage-1 output (layout plumbing) -
    taps = [stage1[kh:kh + 2 * HF:2, kw:kw + 2 * WF:2, :]
            for kh in range(3) for kw in range(3)]
    cols_down = jnp.concatenate(taps, axis=-1).reshape(HF * WF, 9 * C1).astype(bf)

    # fused lane-dense head weight: [score(3) | ctr(6) | size(6) | zero-pad->128]
    w_heads = jnp.concatenate(
        [params["score_w"], params["ctr_w"], params["size_w"]], axis=1)
    w_heads = jnp.pad(w_heads, ((0, 0), (0, HEAD_PAD - N_HEAD))).astype(bf)
    b_heads = jnp.concatenate(
        [params["score_b"], params["ctr_b"], params["size_b"]])
    b_heads = jnp.pad(b_heads, (0, HEAD_PAD - N_HEAD)).reshape(1, -1).astype(f32)

    # --- kernel 2: downsample conv + RPN conv + fused heads -------------------
    heads = pl.pallas_call(
        _rpn_stage2_kernel,
        out_shape=jax.ShapeDtypeStruct((HF * WF, HEAD_PAD), f32),
        grid=(1,),
        in_specs=[_full_spec((HF * WF, 9 * C1)),
                  _full_spec((9 * C1, C2)), _full_spec((1, C2)),
                  _full_spec((9 * C2, C2)), _full_spec((1, C2)),
                  _full_spec((C2, HEAD_PAD)), _full_spec((1, HEAD_PAD))],
        out_specs=_full_spec((HF * WF, HEAD_PAD)),
        compiler_params=pltpu.CompilerParams(dimension_semantics=("arbitrary",)),
        cost_estimate=pl.CostEstimate(
            flops=2 * 64 * (144 * C2 + 288 * C2 + C2 * HEAD_PAD),
            transcendentals=64 * HEAD_PAD, bytes_accessed=90_000),
    )(cols_down, as_w("down_w"), as_b("down_b"), as_w("rpn_w"), as_b("rpn_b"),
      w_heads, b_heads)

    # --- unpack fused head -> lane-major per-anchor rows (order: h, w, anchor) -
    s_flat = heads[:, 0:A].reshape(-1)                                    # (192,)
    pcx = heads[:, A:2 * A].reshape(-1)
    pcy = heads[:, 2 * A:3 * A].reshape(-1)
    pw_ = heads[:, 3 * A:4 * A].reshape(-1)
    ph_ = heads[:, 4 * A:5 * A].reshape(-1)
    pred = jnp.stack([pcx, pcy, pw_, ph_], axis=0)                        # (4,192)
    pred = jnp.pad(pred, ((0, 0), (0, NPAD - N_ANCH)))                    # (4,256)
    scores_row = jnp.pad(s_flat, (0, NPAD - N_ANCH)).reshape(1, NPAD)

    # constant anchor grid / scales (trace-time numpy constants).
    # TODO(synk): aspect-ratio anchors of the original RPN not modelled (square).
    n = np.arange(NPAD)
    in_range = (n < N_ANCH).astype(np.float32)
    gx = ((n // A) % WF + 0.5) * in_range
    gy = ((n // (A * WF)) + 0.5) * in_range
    aw = np.array([2.0, 4.0, 8.0], np.float32)[n % A] * in_range
    anchors = jnp.asarray(np.stack([gx, gy, aw, aw], 0), dtype=f32)       # (4,256)

    order = jnp.argsort(-scores_row[0]).astype(jnp.int32)                 # (256,)
    sx, sy = float(W_IN) / WF, float(H_IN) / HF

    # --- kernel 3: fmap2roi decode + score thresholding + greedy NMS ----------
    boxes_l, wh_l, valid_f, keep_f = pl.pallas_call(
        functools.partial(_decode_nms_kernel, sx=sx, sy=sy,
                          score_threshold=float(score_threshold),
                          iou_threshold=float(iou_threshold)),
        out_shape=(jax.ShapeDtypeStruct((4, NPAD), f32),
                   jax.ShapeDtypeStruct((2, NPAD), f32),
                   jax.ShapeDtypeStruct((1, NPAD), f32),
                   jax.ShapeDtypeStruct((1, NPAD), f32)),
        grid_spec=pltpu.PrefetchScalarGridSpec(
            num_scalar_prefetch=1,
            grid=(1,),
            in_specs=[pl.BlockSpec((4, NPAD), lambda i, o: (0, 0)),
                      pl.BlockSpec((1, NPAD), lambda i, o: (0, 0)),
                      pl.BlockSpec((4, NPAD), lambda i, o: (0, 0))],
            out_specs=[pl.BlockSpec((4, NPAD), lambda i, o: (0, 0)),
                       pl.BlockSpec((2, NPAD), lambda i, o: (0, 0)),
                       pl.BlockSpec((1, NPAD), lambda i, o: (0, 0)),
                       pl.BlockSpec((1, NPAD), lambda i, o: (0, 0))]),
        compiler_params=pltpu.CompilerParams(dimension_semantics=("arbitrary",)),
    )(order, pred, scores_row, anchors)

    boxes = boxes_l[:, :N_ANCH].T                      # (192,4) xyxy image coords
    wh = wh_l[:, :N_ANCH].T                            # (192,2)
    valid = valid_f[0, :N_ANCH] > 0.5
    keep = keep_f[0, :N_ANCH] > 0.5

    denormalized_predictions = (s_flat, boxes, wh)
    score_thresholded_predictions = (jnp.where(valid, s_flat, 0.0), boxes, wh, valid)
    supressed_predictions = (jnp.where(keep, s_flat, 0.0), boxes, wh, keep)
    # train_flag=False, get_feature_map_flag=False -> predictions / feature_map
    # are never returned, so they are not materialized at all.
    return (denormalized_predictions, score_thresholded_predictions,
            supressed_predictions)


# ----------------------------------------------------------------------------
if __name__ == "__main__":
    key = jax.random.PRNGKey(0)
    # B=1 (fmap2roi squeezes batch, i.e. single-image inference), RGB 16x16.
    x = jax.random.normal(key, (1, 3, 16, 16), jnp.float32)
    params = init_params(jax.random.PRNGKey(42))

    fwd = jax.jit(detector_forward)
    out = fwd(params, x)
    jax.block_until_ready(out)

    denorm, thresh, nms_out = out
    assert denorm[0].shape == (N_ANCH,)
    assert denorm[1].shape == (N_ANCH, 4)
    assert nms_out[3].dtype == jnp.bool_
    print("KERNEL_OK")
</pallas_src>

<mosaic_0001>
module attributes {stable_mosaic.version = 11 : i64} {
  func.func @_backbone_stage1_kernel(%arg0: i32, %arg1: memref<16x16x3xf32, #tpu.memory_space<vmem>>, %arg2: memref<27x16xbf16, #tpu.memory_space<vmem>>, %arg3: memref<1x16xf32, #tpu.memory_space<vmem>>, %arg4: memref<144x16xbf16, #tpu.memory_space<vmem>>, %arg5: memref<1x16xf32, #tpu.memory_space<vmem>>, %arg6: memref<144x16xbf16, #tpu.memory_space<vmem>>, %arg7: memref<1x16xf32, #tpu.memory_space<vmem>>, %arg8: memref<18x18x16xf32, #tpu.memory_space<vmem>>) attributes {dimension_semantics = [#tpu.dimension_semantics<arbitrary>], iteration_bounds = array<i64: 1>, scalar_prefetch = 0 : i64, scratch_operands = 0 : i64, tpu.core_type = #tpu.core_type<tc>, window_params = [{pipeline_mode = #tpu.pipeline_mode<synchronous>, transform_indices = @transform_0, window_bounds = array<i64: 16, 16, 3>}, {pipeline_mode = #tpu.pipeline_mode<synchronous>, transform_indices = @transform_1, window_bounds = array<i64: 27, 16>}, {pipeline_mode = #tpu.pipeline_mode<synchronous>, transform_indices = @transform_2, window_bounds = array<i64: 1, 16>}, {pipeline_mode = #tpu.pipeline_mode<synchronous>, transform_indices = @transform_3, window_bounds = array<i64: 144, 16>}, {pipeline_mode = #tpu.pipeline_mode<synchronous>, transform_indices = @transform_4, window_bounds = array<i64: 1, 16>}, {pipeline_mode = #tpu.pipeline_mode<synchronous>, transform_indices = @transform_5, window_bounds = array<i64: 144, 16>}, {pipeline_mode = #tpu.pipeline_mode<synchronous>, transform_indices = @transform_6, window_bounds = array<i64: 1, 16>}, {pipeline_mode = #tpu.pipeline_mode<synchronous>, transform_indices = @transform_7, window_bounds = array<i64: 18, 18, 16>}]} {
    %c0 = arith.constant 0 : index
    %c0_0 = arith.constant 0 : index
    %c0_1 = arith.constant 0 : index
    %0 = vector.load %arg1[%c0, %c0_0, %c0_1] : memref<16x16x3xf32, #tpu.memory_space<vmem>>, vector<16x16x3xf32>
    %cst = arith.constant 0.000000e+00 : f32
    %1 = vector.broadcast %cst : f32 to vector<16x1x3xf32>
    %2 = tpu.concatenate %1, %0, %1 in 1 : vector<16x1x3xf32>, vector<16x16x3xf32>, vector<16x1x3xf32> -> vector<16x18x3xf32>
    %cst_2 = arith.constant 0.000000e+00 : f32
    %3 = vector.broadcast %cst_2 : f32 to vector<1x18x3xf32>
    %4 = tpu.concatenate %3, %2, %3 in 0 : vector<1x18x3xf32>, vector<16x18x3xf32>, vector<1x18x3xf32> -> vector<18x18x3xf32>
    %5 = vector.extract_strided_slice %4 {offsets = [0, 0, 0], sizes = [16, 16, 3], strides = [1, 1, 1]} : vector<18x18x3xf32> to vector<16x16x3xf32>
    %6 = vector.shape_cast %5 : vector<16x16x3xf32> to vector<256x3xf32>
    %7 = vector.extract_strided_slice %4 {offsets = [0, 1, 0], sizes = [16, 16, 3], strides = [1, 1, 1]} : vector<18x18x3xf32> to vector<16x16x3xf32>
    %8 = vector.shape_cast %7 : vector<16x16x3xf32> to vector<256x3xf32>
    %9 = vector.extract_strided_slice %4 {offsets = [0, 2, 0], sizes = [16, 16, 3], strides = [1, 1, 1]} : vector<18x18x3xf32> to vector<16x16x3xf32>
    %10 = vector.shape_cast %9 : vector<16x16x3xf32> to vector<256x3xf32>
    %11 = vector.extract_strided_slice %4 {offsets = [1, 0, 0], sizes = [16, 16, 3], strides = [1, 1, 1]} : vector<18x18x3xf32> to vector<16x16x3xf32>
    %12 = vector.shape_cast %11 : vector<16x16x3xf32> to vector<256x3xf32>
    %13 = vector.extract_strided_slice %4 {offsets = [1, 1, 0], sizes = [16, 16, 3], strides = [1, 1, 1]} : vector<18x18x3xf32> to vector<16x16x3xf32>
    %14 = vector.shape_cast %13 : vector<16x16x3xf32> to vector<256x3xf32>
    %15 = vector.extract_strided_slice %4 {offsets = [1, 2, 0], sizes = [16, 16, 3], strides = [1, 1, 1]} : vector<18x18x3xf32> to vector<16x16x3xf32>
    %16 = vector.shape_cast %15 : vector<16x16x3xf32> to vector<256x3xf32>
    %17 = vector.extract_strided_slice %4 {offsets = [2, 0, 0], sizes = [16, 16, 3], strides = [1, 1, 1]} : vector<18x18x3xf32> to vector<16x16x3xf32>
    %18 = vector.shape_cast %17 : vector<16x16x3xf32> to vector<256x3xf32>
    %19 = vector.extract_strided_slice %4 {offsets = [2, 1, 0], sizes = [16, 16, 3], strides = [1, 1, 1]} : vector<18x18x3xf32> to vector<16x16x3xf32>
    %20 = vector.shape_cast %19 : vector<16x16x3xf32> to vector<256x3xf32>
    %21 = vector.extract_strided_slice %4 {offsets = [2, 2, 0], sizes = [16, 16, 3], strides = [1, 1, 1]} : vector<18x18x3xf32> to vector<16x16x3xf32>
    %22 = vector.shape_cast %21 : vector<16x16x3xf32> to vector<256x3xf32>
    %23 = tpu.concatenate %6, %8, %10, %12, %14, %16, %18, %20, %22 in 1 : vector<256x3xf32>, vector<256x3xf32>, vector<256x3xf32>, vector<256x3xf32>, vector<256x3xf32>, vector<256x3xf32>, vector<256x3xf32>, vector<256x3xf32>, vector<256x3xf32> -> vector<256x27xf32>
    %c0_3 = arith.constant 0 : index
    %c0_4 = arith.constant 0 : index
    %24 = vector.load %arg3[%c0_3, %c0_4] : memref<1x16xf32, #tpu.memory_space<vmem>>, vector<1x16xf32>
    %25 = arith.truncf %23 : vector<256x27xf32> to vector<256x27xbf16>
    %c0_5 = arith.constant 0 : index
    %c0_6 = arith.constant 0 : index
    %26 = vector.load %arg2[%c0_5, %c0_6] : memref<27x16xbf16, #tpu.memory_space<vmem>>, vector<27x16xbf16>
    %cst_7 = arith.constant dense<0.000000e+00> : vector<256x16xf32>
    %27 = tpu.matmul %25, %26, %cst_7 {dimension_numbers = #tpu.dot_dimension_numbers<[1], [0], [0], [1], [0, 0, 1, 1], [], []>} : vector<256x27xbf16>, vector<27x16xbf16>, vector<256x16xf32> -> vector<256x16xf32>
    %28 = vector.broadcast %24 : vector<1x16xf32> to vector<256x16xf32>
    %29 = arith.addf %27, %28 : vector<256x16xf32>
    %cst_8 = arith.constant 0.000000e+00 : f32
    %30 = vector.broadcast %cst_8 : f32 to vector<256x16xf32>
    %31 = arith.maximumf %29, %30 : vector<256x16xf32>
    %32 = vector.shape_cast %31 : vector<256x16xf32> to vector<16x16x16xf32>
    %cst_9 = arith.constant 0.000000e+00 : f32
    %33 = vector.broadcast %cst_9 : f32 to vector<16x1x16xf32>
    %34 = tpu.concatenate %33, %32, %33 in 1 : vector<16x1x16xf32>, vector<16x16x16xf32>, vector<16x1x16xf32> -> vector<16x18x16xf32>
    %cst_10 = arith.constant 0.000000e+00 : f32
    %35 = vector.broadcast %cst_10 : f32 to vector<1x18x16xf32>
    %36 = tpu.concatenate %35, %34, %35 in 0 : vector<1x18x16xf32>, vector<16x18x16xf32>, vector<1x18x16xf32> -> vector<18x18x16xf32>
    %37 = vector.extract_strided_slice %36 {offsets = [0, 0, 0], sizes = [16, 16, 16], strides = [1, 1, 1]} : vector<18x18x16xf32> to vector<16x16x16xf32>
    %38 = vector.shape_cast %37 : vector<16x16x16xf32> to vector<256x16xf32>
    %39 = vector.extract_strided_slice %36 {offsets = [0, 1, 0], sizes = [16, 16, 16], strides = [1, 1, 1]} : vector<18x18x16xf32> to vector<16x16x16xf32>
    %40 = vector.shape_cast %39 : vector<16x16x16xf32> to vector<256x16xf32>
    %41 = vector.extract_strided_slice %36 {offsets = [0, 2, 0], sizes = [16, 16, 16], strides = [1, 1, 1]} : vector<18x18x16xf32> to vector<16x16x16xf32>
    %42 = vector.shape_cast %41 : vector<16x16x16xf32> to vector<256x16xf32>
    %43 = vector.extract_strided_slice %36 {offsets = [1, 0, 0], sizes = [16, 16, 16], strides = [1, 1, 1]} : vector<18x18x16xf32> to vector<16x16x16xf32>
    %44 = vector.shape_cast %43 : vector<16x16x16xf32> to vector<256x16xf32>
    %45 = vector.extract_strided_slice %36 {offsets = [1, 1, 0], sizes = [16, 16, 16], strides = [1, 1, 1]} : vector<18x18x16xf32> to vector<16x16x16xf32>
    %46 = vector.shape_cast %45 : vector<16x16x16xf32> to vector<256x16xf32>
    %47 = vector.extract_strided_slice %36 {offsets = [1, 2, 0], sizes = [16, 16, 16], strides = [1, 1, 1]} : vector<18x18x16xf32> to vector<16x16x16xf32>
    %48 = vector.shape_cast %47 : vector<16x16x16xf32> to vector<256x16xf32>
    %49 = vector.extract_strided_slice %36 {offsets = [2, 0, 0], sizes = [16, 16, 16], strides = [1, 1, 1]} : vector<18x18x16xf32> to vector<16x16x16xf32>
    %50 = vector.shape_cast %49 : vector<16x16x16xf32> to vector<256x16xf32>
    %51 = vector.extract_strided_slice %36 {offsets = [2, 1, 0], sizes = [16, 16, 16], strides = [1, 1, 1]} : vector<18x18x16xf32> to vector<16x16x16xf32>
    %52 = vector.shape_cast %51 : vector<16x16x16xf32> to vector<256x16xf32>
    %53 = vector.extract_strided_slice %36 {offsets = [2, 2, 0], sizes = [16, 16, 16], strides = [1, 1, 1]} : vector<18x18x16xf32> to vector<16x16x16xf32>
    %54 = vector.shape_cast %53 : vector<16x16x16xf32> to vector<256x16xf32>
    %55 = tpu.concatenate %38, %40, %42, %44, %46, %48, %50, %52, %54 in 1 : vector<256x16xf32>, vector<256x16xf32>, vector<256x16xf32>, vector<256x16xf32>, vector<256x16xf32>, vector<256x16xf32>, vector<256x16xf32>, vector<256x16xf32>, vector<256x16xf32> -> vector<256x144xf32>
    %c0_11 = arith.constant 0 : index
    %c0_12 = arith.constant 0 : index
    %56 = vector.load %arg5[%c0_11, %c0_12] : memref<1x16xf32, #tpu.memory_space<vmem>>, vector<1x16xf32>
    %57 = arith.truncf %55 : vector<256x144xf32> to vector<256x144xbf16>
    %c0_13 = arith.constant 0 : index
    %c0_14 = arith.constant 0 : index
    %58 = vector.load %arg4[%c0_13, %c0_14] : memref<144x16xbf16, #tpu.memory_space<vmem>>, vector<144x16xbf16>
    %cst_15 = arith.constant dense<0.000000e+00> : vector<256x16xf32>
    %59 = tpu.matmul %57, %58, %cst_15 {dimension_numbers = #tpu.dot_dimension_numbers<[1], [0], [0], [1], [0, 0, 1, 1], [], []>} : vector<256x144xbf16>, vector<144x16xbf16>, vector<256x16xf32> -> vector<256x16xf32>
    %60 = vector.broadcast %56 : vector<1x16xf32> to vector<256x16xf32>
    %61 = arith.addf %59, %60 : vector<256x16xf32>
    %cst_16 = arith.constant 0.000000e+00 : f32
    %62 = vector.broadcast %cst_16 : f32 to vector<256x16xf32>
    %63 = arith.maximumf %61, %62 : vector<256x16xf32>
    %64 = vector.shape_cast %63 : vector<256x16xf32> to vector<16x16x16xf32>
    %cst_17 = arith.constant 0.000000e+00 : f32
    %65 = vector.broadcast %cst_17 : f32 to vector<16x1x16xf32>
    %66 = tpu.concatenate %65, %64, %65 in 1 : vector<16x1x16xf32>, vector<16x16x16xf32>, vector<16x1x16xf32> -> vector<16x18x16xf32>
    %cst_18 = arith.constant 0.000000e+00 : f32
    %67 = vector.broadcast %cst_18 : f32 to vector<1x18x16xf32>
    %68 = tpu.concatenate %67, %66, %67 in 0 : vector<1x18x16xf32>, vector<16x18x16xf32>, vector<1x18x16xf32> -> vector<18x18x16xf32>
    %69 = vector.extract_strided_slice %68 {offsets = [0, 0, 0], sizes = [16, 16, 16], strides = [1, 1, 1]} : vector<18x18x16xf32> to vector<16x16x16xf32>
    %70 = vector.shape_cast %69 : vector<16x16x16xf32> to vector<256x16xf32>
    %71 = vector.extract_strided_slice %68 {offsets = [0, 1, 0], sizes = [16, 16, 16], strides = [1, 1, 1]} : vector<18x18x16xf32> to vector<16x16x16xf32>
    %72 = vector.shape_cast %71 : vector<16x16x16xf32> to vector<256x16xf32>
    %73 = vector.extract_strided_slice %68 {offsets = [0, 2, 0], sizes = [16, 16, 16], strides = [1, 1, 1]} : vector<18x18x16xf32> to vector<16x16x16xf32>
    %74 = vector.shape_cast %73 : vector<16x16x16xf32> to vector<256x16xf32>
    %75 = vector.extract_strided_slice %68 {offsets = [1, 0, 0], sizes = [16, 16, 16], strides = [1, 1, 1]} : vector<18x18x16xf32> to vector<16x16x16xf32>
    %76 = vector.shape_cast %75 : vector<16x16x16xf32> to vector<256x16xf32>
    %77 = vector.extract_strided_slice %68 {offsets = [1, 1, 0], sizes = [16, 16, 16], strides = [1, 1, 1]} : vector<18x18x16xf32> to vector<16x16x16xf32>
    %78 = vector.shape_cast %77 : vector<16x16x16xf32> to vector<256x16xf32>
    %79 = vector.extract_strided_slice %68 {offsets = [1, 2, 0], sizes = [16, 16, 16], strides = [1, 1, 1]} : vector<18x18x16xf32> to vector<16x16x16xf32>
    %80 = vector.shape_cast %79 : vector<16x16x16xf32> to vector<256x16xf32>
    %81 = vector.extract_strided_slice %68 {offsets = [2, 0, 0], sizes = [16, 16, 16], strides = [1, 1, 1]} : vector<18x18x16xf32> to vector<16x16x16xf32>
    %82 = vector.shape_cast %81 : vector<16x16x16xf32> to vector<256x16xf32>
    %83 = vector.extract_strided_slice %68 {offsets = [2, 1, 0], sizes = [16, 16, 16], strides = [1, 1, 1]} : vector<18x18x16xf32> to vector<16x16x16xf32>
    %84 = vector.shape_cast %83 : vector<16x16x16xf32> to vector<256x16xf32>
    %85 = vector.extract_strided_slice %68 {offsets = [2, 2, 0], sizes = [16, 16, 16], strides = [1, 1, 1]} : vector<18x18x16xf32> to vector<16x16x16xf32>
    %86 = vector.shape_cast %85 : vector<16x16x16xf32> to vector<256x16xf32>
    %87 = tpu.concatenate %70, %72, %74, %76, %78, %80, %82, %84, %86 in 1 : vector<256x16xf32>, vector<256x16xf32>, vector<256x16xf32>, vector<256x16xf32>, vector<256x16xf32>, vector<256x16xf32>, vector<256x16xf32>, vector<256x16xf32>, vector<256x16xf32> -> vector<256x144xf32>
    %c0_19 = arith.constant 0 : index
    %c0_20 = arith.constant 0 : index
    %88 = vector.load %arg7[%c0_19, %c0_20] : memref<1x16xf32, #tpu.memory_space<vmem>>, vector<1x16xf32>
    %89 = arith.truncf %87 : vector<256x144xf32> to vector<256x144xbf16>
    %c0_21 = arith.constant 0 : index
    %c0_22 = arith.constant 0 : index
    %90 = vector.load %arg6[%c0_21, %c0_22] : memref<144x16xbf16, #tpu.memory_space<vmem>>, vector<144x16xbf16>
    %cst_23 = arith.constant dense<0.000000e+00> : vector<256x16xf32>
    %91 = tpu.matmul %89, %90, %cst_23 {dimension_numbers = #tpu.dot_dimension_numbers<[1], [0], [0], [1], [0, 0, 1, 1], [], []>} : vector<256x144xbf16>, vector<144x16xbf16>, vector<256x16xf32> -> vector<256x16xf32>
    %92 = vector.broadcast %88 : vector<1x16xf32> to vector<256x16xf32>
    %93 = arith.addf %91, %92 : vector<256x16xf32>
    %94 = arith.addf %93, %31 : vector<256x16xf32>
    %cst_24 = arith.constant 0.000000e+00 : f32
    %95 = vector.broadcast %cst_24 : f32 to vector<256x16xf32>
    %96 = arith.maximumf %94, %95 : vector<256x16xf32>
    %97 = vector.shape_cast %96 : vector<256x16xf32> to vector<16x16x16xf32>
    %cst_25 = arith.constant 0.000000e+00 : f32
    %98 = vector.broadcast %cst_25 : f32 to vector<16x1x16xf32>
    %99 = tpu.concatenate %98, %97, %98 in 1 : vector<16x1x16xf32>, vector<16x16x16xf32>, vector<16x1x16xf32> -> vector<16x18x16xf32>
    %cst_26 = arith.constant 0.000000e+00 : f32
    %100 = vector.broadcast %cst_26 : f32 to vector<1x18x16xf32>
    %101 = tpu.concatenate %100, %99, %100 in 0 : vector<1x18x16xf32>, vector<16x18x16xf32>, vector<1x18x16xf32> -> vector<18x18x16xf32>
    %c0_27 = arith.constant 0 : index
    %c0_28 = arith.constant 0 : index
    %c0_29 = arith.constant 0 : index
    %102 = vector.load %arg8[%c0_27, %c0_28, %c0_29] : memref<18x18x16xf32, #tpu.memory_space<vmem>>, vector<18x18x16xf32>
    tpu.vector_store %arg8[%c0_27, %c0_28, %c0_29], %101 {strides = array<i32>} : memref<18x18x16xf32, #tpu.memory_space<vmem>>, vector<18x18x16xf32>,
    return
  }
  func.func @transform_0(%arg0: i32) -> (i32, i32, i32) {
    %c0_i32 = arith.constant 0 : i32
    %c0_i32_0 = arith.constant 0 : i32
    %c0_i32_1 = arith.constant 0 : i32
    %c0_i32_2 = arith.constant 0 : i32
    return %c0_i32, %c0_i32_0, %c0_i32_1 : i32, i32, i32
  }
  func.func @transform_1(%arg0: i32) -> (i32, i32) {
    %c0_i32 = arith.constant 0 : i32
    %c0_i32_0 = arith.constant 0 : i32
    %c0_i32_1 = arith.constant 0 : i32
    return %c0_i32, %c0_i32_0 : i32, i32
  }
  func.func @transform_2(%arg0: i32) -> (i32, i32) {
    %c0_i32 = arith.constant 0 : i32
    %c0_i32_0 = arith.constant 0 : i32
    %c0_i32_1 = arith.constant 0 : i32
    return %c0_i32, %c0_i32_0 : i32, i32
  }
  func.func @transform_3(%arg0: i32) -> (i32, i32) {
    %c0_i32 = arith.constant 0 : i32
    %c0_i32_0 = arith.constant 0 : i32
    %c0_i32_1 = arith.constant 0 : i32
    return %c0_i32, %c0_i32_0 : i32, i32
  }
  func.func @transform_4(%arg0: i32) -> (i32, i32) {
    %c0_i32 = arith.constant 0 : i32
    %c0_i32_0 = arith.constant 0 : i32
    %c0_i32_1 = arith.constant 0 : i32
    return %c0_i32, %c0_i32_0 : i32, i32
  }
  func.func @transform_5(%arg0: i32) -> (i32, i32) {
    %c0_i32 = arith.constant 0 : i32
    %c0_i32_0 = arith.constant 0 : i32
    %c0_i32_1 = arith.constant 0 : i32
    return %c0_i32, %c0_i32_0 : i32, i32
  }
  func.func @transform_6(%arg0: i32) -> (i32, i32) {
    %c0_i32 = arith.constant 0 : i32
    %c0_i32_0 = arith.constant 0 : i32
    %c0_i32_1 = arith.constant 0 : i32
    return %c0_i32, %c0_i32_0 : i32, i32
  }
  func.func @transform_7(%arg0: i32) -> (i32, i32, i32) {
    %c0_i32 = arith.constant 0 : i32
    %c0_i32_0 = arith.constant 0 : i32
    %c0_i32_1 = arith.constant 0 : i32
    %c0_i32_2 = arith.constant 0 : i32
    return %c0_i32, %c0_i32_0, %c0_i32_1 : i32, i32, i32
  }
}

module attributes {stable_mosaic.version = 11 : i64} {
  func.func @_rpn_stage2_kernel(%arg0: i32, %arg1: memref<64x144xbf16, #tpu.memory_space<vmem>>, %arg2: memref<144x32xbf16, #tpu.memory_space<vmem>>, %arg3: memref<1x32xf32, #tpu.memory_space<vmem>>, %arg4: memref<288x32xbf16, #tpu.memory_space<vmem>>, %arg5: memref<1x32xf32, #tpu.memory_space<vmem>>, %arg6: memref<32x128xbf16, #tpu.memory_space<vmem>>, %arg7: memref<1x128xf32, #tpu.memory_space<vmem>>, %arg8: memref<64x128xf32, #tpu.memory_space<vmem>>) attributes {dimension_semantics = [#tpu.dimension_semantics<arbitrary>], iteration_bounds = array<i64: 1>, scalar_prefetch = 0 : i64, scratch_operands = 0 : i64, tpu.core_type = #tpu.core_type<tc>, window_params = [{pipeline_mode = #tpu.pipeline_mode<synchronous>, transform_indices = @transform_0, window_bounds = array<i64: 64, 144>}, {pipeline_mode = #tpu.pipeline_mode<synchronous>, transform_indices = @transform_1, window_bounds = array<i64: 144, 32>}, {pipeline_mode = #tpu.pipeline_mode<synchronous>, transform_indices = @transform_2, window_bounds = array<i64: 1, 32>}, {pipeline_mode = #tpu.pipeline_mode<synchronous>, transform_indices = @transform_3, window_bounds = array<i64: 288, 32>}, {pipeline_mode = #tpu.pipeline_mode<synchronous>, transform_indices = @transform_4, window_bounds = array<i64: 1, 32>}, {pipeline_mode = #tpu.pipeline_mode<synchronous>, transform_indices = @transform_5, window_bounds = array<i64: 32, 128>}, {pipeline_mode = #tpu.pipeline_mode<synchronous>, transform_indices = @transform_6, window_bounds = array<i64: 1, 128>}, {pipeline_mode = #tpu.pipeline_mode<synchronous>, transform_indices = @transform_7, window_bounds = array<i64: 64, 128>}]} {
    %c0 = arith.constant 0 : index
    %c0_0 = arith.constant 0 : index
    %0 = vector.load %arg1[%c0, %c0_0] : memref<64x144xbf16, #tpu.memory_space<vmem>>, vector<64x144xbf16>
    %c0_1 = arith.constant 0 : index
    %c0_2 = arith.constant 0 : index
    %1 = vector.load %arg3[%c0_1, %c0_2] : memref<1x32xf32, #tpu.memory_space<vmem>>, vector<1x32xf32>
    %c0_3 = arith.constant 0 : index
    %c0_4 = arith.constant 0 : index
    %2 = vector.load %arg2[%c0_3, %c0_4] : memref<144x32xbf16, #tpu.memory_space<vmem>>, vector<144x32xbf16>
    %cst = arith.constant dense<0.000000e+00> : vector<64x32xf32>
    %3 = tpu.matmul %0, %2, %cst {dimension_numbers = #tpu.dot_dimension_numbers<[1], [0], [0], [1], [0, 0, 1, 1], [], []>} : vector<64x144xbf16>, vector<144x32xbf16>, vector<64x32xf32> -> vector<64x32xf32>
    %4 = vector.broadcast %1 : vector<1x32xf32> to vector<64x32xf32>
    %5 = arith.addf %3, %4 : vector<64x32xf32>
    %cst_5 = arith.constant 0.000000e+00 : f32
    %6 = vector.broadcast %cst_5 : f32 to vector<64x32xf32>
    %7 = arith.maximumf %5, %6 : vector<64x32xf32>
    %8 = vector.shape_cast %7 : vector<64x32xf32> to vector<8x8x32xf32>
    %cst_6 = arith.constant 0.000000e+00 : f32
    %9 = vector.broadcast %cst_6 : f32 to vector<8x1x32xf32>
    %10 = tpu.concatenate %9, %8, %9 in 1 : vector<8x1x32xf32>, vector<8x8x32xf32>, vector<8x1x32xf32> -> vector<8x10x32xf32>
    %cst_7 = arith.constant 0.000000e+00 : f32
    %11 = vector.broadcast %cst_7 : f32 to vector<1x10x32xf32>
    %12 = tpu.concatenate %11, %10, %11 in 0 : vector<1x10x32xf32>, vector<8x10x32xf32>, vector<1x10x32xf32> -> vector<10x10x32xf32>
    %13 = vector.extract_strided_slice %12 {offsets = [0, 0, 0], sizes = [8, 8, 32], strides = [1, 1, 1]} : vector<10x10x32xf32> to vector<8x8x32xf32>
    %14 = vector.shape_cast %13 : vector<8x8x32xf32> to vector<64x32xf32>
    %15 = vector.extract_strided_slice %12 {offsets = [0, 1, 0], sizes = [8, 8, 32], strides = [1, 1, 1]} : vector<10x10x32xf32> to vector<8x8x32xf32>
    %16 = vector.shape_cast %15 : vector<8x8x32xf32> to vector<64x32xf32>
    %17 = vector.extract_strided_slice %12 {offsets = [0, 2, 0], sizes = [8, 8, 32], strides = [1, 1, 1]} : vector<10x10x32xf32> to vector<8x8x32xf32>
    %18 = vector.shape_cast %17 : vector<8x8x32xf32> to vector<64x32xf32>
    %19 = vector.extract_strided_slice %12 {offsets = [1, 0, 0], sizes = [8, 8, 32], strides = [1, 1, 1]} : vector<10x10x32xf32> to vector<8x8x32xf32>
    %20 = vector.shape_cast %19 : vector<8x8x32xf32> to vector<64x32xf32>
    %21 = vector.extract_strided_slice %12 {offsets = [1, 1, 0], sizes = [8, 8, 32], strides = [1, 1, 1]} : vector<10x10x32xf32> to vector<8x8x32xf32>
    %22 = vector.shape_cast %21 : vector<8x8x32xf32> to vector<64x32xf32>
    %23 = vector.extract_strided_slice %12 {offsets = [1, 2, 0], sizes = [8, 8, 32], strides = [1, 1, 1]} : vector<10x10x32xf32> to vector<8x8x32xf32>
    %24 = vector.shape_cast %23 : vector<8x8x32xf32> to vector<64x32xf32>
    %25 = vector.extract_strided_slice %12 {offsets = [2, 0, 0], sizes = [8, 8, 32], strides = [1, 1, 1]} : vector<10x10x32xf32> to vector<8x8x32xf32>
    %26 = vector.shape_cast %25 : vector<8x8x32xf32> to vector<64x32xf32>
    %27 = vector.extract_strided_slice %12 {offsets = [2, 1, 0], sizes = [8, 8, 32], strides = [1, 1, 1]} : vector<10x10x32xf32> to vector<8x8x32xf32>
    %28 = vector.shape_cast %27 : vector<8x8x32xf32> to vector<64x32xf32>
    %29 = vector.extract_strided_slice %12 {offsets = [2, 2, 0], sizes = [8, 8, 32], strides = [1, 1, 1]} : vector<10x10x32xf32> to vector<8x8x32xf32>
    %30 = vector.shape_cast %29 : vector<8x8x32xf32> to vector<64x32xf32>
    %31 = tpu.concatenate %14, %16, %18, %20, %22, %24, %26, %28, %30 in 1 : vector<64x32xf32>, vector<64x32xf32>, vector<64x32xf32>, vector<64x32xf32>, vector<64x32xf32>, vector<64x32xf32>, vector<64x32xf32>, vector<64x32xf32>, vector<64x32xf32> -> vector<64x288xf32>
    %c0_8 = arith.constant 0 : index
    %c0_9 = arith.constant 0 : index
    %32 = vector.load %arg5[%c0_8, %c0_9] : memref<1x32xf32, #tpu.memory_space<vmem>>, vector<1x32xf32>
    %33 = arith.truncf %31 : vector<64x288xf32> to vector<64x288xbf16>
    %c0_10 = arith.constant 0 : index
    %c0_11 = arith.constant 0 : index
    %34 = vector.load %arg4[%c0_10, %c0_11] : memref<288x32xbf16, #tpu.memory_space<vmem>>, vector<288x32xbf16>
    %cst_12 = arith.constant dense<0.000000e+00> : vector<64x32xf32>
    %35 = tpu.matmul %33, %34, %cst_12 {dimension_numbers = #tpu.dot_dimension_numbers<[1], [0], [0], [1], [0, 0, 1, 1], [], []>} : vector<64x288xbf16>, vector<288x32xbf16>, vector<64x32xf32> -> vector<64x32xf32>
    %36 = vector.broadcast %32 : vector<1x32xf32> to vector<64x32xf32>
    %37 = arith.addf %35, %36 : vector<64x32xf32>
    %cst_13 = arith.constant 0.000000e+00 : f32
    %38 = vector.broadcast %cst_13 : f32 to vector<64x32xf32>
    %39 = arith.maximumf %37, %38 : vector<64x32xf32>
    %c0_14 = arith.constant 0 : index
    %c0_15 = arith.constant 0 : index
    %40 = vector.load %arg7[%c0_14, %c0_15] : memref<1x128xf32, #tpu.memory_space<vmem>>, vector<1x128xf32>
    %41 = arith.truncf %39 : vector<64x32xf32> to vector<64x32xbf16>
    %c0_16 = arith.constant 0 : index
    %c0_17 = arith.constant 0 : index
    %42 = vector.load %arg6[%c0_16, %c0_17] : memref<32x128xbf16, #tpu.memory_space<vmem>>, vector<32x128xbf16>
    %cst_18 = arith.constant dense<0.000000e+00> : vector<64x128xf32>
    %43 = tpu.matmul %41, %42, %cst_18 {dimension_numbers = #tpu.dot_dimension_numbers<[1], [0], [0], [1], [0, 0, 1, 1], [], []>} : vector<64x32xbf16>, vector<32x128xbf16>, vector<64x128xf32> -> vector<64x128xf32>
    %44 = vector.broadcast %40 : vector<1x128xf32> to vector<64x128xf32>
    %45 = arith.addf %43, %44 : vector<64x128xf32>
    %46 = tpu.iota {dimensions = array<i32: 1>} : vector<64x128xi32>
    %c3_i32 = arith.constant 3 : i32
    %47 = vector.broadcast %c3_i32 : i32 to vector<64x128xi32>
    %48 = arith.cmpi slt, %46, %47 : vector<64x128xi32>
    %49 = arith.negf %45 : vector<64x128xf32>
    %50 = math.exp %49 : vector<64x128xf32>
    %cst_19 = arith.constant 1.000000e+00 : f32
    %51 = vector.broadcast %cst_19 : f32 to vector<64x128xf32>
    %52 = arith.addf %51, %50 : vector<64x128xf32>
    %53 = arith.divf %51, %52 : vector<64x128xf32>
    %54 = arith.select %48, %53, %45 : vector<64x128xi1>, vector<64x128xf32>
    %c0_20 = arith.constant 0 : index
    %c0_21 = arith.constant 0 : index
    %55 = vector.load %arg8[%c0_20, %c0_21] : memref<64x128xf32, #tpu.memory_space<vmem>>, vector<64x128xf32>
    tpu.vector_store %arg8[%c0_20, %c0_21], %54 {strides = array<i32>} : memref<64x128xf32, #tpu.memory_space<vmem>>, vector<64x128xf32>,
    return
  }
  func.func @transform_0(%arg0: i32) -> (i32, i32) {
    %c0_i32 = arith.constant 0 : i32
    %c0_i32_0 = arith.constant 0 : i32
    %c0_i32_1 = arith.constant 0 : i32
    return %c0_i32, %c0_i32_0 : i32, i32
  }
  func.func @transform_1(%arg0: i32) -> (i32, i32) {
    %c0_i32 = arith.constant 0 : i32
    %c0_i32_0 = arith.constant 0 : i32
    %c0_i32_1 = arith.constant 0 : i32
    return %c0_i32, %c0_i32_0 : i32, i32
  }
  func.func @transform_2(%arg0: i32) -> (i32, i32) {
    %c0_i32 = arith.constant 0 : i32
    %c0_i32_0 = arith.constant 0 : i32
    %c0_i32_1 = arith.constant 0 : i32
    return %c0_i32, %c0_i32_0 : i32, i32
  }
  func.func @transform_3(%arg0: i32) -> (i32, i32) {
    %c0_i32 = arith.constant 0 : i32
    %c0_i32_0 = arith.constant 0 : i32
    %c0_i32_1 = arith.constant 0 : i32
    return %c0_i32, %c0_i32_0 : i32, i32
  }
  func.func @transform_4(%arg0: i32) -> (i32, i32) {
    %c0_i32 = arith.constant 0 : i32
    %c0_i32_0 = arith.constant 0 : i32
    %c0_i32_1 = arith.constant 0 : i32
    return %c0_i32, %c0_i32_0 : i32, i32
  }
  func.func @transform_5(%arg0: i32) -> (i32, i32) {
    %c0_i32 = arith.constant 0 : i32
    %c0_i32_0 = arith.constant 0 : i32
    %c0_i32_1 = arith.constant 0 : i32
    return %c0_i32, %c0_i32_0 : i32, i32
  }
  func.func @transform_6(%arg0: i32) -> (i32, i32) {
    %c0_i32 = arith.constant 0 : i32
    %c0_i32_0 = arith.constant 0 : i32
    %c0_i32_1 = arith.constant 0 : i32
    return %c0_i32, %c0_i32_0 : i32, i32
  }
  func.func @transform_7(%arg0: i32) -> (i32, i32) {
    %c0_i32 = arith.constant 0 : i32
    %c0_i32_0 = arith.constant 0 : i32
    %c0_i32_1 = arith.constant 0 : i32
    return %c0_i32, %c0_i32_0 : i32, i32
  }
}

module attributes {stable_mosaic.version = 11 : i64} {
  func.func @_decode_nms_kernel(%arg0: i32, %arg1: memref<256xi32, #tpu.memory_space<smem>>, %arg2: memref<4x256xf32, #tpu.memory_space<vmem>>, %arg3: memref<1x256xf32, #tpu.memory_space<vmem>>, %arg4: memref<4x256xf32, #tpu.memory_space<vmem>>, %arg5: memref<4x256xf32, #tpu.memory_space<vmem>>, %arg6: memref<2x256xf32, #tpu.memory_space<vmem>>, %arg7: memref<1x256xf32, #tpu.memory_space<vmem>>, %arg8: memref<1x256xf32, #tpu.memory_space<vmem>>) attributes {dimension_semantics = [#tpu.dimension_semantics<arbitrary>], iteration_bounds = array<i64: 1>, scalar_prefetch = 1 : i64, scratch_operands = 0 : i64, tpu.core_type = #tpu.core_type<tc>, window_params = [{pipeline_mode = #tpu.pipeline_mode<synchronous>, transform_indices = @transform_0, window_bounds = array<i64: 4, 256>}, {pipeline_mode = #tpu.pipeline_mode<synchronous>, transform_indices = @transform_1, window_bounds = array<i64: 1, 256>}, {pipeline_mode = #tpu.pipeline_mode<synchronous>, transform_indices = @transform_2, window_bounds = array<i64: 4, 256>}, {pipeline_mode = #tpu.pipeline_mode<synchronous>, transform_indices = @transform_3, window_bounds = array<i64: 4, 256>}, {pipeline_mode = #tpu.pipeline_mode<synchronous>, transform_indices = @transform_4, window_bounds = array<i64: 2, 256>}, {pipeline_mode = #tpu.pipeline_mode<synchronous>, transform_indices = @transform_5, window_bounds = array<i64: 1, 256>}, {pipeline_mode = #tpu.pipeline_mode<synchronous>, transform_indices = @transform_6, window_bounds = array<i64: 1, 256>}]} {
    %c0 = arith.constant 0 : index
    %c0_0 = arith.constant 0 : index
    %0 = vector.load %arg2[%c0, %c0_0] : memref<4x256xf32, #tpu.memory_space<vmem>>, vector<4x256xf32>
    %c0_1 = arith.constant 0 : index
    %c0_2 = arith.constant 0 : index
    %1 = vector.load %arg4[%c0_1, %c0_2] : memref<4x256xf32, #tpu.memory_space<vmem>>, vector<4x256xf32>
    %2 = vector.extract_strided_slice %0 {offsets = [0, 0], sizes = [1, 256], strides = [1, 1]} : vector<4x256xf32> to vector<1x256xf32>
    %3 = vector.extract_strided_slice %0 {offsets = [1, 0], sizes = [1, 256], strides = [1, 1]} : vector<4x256xf32> to vector<1x256xf32>
    %4 = vector.extract_strided_slice %0 {offsets = [2, 0], sizes = [1, 256], strides = [1, 1]} : vector<4x256xf32> to vector<1x256xf32>
    %5 = vector.extract_strided_slice %0 {offsets = [3, 0], sizes = [1, 256], strides = [1, 1]} : vector<4x256xf32> to vector<1x256xf32>
    %6 = vector.extract_strided_slice %1 {offsets = [0, 0], sizes = [1, 256], strides = [1, 1]} : vector<4x256xf32> to vector<1x256xf32>
    %7 = vector.extract_strided_slice %1 {offsets = [1, 0], sizes = [1, 256], strides = [1, 1]} : vector<4x256xf32> to vector<1x256xf32>
    %8 = vector.extract_strided_slice %1 {offsets = [2, 0], sizes = [1, 256], strides = [1, 1]} : vector<4x256xf32> to vector<1x256xf32>
    %9 = vector.extract_strided_slice %1 {offsets = [3, 0], sizes = [1, 256], strides = [1, 1]} : vector<4x256xf32> to vector<1x256xf32>
    %10 = arith.addf %6, %2 : vector<1x256xf32>
    %cst = arith.constant 2.000000e+00 : f32
    %11 = vector.broadcast %cst : f32 to vector<1x256xf32>
    %12 = arith.mulf %10, %11 : vector<1x256xf32>
    %13 = arith.addf %7, %3 : vector<1x256xf32>
    %cst_3 = arith.constant 2.000000e+00 : f32
    %14 = vector.broadcast %cst_3 : f32 to vector<1x256xf32>
    %15 = arith.mulf %13, %14 : vector<1x256xf32>
    %cst_4 = arith.constant 4.13516665 : f32
    %16 = vector.broadcast %cst_4 : f32 to vector<1x256xf32>
    %17 = arith.minimumf %4, %16 : vector<1x256xf32>
    %18 = math.exp %17 : vector<1x256xf32>
    %19 = arith.mulf %8, %18 : vector<1x256xf32>
    %cst_5 = arith.constant 4.13516665 : f32
    %20 = vector.broadcast %cst_5 : f32 to vector<1x256xf32>
    %21 = arith.minimumf %5, %20 : vector<1x256xf32>
    %22 = math.exp %21 : vector<1x256xf32>
    %23 = arith.mulf %9, %22 : vector<1x256xf32>
    %cst_6 = arith.constant 5.000000e-01 : f32
    %24 = vector.broadcast %cst_6 : f32 to vector<1x256xf32>
    %25 = arith.mulf %24, %19 : vector<1x256xf32>
    %26 = arith.subf %12, %25 : vector<1x256xf32>
    %cst_7 = arith.constant 5.000000e-01 : f32
    %27 = vector.broadcast %cst_7 : f32 to vector<1x256xf32>
    %28 = arith.mulf %27, %23 : vector<1x256xf32>
    %29 = arith.subf %15, %28 : vector<1x256xf32>
    %cst_8 = arith.constant 5.000000e-01 : f32
    %30 = vector.broadcast %cst_8 : f32 to vector<1x256xf32>
    %31 = arith.mulf %30, %19 : vector<1x256xf32>
    %32 = arith.addf %12, %31 : vector<1x256xf32>
    %cst_9 = arith.constant 5.000000e-01 : f32
    %33 = vector.broadcast %cst_9 : f32 to vector<1x256xf32>
    %34 = arith.mulf %33, %23 : vector<1x256xf32>
    %35 = arith.addf %15, %34 : vector<1x256xf32>
    %36 = tpu.concatenate %26, %29, %32, %35 in 0 : vector<1x256xf32>, vector<1x256xf32>, vector<1x256xf32>, vector<1x256xf32> -> vector<4x256xf32>
    %c0_10 = arith.constant 0 : index
    %c0_11 = arith.constant 0 : index
    %37 = vector.load %arg5[%c0_10, %c0_11] : memref<4x256xf32, #tpu.memory_space<vmem>>, vector<4x256xf32>
    tpu.vector_store %arg5[%c0_10, %c0_11], %36 {strides = array<i32>} : memref<4x256xf32, #tpu.memory_space<vmem>>, vector<4x256xf32>,
    %38 = tpu.concatenate %19, %23 in 0 : vector<1x256xf32>, vector<1x256xf32> -> vector<2x256xf32>
    %c0_12 = arith.constant 0 : index
    %c0_13 = arith.constant 0 : index
    %39 = vector.load %arg6[%c0_12, %c0_13] : memref<2x256xf32, #tpu.memory_space<vmem>>, vector<2x256xf32>
    tpu.vector_store %arg6[%c0_12, %c0_13], %38 {strides = array<i32>} : memref<2x256xf32, #tpu.memory_space<vmem>>, vector<2x256xf32>,
    %c0_14 = arith.constant 0 : index
    %c0_15 = arith.constant 0 : index
    %40 = vector.load %arg3[%c0_14, %c0_15] : memref<1x256xf32, #tpu.memory_space<vmem>>, vector<1x256xf32>
    %cst_16 = arith.constant 0.699999988 : f32
    %41 = vector.broadcast %cst_16 : f32 to vector<1x256xf32>
    %42 = arith.cmpf ogt, %40, %41 : vector<1x256xf32>
    %43 = arith.extui %42 : vector<1x256xi1> to vector<1x256xi32>
    %44 = arith.sitofp %43 : vector<1x256xi32> to vector<1x256xf32>
    %c0_17 = arith.constant 0 : index
    %c0_18 = arith.constant 0 : index
    %45 = vector.load %arg7[%c0_17, %c0_18] : memref<1x256xf32, #tpu.memory_space<vmem>>, vector<1x256xf32>
    tpu.vector_store %arg7[%c0_17, %c0_18], %44 {strides = array<i32>} : memref<1x256xf32, #tpu.memory_space<vmem>>, vector<1x256xf32>,
    %46 = arith.mulf %19, %23 : vector<1x256xf32>
    %47 = tpu.concatenate %26, %29, %32, %35, %46 in 0 : vector<1x256xf32>, vector<1x256xf32>, vector<1x256xf32>, vector<1x256xf32>, vector<1x256xf32> -> vector<5x256xf32>
    %48 = tpu.iota {dimensions = array<i32: 1>} : vector<1x256xi32>
    %cst_19 = arith.constant 0.000000e+00 : f32
    %49 = vector.broadcast %cst_19 : f32 to vector<1x256xf32>
    %c0_i32 = arith.constant 0 : i32
    %c256_i32 = arith.constant 256 : i32
    %50 = arith.addi %c0_i32, %c256_i32 : i32
    %c1_i32 = arith.constant 1 : i32
    %51 = scf.for %arg9 = %c0_i32 to %50 step %c1_i32 iter_args(%arg10 = %49) -> (vector<1x256xf32>)  : i32 {
      %53 = arith.index_cast %arg9 : i32 to index
      %54 = memref.load %arg1[%53] : memref<256xi32, #tpu.memory_space<smem>>
      %55 = vector.broadcast %54 : i32 to vector<1x256xi32>
      %56 = arith.cmpi eq, %48, %55 : vector<1x256xi32>
      %57 = arith.extui %56 : vector<1x256xi1> to vector<1x256xi32>
      %58 = arith.sitofp %57 : vector<1x256xi32> to vector<1x256xf32>
      %59 = vector.broadcast %58 : vector<1x256xf32> to vector<5x256xf32>
      %60 = arith.mulf %47, %59 : vector<5x256xf32>
      %cst_23 = arith.constant dense<0.000000e+00> : vector<5xf32>
      %61 = vector.multi_reduction <add>, %60, %cst_23 [1] : vector<5x256xf32> to vector<5xf32>
      %62 = vector.shape_cast %61 : vector<5xf32> to vector<5x1xf32>
      %63 = vector.extract_strided_slice %62 {offsets = [0, 0], sizes = [1, 1], strides = [1, 1]} : vector<5x1xf32> to vector<1x1xf32>
      %64 = vector.extract_strided_slice %62 {offsets = [1, 0], sizes = [1, 1], strides = [1, 1]} : vector<5x1xf32> to vector<1x1xf32>
      %65 = vector.extract_strided_slice %62 {offsets = [2, 0], sizes = [1, 1], strides = [1, 1]} : vector<5x1xf32> to vector<1x1xf32>
      %66 = vector.extract_strided_slice %62 {offsets = [3, 0], sizes = [1, 1], strides = [1, 1]} : vector<5x1xf32> to vector<1x1xf32>
      %67 = vector.extract_strided_slice %62 {offsets = [4, 0], sizes = [1, 1], strides = [1, 1]} : vector<5x1xf32> to vector<1x1xf32>
      %68 = vector.broadcast %65 : vector<1x1xf32> to vector<1x256xf32>
      %69 = arith.minimumf %32, %68 : vector<1x256xf32>
      %70 = vector.broadcast %63 : vector<1x1xf32> to vector<1x256xf32>
      %71 = arith.maximumf %26, %70 : vector<1x256xf32>
      %72 = arith.subf %69, %71 : vector<1x256xf32>
      %cst_24 = arith.constant 0.000000e+00 : f32
      %73 = vector.broadcast %cst_24 : f32 to vector<1x256xf32>
      %74 = arith.maximumf %72, %73 : vector<1x256xf32>
      %75 = vector.broadcast %66 : vector<1x1xf32> to vector<1x256xf32>
      %76 = arith.minimumf %35, %75 : vector<1x256xf32>
      %77 = vector.broadcast %64 : vector<1x1xf32> to vector<1x256xf32>
      %78 = arith.maximumf %29, %77 : vector<1x256xf32>
      %79 = arith.subf %76, %78 : vector<1x256xf32>
      %cst_25 = arith.constant 0.000000e+00 : f32
      %80 = vector.broadcast %cst_25 : f32 to vector<1x256xf32>
      %81 = arith.maximumf %79, %80 : vector<1x256xf32>
      %82 = arith.mulf %74, %81 : vector<1x256xf32>
      %83 = vector.broadcast %67 : vector<1x1xf32> to vector<1x256xf32>
      %84 = arith.addf %46, %83 : vector<1x256xf32>
      %85 = arith.subf %84, %82 : vector<1x256xf32>
      %cst_26 = arith.constant 9.99999993E-9 : f32
      %86 = vector.broadcast %cst_26 : f32 to vector<1x256xf32>
      %87 = arith.addf %85, %86 : vector<1x256xf32>
      %88 = arith.divf %82, %87 : vector<1x256xf32>
      %cst_27 = arith.constant 5.000000e-01 : f32
      %89 = vector.broadcast %cst_27 : f32 to vector<1x256xf32>
      %90 = arith.cmpf ogt, %arg10, %89 : vector<1x256xf32>
      %cst_28 = arith.constant 0.000000e+00 : f32
      %91 = vector.broadcast %cst_28 : f32 to vector<1x256xf32>
      %92 = arith.select %90, %88, %91 : vector<1x256xi1>, vector<1x256xf32>
      %cst_29 = arith.constant dense<0xFF800000> : vector<1xf32>
      %93 = vector.multi_reduction <maximumf>, %92, %cst_29 [1] : vector<1x256xf32> to vector<1xf32>
      %94 = vector.shape_cast %93 : vector<1xf32> to vector<1x1xf32>
      %cst_30 = arith.constant 5.000000e-01 : f32
      %95 = vector.broadcast %cst_30 : f32 to vector<1x1xf32>
      %96 = arith.cmpf ole, %94, %95 : vector<1x1xf32>
      %97 = arith.extui %96 : vector<1x1xi1> to vector<1x1xi32>
      %98 = arith.sitofp %97 : vector<1x1xi32> to vector<1x1xf32>
      %99 = vector.broadcast %54 : i32 to vector<1x256xi32>
      %100 = arith.cmpi eq, %48, %99 : vector<1x256xi32>
      %101 = arith.andi %100, %42 : vector<1x256xi1>
      %102 = vector.shape_cast %98 : vector<1x1xf32> to vector<1x1xf32>
      %103 = vector.broadcast %102 : vector<1x1xf32> to vector<1x256xf32>
      %104 = arith.select %101, %103, %arg10 : vector<1x256xi1>, vector<1x256xf32>
      scf.yield %104 : vector<1x256xf32>
    }
    %c256_i32_20 = arith.constant 256 : i32
    %c0_21 = arith.constant 0 : index
    %c0_22 = arith.constant 0 : index
    %52 = vector.load %arg8[%c0_21, %c0_22] : memref<1x256xf32, #tpu.memory_space<vmem>>, vector<1x256xf32>
    tpu.vector_store %arg8[%c0_21, %c0_22], %51 {strides = array<i32>} : memref<1x256xf32, #tpu.memory_space<vmem>>, vector<1x256xf32>,
    return
  }
  func.func @transform_0(%arg0: i32, %arg1: memref<256xi32, #tpu.memory_space<smem>>) -> (i32, i32) {
    %c0_i32 = arith.constant 0 : i32
    %c0_i32_0 = arith.constant 0 : i32
    %c0_i32_1 = arith.constant 0 : i32
    return %c0_i32, %c0_i32_0 : i32, i32
  }
  func.func @transform_1(%arg0: i32, %arg1: memref<256xi32, #tpu.memory_space<smem>>) -> (i32, i32) {
    %c0_i32 = arith.constant 0 : i32
    %c0_i32_0 = arith.constant 0 : i32
    %c0_i32_1 = arith.constant 0 : i32
    return %c0_i32, %c0_i32_0 : i32, i32
  }
  func.func @transform_2(%arg0: i32, %arg1: memref<256xi32, #tpu.memory_space<smem>>) -> (i32, i32) {
    %c0_i32 = arith.constant 0 : i32
    %c0_i32_0 = arith.constant 0 : i32
    %c0_i32_1 = arith.constant 0 : i32
    return %c0_i32, %c0_i32_0 : i32, i32
  }
  func.func @transform_3(%arg0: i32, %arg1: memref<256xi32, #tpu.memory_space<smem>>) -> (i32, i32) {
    %c0_i32 = arith.constant 0 : i32
    %c0_i32_0 = arith.constant 0 : i32
    %c0_i32_1 = arith.constant 0 : i32
    return %c0_i32, %c0_i32_0 : i32, i32
  }
  func.func @transform_4(%arg0: i32, %arg1: memref<256xi32, #tpu.memory_space<smem>>) -> (i32, i32) {
    %c0_i32 = arith.constant 0 : i32
    %c0_i32_0 = arith.constant 0 : i32
    %c0_i32_1 = arith.constant 0 : i32
    return %c0_i32, %c0_i32_0 : i32, i32
  }
  func.func @transform_5(%arg0: i32, %arg1: memref<256xi32, #tpu.memory_space<smem>>) -> (i32, i32) {
    %c0_i32 = arith.constant 0 : i32
    %c0_i32_0 = arith.constant 0 : i32
    %c0_i32_1 = arith.constant 0 : i32
    return %c0_i32, %c0_i32_0 : i32, i32
  }
  func.func @transform_6(%arg0: i32, %arg1: memref<256xi32, #tpu.memory_space<smem>>) -> (i32, i32) {
    %c0_i32 = arith.constant 0 : i32
    %c0_i32_0 = arith.constant 0 : i32
    %c0_i32_1 = arith.constant 0 : i32
    return %c0_i32, %c0_i32_0 : i32, i32
  }
}

</mosaic_0001>

<bundles_post_ra>
// kernel: detector_forward.5
= control target key start
LH: loop header
LB: loop body
LE: loop exit
PB: predicated region body
PF: predicated region fallthrough
CT: control target
= control target key end

     0   :  { %s589_s0 = inlined_call_operand.vmem [shape: s32[256], index: 0, kind: input, shape index: {}]   ;;  %s590_s1 = inlined_call_operand.vmem [shape: f32[4,256], index: 1, kind: input, shape index: {}]   ;;  %s591_s2 = inlined_call_operand.vmem [shape: f32[1,256], index: 2, kind: input, shape index: {}]   ;;  %s592_s3 = inlined_call_operand.vmem [shape: f32[4,256], index: 3, kind: input, shape index: {}]   ;;  %s593_s4 = inlined_call_operand.vmem [shape: f32[4,256], index: 4, kind: output, shape index: {0}]   ;;  %s594_s5 = inlined_call_operand.vmem [shape: f32[2,256], index: 5, kind: output, shape index: {1}]   ;;  %s595_s6 = inlined_call_operand.vmem [shape: f32[1,256], index: 6, kind: output, shape index: {2}]   ;;  %s596_s7 = inlined_call_operand.vmem [shape: f32[1,256], index: 7, kind: output, shape index: {3}]  }
   0x1   :  { %s13_s26 = sshll.u32 %s589_s0, 4  ;;  %s14_s26 = int_to_ptr.vmem [resolvable:$true] %s13_s26 }
   0x2   :  { %s354_s27 = scalar_lea.vmem %s14_s26, 32  ;;  %p359_p1 = scmp.lt.s32.totalorder %s14_s26, %s14_s26 }
   0x3   :  { %p355_p0 = scmp.ne.s32.totalorder %s14_s26, %s354_s27  ;;  %p360_p2 = scmp.lt.s32.totalorder %s354_s27, %s354_s27 }
   0x5   :  { %p361_p3 = por %p360_p2, %p359_p1 }
   0x7   :  { %p362_p4 = pnand %p361_p3, %p355_p0 }
   0x9   :  { %365 = shalt.err (!%p362_p4)  }
   0xa   :  { %s392_s28 = smov [#allocation3]  }
   0xb   :  { %16 = dma.vmem_to_smem %s14_s26, 32, %s392_s28, [#allocation2] }
   0xc   :  { %378 = dma.done.wait [#allocation2], 32 }
   0xd   :  { %379 = vsyncadd [#allocation2], 4294967264 }
   0xe   :  { %18 = sfence }
   0xf   :  { %v25_v0 = vld [vmem:[%s590_s1] sm:$0xff]  ;;  %v41_v1 = vlaneseq  ;;  %v393_v6 = vmov 0   ;;  %v394_v8 = vmov 0.0   ;;  %vm82_vm2 = vcmask 1040384   ;;  %s527_s12 = smov 0  }
  0x10   :  { %v29_v2 = vmin.f32 %v25_v0, 4.1351666  ;;  %v131_v3 = vld [vmem:[%s591_s2] sm:$0x3]  ;;  %vm85_vm3 = vcmask 1041408   ;;  %vm88_vm4 = vcmask 1042432  }
  0x11   :  { %v448_v4 = vand.u32 127, %v41_v1  ;;  %vm132_vm0 = vcmp.gt.f32.partialorder %v131_v3, 0.7  ;;  %vm455_vm1 = vcmp.lt.s32.totalorder %v41_v1, 256  ;;  %v464_v12 = vshrl.u32 %v41_v1, 7  ;;  %v26_v13 = vld [vmem:[%s592_s3] sm:$0xff] }
  0x12   :  { %v30_v5 = vmul.f32 1.442695, %v29_v2  ;;  %v450_v7 = vsel %vm132_vm0, 1, %v393_v6  ;;  %v311_v9 = vsel %vm132_vm0, 1.0, %v394_v8  ;;  %v27_v19 = vadd.f32 %v26_v13, %v25_v0 }
  0x13   :  { %v453_v10 = vadd.s32 128, %v448_v4  ;;  %139 = vst.msk [vmem:[%s595_s6] sm:$0x3] %vm455_vm1, %v311_v9  ;;  %v99_v14 = vsub.s32 2, %v464_v12  ;;  %v103_v15 = vsub.s32 6, %v464_v12  ;;  %v109_v17 = vsub.s32 3, %v464_v12 }
  0x14   :  { %350 = vpow2.f32 %v30_v5  ;;  %v113_v18 = vsub.s32 7, %v464_v12  ;;  %v28_v27 = vmul.f32 2.0, %v27_v19  ;;  %v474_v29 = vsub.s32 0, %v464_v12 }
  0x15   :  { %v477_v30 = vsub.s32 4, %v464_v12  ;;  %v484_v35 = vsub.s32 1, %v464_v12  ;;  %v57_v36 = vsub.s32 5, %v464_v12  ;;  %vm155_vm5 = vcmask 1043456  }
  0x16   :  { %v523_v59 = vmov 0.0   ;;  %v525_v60 = vmov 0.0  }
  0x1e   :  { %v351_v16 = vpop.eup %350 }
  0x1f   :  { %v32_v20 = vmul.f32 %v351_v16, %v26_v13 }
  0x21   :  { %v33_v21 = vmul.f32 0.5, %v32_v20  ;;  %v312_v22 = vrot.slane %v32_v20, 9  ;;  %v100_v23 = vrot.slane %v32_v20, %v99_v14  ;;  %v104_v24 = vrot.slane %v32_v20, %v103_v15 }
  0x22   :  { %v110_v25 = vrot.slane %v32_v20, %v109_v17  ;;  %v114_v26 = vrot.slane %v32_v20, %v113_v18 }
  0x23   :  { %v35_v28 = vrot.slane %v33_v21, 6  ;;  %v479_v31 = vmul.f32 %v312_v22, %v32_v20 }
  0x24   :  { %v117_v32 = vsel %vm82_vm2, %v100_v23, %v110_v25  ;;  %v118_v33 = vsel %vm82_vm2, %v104_v24, %v114_v26 }
  0x25   :  { %v36_v34 = vrot.slane %v35_v28, 4  ;;  %v121_v37 = vcombine.low %v117_v32, %v118_v33  ;;  %v148_v40 = vrot.slane %v479_v31, %v99_v14  ;;  %v152_v41 = vrot.slane %v479_v31, %v103_v15 }
  0x27   :  { %v487_v38 = vsub.f32 %v28_v27, %v36_v34  ;;  %v489_v39 = vadd.f32 %v36_v34, %v28_v27  ;;  %310 = vst.sshfl [vmem:[%s594_s5] sm:$0x33 pattern:$0x76325410] %v121_v37 }
  0x29   :  { %v44_v42 = vrot.slane %v487_v38, %v474_v29  ;;  %v48_v43 = vrot.slane %v487_v38, %v477_v30  ;;  %v54_v44 = vrot.slane %v487_v38, %v484_v35  ;;  %v58_v45 = vrot.slane %v487_v38, %v57_v36 }
  0x2a   :  { %v65_v46 = vrot.slane %v489_v39, %v474_v29  ;;  %v69_v47 = vrot.slane %v489_v39, %v477_v30  ;;  %v75_v48 = vrot.slane %v489_v39, %v484_v35  ;;  %v79_v49 = vrot.slane %v489_v39, %v57_v36 }
  0x2b   :  { %v83_v50 = vsel %vm82_vm2, %v44_v42, %v54_v44  ;;  %v84_v51 = vsel %vm82_vm2, %v48_v43, %v58_v45 }
  0x2c   :  { %v86_v52 = vsel %vm85_vm3, %v83_v50, %v65_v46  ;;  %v87_v53 = vsel %vm85_vm3, %v84_v51, %v69_v47 }
  0x2d   :  { %v89_v54 = vsel %vm88_vm4, %v86_v52, %v75_v48  ;;  %v90_v55 = vsel %vm88_vm4, %v87_v53, %v79_v49 }
  0x2e   :  { %v93_v56 = vcombine.low %v89_v54, %v90_v55  ;;  %v516_v57 = vsel %vm155_vm5, %v89_v54, %v148_v40  ;;  %v518_v58 = vsel %vm155_vm5, %v90_v55, %v152_v41 }
  0x30   :  { %95 = vst [vmem:[%s593_s4] sm:$0xff] %v93_v56 }
  0x31 LB: > { %s169_s13 = sld [smem:[#allocation3 + %s390_s12]]  ;;  %v395_v0 = vmov 0.0   ;;  %vm179_vm8 = vcmask 1044480   ;;  %v396_v13 = vmov 839922192   ;;  %vm227_vm9 = vcmp.gt.f32.partialorder %v386_v60, 0.5  ;;  %s390_s12 = sphi %s527_s12, %s166_s12   ;;  %v386_v60 = vphi %v525_v60, %v604_v60   ;;  %v382_v59 = vphi %v523_v59, %v603_v59  }
  0x32   : > { %v187_v14 = vunpack.c.l.s4 %v396_v13  ;;  %v397_v16 = vmov 1985246804   ;;  %vm228_vm10 = vcmp.gt.f32.partialorder %v382_v59, 0.5  ;;  %v253_v52 = vrot.slane %v450_v7, %v474_v29  ;;  %s166_s12 = sadd.s32 1, %s390_s12  }
  0x33   : > { %v207_v17 = vunpack.c.l.s4 %v397_v16  ;;  %v257_v53 = vrot.slane %v450_v7, %v484_v35  ;;  %p163_p5 = scmp.ge.s32.totalorder %s166_s12, 256  }
  0x34   : > { %v188_v15 = vunpack.c.0.s8 %v187_v14  ;;  %vm258_vm11 = vcmp.ne.s32.totalorder %v253_v52, 0  ;;  %v398_v62 = vmov (%p163_p5), 1966171168  }
  0x35   : > { %v208_v19 = vunpack.c.0.s8 %v207_v17  ;;  %vm259_vm12 = vcmp.ne.s32.totalorder %v257_v53, 0  ;;  %v268_v63 = vunpack.c.l.s4 (%p163_p5), %v398_v62 }
  0x36   : > { %v191_v18 = vsub.s32 %v188_v15, %v464_v12 }
  0x37   : > { %v170_v61 = vstv %s169_s13  ;;  %v211_v22 = vsub.s32 %v208_v19, %v464_v12 }
  0x38   : > { %vm540_vm6 = vcmp.eq.s32.totalorder %v448_v4, %v170_v61  ;;  %vm545_vm7 = vcmp.eq.s32.totalorder %v453_v10, %v170_v61 }
  0x39   : > { %v313_v1 = vsel %vm540_vm6, 1.0, %v395_v0  ;;  %v314_v2 = vsel %vm545_vm7, 1.0, %v395_v0  ;;  %vm260_vm13 = vmand %vm540_vm6, %vm258_vm11 }
  0x3a   : > { %v177_v3 = vmul.f32 %v313_v1, %v516_v57  ;;  %v178_v5 = vmul.f32 %v314_v2, %v518_v58  ;;  %vm261_vm14 = vmand %vm545_vm7, %vm259_vm12  ;;  %v269_v2 = vunpack.c.0.s8 (%p163_p5), %v268_v63 }
  0x3c   : > { %v180_v6 = vsel %vm179_vm8, %v177_v3, 0.0  ;;  %v181_v8 = vsel %vm179_vm8, %v178_v5, 0.0 }
  0x3d   : > { %v182_v9 = vadd.f32 %v181_v8, %v180_v6 }
  0x3f   : > { %183 = vadd.xlane.f32.xlu0 %v182_v9 }
  0xcc   : > { %v184_v20 = vpop.xlane.xlu0 %183 }
  0xcd   : > { %v192_v21 = vrot.slane %v184_v20, %v191_v18  ;;  %v212_v27 = vrot.slane %v184_v20, %v211_v22 }
  0xcf   : > { %v315_v23 = vrot.slane %v192_v21, 10  ;;  %v198_v25 = vmax.f32 %v487_v38, %v192_v21  ;;  %v213_v33 = vrot.slane %v212_v27, 6 }
  0xd1   : > { %v196_v24 = vmin.f32 %v489_v39, %v315_v23  ;;  %v215_v36 = vadd.f32 %v213_v33, %v479_v31 }
  0xd3   : > { %v199_v26 = vsub.f32 %v196_v24, %v198_v25 }
  0xd5   : > { %v200_v28 = vmax.f32 %v199_v26, 0.0 }
  0xd7   : > { %v316_v32 = vrot.slane %v200_v28, 9 }
  0xd9   : > { %v205_v34 = vmul.f32 %v316_v32, %v200_v28 }
  0xdb   : > { %v217_v37 = vrot.slane %v205_v34, 6 }
  0xdd   : > { %v219_v40 = vsub.f32 %v215_v36, %v217_v37 }
  0xdf   : > { %v220_v41 = vadd.f32 1e-08, %v219_v40 }
  0xe1   : > { %v317_v42 = vrot.slane %v220_v41, 10 }
  0xe3   : > { %352 = vrcp.f32 %v317_v42 }
  0xed   : > { %v353_v43 = vpop.eup %352 }
  0xee   : > { %v226_v44 = vmul.f32 %v353_v43, %v205_v34 }
  0xf0   : > { %v233_v45 = vrot.slane %v226_v44, %v474_v29  ;;  %v237_v46 = vrot.slane %v226_v44, %v477_v30 }
  0xf2   : > { %v240_v47 = vsel %vm227_vm9, %v233_v45, 0.0  ;;  %v241_v48 = vsel %vm228_vm10, %v237_v46, 0.0 }
  0xf3   : > { %v242_v49 = vsel %vm82_vm2, %v240_v47, -inf  ;;  %v243_v50 = vsel %vm82_vm2, %v241_v48, -inf }
  0xf4   : > { %v244_v51 = vmax.f32 %v242_v49, %v243_v50 }
  0xf6   : > { %245 = vmax.xlane.f32.xlu0 %v244_v51 }
 0x181   :  { %165 = sbr.rel (!%p163_p5) target bundleno = 49 (0x31), region = 63 }
 0x183   : > { %v246_v54 = vpop.xlane.xlu0 %245 }
 0x184   : > { %vm247_vm15 = vcmp.le.f32.partialorder %v246_v54, 0.5 }
 0x185   : > { %v318_v55 = vsel %vm247_vm15, 1.0, %v395_v0  ;;  %v272_v0 = vsub.s32 (%p163_p5), %v269_v2, %v464_v12 }
 0x186   : > { %v262_v56 = vsel %vm260_vm13, %v318_v55, %v386_v60   ;;  %v263_v61 = vsel %vm261_vm14, %v318_v55, %v382_v59  }
 0x187   : > { %v603_v59 = vmov %v263_v61  ;;  %v604_v60 = vmov %v262_v56  ;;  %v266_v1 = vcombine.low (%p163_p5), %v262_v56, %v263_v61 }
 0x189   :  { %v273_v3 = vrot.slane %v266_v1, %v272_v0 }
 0x18b   :  { %v280_v60 = vrot.slane %v273_v3, %v272_v0 }
 0x18d   :  { %282 = vst.msk [vmem:[%s596_s7] sm:$0x3] %vm455_vm1, %v280_v60 }

// kernel: detector_forward.4
= control target key start
LH: loop header
LB: loop body
LE: loop exit
PB: predicated region body
PF: predicated region fallthrough
CT: control target
= control target key end

     0   :  { %v1381_v0 = vmov 0   ;;  %vm150_vm0 = vcmask 130048   ;;  %vm260_vm1 = vcmask 1040384   ;;  %vm292_vm2 = vcmask 1046528   ;;  %s1384_s19 = smov 32   ;;  %s1385_s20 = smov 64   ;;  %s1857_s1 = inlined_call_operand.vmem [shape: bf16[144,32], index: 1, kind: input, shape index: {}]   ;;  %s1858_s0 = inlined_call_operand.vmem [shape: bf16[64,144], index: 0, kind: input, shape index: {}]   ;;  %s1859_s3 = inlined_call_operand.vmem [shape: bf16[288,32], index: 3, kind: input, shape index: {}]   ;;  %s1860_s2 = inlined_call_operand.vmem [shape: f32[1,32], index: 2, kind: input, shape index: {}]   ;;  %s1861_s5 = inlined_call_operand.vmem [shape: bf16[32,128], index: 5, kind: input, shape index: {}]   ;;  %s1862_s4 = inlined_call_operand.vmem [shape: f32[1,32], index: 4, kind: input, shape index: {}]   ;;  %s1863_s6 = inlined_call_operand.vmem [shape: f32[1,128], index: 6, kind: input, shape index: {}]   ;;  %s1864_s7 = inlined_call_operand.vmem [shape: f32[64,128], index: 7, kind: output, shape index: {}]  }
   0x1   :  { %163 = vmatprep.subr.bf16.mxu0 %v1381_v0  ;;  %v1308_v1 = vld [vmem:[%s1857_s1] sm:$0xff]   ;;  %v1309_v2 = vld [vmem:[%s1857_s1 + $0x8] sm:$0xff]   ;;  %v1310_v3 = vld [vmem:[%s1857_s1 + $0x10] sm:$0xff]   ;;  %v1382_v44 = vmov 0.0   ;;  %vm316_vm3 = vcmask 1045504   ;;  %vm508_vm4 = vcmask 261120  }
   0x2   :  { %164 = vmatpush1.bf16.msra.mxu0 %v1308_v1  ;;  %v1311_v4 = vld [vmem:[%s1857_s1 + $0x18] sm:$0xff]   ;;  %v1319_v5 = vld [vmem:[%s1858_s0 + $0x4] ss:$8 sps:$4 sm:$0xff]   ;;  %v1314_v8 = vld [vmem:[%s1857_s1 + $0x30] sm:$0xff]   ;;  %v1532_v45 = vrot.slane %v1382_v44, 1  ;;  %v1549_v60 = vrot.slane %v1382_v44, 2 }
   0x3   :  { %165 = vmatprep.subr.bf16.mxu0 %v1381_v0  ;;  %1065 = vmatprep.mubr.msk.bf16.mxu0 %vm150_vm0, %v1319_v5  ;;  %v1312_v6 = vld [vmem:[%s1857_s1 + $0x20] sm:$0xff]   ;;  %v1313_v7 = vld [vmem:[%s1857_s1 + $0x28] sm:$0xff]   ;;  %v1315_v9 = vld [vmem:[%s1857_s1 + $0x38] sm:$0xff]   ;;  %vm517_vm5 = vcmask 523264   ;;  %vm526_vm6 = vcmask 785408  }
   0x4   :  { %v1316_v10 = vld [vmem:[%s1857_s1 + $0x40] sm:$0xff]   ;;  %v1320_v12 = vld [vmem:[%s1858_s0 + $0x14] ss:$8 sps:$4 sm:$0xff]   ;;  %v1322_v13 = vld [vmem:[%s1858_s0 + $0x10] ss:$8 sps:$4 sm:$0xff]  }
   0x5   :  { %v1317_v11 = vld [vmem:[%s1858_s0] ss:$8 sps:$4 sm:$0xff]   ;;  %v1323_v14 = vld [vmem:[%s1858_s0 + $0x24] ss:$8 sps:$4 sm:$0xff]   ;;  %v1326_v16 = vld [vmem:[%s1858_s0 + $0x34] ss:$8 sps:$4 sm:$0xff]  }
   0x6   :  { %166 = vmatpush1.bf16.msra.mxu0 %v1309_v2  ;;  %v1325_v15 = vld [vmem:[%s1858_s0 + $0x20] ss:$8 sps:$4 sm:$0xff]   ;;  %v1328_v17 = vld [vmem:[%s1858_s0 + $0x30] ss:$8 sps:$4 sm:$0xff]   ;;  %s1383_s0 = smov 96  }
   0x7   :  { %167 = vmatprep.subr.bf16.mxu0 %v1381_v0  ;;  %v1329_v18 = vld [vmem:[%s1859_s3 + $0x40] sm:$0xff]   ;;  %v1331_v20 = vld [vmem:[%s1859_s3 + $0x48] sm:$0xff]   ;;  %v1333_v22 = vld [vmem:[%s1859_s3 + $0x50] sm:$0xff]  }
   0x8   :  { %v1330_v19 = vld [vmem:[%s1859_s3] sm:$0xff]   ;;  %1107 = vmatprep.subr.bf16.mxu1 %v1329_v18  ;;  %v1332_v21 = vld [vmem:[%s1859_s3 + $0x8] sm:$0xff]   ;;  %v1334_v23 = vld [vmem:[%s1859_s3 + $0x10] sm:$0xff]  }
   0x9   :  { %1108 = vmatpush3.bf16.msra.mxu1 %v1330_v19  ;;  %v1335_v24 = vld [vmem:[%s1859_s3 + $0x58] sm:$0xff]   ;;  %v1337_v26 = vld [vmem:[%s1859_s3 + $0x60] sm:$0xff]   ;;  %v1339_v36 = vld [vmem:[%s1859_s3 + $0x68] sm:$0xff]  }
   0xa   :  { %168 = vmatpush1.bf16.msra.mxu0 %v1310_v3  ;;  %1109 = vmatprep.subr.bf16.mxu1 %v1331_v20  ;;  %v1336_v25 = vld [vmem:[%s1859_s3 + $0x18] sm:$0xff]   ;;  %v1511_v27 = vld [vmem:[%s1860_s2] ss:$0 sm:$0xff]  ;;  %v1340_v37 = vld [vmem:[%s1859_s3 + $0x28] sm:$0xff]  }
   0xb   :  { %169 = vmatprep.subr.bf16.mxu0 %v1381_v0  ;;  %v1338_v29 = vld [vmem:[%s1859_s3 + $0x20] sm:$0xff]   ;;  %v1341_v40 = vld [vmem:[%s1859_s3 + $0x70] sm:$0xff]   ;;  %v1343_v56 = vld [vmem:[%s1859_s3 + $0x78] sm:$0xff]  }
   0xc   :  { %v1342_v51 = vld [vmem:[%s1859_s3 + $0x30] sm:$0xff]   ;;  %v1344_v5 = vld [vmem:[%s1859_s3 + $0x38] sm:$0xff]  }
   0xd   :  { %1110 = vmatpush3.bf16.msra.mxu1 %v1332_v21 }
   0xe   :  { %170 = vmatpush1.bf16.msra.mxu0 %v1311_v4  ;;  %1111 = vmatprep.subr.bf16.mxu1 %v1333_v22 }
   0xf   :  { %171 = vmatprep.subr.bf16.mxu0 %v1381_v0 }
  0x11   :  { %1112 = vmatpush3.bf16.msra.mxu1 %v1334_v23 }
  0x12   :  { %172 = vmatpush1.bf16.msra.mxu0 %v1312_v6  ;;  %1113 = vmatprep.subr.bf16.mxu1 %v1335_v24 }
  0x13   :  { %173 = vmatprep.subr.bf16.mxu0 %v1381_v0 }
  0x15   :  { %1114 = vmatpush3.bf16.msra.mxu1 %v1336_v25 }
  0x16   :  { %174 = vmatpush1.bf16.msra.mxu0 %v1313_v7  ;;  %1115 = vmatprep.subr.bf16.mxu1 %v1337_v26 }
  0x17   :  { %175 = vmatprep.subr.bf16.mxu0 %v1381_v0 }
  0x19   :  { %1116 = vmatpush3.bf16.msra.mxu1 %v1338_v29 }
  0x1a   :  { %176 = vmatpush1.bf16.msra.mxu0 %v1314_v8  ;;  %1117 = vmatprep.subr.bf16.mxu1 %v1339_v36 }
  0x1b   :  { %177 = vmatprep.subr.bf16.mxu0 %v1381_v0 }
  0x1d   :  { %1118 = vmatpush3.bf16.msra.mxu1 %v1340_v37 }
  0x1e   :  { %178 = vmatpush1.bf16.msra.mxu0 %v1315_v9  ;;  %1119 = vmatprep.subr.bf16.mxu1 %v1341_v40 }
  0x1f   :  { %179 = vmatprep.subr.bf16.mxu0 %v1381_v0 }
  0x21   :  { %1120 = vmatpush3.bf16.msra.mxu1 %v1342_v51 }
  0x22   :  { %180 = vmatpush1.bf16.msra.mxu0 %v1316_v10  ;;  %1121 = vmatprep.subr.bf16.mxu1 %v1343_v56 }
  0x25   :  { %196 = vmatmul.mubr.bf16.vlgmr.msra.gmra.mrb[0].mxu0 %v1317_v11  ;;  %1122 = vmatpush3.bf16.msra.mxu1 %v1344_v5 }
  0x26   :  { %1066 = vmatprep.mubr.msk.bf16.mxu0 %vm150_vm0, %v1320_v12 }
  0x2d   :  { %204 = vmatmul.mubr.bf16.gmra.mrb[4].mxu0 %v1322_v13 }
  0x2e   :  { %1067 = vmatprep.mubr.msk.bf16.mxu0 %vm150_vm0, %v1323_v14 }
  0x35   :  { %212 = vmatmul.mubr.bf16.gmra.mrb[8].mxu0 %v1325_v15 }
  0x36   :  { %1068 = vmatprep.mubr.msk.bf16.mxu0 %vm150_vm0, %v1326_v16 }
  0x3d   :  { %220 = vmatmul.mubr.bf16.gmra.mrb[12].mxu0 %v1328_v17 }
  0xf8   :  { %v197_v28 = vpop.f32.mrb[0].mxu0 }
  0xf9   :  { %v198_v30 = vadd.f32 %v1511_v27, %v197_v28  ;;  %v199_v31 = vpop.f32.mrb[1].mxu0 }
  0xfa   :  { %v200_v32 = vpop.f32.mrb[2].mxu0 }
  0xfb   :  { %v228_v33 = vmax.f32 %v198_v30, 0.0  ;;  %v201_v34 = vadd.f32 %v1511_v27, %v200_v32  ;;  %v202_v35 = vpop.f32.mrb[3].mxu0 }
  0xfd   :  { %v244_v38 = vrot.slane %v228_v33, 7  ;;  %v229_v39 = vmax.f32 %v201_v34, 0.0 }
  0xff   :  { %v1528_v41 = vsel %vm260_vm1, 0.0, %v244_v38  ;;  %v269_v42 = vsel %vm260_vm1, %v244_v38, 0.0  ;;  %v245_v43 = vrot.slane %v229_v39, 7 }
 0x100   :  { %v296_v46 = vrot.slane %v269_v42, 1  ;;  %v319_v47 = vrot.slane %v1528_v41, 2  ;;  %v320_v48 = vrot.slane %v269_v42, 2  ;;  %v205_v49 = vpop.f32.mrb[4].mxu0  ;;  %v295_v50 = vrot.slane %v1528_v41, 1 }
 0x101   :  { %v1540_v52 = vsel %vm260_vm1, 0.0, %v245_v43  ;;  %v270_v53 = vsel %vm260_vm1, %v245_v43, 0.0  ;;  %v206_v54 = vadd.f32 %v1511_v27, %v205_v49  ;;  %v207_v55 = vpop.f32.mrb[5].mxu0 }
 0x102   :  { %v322_v57 = vrot.slane %v1540_v52, 2  ;;  %v323_v58 = vrot.slane %v270_v53, 2  ;;  %v208_v59 = vpop.f32.mrb[6].mxu0  ;;  %v1188_v0 = vpack.i.bf16 %v1540_v52, %v1528_v41  ;;  %v1555_v1 = vsel %vm292_vm2, %v295_v50, %v296_v46 }
 0x103   :  { %v230_v61 = vmax.f32 %v206_v54, 0.0  ;;  %v209_v62 = vadd.f32 %v1511_v27, %v208_v59  ;;  %v210_v63 = vpop.f32.mrb[7].mxu0  ;;  %v1193_v2 = vpack.i.bf16 %v1555_v1, %v1532_v45  ;;  %v321_v3 = vsel %vm316_vm3, %v319_v47, %v320_v48 }
 0x104   :  { %v1561_v4 = vsel %vm316_vm3, %v322_v57, %v323_v58  ;;  %1189 = vrot.lane.b32.xlu1 %v1188_v0, %s1383_s0  ;;  %v298_v9 = vrot.slane %v1540_v52, 1  ;;  %v299_v10 = vrot.slane %v270_v53, 1  ;;  %v1198_v14 = vpack.i.bf16 %v321_v3, %v1549_v60 }
 0x105   :  { %v246_v6 = vrot.slane %v230_v61, 7  ;;  %v231_v7 = vmax.f32 %v209_v62, 0.0  ;;  %v1203_v8 = vpack.i.bf16 %v1561_v4, %v321_v3  ;;  %1194 = vrot.lane.b32.xlu0 %v1193_v2, %s1384_s19 }
 0x106   :  { %v1589_v28 = vsel %vm292_vm2, %v298_v9, %v299_v10 }
 0x107   :  { %v1571_v11 = vsel %vm260_vm1, 0.0, %v246_v6  ;;  %v271_v12 = vsel %vm260_vm1, %v246_v6, 0.0  ;;  %v247_v13 = vrot.slane %v231_v7, 7  ;;  %v1635_v6 = vld [vmem:[%s1859_s3 + $0x80] sm:$0xff]  }
 0x108   :  { %v301_v15 = vrot.slane %v1571_v11, 1  ;;  %v302_v16 = vrot.slane %v271_v12, 1  ;;  %v325_v17 = vrot.slane %v1571_v11, 2  ;;  %v326_v18 = vrot.slane %v271_v12, 2  ;;  %v213_v19 = vpop.f32.mrb[8].mxu0  ;;  %1199 = vrot.lane.b32.xlu1 %v1198_v14, %s1385_s20  ;;  %1159 = vmatprep.subr.bf16.mxu1 %v1635_v6 }
 0x109   :  { %v1578_v20 = vsel %vm260_vm1, 0.0, %v247_v13  ;;  %v1581_v21 = vsel %vm260_vm1, %v247_v13, 0.0  ;;  %v214_v22 = vadd.f32 %v1511_v27, %v213_v19  ;;  %v215_v23 = vpop.f32.mrb[9].mxu0  ;;  %1204 = vrot.lane.b32.xlu0 %v1203_v8, %s1384_s19  ;;  %v1208_v32 = vpack.i.bf16 %v1571_v11, %v1540_v52 }
 0x10a   :  { %v328_v24 = vrot.slane %v1578_v20, 2  ;;  %v329_v25 = vrot.slane %v1581_v21, 2  ;;  %v216_v26 = vpop.f32.mrb[10].mxu0  ;;  %v1595_v33 = vsel %vm292_vm2, %v301_v15, %v302_v16  ;;  %v1600_v35 = vsel %vm316_vm3, %v325_v17, %v326_v18 }
 0x10b   :  { %v232_v29 = vmax.f32 %v214_v22, 0.0  ;;  %v217_v30 = vadd.f32 %v1511_v27, %v216_v26  ;;  %v218_v31 = vpop.f32.mrb[11].mxu0  ;;  %v1218_v34 = vpack.i.bf16 %v1595_v33, %v1589_v28  ;;  %v1228_v40 = vpack.i.bf16 %v1600_v35, %v1561_v4 }
 0x10c   :  { %v1603_v36 = vsel %vm316_vm3, %v328_v24, %v329_v25  ;;  %1209 = vrot.lane.b32.xlu1 %v1208_v32, %s1385_s20  ;;  %v562_v42 = vpack.c.bf16 %v1600_v35, %v1561_v4  ;;  %v1213_v48 = vpack.i.bf16 %v1578_v20, %v1571_v11  ;;  %v304_v59 = vrot.slane %v1578_v20, 1  ;;  %v1347_v4 = vld [vmem:[%s1861_s5] sm:$0xff]  }
 0x10d   :  { %v248_v37 = vrot.slane %v232_v29, 7  ;;  %v233_v38 = vmax.f32 %v217_v30, 0.0  ;;  %v1233_v39 = vpack.i.bf16 %v1603_v36, %v1600_v35  ;;  %1219 = vrot.lane.b32.xlu0 %v1218_v34, %s1383_s0  ;;  %v305_v0 = vrot.slane %v1581_v21, 1  ;;  %1171 = vmatprep.subr.bf16.mxu0 %v1347_v4  ;;  %v1348_v35 = vld [vmem:[%s1861_s5 + $0x8] sm:$0xff]  }
 0x10e   :  { %1172 = vmatpush3.bf16.msra.mxu0 %v1347_v4 }
 0x10f   :  { %v1614_v43 = vsel %vm260_vm1, 0.0, %v248_v37  ;;  %v273_v46 = vsel %vm260_vm1, %v248_v37, 0.0  ;;  %v249_v47 = vrot.slane %v233_v38, 7  ;;  %v1662_v19 = vsel %vm292_vm2, %v304_v59, %v305_v0  ;;  %1173 = vmatprep.subr.bf16.mxu0 %v1348_v35 }
 0x110   :  { %v307_v49 = vrot.slane %v1614_v43, 1  ;;  %v308_v50 = vrot.slane %v273_v46, 1  ;;  %v331_v51 = vrot.slane %v1614_v43, 2  ;;  %v332_v53 = vrot.slane %v273_v46, 2  ;;  %v221_v54 = vpop.f32.mrb[12].mxu0  ;;  %1214 = vrot.lane.b32.xlu1 %v1213_v48, %s1383_s0 }
 0x111   :  { %v1622_v55 = vsel %vm260_vm1, 0.0, %v249_v47  ;;  %v274_v56 = vsel %vm260_vm1, %v249_v47, 0.0  ;;  %v222_v57 = vadd.f32 %v1511_v27, %v221_v54  ;;  %v223_v58 = vpop.f32.mrb[13].mxu0  ;;  %1234 = vrot.lane.b32.xlu0 %v1233_v39, %s1384_s19  ;;  %v1238_v7 = vpack.i.bf16 %v1614_v43, %v1578_v20 }
 0x112   :  { %v334_v61 = vrot.slane %v1622_v55, 2  ;;  %v335_v62 = vrot.slane %v274_v56, 2  ;;  %v224_v63 = vpop.f32.mrb[14].mxu0  ;;  %v1640_v8 = vsel %vm292_vm2, %v307_v49, %v308_v50  ;;  %v1643_v9 = vsel %vm316_vm3, %v331_v51, %v332_v53  ;;  %1174 = vmatpush3.bf16.msra.mxu0 %v1348_v35 }
 0x113   :  { %v234_v2 = vmax.f32 %v222_v57, 0.0  ;;  %v225_v3 = vadd.f32 %v1511_v27, %v224_v63  ;;  %v226_v5 = vpop.f32.mrb[15].mxu0  ;;  %v565_v14 = vpack.c.bf16 %v1643_v9, %v1603_v36  ;;  %v1258_v15 = vpack.i.bf16 %v1643_v9, %v1603_v36 }
 0x114   :  { %v1646_v10 = vsel %vm316_vm3, %v334_v61, %v335_v62  ;;  %1224 = vrot.lane.b32.xlu1 %v1218_v34, %s1384_s19  ;;  %v1248_v23 = vpack.i.bf16 %v1640_v8, %v1662_v19  ;;  %v1243_v30 = vpack.i.bf16 %v1622_v55, %v1614_v43  ;;  %v310_v48 = vrot.slane %v1622_v55, 1 }
 0x115   :  { %v250_v12 = vrot.slane %v234_v2, 7  ;;  %v235_v27 = vmax.f32 %v225_v3, 0.0  ;;  %v1263_v13 = vpack.i.bf16 %v1646_v10, %v1643_v9  ;;  %1239 = vrot.lane.b32.xlu0 %v1238_v7, %s1385_s20  ;;  %v311_v49 = vrot.slane %v274_v56, 1 }
 0x117   :  { %v1658_v16 = vsel %vm260_vm1, 0.0, %v250_v12  ;;  %v275_v17 = vsel %vm260_vm1, %v250_v12, 0.0  ;;  %v251_v18 = vrot.slane %v235_v27, 7  ;;  %v1702_v53 = vsel %vm292_vm2, %v310_v48, %v311_v49 }
 0x118   :  { %v337_v21 = vrot.slane %v1658_v16, 2  ;;  %v338_v22 = vrot.slane %v275_v17, 2  ;;  %1229 = vrot.lane.b32.xlu1 %v1228_v40, %s1385_s20  ;;  %v313_v40 = vrot.slane %v1658_v16, 1  ;;  %v314_v46 = vrot.slane %v275_v17, 1 }
 0x119   :  { %v268_v24 = vsel %vm260_vm1, 0.0, %v251_v18  ;;  %v276_v25 = vsel %vm260_vm1, %v251_v18, 0.0  ;;  %1249 = vrot.lane.b32.xlu0 %v1248_v23, %s1383_s0  ;;  %v1268_v47 = vpack.i.bf16 %v1658_v16, %v1622_v55 }
 0x11a   :  { %v353_v26 = vrot.slane %v268_v24, 2  ;;  %v354_v29 = vrot.slane %v276_v25, 2  ;;  %v1674_v31 = vsel %vm316_vm3, %v337_v21, %v338_v22  ;;  %v1273_v50 = vpack.i.bf16 %v1382_v44, %v268_v24 }
 0x11b   :  { %v1288_v32 = vpack.i.bf16 %v1674_v31, %v1646_v10  ;;  %v568_v39 = vpack.c.bf16 %v1674_v31, %v1646_v10  ;;  %v1697_v51 = vsel %vm292_vm2, %v313_v40, %v314_v46  ;;  %v342_v57 = vrot.slane %v268_v24, 1 }
 0x11c   :  { %v1679_v34 = vsel %vm316_vm3, %v353_v26, %v354_v29  ;;  %1244 = vrot.lane.b32.xlu1 %v1243_v30, %s1383_s0  ;;  %v1283_v54 = vpack.i.bf16 %v1697_v51, %v1702_v53  ;;  %v343_v58 = vrot.slane %v276_v25, 1  ;;  %v1303_v56 = vpack.i.bf16 %v268_v24, %v1658_v16 }
 0x11d   :  { %v571_v37 = vpack.c.bf16 %v1549_v60, %v1679_v34  ;;  %v1293_v38 = vpack.i.bf16 %v1679_v34, %v1674_v31  ;;  %1264 = vrot.lane.b32.xlu0 %v1263_v13, %s1384_s19 }
 0x11e   :  { %v1710_v44 = vsel %vm292_vm2, %v342_v57, %v343_v58 }
 0x11f   :  { %v1298_v59 = vpack.i.bf16 %v1532_v45, %v1710_v44 }
 0x120   :  { %1254 = vrot.lane.b32.xlu1 %v1248_v23, %s1384_s19 }
 0x121   :  { %1269 = vrot.lane.b32.xlu0 %v1268_v47, %s1385_s20 }
 0x124   :  { %1259 = vrot.lane.b32.xlu1 %v1258_v15, %s1385_s20 }
 0x125   :  { %1274 = vrot.lane.b32.xlu0 %v1273_v50, %s1385_s20 }
 0x128   :  { %1284 = vrot.lane.b32.xlu1 %v1283_v54, %s1384_s19 }
 0x129   :  { %1279 = vrot.lane.b32.xlu0 %v1283_v54, %s1383_s0 }
 0x12c   :  { %1289 = vrot.lane.b32.xlu1 %v1288_v32, %s1385_s20 }
 0x12d   :  { %1294 = vrot.lane.b32.xlu0 %v1293_v38, %s1384_s19 }
 0x130   :  { %1304 = vrot.lane.b32.xlu1 %v1303_v56, %s1383_s0 }
 0x131   :  { %1299 = vrot.lane.b32.xlu0 %v1298_v59, %s1383_s0 }
 0x176   :  { %v1190_v61 = vpop.permute.xlu1 %1189 }
 0x177   :  { %v1195_v62 = vpop.permute.xlu0 %1194  ;;  %v1192_v21 = vunpack.i.h.bf16 %v1190_v61  ;;  %v1191_v22 = vunpack.i.l.bf16 %v1190_v61 }
 0x178   :  { %v1197_v63 = vunpack.i.h.bf16 %v1195_v62  ;;  %v1196_v0 = vunpack.i.l.bf16 %v1195_v62 }
 0x17a   :  { %v1200_v2 = vpop.permute.xlu1 %1199  ;;  %v510_v13 = vsel %vm508_vm4, %v1528_v41, %v1197_v63  ;;  %v509_v45 = vsel %vm508_vm4, 0.0, %v1196_v0 }
 0x17b   :  { %v1202_v3 = vunpack.i.h.bf16 %v1200_v2  ;;  %v1201_v5 = vunpack.i.l.bf16 %v1200_v2  ;;  %v1205_v7 = vpop.permute.xlu0 %1204 }
 0x17c   :  { %v1207_v12 = vunpack.i.h.bf16 %v1205_v7  ;;  %v1206_v27 = vunpack.i.l.bf16 %v1205_v7 }
 0x17d   :  { %v518_v15 = vsel %vm517_vm5, %v509_v45, %v1201_v5  ;;  %v519_v17 = vsel %vm517_vm5, %v510_v13, %v1202_v3 }
 0x17e   :  { %v1210_v18 = vpop.permute.xlu1 %1209  ;;  %v535_v30 = vsel %vm508_vm4, %v1555_v1, %v1206_v27  ;;  %v536_v41 = vsel %vm508_vm4, %v1589_v28, %v1207_v12  ;;  %v527_v40 = vsel %vm526_vm6, %v518_v15, %v1191_v22  ;;  %v528_v46 = vsel %vm526_vm6, %v519_v17, %v1192_v21  ;;  %v1346_v1 = vld [vmem:[%s1859_s3 + $0x88] sm:$0xff]  }
 0x17f   :  { %v1212_v23 = vunpack.i.h.bf16 %v1210_v18  ;;  %v1211_v24 = vunpack.i.l.bf16 %v1210_v18  ;;  %v1220_v25 = vpop.permute.xlu0 %1219  ;;  %v560_v57 = vpack.c.bf16 %v528_v46, %v527_v40 }
 0x180   :  { %v1222_v26 = vunpack.i.h.bf16 %v1220_v25  ;;  %v1221_v29 = vunpack.i.l.bf16 %v1220_v25 }
 0x181   :  { %v543_v32 = vsel %vm517_vm5, %v535_v30, %v1211_v24  ;;  %v544_v38 = vsel %vm517_vm5, %v536_v41, %v1212_v23 }
 0x182   :  { %v1215_v47 = vpop.permute.xlu1 %1214  ;;  %v551_v48 = vsel %vm526_vm6, %v543_v32, %v1221_v29  ;;  %v552_v49 = vsel %vm526_vm6, %v544_v38, %v1222_v26 }
 0x183   :  { %v1235_v50 = vpop.permute.xlu0 %1234  ;;  %v561_v54 = vpack.c.bf16 %v552_v49, %v551_v48  ;;  %v1217_v2 = vunpack.i.h.bf16 %v1215_v47  ;;  %v1216_v3 = vunpack.i.l.bf16 %v1215_v47 }
 0x184   :  { %v1237_v58 = vunpack.i.h.bf16 %v1235_v50  ;;  %v1236_v56 = vunpack.i.l.bf16 %v1235_v50 }
 0x185   :  { %766 = vmatprep.mubr.bf16.mxu1 %v561_v54 }
 0x186   :  { %v1225_v28 = vpop.permute.xlu1 %1224  ;;  %767 = vmatmul.mubr.bf16.vlgmr.msra.gmra.mrb[0].mxu1 %v560_v57  ;;  %v538_v7 = vsel %vm508_vm4, %v1662_v19, %v1237_v58  ;;  %v537_v12 = vsel %vm508_vm4, %v1595_v33, %v1236_v56 }
 0x187   :  { %v1240_v59 = vpop.permute.xlu0 %1239  ;;  %1160 = vmatpush3.bf16.msra.mxu1 %v1635_v6  ;;  %v1227_v61 = vunpack.i.h.bf16 %v1225_v28  ;;  %v1226_v62 = vunpack.i.l.bf16 %v1225_v28 }
 0x188   :  { %1161 = vmatprep.subr.bf16.mxu1 %v1346_v1  ;;  %v1242_v63 = vunpack.i.h.bf16 %v1240_v59  ;;  %v1241_v0 = vunpack.i.l.bf16 %v1240_v59 }
 0x189   :  { %v512_v6 = vsel %vm508_vm4, %v1571_v11, %v1227_v61  ;;  %v511_v15 = vsel %vm508_vm4, %v1540_v52, %v1226_v62 }
 0x18a   :  { %v1230_v5 = vpop.permute.xlu1 %1229  ;;  %v545_v21 = vsel %vm517_vm5, %v537_v12, %v1241_v0  ;;  %v546_v22 = vsel %vm517_vm5, %v538_v7, %v1242_v63 }
 0x18b   :  { %v1232_v27 = vunpack.i.h.bf16 %v1230_v5  ;;  %v1231_v13 = vunpack.i.l.bf16 %v1230_v5  ;;  %v1250_v45 = vpop.permute.xlu0 %1249  ;;  %1162 = vmatpush3.bf16.msra.mxu1 %v1346_v1 }
 0x18c   :  { %v1252_v17 = vunpack.i.h.bf16 %v1250_v45  ;;  %v1251_v18 = vunpack.i.l.bf16 %v1250_v45 }
 0x18d   :  { %v520_v19 = vsel %vm517_vm5, %v511_v15, %v1231_v13  ;;  %v521_v33 = vsel %vm517_vm5, %v512_v6, %v1232_v27 }
 0x18e   :  { %v1245_v23 = vpop.permute.xlu1 %1244  ;;  %v553_v24 = vsel %vm526_vm6, %v545_v21, %v1251_v18  ;;  %v554_v25 = vsel %vm526_vm6, %v546_v22, %v1252_v17  ;;  %v529_v11 = vsel %vm526_vm6, %v520_v19, %v1216_v3  ;;  %v530_v26 = vsel %vm526_vm6, %v521_v33, %v1217_v2 }
 0x18f   :  { %v1265_v52 = vpop.permute.xlu0 %1264  ;;  %v564_v29 = vpack.c.bf16 %v554_v25, %v553_v24  ;;  %v563_v30 = vpack.c.bf16 %v530_v26, %v529_v11  ;;  %v1247_v61 = vunpack.i.h.bf16 %v1245_v23  ;;  %v1246_v62 = vunpack.i.l.bf16 %v1245_v23 }
 0x190   :  { %v1267_v47 = vunpack.i.h.bf16 %v1265_v52  ;;  %v1266_v48 = vunpack.i.l.bf16 %v1265_v52 }
 0x191   :  { %774 = vmatprep.mubr.bf16.mxu1 %v564_v29 }
 0x192   :  { %v1255_v41 = vpop.permute.xlu1 %1254  ;;  %775 = vmatmul.mubr.bf16.gmra.mrb[4].mxu1 %v563_v30  ;;  %v540_v0 = vsel %vm508_vm4, %v1702_v53, %v1267_v47  ;;  %v539_v2 = vsel %vm508_vm4, %v1640_v8, %v1266_v48 }
 0x193   :  { %v1270_v32 = vpop.permute.xlu0 %1269  ;;  %v1257_v38 = vunpack.i.h.bf16 %v1255_v41  ;;  %v1256_v40 = vunpack.i.l.bf16 %v1255_v41 }
 0x194   :  { %v1272_v28 = vunpack.i.h.bf16 %v1270_v32  ;;  %v1271_v58 = vunpack.i.l.bf16 %v1270_v32 }
 0x195   :  { %v514_v57 = vsel %vm508_vm4, %v1614_v43, %v1257_v38  ;;  %v513_v1 = vsel %vm508_vm4, %v1578_v20, %v1256_v40 }
 0x196   :  { %v1260_v46 = vpop.permute.xlu1 %1259  ;;  %v547_v12 = vsel %vm517_vm5, %v539_v2, %v1271_v58  ;;  %v548_v27 = vsel %vm517_vm5, %v540_v0, %v1272_v28 }
 0x197   :  { %v1262_v49 = vunpack.i.h.bf16 %v1260_v46  ;;  %v1261_v50 = vunpack.i.l.bf16 %v1260_v46  ;;  %v1275_v54 = vpop.permute.xlu0 %1274 }
 0x198   :  { %v1277_v23 = vunpack.i.h.bf16 %v1275_v54  ;;  %v1276_v24 = vunpack.i.l.bf16 %v1275_v54 }
 0x199   :  { %v522_v56 = vsel %vm517_vm5, %v513_v1, %v1261_v50  ;;  %v523_v59 = vsel %vm517_vm5, %v514_v57, %v1262_v49 }
 0x19a   :  { %v1285_v63 = vpop.permute.xlu1 %1284  ;;  %v531_v20 = vsel %vm526_vm6, %v522_v56, %v1246_v62  ;;  %v532_v7 = vsel %vm526_vm6, %v523_v59, %v1247_v61 }
 0x19b   :  { %v1280_v3 = vpop.permute.xlu0 %1279  ;;  %v1287_v53 = vunpack.i.h.bf16 %v1285_v63  ;;  %v1286_v15 = vunpack.i.l.bf16 %v1285_v63  ;;  %v566_v18 = vpack.c.bf16 %v532_v7, %v531_v20  ;;  %v1069_v20 = vld [vmem:[%s1862_s4] ss:$0 sm:$0xff] }
 0x19c   :  { %v1282_v43 = vunpack.i.h.bf16 %v1280_v3  ;;  %v1281_v5 = vunpack.i.l.bf16 %v1280_v3 }
 0x19d   :  { %v516_v52 = vsel %vm508_vm4, %v1658_v16, %v1287_v53  ;;  %v515_v29 = vsel %vm508_vm4, %v1622_v55, %v1286_v15 }
 0x19e   :  { %v1290_v13 = vpop.permute.xlu1 %1289  ;;  %v555_v45 = vsel %vm526_vm6, %v547_v12, %v1281_v5  ;;  %v556_v6 = vsel %vm526_vm6, %v548_v27, %v1282_v43 }
 0x19f   :  { %v1295_v17 = vpop.permute.xlu0 %1294  ;;  %v567_v8 = vpack.c.bf16 %v556_v6, %v555_v45  ;;  %v1292_v21 = vunpack.i.h.bf16 %v1290_v13  ;;  %v1291_v22 = vunpack.i.l.bf16 %v1290_v13 }
 0x1a0   :  { %v1297_v19 = vunpack.i.h.bf16 %v1295_v17  ;;  %v1296_v33 = vunpack.i.l.bf16 %v1295_v17 }
 0x1a1   :  { %782 = vmatprep.mubr.bf16.mxu1 %v567_v8  ;;  %v524_v38 = vsel %vm517_vm5, %v515_v29, %v1291_v22  ;;  %v525_v40 = vsel %vm517_vm5, %v516_v52, %v1292_v21 }
 0x1a2   :  { %v542_v25 = vsel %vm508_vm4, %v1710_v44, %v1297_v19  ;;  %v541_v11 = vsel %vm508_vm4, %v1697_v51, %v1296_v33  ;;  %v1305_v26 = vpop.permute.xlu1 %1304  ;;  %783 = vmatmul.mubr.bf16.gmra.mrb[8].mxu1 %v566_v18 }
 0x1a3   :  { %v1307_v30 = vunpack.i.h.bf16 %v1305_v26  ;;  %v1306_v41 = vunpack.i.l.bf16 %v1305_v26  ;;  %v1300_v32 = vpop.permute.xlu0 %1299  ;;  %v549_v47 = vsel %vm517_vm5, %v541_v11, %v1276_v24  ;;  %v550_v51 = vsel %vm517_vm5, %v542_v25, %v1277_v23 }
 0x1a4   :  { %v1302_v46 = vunpack.i.h.bf16 %v1300_v32  ;;  %v1301_v44 = vunpack.i.l.bf16 %v1300_v32 }
 0x1a5   :  { %v533_v48 = vsel %vm526_vm6, %v524_v38, %v1306_v41  ;;  %v534_v16 = vsel %vm526_vm6, %v525_v40, %v1307_v30 }
 0x1a6   :  { %v557_v49 = vsel %vm526_vm6, %v549_v47, %v1301_v44  ;;  %v558_v55 = vsel %vm526_vm6, %v550_v51, %v1302_v46  ;;  %v569_v54 = vpack.c.bf16 %v534_v16, %v533_v48 }
 0x1a7   :  { %v570_v50 = vpack.c.bf16 %v558_v55, %v557_v49 }
 0x1a9   :  { %790 = vmatprep.mubr.bf16.mxu1 %v570_v50 }
 0x1aa   :  { %791 = vmatmul.mubr.bf16.gmra.mrb[12].mxu1 %v569_v54  ;;  %v1092_v54 = vld [vmem:[%s1863_s6] ss:$0 sm:$0xff] }
 0x1ab   :  { %1163 = vmatprep.mubr.msk.bf16.mxu1 %vm508_vm4, %v562_v42 }
 0x1b2   :  { %1164 = vmatmul.mubr.msk.bf16.vlgmr.msra.gmra.mrb[16].mxu1 %vm508_vm4, %v565_v14 }
 0x1b3   :  { %1167 = vmatprep.mubr.msk.bf16.mxu1 %vm508_vm4, %v568_v39 }
 0x1ba   :  { %1168 = vmatmul.mubr.msk.bf16.gmra.mrb[20].mxu1 %vm508_vm4, %v571_v37 }
 0x259   :  { %v1123_v36 = vpop.f32.mrb[0].mxu1 }
 0x25a   :  { %v1124_v42 = vpop.f32.mrb[1].mxu1 }
 0x25b   :  { %v1125_v9 = vadd.f32 %v1124_v42, %v1123_v36  ;;  %v1126_v10 = vpop.f32.mrb[2].mxu1 }
 0x25c   :  { %v1127_v14 = vpop.f32.mrb[3].mxu1 }
 0x25d   :  { %v1128_v60 = vadd.f32 %v1127_v14, %v1126_v10  ;;  %v769_v27 = vadd.f32 %v1125_v9, %v1069_v20 }
 0x25f   :  { %v772_v17 = vadd.f32 %v1128_v60, %v1069_v20 }
 0x265   :  { %v1129_v31 = vpop.f32.mrb[4].mxu1 }
 0x266   :  { %v1130_v34 = vpop.f32.mrb[5].mxu1 }
 0x267   :  { %v1131_v37 = vadd.f32 %v1130_v34, %v1129_v31  ;;  %v1132_v39 = vpop.f32.mrb[6].mxu1 }
 0x268   :  { %v1133_v57 = vpop.f32.mrb[7].mxu1 }
 0x269   :  { %v1134_v1 = vadd.f32 %v1133_v57, %v1132_v39  ;;  %v777_v7 = vadd.f32 %v1131_v37, %v1069_v20 }
 0x26b   :  { %v780_v6 = vadd.f32 %v1134_v1, %v1069_v20 }
 0x275   :  { %v1135_v28 = vpop.f32.mrb[8].mxu1 }
 0x276   :  { %v1136_v58 = vpop.f32.mrb[9].mxu1 }
 0x277   :  { %v1137_v56 = vadd.f32 %v1136_v58, %v1135_v28  ;;  %v1138_v59 = vpop.f32.mrb[10].mxu1 }
 0x278   :  { %v1139_v61 = vpop.f32.mrb[11].mxu1 }
 0x279   :  { %v1140_v62 = vadd.f32 %v1139_v61, %v1138_v59  ;;  %v785_v52 = vadd.f32 %v1137_v56, %v1069_v20 }
 0x27b   :  { %v788_v40 = vadd.f32 %v1140_v62, %v1069_v20 }
 0x27d   :  { %v1141_v63 = vpop.f32.mrb[12].mxu1 }
 0x27e   :  { %v1142_v0 = vpop.f32.mrb[13].mxu1 }
 0x27f   :  { %v1143_v2 = vadd.f32 %v1142_v0, %v1141_v63  ;;  %v1144_v3 = vpop.f32.mrb[14].mxu1 }
 0x280   :  { %v1145_v43 = vpop.f32.mrb[15].mxu1 }
 0x281   :  { %v1146_v5 = vadd.f32 %v1145_v43, %v1144_v3  ;;  %v793_v25 = vadd.f32 %v1143_v2, %v1069_v20 }
 0x283   :  { %v796_v41 = vadd.f32 %v1146_v5, %v1069_v20 }
 0x285   :  { %v1165_v12 = vpop.f32.mrb[16].mxu1 }
 0x286   :  { %v842_v13 = vadd.f32 %v1165_v12, %v777_v7  ;;  %v833_v45 = vpop.f32.mrb[17].mxu1 }
 0x287   :  { %v834_v53 = vadd.f32 %v833_v45, %v769_v27  ;;  %v1166_v15 = vpop.f32.mrb[18].mxu1 }
 0x288   :  { %v845_v8 = vadd.f32 %v1166_v15, %v780_v6  ;;  %v836_v18 = vpop.f32.mrb[19].mxu1  ;;  %v866_v22 = vmax.f32 %v842_v13, 0.0  ;;  %v976_v13 = vlaneseq }
 0x289   :  { %v837_v21 = vadd.f32 %v836_v18, %v772_v17  ;;  %v864_v33 = vmax.f32 %v834_v53, 0.0 }
 0x28a   :  { %v867_v19 = vmax.f32 %v845_v8, 0.0  ;;  %v977_v53 = vand.u32 127, %v976_v13 }
 0x28b   :  { %v865_v23 = vmax.f32 %v837_v21, 0.0 }
 0x28c   :  { %v874_v24 = vpack.c.bf16 %v867_v19, %v866_v22  ;;  %vm978_vm7 = vcmp.lt.s32.totalorder %v977_v53, 3 }
 0x28d   :  { %v873_v11 = vpack.c.bf16 %v865_v23, %v864_v33  ;;  %v1169_v26 = vpop.f32.mrb[20].mxu1 }
 0x28e   :  { %v858_v29 = vadd.f32 %v1169_v26, %v793_v25  ;;  %v849_v30 = vpop.f32.mrb[21].mxu1 }
 0x28f   :  { %v850_v32 = vadd.f32 %v849_v30, %v785_v52  ;;  %v1170_v38 = vpop.f32.mrb[22].mxu1  ;;  %1175 = vmatprep.mubr.msk.bf16.mxu0 %vm508_vm4, %v873_v11 }
 0x290   :  { %v861_v46 = vadd.f32 %v1170_v38, %v796_v41  ;;  %v852_v44 = vpop.f32.mrb[23].mxu1  ;;  %1176 = vmatmul.mubr.msk.bf16.vlgmr.msra.gmra.mrb[16].mxu0 %vm508_vm4, %v874_v24  ;;  %v870_v51 = vmax.f32 %v858_v29, 0.0 }
 0x291   :  { %v853_v47 = vadd.f32 %v852_v44, %v788_v40  ;;  %v868_v16 = vmax.f32 %v850_v32, 0.0 }
 0x292   :  { %v871_v48 = vmax.f32 %v861_v46, 0.0 }
 0x293   :  { %v869_v49 = vmax.f32 %v853_v47, 0.0 }
 0x294   :  { %v876_v55 = vpack.c.bf16 %v871_v48, %v870_v51 }
 0x295   :  { %v875_v50 = vpack.c.bf16 %v869_v49, %v868_v16 }
 0x297   :  { %1179 = vmatprep.mubr.msk.bf16.mxu0 %vm508_vm4, %v875_v50 }
 0x298   :  { %1180 = vmatmul.mubr.msk.bf16.gmra.mrb[20].mxu0 %vm508_vm4, %v876_v55 }
 0x363   :  { %v1177_v4 = vpop.f32.mrb[16].mxu0 }
 0x364   :  { %v954_v35 = vadd.f32 %v1177_v4, %v1092_v54  ;;  %v945_v36 = vpop.f32.mrb[17].mxu0 }
 0x365   :  { %v1817_v42 = vadd.f32 %v1092_v54, %v945_v36  ;;  %v1178_v9 = vpop.f32.mrb[18].mxu0 }
 0x366   :  { %v1101_v10 = vmul.f32 -1.442695, %v954_v35  ;;  %v1819_v14 = vadd.f32 %v1178_v9, %v1092_v54  ;;  %v948_v60 = vpop.f32.mrb[19].mxu0 }
 0x367   :  { %v1099_v31 = vmul.f32 -1.442695, %v1817_v42  ;;  %v949_v34 = vadd.f32 %v1092_v54, %v948_v60 }
 0x368   :  { %1349 = vpow2.f32 %v1101_v10  ;;  %v1102_v37 = vmul.f32 -1.442695, %v1819_v14 }
 0x369   :  { %1351 = vpow2.f32 %v1099_v31  ;;  %v1100_v39 = vmul.f32 -1.442695, %v949_v34 }
 0x36a   :  { %1353 = vpow2.f32 %v1102_v37 }
 0x36b   :  { %1355 = vpow2.f32 %v1100_v39  ;;  %v1181_v57 = vpop.f32.mrb[20].mxu0 }
 0x36c   :  { %v970_v1 = vadd.f32 %v1181_v57, %v1092_v54  ;;  %v961_v28 = vpop.f32.mrb[21].mxu0 }
 0x36d   :  { %v962_v58 = vadd.f32 %v1092_v54, %v961_v28  ;;  %v1182_v56 = vpop.f32.mrb[22].mxu0 }
 0x36e   :  { %v1105_v59 = vmul.f32 -1.442695, %v970_v1  ;;  %v973_v61 = vadd.f32 %v1182_v56, %v1092_v54  ;;  %v964_v62 = vpop.f32.mrb[23].mxu0 }
 0x36f   :  { %v1103_v63 = vmul.f32 -1.442695, %v962_v58  ;;  %v965_v0 = vadd.f32 %v1092_v54, %v964_v62 }
 0x370   :  { %1357 = vpow2.f32 %v1105_v59  ;;  %v1106_v2 = vmul.f32 -1.442695, %v973_v61 }
 0x371   :  { %1359 = vpow2.f32 %v1103_v63  ;;  %v1104_v3 = vmul.f32 -1.442695, %v965_v0 }
 0x372   :  { %v1350_v43 = vpop.eup %1349  ;;  %1361 = vpow2.f32 %v1106_v2 }
 0x373   :  { %v1352_v5 = vpop.eup %1351  ;;  %v1005_v20 = vadd.f32 1.0, %v1350_v43  ;;  %1363 = vpow2.f32 %v1104_v3 }
 0x374   :  { %v1354_v7 = vpop.eup %1353  ;;  %v1003_v12 = vadd.f32 1.0, %v1352_v5 }
 0x375   :  { %v1356_v27 = vpop.eup %1355  ;;  %1365 = vrcp.f32 %v1005_v20  ;;  %v1006_v45 = vadd.f32 1.0, %v1354_v7 }
 0x376   :  { %1367 = vrcp.f32 %v1003_v12  ;;  %v1004_v6 = vadd.f32 1.0, %v1356_v27 }
 0x377   :  { %1369 = vrcp.f32 %v1006_v45 }
 0x378   :  { %1371 = vrcp.f32 %v1004_v6 }
 0x37a   :  { %v1358_v15 = vpop.eup %1357 }
 0x37b   :  { %v1360_v17 = vpop.eup %1359  ;;  %v1009_v8 = vadd.f32 1.0, %v1358_v15 }
 0x37c   :  { %v1362_v18 = vpop.eup %1361  ;;  %v1007_v21 = vadd.f32 1.0, %v1360_v17 }
 0x37d   :  { %v1364_v22 = vpop.eup %1363  ;;  %1373 = vrcp.f32 %v1009_v8  ;;  %v1010_v19 = vadd.f32 1.0, %v1362_v18 }
 0x37e   :  { %1375 = vrcp.f32 %v1007_v21  ;;  %v1008_v33 = vadd.f32 1.0, %v1364_v22 }
 0x37f   :  { %v1366_v23 = vpop.eup %1365  ;;  %1377 = vrcp.f32 %v1010_v19 }
 0x380   :  { %v1368_v24 = vpop.eup %1367  ;;  %v1029_v25 = vsel %vm978_vm7, %v1366_v23, %v954_v35  ;;  %1379 = vrcp.f32 %v1008_v33 }
 0x381   :  { %v1370_v11 = vpop.eup %1369  ;;  %1037 = vst [vmem:[%s1864_s7 + $0x10] sm:$0xff] %v1029_v25  ;;  %v1027_v26 = vsel %vm978_vm7, %v1368_v24, %v1817_v42 }
 0x382   :  { %v1372_v52 = vpop.eup %1371  ;;  %1035 = vst [vmem:[%s1864_s7] sm:$0xff] %v1027_v26  ;;  %v1030_v29 = vsel %vm978_vm7, %v1370_v11, %v1819_v14 }
 0x383   :  { %1038 = vst [vmem:[%s1864_s7 + $0x18] sm:$0xff] %v1030_v29  ;;  %v1028_v30 = vsel %vm978_vm7, %v1372_v52, %v949_v34 }
 0x384   :  { %1036 = vst [vmem:[%s1864_s7 + $0x8] sm:$0xff] %v1028_v30 }
 0x387   :  { %v1374_v41 = vpop.eup %1373 }
 0x388   :  { %v1376_v32 = vpop.eup %1375  ;;  %v1033_v38 = vsel %vm978_vm7, %v1374_v41, %v970_v1 }
 0x389   :  { %v1378_v40 = vpop.eup %1377  ;;  %1041 = vst [vmem:[%s1864_s7 + $0x30] sm:$0xff] %v1033_v38  ;;  %v1031_v46 = vsel %vm978_vm7, %v1376_v32, %v962_v58 }
 0x38a   :  { %v1380_v44 = vpop.eup %1379  ;;  %1039 = vst [vmem:[%s1864_s7 + $0x20] sm:$0xff] %v1031_v46  ;;  %v1034_v47 = vsel %vm978_vm7, %v1378_v40, %v973_v61 }
 0x38b   :  { %1042 = vst [vmem:[%s1864_s7 + $0x38] sm:$0xff] %v1034_v47  ;;  %v1032_v51 = vsel %vm978_vm7, %v1380_v44, %v965_v0 }
 0x38c   :  { %1040 = vst [vmem:[%s1864_s7 + $0x28] sm:$0xff] %v1032_v51 }

// kernel: detector_forward.3
= control target key start
LH: loop header
LB: loop body
LE: loop exit
PB: predicated region body
PF: predicated region fallthrough
CT: control target
= control target key end

     0   :  { %vm2761_vm0 = vcmask 130048   ;;  %vm91_vm1 = vcmask 1040384   ;;  %vm250_vm2 = vcmask 1046528   ;;  %v12433_v3 = vmov 0.0   ;;  %s7055_s14 = smov 3   ;;  %s7058_s10 = smov 12   ;;  %s12425_s0 = inlined_call_operand.vmem [shape: f32[16,16,3], index: 0, kind: input, shape index: {}]   ;;  %s12426_s7 = inlined_call_operand.vmem [shape: f32[18,18,16], index: 7, kind: output, shape index: {}]   ;;  %s12427_s1 = inlined_call_operand.vmem [shape: bf16[27,16], index: 1, kind: input, shape index: {}]   ;;  %s12428_s2 = inlined_call_operand.vmem [shape: f32[1,16], index: 2, kind: input, shape index: {}]   ;;  %s12429_s3 = inlined_call_operand.vmem [shape: bf16[144,16], index: 3, kind: input, shape index: {}]   ;;  %s12430_s4 = inlined_call_operand.vmem [shape: f32[1,16], index: 4, kind: input, shape index: {}]   ;;  %s12431_s5 = inlined_call_operand.vmem [shape: bf16[144,16], index: 5, kind: input, shape index: {}]   ;;  %s12432_s6 = inlined_call_operand.vmem [shape: f32[1,16], index: 6, kind: input, shape index: {}]  }
   0x1   :  { %v29_v0 = vld [vmem:[%s12425_s0 + $0x10] sm:$0xff]  ;;  %v30_v1 = vld [vmem:[%s12425_s0 + $0x18] sm:$0xff]  ;;  %v31_v2 = vld [vmem:[%s12425_s0 + $0x20] sm:$0xff]  ;;  %5131 = vst.msk [vmem:[%s12426_s7] sm:$0xff] %vm2761_vm0, %v12433_v3  ;;  %vm5133_vm3 = vcmask 123904   ;;  %v7161_v13 = vrot.slane %v12433_v3, 1 }
   0x2   :  { %5132 = vst.msk [vmem:[%s12426_s7 + $0x8] sm:$0xff] %vm2761_vm0, %v12433_v3  ;;  %5183 = vst.msk [vmem:[%s12426_s7 + $0x198] sm:$0xff] %vm2761_vm0, %v12433_v3  ;;  %v32_v4 = vld [vmem:[%s12425_s0 + $0x28] sm:$0xff]  ;;  %v95_v5 = vrot.slane %v29_v0, 7  ;;  %v96_v6 = vrot.slane %v30_v1, 7  ;;  %v98_v7 = vrot.slane %v31_v2, 7 }
   0x3   :  { %5184 = vst.msk [vmem:[%s12426_s7 + $0x1a0] sm:$0xff] %vm2761_vm0, %v12433_v3  ;;  %v27_v8 = vld [vmem:[%s12425_s0] sm:$0xff]  ;;  %v28_v9 = vld [vmem:[%s12425_s0 + $0x8] sm:$0xff]  ;;  %v99_v10 = vrot.slane %v32_v4, 7  ;;  %12694 = vst [vmem:[#allocation2_spill] sm:$0xff] %v7161_v13  ;;  %vm328_vm4 = vcmask 1045504  }
   0x4   :  { %5134 = vst.msk [vmem:[%s12426_s7 + $0x10] sm:$0x3] %vm5133_vm3, %v12433_v3  ;;  %5185 = vst.msk [vmem:[%s12426_s7 + $0x1a8] sm:$0x3] %vm5133_vm3, %v12433_v3  ;;  %v92_v11 = vrot.slane %v27_v8, 7  ;;  %v93_v12 = vrot.slane %v28_v9, 7  ;;  %v7167_v15 = vsel %vm91_vm1, %v95_v5, %v96_v6 }
   0x5   :  { %v33_v14 = vld [vmem:[%s12425_s0 + $0x30] sm:$0xff]  ;;  %v7170_v16 = vsel %vm91_vm1, 0.0, %v98_v7  ;;  %v7173_v17 = vsel %vm91_vm1, %v96_v6, 0.0  ;;  %v7176_v19 = vsel %vm91_vm1, %v98_v7, %v99_v10  ;;  %v259_v20 = vrot.slane %v7167_v15, 1  ;;  %v34_v23 = vld [vmem:[%s12425_s0 + $0x38] sm:$0xff]  ;;  %v35_v36 = vld [vmem:[%s12425_s0 + $0x40] sm:$0xff] }
   0x6   :  { %v101_v18 = vrot.slane %v33_v14, 7  ;;  %v261_v21 = vrot.slane %v7173_v17, 1  ;;  %v263_v22 = vrot.slane %v7170_v16, 1  ;;  %v264_v24 = vrot.slane %v7176_v19, 1  ;;  %v36_v41 = vld [vmem:[%s12425_s0 + $0x48] sm:$0xff]  ;;  %v37_v42 = vld [vmem:[%s12425_s0 + $0x50] sm:$0xff] }
   0x7   :  { %v7187_v26 = vsel %vm91_vm1, %v92_v11, %v93_v12  ;;  %v7190_v27 = vsel %vm91_vm1, 0.0, %v92_v11  ;;  %v7196_v29 = vsel %vm91_vm1, %v93_v12, 0.0  ;;  %v102_v34 = vrot.slane %v34_v23, 7  ;;  %v38_v47 = vld [vmem:[%s12425_s0 + $0x58] sm:$0xff]  ;;  %v39_v0 = vld [vmem:[%s12425_s0 + $0x60] sm:$0xff]  ;;  %v40_v1 = vld [vmem:[%s12425_s0 + $0x68] sm:$0xff] }
   0x8   :  { %12695 = vst [vmem:[#allocation3_spill] sm:$0xff] %v7187_v26  ;;  %v7193_v28 = vsel %vm250_vm2, %v259_v20, %v261_v21  ;;  %v253_v30 = vrot.slane %v7190_v27, 1  ;;  %v254_v31 = vrot.slane %v7187_v26, 1  ;;  %v7201_v32 = vsel %vm250_vm2, %v263_v22, %v264_v24  ;;  %v41_v2 = vld [vmem:[%s12425_s0 + $0x70] sm:$0xff]  ;;  %v42_v8 = vld [vmem:[%s12425_s0 + $0x78] sm:$0xff]  ;;  %s7059_s11 = smov 15  }
   0x9   :  { %12696 = vst [vmem:[#allocation4_spill] sm:$0xff] %v7193_v28  ;;  %12697 = vst [vmem:[#allocation5_spill] sm:$0xff] %v7201_v32  ;;  %v256_v33 = vrot.slane %v7196_v29, 1  ;;  %v7205_v35 = vsel %vm91_vm1, 0.0, %v101_v18  ;;  %v5347_v37 = vpack.i.bf16 %v7201_v32, %v7193_v28  ;;  %v7216_v39 = vsel %vm91_vm1, %v99_v10, 0.0  ;;  %s7060_s12 = smov 18  }
   0xa   :  { %v7213_v38 = vsel %vm250_vm2, %v253_v30, %v254_v31  ;;  %v268_v40 = vrot.slane %v7205_v35, 1  ;;  %v7231_v45 = vsel %vm91_vm1, %v101_v18, %v102_v34  ;;  %v266_v46 = vrot.slane %v7216_v39, 1  ;;  %s7063_s18 = smov 24   ;;  %s7065_s21 = smov 48  }
   0xb   :  { %12698 = vst [vmem:[#allocation6_spill] sm:$0xff] %v7213_v38  ;;  %v7226_v43 = vsel %vm250_vm2, %v254_v31, %v256_v33  ;;  %v5337_v44 = vpack.i.bf16 %v7213_v38, %v7161_v13  ;;  %12700 = vst [vmem:[#allocation8_spill] sm:$0xff] %v7231_v45  ;;  %5348 = vrot.lane.b32.xlu1 %v5347_v37, %s7055_s14  ;;  %v269_v49 = vrot.slane %v7231_v45, 1  ;;  %v7242_v50 = vsel %vm91_vm1, 0.0, %v95_v5  ;;  %v43_v37 = vld [vmem:[%s12425_s0 + $0x80] sm:$0xff]  ;;  %s7066_s22 = smov 112  }
   0xc   :  { %12699 = vst [vmem:[#allocation7_spill] sm:$0xff] %v7226_v43  ;;  %12701 = vst [vmem:[#allocation9_spill] sm:$0xff] %v7242_v50  ;;  %v104_v51 = vrot.slane %v35_v36, 7  ;;  %v7246_v52 = vsel %vm250_vm2, %v264_v24, %v266_v46  ;;  %v258_v53 = vrot.slane %v7242_v50, 1  ;;  %v105_v54 = vrot.slane %v36_v41, 7  ;;  %s7067_s23 = smov 64  }
   0xd   :  { %5338 = vrot.lane.b32.xlu0 %v5337_v44, %s7055_s14  ;;  %12702 = vst [vmem:[#allocation10_spill] sm:$0xff] %v7246_v52  ;;  %v107_v55 = vrot.slane %v37_v42, 7  ;;  %v7250_v56 = vsel %vm250_vm2, %v268_v40, %v269_v49  ;;  %v108_v57 = vrot.slane %v38_v47, 7  ;;  %v7256_v59 = vsel %vm91_vm1, %v102_v34, 0.0  ;;  %v44_v40 = vld [vmem:[%s12425_s0 + $0x88] sm:$0xff]  ;;  %v45_v47 = vld [vmem:[%s12425_s0 + $0x90] sm:$0xff] }
   0xe   :  { %12703 = vst [vmem:[#allocation11_spill] sm:$0xff] %v7250_v56  ;;  %v7253_v58 = vsel %vm91_vm1, 0.0, %v104_v51  ;;  %v5352_v60 = vpack.i.bf16 %v7250_v56, %v7246_v52  ;;  %v7261_v61 = vsel %vm250_vm2, %v258_v53, %v259_v20  ;;  %v7264_v62 = vsel %vm91_vm1, %v104_v51, %v105_v54  ;;  %s7068_s24 = smov 80   ;;  %s7069_s25 = smov 16  }
   0xf   :  { %12704 = vst [vmem:[#allocation12_spill] sm:$0xff] %v7253_v58  ;;  %12705 = vst [vmem:[#allocation13_spill] sm:$0xff] %v7261_v61  ;;  %v7267_v63 = vsel %vm91_vm1, 0.0, %v107_v55  ;;  %v5342_v4 = vpack.i.bf16 %v7261_v61, %v7226_v43  ;;  %v7281_v5 = vsel %vm91_vm1, %v107_v55, %v108_v57  ;;  %v7284_v6 = vsel %vm91_vm1, %v105_v54, 0.0  ;;  %v46_v55 = vld [vmem:[%s12425_s0 + $0x98] sm:$0xff]  ;;  %s7070_s26 = smov 32  }
  0x10   :  { %12706 = vst [vmem:[#allocation14_spill] sm:$0xff] %v7264_v62  ;;  %12707 = vst [vmem:[#allocation15_spill] sm:$0xff] %v7267_v63  ;;  %v274_v7 = vrot.slane %v7264_v62, 1  ;;  %5353 = vrot.lane.b32.xlu1 %v5352_v60, %s7055_s14  ;;  %v276_v9 = vrot.slane %v7284_v6, 1  ;;  %v278_v10 = vrot.slane %v7267_v63, 1  ;;  %v279_v11 = vrot.slane %v7281_v5, 1 }
  0x11   :  { %12708 = vst [vmem:[#allocation16_spill] sm:$0xff] %v7281_v5  ;;  %v271_v12 = vrot.slane %v7256_v59, 1  ;;  %5343 = vrot.lane.b32.xlu0 %v5342_v4, %s7055_s14  ;;  %v273_v14 = vrot.slane %v7253_v58, 1  ;;  %v110_v18 = vrot.slane %v39_v0, 7  ;;  %v111_v20 = vrot.slane %v40_v1, 7 }
  0x12   :  { %v113_v21 = vrot.slane %v41_v2, 7  ;;  %v7298_v22 = vsel %vm250_vm2, %v274_v7, %v276_v9  ;;  %v7301_v23 = vsel %vm250_vm2, %v278_v10, %v279_v11  ;;  %v114_v30 = vrot.slane %v42_v8, 7 }
  0x13   :  { %12709 = vst [vmem:[#allocation17_spill] sm:$0xff] %v7298_v22  ;;  %12710 = vst [vmem:[#allocation18_spill] sm:$0xff] %v7301_v23  ;;  %v7304_v24 = vsel %vm250_vm2, %v269_v49, %v271_v12  ;;  %v5362_v31 = vpack.i.bf16 %v7301_v23, %v7298_v22  ;;  %v7309_v33 = vsel %vm250_vm2, %v273_v14, %v274_v7  ;;  %v7329_v44 = vsel %vm91_vm1, %v111_v20, 0.0 }
  0x14   :  { %12711 = vst [vmem:[#allocation19_spill] sm:$0xff] %v7304_v24  ;;  %12712 = vst [vmem:[#allocation20_spill] sm:$0xff] %v7309_v33  ;;  %v7312_v34 = vsel %vm91_vm1, %v110_v18, %v111_v20  ;;  %v7315_v36 = vsel %vm91_vm1, 0.0, %v113_v21  ;;  %v5357_v41 = vpack.i.bf16 %v7309_v33, %v7304_v24  ;;  %v7326_v42 = vsel %vm91_vm1, %v113_v21, %v114_v30 }
  0x15   :  { %12713 = vst [vmem:[#allocation21_spill] sm:$0xff] %v7312_v34  ;;  %12714 = vst [vmem:[#allocation22_spill] sm:$0xff] %v7315_v36  ;;  %v284_v46 = vrot.slane %v7312_v34, 1  ;;  %5363 = vrot.lane.b32.xlu1 %v5362_v31, %s7055_s14  ;;  %v286_v49 = vrot.slane %v7329_v44, 1  ;;  %v288_v51 = vrot.slane %v7315_v36, 1  ;;  %v289_v53 = vrot.slane %v7326_v42, 1 }
  0x16   :  { %12715 = vst [vmem:[#allocation23_spill] sm:$0xff] %v7326_v42  ;;  %v7340_v54 = vsel %vm91_vm1, 0.0, %v110_v18  ;;  %5358 = vrot.lane.b32.xlu0 %v5357_v41, %s7055_s14  ;;  %v7347_v60 = vsel %vm91_vm1, %v108_v57, 0.0  ;;  %v116_v1 = vrot.slane %v43_v37, 7  ;;  %v117_v2 = vrot.slane %v44_v40, 7  ;;  %v47_v18 = vld [vmem:[%s12425_s0 + $0xa0] sm:$0xff] }
  0x17   :  { %12716 = vst [vmem:[#allocation24_spill] sm:$0xff] %v7340_v54  ;;  %v283_v0 = vrot.slane %v7340_v54, 1  ;;  %v7351_v4 = vsel %vm250_vm2, %v284_v46, %v286_v49  ;;  %v7354_v7 = vsel %vm250_vm2, %v288_v51, %v289_v53  ;;  %v281_v8 = vrot.slane %v7347_v60, 1  ;;  %v48_v40 = vld [vmem:[%s12425_s0 + $0xa8] sm:$0xff]  ;;  %v49_v49 = vld [vmem:[%s12425_s0 + $0xb0] sm:$0xff]  ;;  %v50_v51 = vld [vmem:[%s12425_s0 + $0xb8] sm:$0xff] }
  0x18   :  { %12717 = vst [vmem:[#allocation25_spill] sm:$0xff] %v7351_v4  ;;  %12718 = vst [vmem:[#allocation26_spill] sm:$0xff] %v7354_v7  ;;  %v119_v9 = vrot.slane %v45_v47, 7  ;;  %v5372_v10 = vpack.i.bf16 %v7354_v7, %v7351_v4  ;;  %v7363_v57 = vsel %vm91_vm1, %v116_v1, %v117_v2  ;;  %v120_v14 = vrot.slane %v46_v55, 7 }
  0x19   :  { %v7360_v12 = vsel %vm250_vm2, %v283_v0, %v284_v46  ;;  %12720 = vst [vmem:[#allocation28_spill] sm:$0xff] %v7363_v57  ;;  %v7369_v20 = vsel %vm250_vm2, %v279_v11, %v281_v8  ;;  %v7375_v31 = vsel %vm91_vm1, %v117_v2, 0.0  ;;  %v294_v37 = vrot.slane %v7363_v57, 1 }
  0x1a   :  { %12719 = vst [vmem:[#allocation27_spill] sm:$0xff] %v7360_v12  ;;  %12721 = vst [vmem:[#allocation29_spill] sm:$0xff] %v7369_v20  ;;  %v7372_v21 = vsel %vm91_vm1, 0.0, %v119_v9  ;;  %5373 = vrot.lane.b32.xlu1 %v5372_v10, %s7055_s14  ;;  %v5367_v41 = vpack.i.bf16 %v7360_v12, %v7369_v20  ;;  %v7385_v11 = vsel %vm91_vm1, %v119_v9, %v120_v14  ;;  %v296_v46 = vrot.slane %v7375_v31, 1 }
  0x1b   :  { %12722 = vst [vmem:[#allocation30_spill] sm:$0xff] %v7372_v21  ;;  %12723 = vst [vmem:[#allocation31_spill] sm:$0xff] %v7385_v11  ;;  %v298_v47 = vrot.slane %v7372_v21, 1  ;;  %v299_v55 = vrot.slane %v7385_v11, 1  ;;  %v7397_v0 = vsel %vm91_vm1, 0.0, %v116_v1  ;;  %v7400_v2 = vsel %vm91_vm1, %v114_v30, 0.0 }
  0x1c   :  { %12724 = vst [vmem:[#allocation32_spill] sm:$0xff] %v7397_v0  ;;  %v122_v8 = vrot.slane %v47_v18, 7  ;;  %5368 = vrot.lane.b32.xlu0 %v5367_v41, %s7055_s14  ;;  %v7404_v9 = vsel %vm250_vm2, %v294_v37, %v296_v46  ;;  %v291_v10 = vrot.slane %v7400_v2, 1  ;;  %v293_v48 = vrot.slane %v7397_v0, 1 }
  0x1d   :  { %12725 = vst [vmem:[#allocation33_spill] sm:$0xff] %v7404_v9  ;;  %v123_v25 = vrot.slane %v48_v40, 7  ;;  %v7409_v3 = vsel %vm250_vm2, %v298_v47, %v299_v55  ;;  %v125_v13 = vrot.slane %v49_v49, 7  ;;  %v126_v1 = vrot.slane %v50_v51, 7  ;;  %v51_v40 = vld [vmem:[%s12425_s0 + $0xc0] sm:$0xff]  ;;  %v52_v47 = vld [vmem:[%s12425_s0 + $0xc8] sm:$0xff] }
  0x1e   :  { %12726 = vst [vmem:[#allocation34_spill] sm:$0xff] %v7409_v3  ;;  %v7412_v4 = vsel %vm91_vm1, 0.0, %v122_v8  ;;  %v5382_v30 = vpack.i.bf16 %v7409_v3, %v7404_v9  ;;  %v7417_v18 = vsel %vm250_vm2, %v289_v53, %v291_v10  ;;  %v7420_v41 = vsel %vm250_vm2, %v293_v48, %v294_v37  ;;  %v53_v51 = vld [vmem:[%s12425_s0 + $0xd0] sm:$0xff] }
  0x1f   :  { %12727 = vst [vmem:[#allocation35_spill] sm:$0xff] %v7412_v4  ;;  %12728 = vst [vmem:[#allocation36_spill] sm:$0xff] %v7417_v18  ;;  %v7423_v46 = vsel %vm91_vm1, %v122_v8, %v123_v25  ;;  %v5377_v49 = vpack.i.bf16 %v7420_v41, %v7417_v18  ;;  %v7434_v53 = vsel %vm91_vm1, %v125_v13, %v126_v1  ;;  %v7437_v48 = vsel %vm91_vm1, 0.0, %v125_v13  ;;  %v54_v13 = vld [vmem:[%s12425_s0 + $0xd8] sm:$0xff] }
  0x20   :  { %12729 = vst [vmem:[#allocation37_spill] sm:$0xff] %v7420_v41  ;;  %12730 = vst [vmem:[#allocation38_spill] sm:$0xff] %v7423_v46  ;;  %v7440_v37 = vsel %vm91_vm1, %v123_v25, 0.0  ;;  %5383 = vrot.lane.b32.xlu1 %v5382_v30, %s7055_s14  ;;  %v304_v8 = vrot.slane %v7423_v46, 1  ;;  %v308_v9 = vrot.slane %v7437_v48, 1  ;;  %v309_v41 = vrot.slane %v7434_v53, 1 }
  0x21   :  { %12731 = vst [vmem:[#allocation39_spill] sm:$0xff] %v7434_v53  ;;  %12732 = vst [vmem:[#allocation40_spill] sm:$0xff] %v7437_v48  ;;  %v306_v10 = vrot.slane %v7440_v37, 1  ;;  %5378 = vrot.lane.b32.xlu0 %v5377_v49, %s7055_s14  ;;  %v7455_v25 = vsel %vm91_vm1, %v120_v14, 0.0  ;;  %v303_v3 = vrot.slane %v7412_v4, 1  ;;  %v128_v30 = vrot.slane %v51_v40, 7 }
  0x22   :  { %v129_v12 = vrot.slane %v52_v47, 7  ;;  %v7462_v7 = vsel %vm250_vm2, %v308_v9, %v309_v41  ;;  %v301_v22 = vrot.slane %v7455_v25, 1  ;;  %v131_v33 = vrot.slane %v53_v51, 7  ;;  %v55_v47 = vld [vmem:[%s12425_s0 + $0xe0] sm:$0xff] }
  0x23   :  { %v7459_v18 = vsel %vm250_vm2, %v304_v8, %v306_v10  ;;  %12734 = vst [vmem:[#allocation42_spill] sm:$0xff] %v7462_v7  ;;  %v7468_v14 = vsel %vm250_vm2, %v303_v3, %v304_v8  ;;  %v132_v40 = vrot.slane %v54_v13, 7  ;;  %v56_v8 = vld [vmem:[%s12425_s0 + $0xe8] sm:$0xff]  ;;  %v7502_v23 = vsel %vm91_vm1, %v126_v1, 0.0 }
  0x24   :  { %12733 = vst [vmem:[#allocation41_spill] sm:$0xff] %v7459_v18  ;;  %v5392_v49 = vpack.i.bf16 %v7462_v7, %v7459_v18  ;;  %12735 = vst [vmem:[#allocation43_spill] sm:$0xff] %v7468_v14  ;;  %v7471_v20 = vsel %vm91_vm1, %v128_v30, %v129_v12  ;;  %v7477_v9 = vsel %vm250_vm2, %v299_v55, %v301_v22  ;;  %v7480_v51 = vsel %vm91_vm1, 0.0, %v131_v33 }
  0x25   :  { %12736 = vst [vmem:[#allocation44_spill] sm:$0xff] %v7471_v20  ;;  %12737 = vst [vmem:[#allocation45_spill] sm:$0xff] %v7477_v9  ;;  %v7483_v10 = vsel %vm91_vm1, %v129_v12, 0.0  ;;  %v314_v3 = vrot.slane %v7471_v20, 1  ;;  %v5387_v13 = vpack.i.bf16 %v7468_v14, %v7477_v9  ;;  %v7493_v22 = vsel %vm91_vm1, %v131_v33, %v132_v40 }
  0x26   :  { %12738 = vst [vmem:[#allocation46_spill] sm:$0xff] %v7480_v51  ;;  %5393 = vrot.lane.b32.xlu1 %v5392_v49, %s7055_s14  ;;  %12739 = vst [vmem:[#allocation47_spill] sm:$0xff] %v7493_v22  ;;  %v316_v55 = vrot.slane %v7483_v10, 1  ;;  %v318_v18 = vrot.slane %v7480_v51, 1  ;;  %v319_v12 = vrot.slane %v7493_v22, 1  ;;  %v7499_v7 = vsel %vm91_vm1, 0.0, %v128_v30 }
  0x27   :  { %12740 = vst [vmem:[#allocation48_spill] sm:$0xff] %v7499_v7  ;;  %v134_v52 = vrot.slane %v55_v47, 7  ;;  %5388 = vrot.lane.b32.xlu0 %v5387_v13, %s7055_s14  ;;  %v311_v33 = vrot.slane %v7502_v23, 1  ;;  %v313_v14 = vrot.slane %v7499_v7, 1  ;;  %v135_v9 = vrot.slane %v56_v8, 7 }
  0x28   :  { %v7506_v49 = vsel %vm250_vm2, %v314_v3, %v316_v55  ;;  %v7511_v32 = vsel %vm250_vm2, %v318_v18, %v319_v12  ;;  %v7517_v1 = vsel %vm91_vm1, %v132_v40, 0.0  ;;  %v332_v47 = vrot.slane %v7187_v26, 2 }
  0x29   :  { %12741 = vst [vmem:[#allocation49_spill] sm:$0xff] %v7506_v49  ;;  %12742 = vst [vmem:[#allocation50_spill] sm:$0xff] %v7511_v32  ;;  %v7514_v30 = vsel %vm91_vm1, 0.0, %v134_v52  ;;  %v5402_v13 = vpack.i.bf16 %v7511_v32, %v7506_v49  ;;  %v7523_v55 = vsel %vm250_vm2, %v309_v41, %v311_v33  ;;  %v7526_v38 = vsel %vm250_vm2, %v313_v14, %v314_v3 }
  0x2a   :  { %12743 = vst [vmem:[#allocation51_spill] sm:$0xff] %v7514_v30  ;;  %12744 = vst [vmem:[#allocation52_spill] sm:$0xff] %v7523_v55  ;;  %v7529_v18 = vsel %vm91_vm1, %v134_v52, %v135_v9  ;;  %v5397_v8 = vpack.i.bf16 %v7526_v38, %v7523_v55  ;;  %v7534_v40 = vsel %vm91_vm1, %v135_v9, 0.0  ;;  %v323_v43 = vrot.slane %v7514_v30, 1 }
  0x2b   :  { %12745 = vst [vmem:[#allocation53_spill] sm:$0xff] %v7526_v38  ;;  %12746 = vst [vmem:[#allocation54_spill] sm:$0xff] %v7529_v18  ;;  %v324_v24 = vrot.slane %v7529_v18, 1  ;;  %5403 = vrot.lane.b32.xlu1 %v5402_v13, %s7055_s14  ;;  %v326_v41 = vrot.slane %v7534_v40, 1  ;;  %v321_v14 = vrot.slane %v7517_v1, 1  ;;  %v334_v3 = vrot.slane %v7196_v29, 2 }
  0x2c   :  { %v336_v52 = vrot.slane %v7242_v50, 2  ;;  %5398 = vrot.lane.b32.xlu0 %v5397_v8, %s7055_s14  ;;  %v337_v9 = vrot.slane %v7167_v15, 2  ;;  %v12747_v49 = vmov 0.0   ;;  %v331_v32 = vrot.slane %v7190_v27, 2 }
  0x2d   :  { %v325_v33 = vsel %vm250_vm2, %v323_v43, %v324_v24  ;;  %v7547_v38 = vrot.slane %v12747_v49, 2  ;;  %v327_v13 = vsel %vm250_vm2, %v324_v24, %v326_v41  ;;  %v7552_v55 = vsel %vm250_vm2, %v319_v12, %v321_v14 }
  0x2e   :  { %12749 = vst [vmem:[#allocation56_spill] sm:$0xff] %v7552_v55  ;;  %v7555_v29 = vsel %vm328_vm4, %v332_v47, %v334_v3  ;;  %v342_v56 = vrot.slane %v7176_v19, 2  ;;  %v7558_v8 = vpack.i.bf16 %v327_v13, %v325_v33  ;;  %v5407_v43 = vpack.i.bf16 %v325_v33, %v7552_v55 }
  0x2f   :  { %12748 = vst [vmem:[#allocation55_spill] sm:$0xff] %v7547_v38  ;;  %v7562_v28 = vsel %vm328_vm4, %v336_v52, %v337_v9  ;;  %v7565_v49 = vsel %vm328_vm4, %v331_v32, %v332_v47  ;;  %478 = vrot.lane.b32.xlu1 %v327_v13, %s7055_s14  ;;  %v344_v41 = vrot.slane %v7216_v39, 2  ;;  %v346_v14 = vrot.slane %v7205_v35, 2 }
  0x30   :  { %12750 = vst [vmem:[#allocation57_spill] sm:$0xff] %v7558_v8  ;;  %v5417_v24 = vpack.i.bf16 %v7562_v28, %v7555_v29  ;;  %v5412_v12 = vpack.i.bf16 %v7565_v49, %v7547_v38  ;;  %5408 = vrot.lane.b32.xlu0 %v5407_v43, %s7055_s14  ;;  %v347_v3 = vrot.slane %v7231_v45, 2  ;;  %v12751_v52 = vrot.slane %v7173_v17, 2  ;;  %s7056_s14 = smov 6  }
  0x31   :  { %v341_v47 = vrot.slane %v7170_v16, 2  ;;  %v352_v33 = vrot.slane %v7264_v62, 2  ;;  %v7584_v13 = vsel %vm328_vm4, %v342_v56, %v344_v41  ;;  %v354_v39 = vrot.slane %v7284_v6, 2 }
  0x32   :  { %v7579_v32 = vsel %vm328_vm4, %v337_v9, %v12751_v52  ;;  %v356_v38 = vrot.slane %v7267_v63, 2  ;;  %v357_v43 = vrot.slane %v7281_v5, 2  ;;  %v7590_v8 = vsel %vm328_vm4, %v346_v14, %v347_v3 }
  0x33   :  { %v7593_v17 = vsel %vm328_vm4, %v341_v47, %v342_v56  ;;  %v349_v9 = vrot.slane %v7256_v59, 2  ;;  %v351_v52 = vrot.slane %v7253_v58, 2  ;;  %5418 = vrot.lane.b32.xlu1 %v5417_v24, %s7056_s14  ;;  %v5427_v6 = vpack.i.bf16 %v7590_v8, %v7584_v13 }
  0x34   :  { %v7601_v41 = vsel %vm328_vm4, %v352_v33, %v354_v39  ;;  %v7604_v55 = vsel %vm328_vm4, %v356_v38, %v357_v43  ;;  %5413 = vrot.lane.b32.xlu0 %v5412_v12, %s7056_s14  ;;  %v5422_v56 = vpack.i.bf16 %v7593_v17, %v7579_v32  ;;  %v362_v24 = vrot.slane %v7312_v34, 2 }
  0x35   :  { %v5437_v59 = vpack.i.bf16 %v7604_v55, %v7601_v41  ;;  %v7612_v14 = vsel %vm328_vm4, %v347_v3, %v349_v9  ;;  %v7616_v47 = vsel %vm328_vm4, %v351_v52, %v352_v33  ;;  %v364_v39 = vrot.slane %v7329_v44, 2 }
  0x36   :  { %v366_v38 = vrot.slane %v7315_v36, 2  ;;  %v367_v12 = vrot.slane %v7326_v42, 2  ;;  %v359_v61 = vrot.slane %v7347_v60, 2  ;;  %v361_v62 = vrot.slane %v7340_v54, 2 }
  0x37   :  { %v372_v58 = vrot.slane %v7363_v57, 2  ;;  %v374_v3 = vrot.slane %v7375_v31, 2  ;;  %5428 = vrot.lane.b32.xlu1 %v5427_v6, %s7056_s14  ;;  %v7627_v9 = vsel %vm328_vm4, %v362_v24, %v364_v39  ;;  %v376_v44 = vrot.slane %v7372_v21, 2 }
  0x38   :  { %v7630_v33 = vsel %vm328_vm4, %v366_v38, %v367_v12  ;;  %v377_v52 = vrot.slane %v7385_v11, 2  ;;  %5423 = vrot.lane.b32.xlu0 %v5422_v56, %s7056_s14  ;;  %v5432_v60 = vpack.i.bf16 %v7616_v47, %v7612_v14  ;;  %v7640_v6 = vsel %vm328_vm4, %v357_v43, %v359_v61 }
  0x39   :  { %v5447_v31 = vpack.i.bf16 %v7630_v33, %v7627_v9  ;;  %v7643_v39 = vsel %vm328_vm4, %v361_v62, %v362_v24  ;;  %v369_v38 = vrot.slane %v7400_v2, 2  ;;  %v371_v57 = vrot.slane %v7397_v0, 2 }
  0x3a   :  { %v7648_v11 = vsel %vm328_vm4, %v372_v58, %v374_v3  ;;  %v7651_v56 = vsel %vm328_vm4, %v376_v44, %v377_v52  ;;  %v382_v21 = vrot.slane %v7423_v46, 2  ;;  %v384_v34 = vrot.slane %v7440_v37, 2 }
  0x3b   :  { %5438 = vrot.lane.b32.xlu1 %v5437_v59, %s7056_s14  ;;  %v7657_v61 = vsel %vm328_vm4, %v367_v12, %v369_v38  ;;  %v7660_v62 = vsel %vm328_vm4, %v371_v57, %v372_v58  ;;  %v386_v2 = vrot.slane %v7437_v48, 2  ;;  %v387_v43 = vrot.slane %v7434_v53, 2 }
  0x3c   :  { %5433 = vrot.lane.b32.xlu0 %v5432_v60, %s7056_s14  ;;  %v5442_v24 = vpack.i.bf16 %v7643_v39, %v7640_v6  ;;  %v379_v3 = vrot.slane %v7455_v25, 2  ;;  %v381_v37 = vrot.slane %v7412_v4, 2  ;;  %v5457_v59 = vpack.i.bf16 %v7651_v56, %v7648_v11 }
  0x3d   :  { %v5452_v58 = vpack.i.bf16 %v7660_v62, %v7657_v61  ;;  %v7674_v57 = vsel %vm328_vm4, %v382_v21, %v384_v34  ;;  %v388_v12 = vsel %vm328_vm4, %v386_v2, %v387_v43  ;;  %v392_v44 = vrot.slane %v7471_v20, 2 }
  0x3e   :  { %v394_v60 = vrot.slane %v7483_v10, 2  ;;  %v401_v25 = vrot.slane %v7514_v30, 2  ;;  %v396_v38 = vrot.slane %v7480_v51, 2  ;;  %v397_v46 = vrot.slane %v7493_v22, 2 }
  0x3f   :  { %5448 = vrot.lane.b32.xlu1 %v5447_v31, %s7056_s14  ;;  %v402_v4 = vrot.slane %v7529_v18, 2  ;;  %v404_v34 = vrot.slane %v7534_v40, 2  ;;  %v380_v31 = vsel %vm328_vm4, %v377_v52, %v379_v3  ;;  %v383_v2 = vsel %vm328_vm4, %v381_v37, %v382_v21  ;;  %v58_v3 = vld [vmem:[%s12425_s0 + $0xf8] sm:$0xff] }
  0x40   :  { %5443 = vrot.lane.b32.xlu0 %v5442_v24, %s7056_s14  ;;  %v389_v20 = vrot.slane %v7502_v23, 2  ;;  %v391_v10 = vrot.slane %v7499_v7, 2  ;;  %v5467_v22 = vpack.i.bf16 %v388_v12, %v7674_v57  ;;  %v5462_v40 = vpack.i.bf16 %v383_v2, %v380_v31 }
  0x41   :  { %v403_v30 = vsel %vm328_vm4, %v401_v25, %v402_v4  ;;  %v405_v24 = vsel %vm328_vm4, %v402_v4, %v404_v34  ;;  %v395_v52 = vsel %vm328_vm4, %v392_v44, %v394_v60  ;;  %v7699_v21 = vsel %vm328_vm4, %v396_v38, %v397_v46  ;;  %v57_v4 = vld [vmem:[%s12425_s0 + $0xf0] sm:$0xff]  ;;  %s7057_s0 = smov 9  }
  0x42   :  { %v7694_v51 = vpack.i.bf16 %v405_v24, %v403_v30  ;;  %v399_v23 = vrot.slane %v7517_v1, 2  ;;  %v390_v37 = vsel %vm328_vm4, %v387_v43, %v389_v20  ;;  %v137_v60 = vrot.slane %v57_v4, 7 }
  0x43   :  { %5458 = vrot.lane.b32.xlu1 %v5457_v59, %s7056_s14  ;;  %v393_v59 = vsel %vm328_vm4, %v391_v10, %v392_v44  ;;  %v138_v25 = vrot.slane %v58_v3, 7  ;;  %vm1520_vm5 = vcmask 1044480   ;;  %vm1171_vm6 = vcmask 23552  }
  0x44   :  { %5453 = vrot.lane.b32.xlu0 %v5452_v58, %s7056_s14  ;;  %v5477_v58 = vpack.i.bf16 %v7699_v21, %v395_v52  ;;  %v5472_v1 = vpack.i.bf16 %v393_v59, %v390_v37  ;;  %v7714_v38 = vsel %vm328_vm4, %v397_v46, %v399_v23  ;;  %v202_v43 = vsel %vm91_vm1, 0.0, %v137_v60 }
  0x45   :  { %v5482_v34 = vpack.i.bf16 %v403_v30, %v7714_v38  ;;  %v139_v20 = vsel %vm91_vm1, %v137_v60, %v138_v25  ;;  %v408_v44 = vrot.slane %v202_v43, 1  ;;  %v7730_v30 = vpack.i.bf16 %v7612_v14, %v7590_v8 }
  0x46   :  { %v409_v10 = vrot.slane %v139_v20, 1  ;;  %v7734_v23 = vpack.i.bf16 %v7584_v13, %v7593_v17  ;;  %v7740_v60 = vpack.i.bf16 %v7640_v6, %v7604_v55  ;;  %v7749_v8 = vpack.i.bf16 %v7167_v15, %v7242_v50 }
  0x47   :  { %5468 = vrot.lane.b32.xlu1 %v5467_v22, %s7056_s14  ;;  %v218_v22 = vsel %vm91_vm1, %v138_v25, 0.0  ;;  %v7755_v13 = vpack.i.bf16 %v7657_v61, %v7630_v33  ;;  %v7759_v55 = vpack.i.bf16 %v7627_v9, %v7643_v39  ;;  %v5487_v17 = vpack.i.bf16 %v7187_v26, %v7190_v27  ;;  %v12755_v25 = vld [vmem:[#allocation21_spill] sm:$0xff] }
  0x48   :  { %5463 = vrot.lane.b32.xlu0 %v5462_v40, %s7056_s14  ;;  %v411_v4 = vrot.slane %v218_v22, 1  ;;  %v7724_v40 = vpack.i.bf16 %v7579_v32, %v7562_v28  ;;  %v410_v3 = vsel %vm250_vm2, %v408_v44, %v409_v10  ;;  %v7744_v28 = vpack.i.bf16 %v7601_v41, %v7616_v47 }
  0x49   :  { %v7765_v41 = vpack.i.bf16 %v380_v31, %v7651_v56  ;;  %v7769_v14 = vpack.i.bf16 %v7648_v11, %v7660_v62  ;;  %v7771_v47 = vpack.i.bf16 %v390_v37, %v388_v12  ;;  %v7774_v33 = vpack.i.bf16 %v7674_v57, %v383_v2 }
  0x4a   :  { %v7776_v6 = vpack.i.bf16 %v395_v52, %v393_v59  ;;  %v413_v9 = vrot.slane %v202_v43, 2  ;;  %v414_v39 = vrot.slane %v139_v20, 2  ;;  %v416_v61 = vrot.slane %v218_v22, 2  ;;  %v12754_v52 = vld [vmem:[#allocation14_spill] sm:$0xff]  ;;  %v12758_v22 = vld [vmem:[#allocation28_spill] sm:$0xff] }
  0x4b   :  { %5478 = vrot.lane.b32.xlu1 %v5477_v58, %s7056_s14  ;;  %v412_v58 = vsel %vm250_vm2, %v409_v10, %v411_v4  ;;  %v7782_v56 = vpack.i.bf16 %v7231_v45, %v7205_v35  ;;  %v7787_v11 = vpack.i.bf16 %v7176_v19, %v7170_v16  ;;  %v7797_v31 = vpack.i.bf16 %v7281_v5, %v7267_v63  ;;  %v12759_v4 = vld [vmem:[#allocation35_spill] sm:$0xff] }
  0x4c   :  { %5473 = vrot.lane.b32.xlu0 %v5472_v1, %s7056_s14  ;;  %v7751_v32 = vpack.i.bf16 %v412_v58, %v410_v3  ;;  %v415_v62 = vsel %vm328_vm4, %v413_v9, %v414_v39  ;;  %v417_v57 = vsel %vm328_vm4, %v414_v39, %v416_v61  ;;  %v7799_v2 = vpack.i.bf16 %v139_v20, %v202_v43  ;;  %v12757_v20 = vld [vmem:[#allocation31_spill] sm:$0xff]  ;;  %v12760_v3 = vld [vmem:[#allocation38_spill] sm:$0xff]  ;;  %v12763_v61 = vld [vmem:[#allocation44_spill] sm:$0xff] }
  0x4d   :  { %v7791_v12 = vpack.i.bf16 %v417_v57, %v415_v62  ;;  %v7811_v59 = vpack.i.bf16 %v7326_v42, %v7315_v36  ;;  %v7817_v1 = vpack.i.bf16 %v12755_v25, %v7340_v54  ;;  %v7829_v44 = vpack.i.bf16 %v12758_v22, %v7397_v0  ;;  %v12762_v9 = vld [vmem:[#allocation47_spill] sm:$0xff]  ;;  %v12775_v42 = vld [vmem:[#allocation29_spill] sm:$0xff]  ;;  %v12787_v25 = vld [vmem:[#allocation52_spill] sm:$0xff] }
  0x4e   :  { %12752 = vst [vmem:[#allocation58_spill] sm:$0xff] %v7751_v32  ;;  %v7835_v10 = vpack.i.bf16 %v7434_v53, %v7437_v48  ;;  %v7841_v58 = vpack.i.bf16 %v12760_v3, %v12759_v4  ;;  %v7853_v62 = vpack.i.bf16 %v12763_v61, %v7499_v7  ;;  %v12764_v57 = vld [vmem:[#allocation51_spill] sm:$0xff]  ;;  %v12766_v53 = vld [vmem:[#allocation4_spill] sm:$0xff]  ;;  %v12772_v3 = vld [vmem:[#allocation5_spill] sm:$0xff]  ;;  %vm1203_vm7 = vcmask 48128  }
  0x4f   :  { %571 = vrot.lane.b32.xlu1 %v405_v24, %s7056_s14  ;;  %v12753_v24 = vld [vmem:[#allocation12_spill] sm:$0xff]  ;;  %v7861_v46 = vpack.i.bf16 %v7529_v18, %v12764_v57  ;;  %v12767_v7 = vld [vmem:[#allocation11_spill] sm:$0xff]  ;;  %v12770_v18 = vld [vmem:[#allocation6_spill] sm:$0xff]  ;;  %vm1235_vm8 = vcmask 72704   ;;  %vm1268_vm9 = vcmask 97280   ;;  %vm1301_vm10 = vcmask 121856  }
  0x50   :  { %5483 = vrot.lane.b32.xlu0 %v5482_v34, %s7056_s14  ;;  %v7805_v37 = vpack.i.bf16 %v12754_v52, %v12753_v24  ;;  %v12756_v34 = vld [vmem:[#allocation30_spill] sm:$0xff]  ;;  %v12768_v61 = vld [vmem:[#allocation19_spill] sm:$0xff]  ;;  %vm1334_vm11 = vcmask 146432   ;;  %vm1367_vm12 = vcmask 171008   ;;  %vm1400_vm13 = vcmask 195584  }
  0x51   :  { %v7823_v43 = vpack.i.bf16 %v12757_v20, %v12756_v34  ;;  %v7875_v20 = vpack.i.bf16 %v12768_v61, %v12767_v7  ;;  %v12769_v57 = vld [vmem:[#allocation7_spill] sm:$0xff]  ;;  %v12773_v48 = vld [vmem:[#allocation10_spill] sm:$0xff]  ;;  %v12776_v7 = vld [vmem:[#allocation20_spill] sm:$0xff]  ;;  %vm1471_vm14 = vcmask 220160   ;;  %vm2793_vm15 = vcmask 261120  }
  0x52   :  { %v12771_v4 = vpack.i.bf16 %v12769_v57, %v12770_v18  ;;  %v12777_v61 = vld [vmem:[#allocation17_spill] sm:$0xff]  ;;  %v12778_v18 = vld [vmem:[#allocation26_spill] sm:$0xff] }
  0x53   :  { %5493 = vrot.lane.b32.xlu1 %v7749_v8, %s7057_s0  ;;  %v7895_v22 = vpack.i.bf16 %v12777_v61, %v12776_v7  ;;  %v12782_v7 = vld [vmem:[#allocation34_spill] sm:$0xff]  ;;  %v12783_v61 = vld [vmem:[#allocation45_spill] sm:$0xff] }
  0x54   :  { %5488 = vrot.lane.b32.xlu0 %v5487_v17, %s7057_s0  ;;  %v12761_v17 = vld [vmem:[#allocation46_spill] sm:$0xff]  ;;  %v7917_v5 = vpack.i.bf16 %v12783_v61, %v12782_v7  ;;  %v12788_v7 = vld [vmem:[#allocation43_spill] sm:$0xff]  ;;  %v12789_v61 = vld [vmem:[#allocation41_spill] sm:$0xff] }
  0x55   :  { %v7847_v39 = vpack.i.bf16 %v12762_v9, %v12761_v17  ;;  %v12765_v9 = vld [vmem:[#allocation13_spill] sm:$0xff]  ;;  %v7939_v24 = vpack.i.bf16 %v12789_v61, %v12788_v7 }
  0x56   :  { %v7867_v17 = vpack.i.bf16 %v12766_v53, %v12765_v9  ;;  %v7883_v53 = vpack.i.bf16 %v12773_v48, %v12772_v3  ;;  %v12774_v9 = vld [vmem:[#allocation18_spill] sm:$0xff]  ;;  %v12779_v48 = vld [vmem:[#allocation36_spill] sm:$0xff]  ;;  %v12780_v3 = vld [vmem:[#allocation27_spill] sm:$0xff] }
  0x57   :  { %5503 = vrot.lane.b32.xlu1 %v7782_v56, %s7057_s0  ;;  %v7889_v0 = vpack.i.bf16 %v12775_v42, %v12774_v9  ;;  %v12781_v42 = vld [vmem:[#allocation25_spill] sm:$0xff] }
  0x58   :  { %5498 = vrot.lane.b32.xlu0 %v7787_v11, %s7057_s0  ;;  %v7907_v57 = vpack.i.bf16 %v12781_v42, %v12780_v3  ;;  %v12786_v42 = vld [vmem:[#allocation42_spill] sm:$0xff] }
  0x59   :  { %v7931_v36 = vpack.i.bf16 %v12787_v25, %v12786_v42  ;;  %v12792_v25 = vld [vmem:[#allocation53_spill] sm:$0xff] }
  0x5a   :  { %v12793_v42 = vld [vmem:[#allocation49_spill] sm:$0xff] }
  0x5b   :  { %5513 = vrot.lane.b32.xlu1 %v7797_v31, %s7057_s0  ;;  %v7953_v26 = vpack.i.bf16 %v12793_v42, %v12792_v25  ;;  %v12798_v42 = vpack.i.bf16 %v7555_v29, %v7565_v49 }
  0x5c   :  { %5508 = vrot.lane.b32.xlu0 %v7805_v37, %s7057_s0 }
  0x5f   :  { %5523 = vrot.lane.b32.xlu1 %v7811_v59, %s7057_s0 }
  0x60   :  { %5518 = vrot.lane.b32.xlu0 %v7817_v1, %s7057_s0 }
  0x63   :  { %5533 = vrot.lane.b32.xlu1 %v7823_v43, %s7057_s0 }
  0x64   :  { %5528 = vrot.lane.b32.xlu0 %v7829_v44, %s7057_s0 }
  0x67   :  { %5543 = vrot.lane.b32.xlu1 %v7835_v10, %s7057_s0 }
  0x68   :  { %5538 = vrot.lane.b32.xlu0 %v7841_v58, %s7057_s0 }
  0x6b   :  { %5553 = vrot.lane.b32.xlu1 %v7847_v39, %s7057_s0 }
  0x6c   :  { %5548 = vrot.lane.b32.xlu0 %v7853_v62, %s7057_s0 }
  0x6f   :  { %5563 = vrot.lane.b32.xlu1 %v7799_v2, %s7057_s0 }
  0x70   :  { %5558 = vrot.lane.b32.xlu0 %v7861_v46, %s7057_s0 }
  0x73   :  { %5573 = vrot.lane.b32.xlu1 %v7867_v17, %s7058_s10 }
  0x74   :  { %5568 = vrot.lane.b32.xlu0 %v12771_v4, %s7058_s10  ;;  %v7901_v4 = vpack.i.bf16 %v12779_v48, %v12778_v18  ;;  %v12784_v18 = vld [vmem:[#allocation37_spill] sm:$0xff] }
  0x75   :  { %v12785_v48 = vld [vmem:[#allocation33_spill] sm:$0xff] }
  0x76   :  { %v7923_v54 = vpack.i.bf16 %v12785_v48, %v12784_v18  ;;  %v12790_v18 = vld [vmem:[#allocation50_spill] sm:$0xff]  ;;  %v12791_v48 = vld [vmem:[#allocation56_spill] sm:$0xff] }
  0x77   :  { %5583 = vrot.lane.b32.xlu1 %v7875_v20, %s7058_s10  ;;  %v7945_v52 = vpack.i.bf16 %v12791_v48, %v12790_v18  ;;  %v12796_v18 = vld [vmem:[#allocation57_spill] sm:$0xff] }
  0x78   :  { %5578 = vrot.lane.b32.xlu0 %v7883_v53, %s7058_s10 }
  0x7b   :  { %5593 = vrot.lane.b32.xlu1 %v7889_v0, %s7058_s10 }
  0x7c   :  { %5588 = vrot.lane.b32.xlu0 %v7895_v22, %s7058_s10 }
  0x7d   :  { %v7909_v9 = vpop.permute.xlu1 %5348 }
  0x7f   :  { %v7911_v34 = vpop.permute.xlu0 %5338  ;;  %5603 = vrot.lane.b32.xlu1 %v7901_v4, %s7058_s10 }
  0x80   :  { %5598 = vrot.lane.b32.xlu0 %v7907_v57, %s7058_s10 }
  0x82   :  { %v7925_v3 = vpop.permute.xlu1 %5353 }
  0x83   :  { %5613 = vrot.lane.b32.xlu1 %v7917_v5, %s7058_s10  ;;  %v7933_v45 = vpop.permute.xlu0 %5343 }
  0x84   :  { %5608 = vrot.lane.b32.xlu0 %v7923_v54, %s7058_s10 }
  0x87   :  { %5623 = vrot.lane.b32.xlu1 %v7931_v36, %s7058_s10  ;;  %v7947_v63 = vpop.permute.xlu1 %5363 }
  0x88   :  { %5618 = vrot.lane.b32.xlu0 %v7939_v24, %s7058_s10  ;;  %v7955_v50 = vpop.permute.xlu0 %5358 }
  0x8b   :  { %5633 = vrot.lane.b32.xlu1 %v7945_v52, %s7058_s10 }
  0x8c   :  { %5628 = vrot.lane.b32.xlu0 %v7953_v26, %s7058_s10  ;;  %v7961_v7 = vpop.permute.xlu1 %5373 }
  0x8d   :  { %12794 = vst [vmem:[#allocation13_spill] sm:$0xff] %v7961_v7 }
  0x8e   :  { %v7963_v61 = vpop.permute.xlu0 %5368 }
  0x8f   :  { %12795 = vst [vmem:[#allocation4_spill] sm:$0xff] %v7963_v61  ;;  %5643 = vrot.lane.b32.xlu1 %v7751_v32, %s7058_s10 }
  0x90   :  { %5638 = vrot.lane.b32.xlu0 %v12796_v18, %s7058_s10 }
  0x92   :  { %v7969_v48 = vpop.permute.xlu1 %5383 }
  0x93   :  { %12797 = vst [vmem:[#allocation11_spill] sm:$0xff] %v7969_v48  ;;  %5653 = vrot.lane.b32.xlu1 %v7724_v40, %s7059_s11  ;;  %v7972_v25 = vpop.permute.xlu0 %5378 }
  0x94   :  { %5648 = vrot.lane.b32.xlu0 %v12798_v42, %s7059_s11 }
  0x97   :  { %5663 = vrot.lane.b32.xlu1 %v7730_v30, %s7059_s11 }
  0x98   :  { %v7978_v61 = vpop.permute.xlu1 %5393  ;;  %5658 = vrot.lane.b32.xlu0 %v7734_v23, %s7059_s11 }
  0x99   :  { %v7981_v32 = vpop.permute.xlu0 %5388 }
  0x9a   :  { %12799 = vst [vmem:[#allocation19_spill] sm:$0xff] %v7981_v32 }
  0x9b   :  { %5673 = vrot.lane.b32.xlu1 %v7740_v60, %s7059_s11 }
  0x9c   :  { %5668 = vrot.lane.b32.xlu0 %v7744_v28, %s7059_s11 }
  0x9d   :  { %v7985_v48 = vpop.permute.xlu1 %5403 }
  0x9e   :  { %12800 = vst [vmem:[#allocation7_spill] sm:$0xff] %v7985_v48  ;;  %v7987_v7 = vpop.permute.xlu0 %5398 }
  0x9f   :  { %12801 = vst [vmem:[#allocation6_spill] sm:$0xff] %v7987_v7  ;;  %5683 = vrot.lane.b32.xlu1 %v7755_v13, %s7059_s11  ;;  %v8004_v7 = vpack.i.bf16 %v7714_v38, %v7699_v21 }
  0xa0   :  { %5678 = vrot.lane.b32.xlu0 %v7759_v55, %s7059_s11 }
  0xa1   :  { %v7991_v49 = vpop.permute.xlu1 %478 }
  0xa2   :  { %12802 = vst [vmem:[#allocation5_spill] sm:$0xff] %v7991_v49  ;;  %v7993_v29 = vpop.permute.xlu0 %5408 }
  0xa3   :  { %12803 = vst [vmem:[#allocation10_spill] sm:$0xff] %v7993_v29  ;;  %5693 = vrot.lane.b32.xlu1 %v7765_v41, %s7059_s11 }
  0xa4   :  { %5688 = vrot.lane.b32.xlu0 %v7769_v14, %s7059_s11 }
  0xa5   :  { %v7997_v42 = vpop.permute.xlu1 %5418 }
  0xa6   :  { %12804 = vst [vmem:[#allocation18_spill] sm:$0xff] %v7997_v42  ;;  %v7999_v32 = vpop.permute.xlu0 %5413 }
  0xa7   :  { %5703 = vrot.lane.b32.xlu1 %v7771_v47, %s7059_s11 }
  0xa8   :  { %5698 = vrot.lane.b32.xlu0 %v7774_v33, %s7059_s11 }
  0xa9   :  { %v8007_v48 = vpop.permute.xlu1 %5428 }
  0xaa   :  { %v8009_v49 = vpop.permute.xlu0 %5423 }
  0xab   :  { %12805 = vst [vmem:[#allocation29_spill] sm:$0xff] %v8009_v49  ;;  %5713 = vrot.lane.b32.xlu1 %v8004_v7, %s7059_s11 }
  0xac   :  { %5708 = vrot.lane.b32.xlu0 %v7776_v6, %s7059_s11 }
  0xad   :  { %v8013_v29 = vpop.permute.xlu1 %5438 }
  0xae   :  { %12806 = vst [vmem:[#allocation20_spill] sm:$0xff] %v8013_v29  ;;  %v8015_v42 = vpop.permute.xlu0 %5433 }
  0xaf   :  { %5723 = vrot.lane.b32.xlu1 %v7791_v12, %s7059_s11 }
  0xb0   :  { %5718 = vrot.lane.b32.xlu0 %v7694_v51, %s7059_s11 }
  0xb1   :  { %v8019_v21 = vpop.permute.xlu1 %5448 }
  0xb2   :  { %12807 = vst [vmem:[#allocation17_spill] sm:$0xff] %v8019_v21  ;;  %v8021_v38 = vpop.permute.xlu0 %5443 }
  0xb3   :  { %12808 = vst [vmem:[#allocation26_spill] sm:$0xff] %v8021_v38  ;;  %5733 = vrot.lane.b32.xlu1 %v7787_v11, %s7060_s12 }
  0xb4   :  { %5728 = vrot.lane.b32.xlu0 %v7749_v8, %s7060_s12 }
  0xb5   :  { %v8027_v49 = vpop.permute.xlu1 %5458 }
  0xb6   :  { %v8029_v29 = vpop.permute.xlu0 %5453 }
  0xb7   :  { %5743 = vrot.lane.b32.xlu1 %v7805_v37, %s7060_s12 }
  0xb8   :  { %5738 = vrot.lane.b32.xlu0 %v7782_v56, %s7060_s12 }
  0xb9   :  { %v8035_v21 = vpop.permute.xlu1 %5468 }
  0xba   :  { %v8037_v38 = vpop.permute.xlu0 %5463 }
  0xbb   :  { %5753 = vrot.lane.b32.xlu1 %v7817_v1, %s7060_s12 }
  0xbc   :  { %5748 = vrot.lane.b32.xlu0 %v7797_v31, %s7060_s12 }
  0xbd   :  { %v8043_v8 = vpop.permute.xlu1 %5478 }
  0xbe   :  { %v8045_v11 = vpop.permute.xlu0 %5473 }
  0xbf   :  { %5763 = vrot.lane.b32.xlu1 %v7829_v44, %s7060_s12 }
  0xc0   :  { %5758 = vrot.lane.b32.xlu0 %v7811_v59, %s7060_s12 }
  0xc1   :  { %v8051_v56 = vpop.permute.xlu1 %571 }
  0xc2   :  { %12809 = vst [vmem:[#allocation36_spill] sm:$0xff] %v8051_v56  ;;  %v8053_v37 = vpop.permute.xlu0 %5483 }
  0xc3   :  { %5773 = vrot.lane.b32.xlu1 %v7841_v58, %s7060_s12  ;;  %v7032_v58 = vld [vmem:[%s12427_s1] sm:$0xff]  }
  0xc4   :  { %5768 = vrot.lane.b32.xlu0 %v7823_v43, %s7060_s12  ;;  %5279 = vmatprep.subr.bf16.mxu0 %v7032_v58  ;;  %v7033_v43 = vld [vmem:[%s12427_s1 + $0x8] sm:$0x3f]   ;;  %s7062_s1 = smov 21  }
  0xc5   :  { %v8059_v31 = vpop.permute.xlu1 %5493  ;;  %5280 = vmatpush3.bf16.msra.mxu0 %v7032_v58  ;;  %5315 = vmatprep.subr.bf16.mxu1 %v7032_v58 }
  0xc6   :  { %v8061_v1 = vpop.permute.xlu0 %5488  ;;  %5317 = vmatpush3.bf16.msra.mxu1 %v7032_v58 }
  0xc7   :  { %12810 = vst [vmem:[#allocation27_spill] sm:$0xff] %v8061_v1  ;;  %5783 = vrot.lane.b32.xlu1 %v7853_v62, %s7060_s12  ;;  %v12813_v1 = vmov 0.0  }
  0xc8   :  { %5778 = vrot.lane.b32.xlu0 %v7835_v10, %s7060_s12  ;;  %v7061_v10 = vmov 65535  }
  0xc9   :  { %v8067_v59 = vpop.permute.xlu1 %5503  ;;  %v1521_v62 = vsel %vm1520_vm5, 4294967295, %v7061_v10  ;;  %vm2825_vm5 = vcmask 392192  }
  0xca   :  { %12811 = vst [vmem:[#allocation25_spill] sm:$0xff] %v8067_v59  ;;  %v8069_v44 = vpop.permute.xlu0 %5498 }
  0xcb   :  { %12812 = vst [vmem:[#allocation34_spill] sm:$0xff] %v8069_v44  ;;  %5793 = vrot.lane.b32.xlu1 %v7861_v46, %s7060_s12  ;;  %v1522_v44 = vsel %vm328_vm4, %v1521_v62, 0  ;;  %v5350_v62 = vunpack.i.l.bf16 %v7909_v9 }
  0xcc   :  { %5788 = vrot.lane.b32.xlu0 %v7847_v39, %s7060_s12  ;;  %v1524_v46 = vand.u32 %v7033_v43, %v1522_v44 }
  0xcd   :  { %v8081_v56 = vpop.permute.xlu1 %5513 }
  0xce   :  { %v8084_v59 = vpop.permute.xlu0 %5508  ;;  %5281 = vmatprep.subr.bf16.mxu0 %v1524_v46  ;;  %5316 = vmatprep.subr.bf16.mxu1 %v1524_v46 }
  0xcf   :  { %952 = vrot.lane.b32.xlu1 %v12813_v1, %s7060_s12  ;;  %5282 = vmatpush3.bf16.msra.mxu0 %v1524_v46  ;;  %v5346_v1 = vunpack.i.h.bf16 %v7933_v45 }
  0xd0   :  { %5798 = vrot.lane.b32.xlu0 %v7799_v2, %s7060_s12  ;;  %5318 = vmatpush3.bf16.msra.mxu1 %v1524_v46  ;;  %v5340_v46 = vunpack.i.l.bf16 %v7911_v34 }
  0xd1   :  { %v8090_v39 = vpop.permute.xlu1 %5523 }
  0xd2   :  { %v8092_v10 = vpop.permute.xlu0 %5518 }
  0xd3   :  { %12814 = vst [vmem:[#allocation45_spill] sm:$0xff] %v8092_v10  ;;  %5808 = vrot.lane.b32.xlu1 %v7883_v53, %s7062_s1 }
  0xd4   :  { %5803 = vrot.lane.b32.xlu0 %v7867_v17, %s7062_s1 }
  0xd5   :  { %v8098_v44 = vpop.permute.xlu1 %5533 }
  0xd6   :  { %12815 = vst [vmem:[#allocation37_spill] sm:$0xff] %v8098_v44  ;;  %v8100_v58 = vpop.permute.xlu0 %5528 }
  0xd7   :  { %12816 = vst [vmem:[#allocation33_spill] sm:$0xff] %v8100_v58  ;;  %5818 = vrot.lane.b32.xlu1 %v7724_v40, %s7063_s18  ;;  %v12884_v58 = vld [vmem:[#allocation54_spill] sm:$0xff] }
  0xd8   :  { %5813 = vrot.lane.b32.xlu0 %v7875_v20, %s7062_s1 }
  0xd9   :  { %v8106_v2 = vpop.permute.xlu1 %5543 }
  0xda   :  { %12817 = vst [vmem:[#allocation42_spill] sm:$0xff] %v8106_v2  ;;  %v8108_v43 = vpop.permute.xlu0 %5538 }
  0xdb   :  { %12818 = vst [vmem:[#allocation52_spill] sm:$0xff] %v8108_v43  ;;  %5828 = vrot.lane.b32.xlu1 %v7895_v22, %s7062_s1 }
  0xdc   :  { %5823 = vrot.lane.b32.xlu0 %v7734_v23, %s7063_s18 }
  0xdd   :  { %v8114_v17 = vpop.permute.xlu1 %5553 }
  0xde   :  { %12819 = vst [vmem:[#allocation43_spill] sm:$0xff] %v8114_v17  ;;  %v8116_v53 = vpop.permute.xlu0 %5548  ;;  %v5435_v17 = vunpack.i.l.bf16 %v8015_v42 }
  0xdf   :  { %12820 = vst [vmem:[#allocation41_spill] sm:$0xff] %v8116_v53  ;;  %5838 = vrot.lane.b32.xlu1 %v7744_v28, %s7063_s18 }
  0xe0   :  { %5833 = vrot.lane.b32.xlu0 %v7730_v30, %s7063_s18 }
  0xe1   :  { %v8122_v40 = vpop.permute.xlu1 %5563 }
  0xe2   :  { %12821 = vst [vmem:[#allocation50_spill] sm:$0xff] %v8122_v40  ;;  %v8124_v20 = vpop.permute.xlu0 %5558  ;;  %v12879_v40 = vld [vmem:[#allocation48_spill] sm:$0xff] }
  0xe3   :  { %12822 = vst [vmem:[#allocation56_spill] sm:$0xff] %v8124_v20  ;;  %5848 = vrot.lane.b32.xlu1 %v7907_v57, %s7062_s1  ;;  %v12858_v20 = vld [vmem:[#allocation7_spill] sm:$0xff] }
  0xe4   :  { %5843 = vrot.lane.b32.xlu0 %v7889_v0, %s7062_s1 }
  0xe5   :  { %v8130_v23 = vpop.permute.xlu1 %5573 }
  0xe6   :  { %12823 = vst [vmem:[#allocation53_spill] sm:$0xff] %v8130_v23  ;;  %v8132_v22 = vpop.permute.xlu0 %5568 }
  0xe7   :  { %12824 = vst [vmem:[#allocation49_spill] sm:$0xff] %v8132_v22  ;;  %5858 = vrot.lane.b32.xlu1 %v7759_v55, %s7063_s18  ;;  %v5415_v22 = vunpack.i.l.bf16 %v7999_v32 }
  0xe8   :  { %5853 = vrot.lane.b32.xlu0 %v7740_v60, %s7063_s18 }
  0xe9   :  { %v8138_v30 = vpop.permute.xlu1 %5583 }
  0xea   :  { %12825 = vst [vmem:[#allocation57_spill] sm:$0xff] %v8138_v30  ;;  %v8140_v28 = vpop.permute.xlu0 %5578 }
  0xeb   :  { %12826 = vst [vmem:[#allocation59_spill] sm:$0xff] %v8140_v28  ;;  %5868 = vrot.lane.b32.xlu1 %v7923_v54, %s7062_s1 }
  0xec   :  { %5863 = vrot.lane.b32.xlu0 %v7901_v4, %s7062_s1 }
  0xed   :  { %v8146_v0 = vpop.permute.xlu1 %5593 }
  0xee   :  { %12827 = vst [vmem:[#allocation60_spill] sm:$0xff] %v8146_v0  ;;  %v8148_v57 = vpop.permute.xlu0 %5588 }
  0xef   :  { %12828 = vst [vmem:[#allocation61_spill] sm:$0xff] %v8148_v57  ;;  %5878 = vrot.lane.b32.xlu1 %v7769_v14, %s7063_s18 }
  0xf0   :  { %5873 = vrot.lane.b32.xlu0 %v7755_v13, %s7063_s18 }
  0xf1   :  { %v8154_v60 = vpop.permute.xlu1 %5603 }
  0xf2   :  { %12829 = vst [vmem:[#allocation62_spill] sm:$0xff] %v8154_v60  ;;  %v8156_v55 = vpop.permute.xlu0 %5598  ;;  %v12857_v60 = vld [vmem:[#allocation21_spill] sm:$0xff] }
  0xf3   :  { %12830 = vst [vmem:[#allocation63_spill] sm:$0xff] %v8156_v55  ;;  %5888 = vrot.lane.b32.xlu1 %v7939_v24, %s7062_s1  ;;  %v12856_v55 = vld [vmem:[#allocation22_spill] sm:$0xff] }
  0xf4   :  { %5883 = vrot.lane.b32.xlu0 %v7917_v5, %s7062_s1 }
  0xf5   :  { %v8162_v54 = vpop.permute.xlu1 %5613 }
  0xf6   :  { %12831 = vst [vmem:[#allocation64_spill] sm:$0xff] %v8162_v54  ;;  %v8164_v4 = vpop.permute.xlu0 %5608 }
  0xf7   :  { %12832 = vst [vmem:[#allocation65_spill] sm:$0xff] %v8164_v4  ;;  %5898 = vrot.lane.b32.xlu1 %v7774_v33, %s7063_s18 }
  0xf8   :  { %5893 = vrot.lane.b32.xlu0 %v7765_v41, %s7063_s18 }
  0xf9   :  { %v8170_v13 = vpop.permute.xlu1 %5623 }
  0xfa   :  { %12833 = vst [vmem:[#allocation66_spill] sm:$0xff] %v8170_v13  ;;  %v8172_v14 = vpop.permute.xlu0 %5618 }
  0xfb   :  { %12834 = vst [vmem:[#allocation67_spill] sm:$0xff] %v8172_v14  ;;  %5908 = vrot.lane.b32.xlu1 %v7953_v26, %s7062_s1  ;;  %v5351_v26 = vunpack.i.h.bf16 %v7909_v9  ;;  %v5366_v9 = vunpack.i.h.bf16 %v7947_v63 }
  0xfc   :  { %5903 = vrot.lane.b32.xlu0 %v7931_v36, %s7062_s1  ;;  %v5341_v36 = vunpack.i.h.bf16 %v7911_v34 }
  0xfd   :  { %v8178_v5 = vpop.permute.xlu1 %5633  ;;  %v8210_v34 = vsel %vm1171_vm6, %v7170_v16, %v5351_v26 }
  0xfe   :  { %12835 = vst [vmem:[#allocation68_spill] sm:$0xff] %v8178_v5  ;;  %v8180_v24 = vpop.permute.xlu0 %5628 }
  0xff   :  { %12836 = vst [vmem:[#allocation69_spill] sm:$0xff] %v8180_v24  ;;  %5918 = vrot.lane.b32.xlu1 %v7776_v6, %s7063_s18  ;;  %v5356_v6 = vunpack.i.h.bf16 %v7925_v3  ;;  %v5365_v24 = vunpack.i.l.bf16 %v7947_v63 }
 0x100   :  { %5913 = vrot.lane.b32.xlu0 %v7771_v47, %s7063_s18  ;;  %v5355_v47 = vunpack.i.l.bf16 %v7925_v3  ;;  %v8214_v3 = vsel %vm1171_vm6, %v7167_v15, %v5350_v62  ;;  %v12841_v15 = vld [vmem:[#allocation9_spill] sm:$0xff]  ;;  %v5361_v62 = vunpack.i.h.bf16 %v7955_v50 }
 0x101   :  { %v8186_v41 = vpop.permute.xlu1 %5643  ;;  %v8227_v63 = vsel %vm1171_vm6, %v7205_v35, %v5356_v6  ;;  %v5360_v35 = vunpack.i.l.bf16 %v7955_v50  ;;  %v12845_v6 = vld [vmem:[#allocation14_spill] sm:$0xff] }
 0x102   :  { %12837 = vst [vmem:[#allocation70_spill] sm:$0xff] %v8186_v41  ;;  %v8188_v33 = vpop.permute.xlu0 %5638  ;;  %v8231_v16 = vsel %vm1171_vm6, %v7176_v19, %v5355_v47 }
 0x103   :  { %12838 = vst [vmem:[#allocation71_spill] sm:$0xff] %v8188_v33  ;;  %5928 = vrot.lane.b32.xlu1 %v12796_v18, %s7062_s1  ;;  %v5345_v33 = vunpack.i.l.bf16 %v7933_v45  ;;  %v8220_v45 = vsel %vm1171_vm6, %v7190_v27, %v5341_v36  ;;  %v12842_v27 = vld [vmem:[#allocation3_spill] sm:$0xff] }
 0x104   :  { %5923 = vrot.lane.b32.xlu0 %v7945_v52, %s7062_s1  ;;  %v8223_v52 = vsel %vm1171_vm6, 0.0, %v5340_v46  ;;  %v12844_v46 = vld [vmem:[#allocation15_spill] sm:$0xff] }
 0x105   :  { %v8202_v41 = vpop.permute.xlu1 %5653  ;;  %v8241_v26 = vsel %vm1171_vm6, %v12842_v27, %v5345_v33  ;;  %v8249_v19 = vsel %vm1171_vm6, %v12844_v46, %v5366_v9  ;;  %v12848_v27 = vld [vmem:[#allocation4_spill] sm:$0xff]  ;;  %v12850_v9 = vld [vmem:[#allocation2_spill] sm:$0xff]  ;;  %v5380_v46 = vunpack.i.l.bf16 %v7972_v25 }
 0x106   :  { %12839 = vst [vmem:[#allocation72_spill] sm:$0xff] %v8202_v41  ;;  %v8206_v18 = vpop.permute.xlu0 %5648  ;;  %v5370_v50 = vunpack.i.l.bf16 %v12848_v27  ;;  %v12849_v41 = vld [vmem:[#allocation11_spill] sm:$0xff] }
 0x107   :  { %12840 = vst [vmem:[#allocation73_spill] sm:$0xff] %v8206_v18  ;;  %5938 = vrot.lane.b32.xlu1 %v7694_v51, %s7063_s18  ;;  %v8237_v51 = vsel %vm1171_vm6, %v12841_v15, %v5346_v1  ;;  %v12846_v1 = vld [vmem:[#allocation13_spill] sm:$0xff]  ;;  %v5371_v18 = vunpack.i.h.bf16 %v12848_v27  ;;  %v5385_v5 = vunpack.i.l.bf16 %v12849_v41  ;;  %v12852_v27 = vld [vmem:[#allocation12_spill] sm:$0xff] }
 0x108   :  { %5933 = vrot.lane.b32.xlu0 %v8004_v7, %s7063_s18  ;;  %v8253_v7 = vsel %vm1171_vm6, %v12845_v6, %v5365_v24  ;;  %v5376_v47 = vunpack.i.h.bf16 %v12846_v1  ;;  %v5375_v15 = vunpack.i.l.bf16 %v12846_v1  ;;  %v5381_v24 = vunpack.i.h.bf16 %v7972_v25 }
 0x109   :  { %v8245_v36 = vpop.permute.xlu1 %5663  ;;  %v5396_v6 = vunpack.i.h.bf16 %v7978_v61  ;;  %v5395_v1 = vunpack.i.l.bf16 %v7978_v61  ;;  %v8273_v14 = vsel %vm1171_vm6, %v12852_v27, %v5361_v62  ;;  %v5406_v62 = vunpack.i.h.bf16 %v12858_v20 }
 0x10a   :  { %12843 = vst [vmem:[#allocation9_spill] sm:$0xff] %v8245_v36  ;;  %v8257_v33 = vpop.permute.xlu0 %5658  ;;  %v5386_v36 = vunpack.i.h.bf16 %v12849_v41  ;;  %v12853_v41 = vld [vmem:[#allocation8_spill] sm:$0xff]  ;;  %v8283_v61 = vsel %vm1171_vm6, %v12856_v55, %v5376_v47  ;;  %v5405_v27 = vunpack.i.l.bf16 %v12858_v20  ;;  %v12862_v55 = vld [vmem:[#allocation30_spill] sm:$0xff]  ;;  %v12864_v20 = vld [vmem:[#allocation55_spill] sm:$0xff] }
 0x10b   :  { %12847 = vst [vmem:[#allocation3_spill] sm:$0xff] %v8257_v33  ;;  %1045 = vrot.lane.b32.xlu1 %v12850_v9, %s7062_s1  ;;  %v12851_v33 = vld [vmem:[#allocation58_spill] sm:$0xff]  ;;  %v1180_v13 = vsel %vm1171_vm6, %v12853_v41, %v5360_v35  ;;  %v12854_v9 = vld [vmem:[#allocation19_spill] sm:$0xff]  ;;  %v12860_v35 = vld [vmem:[#allocation24_spill] sm:$0xff] }
 0x10c   :  { %5943 = vrot.lane.b32.xlu0 %v12851_v33, %s7062_s1  ;;  %v5391_v4 = vunpack.i.h.bf16 %v12854_v9  ;;  %v5390_v54 = vunpack.i.l.bf16 %v12854_v9  ;;  %v8287_v33 = vsel %vm1171_vm6, %v12857_v60, %v5375_v15  ;;  %v8295_v41 = vsel %vm1171_vm6, %v12860_v35, %v5371_v18  ;;  %v12861_v9 = vld [vmem:[#allocation16_spill] sm:$0xff]  ;;  %v12866_v18 = vld [vmem:[#allocation23_spill] sm:$0xff] }
 0x10d   :  { %v8279_v25 = vpop.permute.xlu1 %5673  ;;  %v8303_v47 = vsel %vm1171_vm6, %v12862_v55, %v5386_v36  ;;  %v12863_v60 = vld [vmem:[#allocation28_spill] sm:$0xff]  ;;  %v8317_v35 = vsel %vm1171_vm6, %v12866_v18, %v5380_v46  ;;  %v12868_v36 = vld [vmem:[#allocation38_spill] sm:$0xff] }
 0x10e   :  { %12855 = vst [vmem:[#allocation15_spill] sm:$0xff] %v8279_v25  ;;  %v8291_v57 = vpop.permute.xlu0 %5668  ;;  %v8299_v25 = vsel %vm1171_vm6, %v12861_v9, %v5370_v50  ;;  %v8307_v15 = vsel %vm1171_vm6, %v12863_v60, %v5385_v5  ;;  %v12867_v50 = vld [vmem:[#allocation40_spill] sm:$0xff]  ;;  %v8325_v55 = vsel %vm1171_vm6, %v12868_v36, %v5395_v1  ;;  %v12869_v5 = vld [vmem:[#allocation35_spill] sm:$0xff]  ;;  %v12871_v46 = vld [vmem:[#allocation6_spill] sm:$0xff] }
 0x10f   :  { %12859 = vst [vmem:[#allocation14_spill] sm:$0xff] %v8291_v57  ;;  %1138 = vrot.lane.b32.xlu1 %v12864_v20, %s7063_s18  ;;  %v12865_v57 = vld [vmem:[#allocation32_spill] sm:$0xff]  ;;  %v8321_v9 = vsel %vm1171_vm6, %v12867_v50, %v5396_v6  ;;  %v8331_v60 = vsel %vm1171_vm6, %v12869_v5, %v5391_v4  ;;  %v5401_v18 = vunpack.i.h.bf16 %v12871_v46  ;;  %v5400_v6 = vunpack.i.l.bf16 %v12871_v46  ;;  %v12873_v20 = vld [vmem:[#allocation46_spill] sm:$0xff] }
 0x110   :  { %v8313_v0 = vsel %vm1171_vm6, %v12865_v57, %v5381_v24  ;;  %5948 = vrot.lane.b32.xlu0 %v7791_v12, %s7063_s18  ;;  %v12870_v57 = vld [vmem:[#allocation31_spill] sm:$0xff]  ;;  %v8343_v1 = vsel %vm1171_vm6, %v12873_v20, %v5406_v62  ;;  %v12874_v36 = vld [vmem:[#allocation44_spill] sm:$0xff]  ;;  %v12875_v4 = vld [vmem:[#allocation10_spill] sm:$0xff]  ;;  %v5431_v62 = vunpack.i.h.bf16 %v8007_v48  ;;  %v5430_v20 = vunpack.i.l.bf16 %v8007_v48 }
 0x111   :  { %v8335_v24 = vsel %vm1171_vm6, %v12870_v57, %v5390_v54  ;;  %v8339_v50 = vpop.permute.xlu1 %5683  ;;  %v8347_v12 = vsel %vm1171_vm6, %v12874_v36, %v5405_v27  ;;  %v5411_v5 = vunpack.i.h.bf16 %v12875_v4  ;;  %v5410_v28 = vunpack.i.l.bf16 %v12875_v4  ;;  %v12877_v57 = vld [vmem:[#allocation18_spill] sm:$0xff]  ;;  %v12878_v27 = vld [vmem:[#allocation29_spill] sm:$0xff] }
 0x112   :  { %12872 = vst [vmem:[#allocation13_spill] sm:$0xff] %v8339_v50  ;;  %v8351_v54 = vpop.permute.xlu0 %5678  ;;  %v5421_v30 = vunpack.i.h.bf16 %v12877_v57  ;;  %v5420_v46 = vunpack.i.l.bf16 %v12877_v57  ;;  %v5416_v50 = vunpack.i.h.bf16 %v7999_v32  ;;  %v5426_v36 = vunpack.i.h.bf16 %v12878_v27  ;;  %v12882_v32 = vld [vmem:[#allocation39_spill] sm:$0xff]  ;;  %v12883_v48 = vld [vmem:[#allocation5_spill] sm:$0xff] }
 0x113   :  { %12876 = vst [vmem:[#allocation4_spill] sm:$0xff] %v8351_v54  ;;  %v5425_v23 = vunpack.i.l.bf16 %v12878_v27  ;;  %v8363_v4 = vsel %vm1171_vm6, %v12879_v40, %v5401_v18  ;;  %v12880_v54 = vld [vmem:[#allocation20_spill] sm:$0xff]  ;;  %v1196_v2 = vsel %vm1171_vm6, %v12882_v32, %v5400_v6  ;;  %v8375_v44 = vsel %vm1171_vm6, %v12884_v58, %v12883_v48  ;;  %v12885_v27 = vld [vmem:[#allocation51_spill] sm:$0xff] }
 0x114   :  { %v5441_v53 = vunpack.i.h.bf16 %v12880_v54  ;;  %v5440_v57 = vunpack.i.l.bf16 %v12880_v54  ;;  %v8379_v40 = vsel %vm1171_vm6, %v12885_v27, %v5411_v5  ;;  %v12886_v18 = vld [vmem:[#allocation47_spill] sm:$0xff]  ;;  %v8393_v6 = vsel %vm1203_vm7, %v8237_v51, %v5421_v30 }
 0x115   :  { %v8368_v43 = vpop.permute.xlu1 %5693  ;;  %v8383_v10 = vsel %vm1171_vm6, %v12886_v18, %v5410_v28  ;;  %v8397_v58 = vsel %vm1203_vm7, %v8223_v52, %v5415_v22  ;;  %v8401_v5 = vsel %vm1203_vm7, %v8220_v45, %v5416_v50  ;;  %v8405_v28 = vsel %vm1203_vm7, %v8227_v63, %v5431_v62 }
 0x116   :  { %12881 = vst [vmem:[#allocation11_spill] sm:$0xff] %v8368_v43  ;;  %v8385_v54 = vpop.permute.xlu0 %5688  ;;  %v8389_v43 = vsel %vm1203_vm7, %v8241_v26, %v5420_v46  ;;  %v8409_v26 = vsel %vm1203_vm7, %v8231_v16, %v5430_v20  ;;  %v8413_v30 = vsel %vm1203_vm7, %v8210_v34, %v5426_v36  ;;  %v8417_v22 = vsel %vm1203_vm7, %v8214_v3, %v5425_v23  ;;  %v12887_v34 = vld [vmem:[#allocation17_spill] sm:$0xff]  ;;  %v12888_v3 = vld [vmem:[#allocation26_spill] sm:$0xff] }
 0x117   :  { %v8421_v45 = vsel %vm1203_vm7, %v8249_v19, %v5441_v53  ;;  %v8425_v52 = vsel %vm1203_vm7, %v8253_v7, %v5440_v57  ;;  %v5436_v63 = vunpack.i.h.bf16 %v8015_v42  ;;  %v8429_v16 = vsel %vm1203_vm7, %v1180_v13, %v5435_v17 }
 0x118   :  { %v5451_v50 = vunpack.i.h.bf16 %v12887_v34  ;;  %v5450_v23 = vunpack.i.l.bf16 %v12887_v34  ;;  %v5446_v46 = vunpack.i.h.bf16 %v12888_v3  ;;  %v5445_v53 = vunpack.i.l.bf16 %v12888_v3 }
 0x119   :  { %v8431_v51 = vpop.permute.xlu1 %5703  ;;  %v5461_v7 = vunpack.i.h.bf16 %v8027_v49  ;;  %v5460_v62 = vunpack.i.l.bf16 %v8027_v49  ;;  %v5456_v42 = vunpack.i.h.bf16 %v8029_v29  ;;  %v5455_v17 = vunpack.i.l.bf16 %v8029_v29 }
 0x11a   :  { %v8437_v19 = vpop.permute.xlu0 %5698  ;;  %v5471_v13 = vunpack.i.h.bf16 %v8035_v21  ;;  %v5470_v20 = vunpack.i.l.bf16 %v8035_v21  ;;  %v5466_v36 = vunpack.i.h.bf16 %v8037_v38  ;;  %v5465_v57 = vunpack.i.l.bf16 %v8037_v38 }
 0x11b   :  { %v1213_v32 = vsel %vm1203_vm7, %v8273_v14, %v5436_v63  ;;  %v5481_v48 = vunpack.i.h.bf16 %v8043_v8  ;;  %v5480_v49 = vunpack.i.l.bf16 %v8043_v8  ;;  %v5475_v27 = vunpack.i.l.bf16 %v8045_v11 }
 0x11c   :  { %v8456_v29 = vsel %vm1203_vm7, %v8283_v61, %v5451_v50  ;;  %v8460_v21 = vsel %vm1203_vm7, %v8287_v33, %v5450_v23  ;;  %v8464_v38 = vsel %vm1203_vm7, %v8299_v25, %v5445_v53  ;;  %v8468_v14 = vsel %vm1203_vm7, %v8295_v41, %v5446_v46  ;;  %v12893_v46 = vld [vmem:[#allocation27_spill] sm:$0xff] }
 0x11d   :  { %v8452_v18 = vpop.permute.xlu1 %5713  ;;  %v8474_v63 = vsel %vm1203_vm7, %v8303_v47, %v5461_v7  ;;  %v8478_v61 = vsel %vm1203_vm7, %v8307_v15, %v5460_v62  ;;  %v8482_v33 = vsel %vm1203_vm7, %v8317_v35, %v5455_v17  ;;  %v8486_v25 = vsel %vm1203_vm7, %v8313_v0, %v5456_v42  ;;  %v12895_v62 = vld [vmem:[#allocation34_spill] sm:$0xff] }
 0x11e   :  { %v8470_v8 = vpop.permute.xlu0 %5708  ;;  %v8490_v41 = vsel %vm1203_vm7, %v8321_v9, %v5471_v13  ;;  %v8494_v47 = vsel %vm1203_vm7, %v8325_v55, %v5470_v20  ;;  %v8498_v15 = vsel %vm1203_vm7, %v8335_v24, %v5465_v57  ;;  %v8502_v35 = vsel %vm1203_vm7, %v8331_v60, %v5466_v36  ;;  %v12896_v20 = vld [vmem:[#allocation36_spill] sm:$0xff] }
 0x11f   :  { %12889 = vst [vmem:[#allocation58_spill] sm:$0xff] %v8470_v8  ;;  %v8506_v0 = vsel %vm1203_vm7, %v8343_v1, %v5481_v48  ;;  %v8510_v9 = vsel %vm1203_vm7, %v8347_v12, %v5480_v49  ;;  %v5476_v34 = vunpack.i.h.bf16 %v8045_v11  ;;  %v8514_v55 = vsel %vm1203_vm7, %v1196_v2, %v5475_v27  ;;  %v12894_v11 = vld [vmem:[#allocation25_spill] sm:$0xff] }
 0x120   :  { %12890 = vst [vmem:[#allocation12_spill] sm:$0xff] %v8506_v0  ;;  %v5486_v24 = vunpack.i.h.bf16 %v8053_v37  ;;  %v5485_v60 = vunpack.i.l.bf16 %v8053_v37  ;;  %v5496_v23 = vunpack.i.h.bf16 %v8059_v31  ;;  %v5495_v1 = vunpack.i.l.bf16 %v8059_v31  ;;  %v12924_v8 = vld [vmem:[#allocation69_spill] sm:$0xff] }
 0x121   :  { %v8516_v50 = vpop.permute.xlu1 %5723  ;;  %v5491_v12 = vunpack.i.h.bf16 %v12893_v46  ;;  %v5490_v53 = vunpack.i.l.bf16 %v12893_v46  ;;  %v5506_v7 = vunpack.i.h.bf16 %v12894_v11  ;;  %v5505_v2 = vunpack.i.l.bf16 %v12894_v11  ;;  %v12901_v11 = vld [vmem:[#allocation33_spill] sm:$0xff] }
 0x122   :  { %12891 = vst [vmem:[#allocation8_spill] sm:$0xff] %v8516_v50  ;;  %v8522_v3 = vpop.permute.xlu0 %5718  ;;  %v5501_v42 = vunpack.i.h.bf16 %v12895_v62  ;;  %v5500_v17 = vunpack.i.l.bf16 %v12895_v62  ;;  %v5516_v37 = vunpack.i.h.bf16 %v8081_v56  ;;  %v5515_v13 = vunpack.i.l.bf16 %v8081_v56 }
 0x123   :  { %12892 = vst [vmem:[#allocation19_spill] sm:$0xff] %v8522_v3  ;;  %v1229_v31 = vsel %vm1203_vm7, %v8363_v4, %v5476_v34  ;;  %v8537_v36 = vsel %vm1203_vm7, %v8375_v44, %v12896_v20  ;;  %v5511_v57 = vunpack.i.h.bf16 %v8084_v59  ;;  %v5510_v48 = vunpack.i.l.bf16 %v8084_v59  ;;  %v12923_v3 = vld [vmem:[#allocation68_spill] sm:$0xff] }
 0x124   :  { %v8545_v27 = vsel %vm1203_vm7, %v8383_v10, %v5485_v60  ;;  %v8549_v56 = vsel %vm1203_vm7, %v8379_v40, %v5486_v24  ;;  %v8553_v4 = vsel %vm1235_vm8, %v8401_v5, %v5495_v1  ;;  %v8557_v44 = vsel %vm1235_vm8, %v8389_v43, %v5496_v23 }
 0x125   :  { %v8541_v49 = vpop.permute.xlu1 %5733  ;;  %12897 = vst [vmem:[#allocation22_spill] sm:$0xff] %v8545_v27  ;;  %12898 = vst [vmem:[#allocation21_spill] sm:$0xff] %v8549_v56  ;;  %v8563_v59 = vsel %vm1235_vm8, %v8397_v58, %v5490_v53  ;;  %v8567_v10 = vsel %vm1235_vm8, %v8397_v58, %v5491_v12  ;;  %v8571_v40 = vsel %vm1235_vm8, %v8413_v30, %v5505_v2  ;;  %v12902_v2 = vld [vmem:[#allocation42_spill] sm:$0xff]  ;;  %v5635_v50 = vunpack.i.l.bf16 %v12923_v3 }
 0x126   :  { %v8559_v34 = vpop.permute.xlu0 %5728  ;;  %v8575_v5 = vsel %vm1235_vm8, %v8409_v26, %v5506_v7  ;;  %v8579_v43 = vsel %vm1235_vm8, %v8393_v6, %v5500_v17  ;;  %v8583_v24 = vsel %vm1235_vm8, %v8417_v22, %v5501_v42  ;;  %v8586_v60 = vsel %vm1235_vm8, %v1213_v32, %v5515_v13  ;;  %v12899_v32 = vld [vmem:[#allocation45_spill] sm:$0xff]  ;;  %v12903_v42 = vld [vmem:[#allocation52_spill] sm:$0xff]  ;;  %v12904_v13 = vld [vmem:[#allocation43_spill] sm:$0xff] }
 0x127   :  { %v8590_v58 = vsel %vm1235_vm8, %v8425_v52, %v5516_v37  ;;  %v8594_v30 = vsel %vm1235_vm8, %v8405_v28, %v5510_v48  ;;  %v8598_v26 = vsel %vm1235_vm8, %v8429_v16, %v5511_v57  ;;  %v5526_v6 = vunpack.i.h.bf16 %v8090_v39  ;;  %v12900_v52 = vld [vmem:[#allocation37_spill] sm:$0xff] }
 0x128   :  { %v5525_v22 = vunpack.i.l.bf16 %v8090_v39  ;;  %v5521_v1 = vunpack.i.h.bf16 %v12899_v32  ;;  %v5520_v46 = vunpack.i.l.bf16 %v12899_v32  ;;  %v5536_v12 = vunpack.i.h.bf16 %v12900_v52 }
 0x129   :  { %v8602_v23 = vpop.permute.xlu1 %5743  ;;  %v5535_v53 = vunpack.i.l.bf16 %v12900_v52  ;;  %v5531_v16 = vunpack.i.h.bf16 %v12901_v11  ;;  %v5530_v7 = vunpack.i.l.bf16 %v12901_v11  ;;  %v5546_v62 = vunpack.i.h.bf16 %v12902_v2  ;;  %v12905_v52 = vld [vmem:[#allocation41_spill] sm:$0xff] }
 0x12a   :  { %v8608_v28 = vpop.permute.xlu0 %5738  ;;  %v5545_v39 = vunpack.i.l.bf16 %v12902_v2  ;;  %v5541_v17 = vunpack.i.h.bf16 %v12903_v42  ;;  %v5540_v37 = vunpack.i.l.bf16 %v12903_v42  ;;  %v5556_v20 = vunpack.i.h.bf16 %v12904_v13 }
 0x12b   :  { %v5555_v57 = vunpack.i.l.bf16 %v12904_v13  ;;  %v8620_v48 = vsel %vm1235_vm8, %v8468_v14, %v5525_v22  ;;  %v8624_v32 = vsel %vm1235_vm8, %v8460_v21, %v5526_v6  ;;  %v5551_v11 = vunpack.i.h.bf16 %v12905_v52 }
 0x12c   :  { %v5550_v2 = vunpack.i.l.bf16 %v12905_v52  ;;  %v8632_v42 = vsel %vm1235_vm8, %v8421_v45, %v5520_v46  ;;  %v8636_v13 = vsel %vm1235_vm8, %v8464_v38, %v5521_v1  ;;  %v8640_v14 = vsel %vm1235_vm8, %v8486_v25, %v5535_v53  ;;  %v12911_v52 = vld [vmem:[#allocation60_spill] sm:$0xff] }
 0x12d   :  { %v8628_v27 = vpop.permute.xlu1 %5753  ;;  %v8644_v21 = vsel %vm1235_vm8, %v8478_v61, %v5536_v12  ;;  %v8650_v22 = vsel %vm1235_vm8, %v8456_v29, %v5530_v7  ;;  %v8654_v45 = vsel %vm1235_vm8, %v8482_v33, %v5531_v16  ;;  %v8658_v38 = vsel %vm1235_vm8, %v8502_v35, %v5545_v39  ;;  %v12907_v12 = vld [vmem:[#allocation53_spill] sm:$0xff] }
 0x12e   :  { %v8646_v6 = vpop.permute.xlu0 %5748  ;;  %v8662_v25 = vsel %vm1235_vm8, %v8494_v47, %v5546_v62  ;;  %v8666_v61 = vsel %vm1235_vm8, %v8474_v63, %v5540_v37  ;;  %v8670_v29 = vsel %vm1235_vm8, %v8498_v15, %v5541_v17  ;;  %v8673_v1 = vsel %vm1235_vm8, %v1229_v31, %v5555_v57  ;;  %v12906_v63 = vld [vmem:[#allocation50_spill] sm:$0xff]  ;;  %v12908_v16 = vld [vmem:[#allocation49_spill] sm:$0xff]  ;;  %v12910_v37 = vld [vmem:[#allocation59_spill] sm:$0xff] }
 0x12f   :  { %v8677_v33 = vsel %vm1235_vm8, %v8510_v9, %v5556_v20  ;;  %v8681_v35 = vsel %vm1235_vm8, %v8490_v41, %v5550_v2  ;;  %v8685_v47 = vsel %vm1235_vm8, %v8514_v55, %v5551_v11  ;;  %v5566_v46 = vunpack.i.h.bf16 %v12906_v63  ;;  %v12909_v62 = vld [vmem:[#allocation57_spill] sm:$0xff]  ;;  %v12922_v17 = vld [vmem:[#allocation67_spill] sm:$0xff] }
 0x130   :  { %v5575_v15 = vunpack.i.l.bf16 %v12907_v12  ;;  %v5576_v31 = vunpack.i.h.bf16 %v12907_v12  ;;  %v5571_v7 = vunpack.i.h.bf16 %v12908_v16  ;;  %v5570_v9 = vunpack.i.l.bf16 %v12908_v16  ;;  %v12912_v12 = vld [vmem:[#allocation61_spill] sm:$0xff] }
 0x131   :  { %v8689_v53 = vpop.permute.xlu1 %5763  ;;  %v5585_v39 = vunpack.i.l.bf16 %v12909_v62  ;;  %v5586_v55 = vunpack.i.h.bf16 %v12909_v62  ;;  %v5581_v20 = vunpack.i.h.bf16 %v12910_v37  ;;  %v5580_v57 = vunpack.i.l.bf16 %v12910_v37 }
 0x132   :  { %v8695_v41 = vpop.permute.xlu0 %5758  ;;  %v5596_v11 = vunpack.i.h.bf16 %v12911_v52  ;;  %v5595_v2 = vunpack.i.l.bf16 %v12911_v52  ;;  %v5591_v0 = vunpack.i.h.bf16 %v12912_v12  ;;  %v5590_v16 = vunpack.i.l.bf16 %v12912_v12 }
 0x133   :  { %v8707_v56 = vsel %vm1235_vm8, %v8537_v36, %v5566_v46  ;;  %v8713_v63 = vsel %vm1268_vm9, %v8553_v4, %v5575_v15  ;;  %v8719_v52 = vsel %vm1268_vm9, %v8557_v44, %v5576_v31  ;;  %v8723_v12 = vsel %vm1268_vm9, %v8563_v59, %v5570_v9  ;;  %v12916_v9 = vld [vmem:[#allocation63_spill] sm:$0xff] }
 0x134   :  { %12913 = vst [vmem:[#allocation7_spill] sm:$0xff] %v8707_v56  ;;  %v8727_v36 = vsel %vm1268_vm9, %v8567_v10, %v5571_v7  ;;  %v8731_v46 = vsel %vm1268_vm9, %v8571_v40, %v5585_v39  ;;  %v8737_v15 = vsel %vm1268_vm9, %v8575_v5, %v5586_v55  ;;  %v8741_v44 = vsel %vm1268_vm9, %v8579_v43, %v5580_v57  ;;  %v12915_v10 = vld [vmem:[#allocation62_spill] sm:$0xff]  ;;  %v12917_v55 = vld [vmem:[#allocation64_spill] sm:$0xff] }
 0x135   :  { %v8715_v37 = vpop.permute.xlu1 %5773  ;;  %v8745_v59 = vsel %vm1268_vm9, %v8583_v24, %v5581_v20  ;;  %v5605_v31 = vunpack.i.l.bf16 %v12915_v10  ;;  %v8750_v40 = vsel %vm1268_vm9, %v8586_v60, %v5595_v2  ;;  %v8754_v7 = vsel %vm1268_vm9, %v8590_v58, %v5596_v11  ;;  %v12919_v11 = vld [vmem:[#allocation65_spill] sm:$0xff] }
 0x136   :  { %v8733_v4 = vpop.permute.xlu0 %5768  ;;  %v8758_v5 = vsel %vm1268_vm9, %v8594_v30, %v5590_v16  ;;  %v8762_v43 = vsel %vm1268_vm9, %v8598_v26, %v5591_v0  ;;  %v5606_v24 = vunpack.i.h.bf16 %v12915_v10  ;;  %v5601_v39 = vunpack.i.h.bf16 %v12916_v9  ;;  %v12920_v16 = vld [vmem:[#allocation66_spill] sm:$0xff] }
 0x137   :  { %v5600_v60 = vunpack.i.l.bf16 %v12916_v9  ;;  %v5615_v20 = vunpack.i.l.bf16 %v12917_v55  ;;  %v5616_v58 = vunpack.i.h.bf16 %v12917_v55  ;;  %v5611_v30 = vunpack.i.h.bf16 %v12919_v11 }
 0x138   :  { %v5610_v2 = vunpack.i.l.bf16 %v12919_v11  ;;  %v5625_v0 = vunpack.i.l.bf16 %v12920_v16  ;;  %v8778_v10 = vsel %vm1268_vm9, %v8620_v48, %v5605_v31  ;;  %v5626_v9 = vunpack.i.h.bf16 %v12920_v16 }
 0x139   :  { %v8768_v57 = vpop.permute.xlu1 %5783  ;;  %v5621_v62 = vunpack.i.h.bf16 %v12922_v17  ;;  %v5620_v56 = vunpack.i.l.bf16 %v12922_v17  ;;  %v5636_v55 = vunpack.i.h.bf16 %v12923_v3  ;;  %v5631_v11 = vunpack.i.h.bf16 %v12924_v8 }
 0x13a   :  { %12918 = vst [vmem:[#allocation24_spill] sm:$0xff] %v8768_v57  ;;  %v8774_v26 = vpop.permute.xlu0 %5778  ;;  %v5630_v57 = vunpack.i.l.bf16 %v12924_v8  ;;  %v8793_v48 = vsel %vm1268_vm9, %v8632_v42, %v5600_v60  ;;  %v8797_v31 = vsel %vm1268_vm9, %v8636_v13, %v5601_v39  ;;  %v8801_v17 = vsel %vm1268_vm9, %v8640_v14, %v5615_v20 }
 0x13b   :  { %12921 = vst [vmem:[#allocation16_spill] sm:$0xff] %v8774_v26  ;;  %v8789_v26 = vsel %vm1268_vm9, %v8624_v32, %v5606_v24  ;;  %v8807_v8 = vsel %vm1268_vm9, %v8644_v21, %v5616_v58  ;;  %v8811_v32 = vsel %vm1268_vm9, %v8650_v22, %v5610_v2  ;;  %v8815_v42 = vsel %vm1268_vm9, %v8654_v45, %v5611_v30  ;;  %v12925_v45 = vld [vmem:[#allocation72_spill] sm:$0xff] }
 0x13c   :  { %v8819_v13 = vsel %vm1268_vm9, %v8658_v38, %v5625_v0  ;;  %v8825_v24 = vsel %vm1268_vm9, %v8662_v25, %v5626_v9  ;;  %v8829_v21 = vsel %vm1268_vm9, %v8666_v61, %v5620_v56  ;;  %v8833_v22 = vsel %vm1268_vm9, %v8670_v29, %v5621_v62  ;;  %v12928_v29 = vld [vmem:[#allocation73_spill] sm:$0xff] }
 0x13d   :  { %v8803_v3 = vpop.permute.xlu1 %5793  ;;  %v5655_v39 = vunpack.i.l.bf16 %v12925_v45  ;;  %v8838_v38 = vsel %vm1268_vm9, %v8673_v1, %v5635_v50  ;;  %v8842_v60 = vsel %vm1268_vm9, %v8677_v33, %v5636_v55  ;;  %v8846_v25 = vsel %vm1268_vm9, %v8681_v35, %v5630_v57  ;;  %v12929_v1 = vld [vmem:[#allocation9_spill] sm:$0xff]  ;;  %v12936_v35 = vld [vmem:[#allocation14_spill] sm:$0xff] }
 0x13e   :  { %v8821_v14 = vpop.permute.xlu0 %5788  ;;  %12926 = vst [vmem:[#allocation30_spill] sm:$0xff] %v8846_v25  ;;  %v8850_v56 = vsel %vm1268_vm9, %v8685_v47, %v5631_v11  ;;  %v5656_v61 = vunpack.i.h.bf16 %v12925_v45  ;;  %v5651_v62 = vunpack.i.h.bf16 %v12928_v29  ;;  %v5650_v50 = vunpack.i.l.bf16 %v12928_v29  ;;  %v12932_v47 = vld [vmem:[#allocation3_spill] sm:$0xff] }
 0x13f   :  { %12927 = vst [vmem:[#allocation28_spill] sm:$0xff] %v8850_v56  ;;  %v5665_v20 = vunpack.i.l.bf16 %v12929_v1  ;;  %v5666_v57 = vunpack.i.h.bf16 %v12929_v1  ;;  %v5660_v2 = vunpack.i.l.bf16 %v12932_v47  ;;  %v1304_v11 = vsel %vm1301_vm10, %v8713_v63, %v5655_v39  ;;  %v12935_v29 = vld [vmem:[#allocation15_spill] sm:$0xff] }
 0x140   :  { %v5661_v45 = vunpack.i.h.bf16 %v12932_v47  ;;  %v5675_v30 = vunpack.i.l.bf16 %v12935_v29  ;;  %v5671_v33 = vunpack.i.h.bf16 %v12936_v35  ;;  %v5670_v1 = vunpack.i.l.bf16 %v12936_v35 }
 0x141   :  { %v8856_v58 = vpop.permute.xlu1 %952  ;;  %v1302_v9 = vsel %vm1301_vm10, %v8723_v12, %v5650_v50  ;;  %v1303_v63 = vsel %vm1301_vm10, %v8727_v36, %v5651_v62  ;;  %v8881_v39 = vsel %vm1301_vm10, %v8731_v46, %v5665_v20  ;;  %v1306_v35 = vsel %vm1301_vm10, %v8741_v44, %v5660_v2  ;;  %v12937_v62 = vld [vmem:[#allocation13_spill] sm:$0xff] }
 0x142   :  { %12930 = vst [vmem:[#allocation32_spill] sm:$0xff] %v8856_v58  ;;  %v8862_v16 = vpop.permute.xlu0 %5798  ;;  %v5676_v58 = vunpack.i.h.bf16 %v12935_v29  ;;  %v8885_v29 = vsel %vm1301_vm10, %v8737_v15, %v5666_v57  ;;  %v1307_v36 = vsel %vm1301_vm10, %v8745_v59, %v5661_v45  ;;  %v5685_v50 = vunpack.i.l.bf16 %v12937_v62  ;;  %v12938_v57 = vld [vmem:[#allocation4_spill] sm:$0xff] }
 0x143   :  { %12933 = vst [vmem:[#allocation23_spill] sm:$0xff] %v8862_v16  ;;  %v1305_v16 = vsel %vm1301_vm10, %v8719_v52, %v5656_v61  ;;  %v5731_v52 = vunpack.i.h.bf16 %v8559_v34  ;;  %v5730_v61 = vunpack.i.l.bf16 %v8559_v34  ;;  %v8896_v55 = vsel %vm1301_vm10, %v8750_v40, %v5675_v30 }
 0x144   :  { %v8900_v15 = vsel %vm1301_vm10, %v8754_v7, %v5676_v58  ;;  %v8904_v44 = vsel %vm1301_vm10, %v8758_v5, %v5670_v1  ;;  %v8908_v34 = vsel %vm1301_vm10, %v8762_v43, %v5671_v33  ;;  %v5686_v59 = vunpack.i.h.bf16 %v12937_v62 }
 0x145   :  { %v5809_v47 = vpop.permute.xlu1 %5808  ;;  %v5680_v45 = vunpack.i.l.bf16 %v12938_v57  ;;  %v5735_v40 = vunpack.i.l.bf16 %v8541_v49  ;;  %v1335_v0 = vsel %vm1334_vm11, %v1302_v9, %v5730_v61  ;;  %v1336_v5 = vsel %vm1334_vm11, %v1303_v63, %v5731_v52  ;;  %v12939_v52 = vld [vmem:[#allocation11_spill] sm:$0xff] }
 0x146   :  { %v5804_v12 = vpop.permute.xlu0 %5803  ;;  %v8918_v43 = vsel %vm1301_vm10, %v8778_v10, %v5685_v50  ;;  %v5736_v33 = vunpack.i.h.bf16 %v8541_v49  ;;  %v5811_v2 = vunpack.i.h.bf16 %v5809_v47  ;;  %v5810_v56 = vunpack.i.l.bf16 %v5809_v47 }
 0x147   :  { %v5806_v46 = vunpack.i.h.bf16 %v5804_v12  ;;  %v5805_v20 = vunpack.i.l.bf16 %v5804_v12  ;;  %v8927_v9 = vsel %vm1301_vm10, %v8789_v26, %v5686_v59  ;;  %v8931_v10 = vsel %vm1301_vm10, %v8793_v48, %v5680_v45 }
 0x148   :  { %v5740_v49 = vunpack.i.l.bf16 %v8608_v28  ;;  %v5696_v61 = vunpack.i.h.bf16 %v12939_v52  ;;  %v5695_v47 = vunpack.i.l.bf16 %v12939_v52  ;;  %v1337_v50 = vsel %vm1334_vm11, %v1304_v11, %v5735_v40 }
 0x149   :  { %v5819_v30 = vpop.permute.xlu1 %5818  ;;  %v1368_v1 = vsel %vm1367_vm12, %v1335_v0, %v5805_v20  ;;  %v1369_v62 = vsel %vm1367_vm12, %v1336_v5, %v5806_v46  ;;  %v5741_v46 = vunpack.i.h.bf16 %v8608_v28  ;;  %v1338_v26 = vsel %vm1334_vm11, %v1305_v16, %v5736_v33 }
 0x14a   :  { %v5821_v12 = vunpack.i.h.bf16 %v5819_v30  ;;  %v5820_v7 = vunpack.i.l.bf16 %v5819_v30  ;;  %v5814_v58 = vpop.permute.xlu0 %5813  ;;  %v5745_v59 = vunpack.i.l.bf16 %v8602_v23  ;;  %v1370_v45 = vsel %vm1367_vm12, %v1337_v50, %v5810_v56 }
 0x14b   :  { %v5815_v5 = vunpack.i.l.bf16 %v5814_v58  ;;  %v1339_v11 = vsel %vm1334_vm11, %v1306_v35, %v5740_v49  ;;  %v1340_v33 = vsel %vm1334_vm11, %v1307_v36, %v5741_v46  ;;  %vm2858_vm6 = vcmask 523264  }
 0x14c   :  { %v1401_v25 = vsel %vm1400_vm13, %v1368_v1, %v5820_v7  ;;  %v1402_v30 = vsel %vm1400_vm13, %v1369_v62, %v5821_v12  ;;  %v5816_v7 = vunpack.i.h.bf16 %v5814_v58  ;;  %v5746_v1 = vunpack.i.h.bf16 %v8602_v23 }
 0x14d   :  { %v5829_v63 = vpop.permute.xlu1 %5828  ;;  %v1434_v0 = vpack.c.bf16 %v1402_v30, %v1401_v25  ;;  %v1371_v25 = vsel %vm1367_vm12, %v1338_v26, %v5811_v2  ;;  %v5690_v58 = vunpack.i.l.bf16 %v8385_v54  ;;  %v1341_v23 = vsel %vm1334_vm11, %v8881_v39, %v5745_v59 }
 0x14e   :  { %v5824_v20 = vpop.permute.xlu0 %5823  ;;  %v5831_v62 = vunpack.i.h.bf16 %v5829_v63  ;;  %v5830_v30 = vunpack.i.l.bf16 %v5829_v63  ;;  %v1372_v35 = vsel %vm1367_vm12, %v1339_v11, %v5815_v5  ;;  %v1373_v49 = vsel %vm1367_vm12, %v1340_v33, %v5816_v7 }
 0x14f   :  { %v5826_v12 = vunpack.i.h.bf16 %v5824_v20  ;;  %v5825_v48 = vunpack.i.l.bf16 %v5824_v20  ;;  %5283 = vmatprep.mubr.msk.bf16.mxu0 %vm1471_vm14, %v1434_v0  ;;  %v1342_v36 = vsel %vm1334_vm11, %v8885_v29, %v5746_v1  ;;  %v5750_v63 = vunpack.i.l.bf16 %v8646_v6 }
 0x150   :  { %v1374_v39 = vsel %vm1367_vm12, %v1341_v23, %v5830_v30  ;;  %v1375_v59 = vsel %vm1367_vm12, %v1342_v36, %v5831_v62  ;;  %v12940_v7 = vunpack.i.h.bf16 %v12938_v57  ;;  %v5691_v5 = vunpack.i.h.bf16 %v8385_v54 }
 0x151   :  { %v1403_v28 = vsel %vm1400_vm13, %v1370_v45, %v5825_v48  ;;  %v1404_v16 = vsel %vm1400_vm13, %v1371_v25, %v5826_v12  ;;  %v5839_v40 = vpop.permute.xlu1 %5838  ;;  %v5751_v48 = vunpack.i.h.bf16 %v8646_v6  ;;  %v5755_v6 = vunpack.i.l.bf16 %v8628_v27 }
 0x152   :  { %v5834_v0 = vpop.permute.xlu0 %5833  ;;  %v1435_v52 = vpack.c.bf16 %v1404_v16, %v1403_v28  ;;  %v5841_v56 = vunpack.i.h.bf16 %v5839_v40  ;;  %v5840_v50 = vunpack.i.l.bf16 %v5839_v40  ;;  %v1315_v29 = vsel %vm1301_vm10, %v8797_v31, %v12940_v7 }
 0x153   :  { %v5836_v2 = vunpack.i.h.bf16 %v5834_v0  ;;  %v5835_v20 = vunpack.i.l.bf16 %v5834_v0  ;;  %v5756_v28 = vunpack.i.h.bf16 %v8628_v27  ;;  %v8974_v57 = vsel %vm1301_vm10, %v8801_v17, %v5695_v47 }
 0x154   :  { %5284 = vmatmul.mubr.msk.bf16.vlgmr.msra.gmra.mrb[0].mxu0 %vm1471_vm14, %v1435_v52  ;;  %v1407_v1 = vsel %vm1400_vm13, %v1374_v39, %v5840_v50  ;;  %v1408_v11 = vsel %vm1400_vm13, %v1375_v59, %v5841_v56  ;;  %v8978_v31 = vsel %vm1301_vm10, %v8807_v8, %v5696_v61  ;;  %v8982_v54 = vsel %vm1301_vm10, %v8811_v32, %v5690_v58 }
 0x155   :  { %v1405_v46 = vsel %vm1400_vm13, %v1372_v35, %v5835_v20  ;;  %v1406_v26 = vsel %vm1400_vm13, %v1373_v49, %v5836_v2  ;;  %v5849_v12 = vpop.permute.xlu1 %5848  ;;  %v1343_v33 = vsel %vm1334_vm11, %v8904_v44, %v5750_v63  ;;  %v1344_v62 = vsel %vm1334_vm11, %v8908_v34, %v5751_v48 }
 0x156   :  { %v5844_v45 = vpop.permute.xlu0 %5843  ;;  %v1436_v25 = vpack.c.bf16 %v1406_v26, %v1405_v46  ;;  %v5851_v30 = vunpack.i.h.bf16 %v5849_v12  ;;  %v5850_v0 = vunpack.i.l.bf16 %v5849_v12  ;;  %v1437_v17 = vpack.c.bf16 %v1408_v11, %v1407_v1 }
 0x157   :  { %v5846_v16 = vunpack.i.h.bf16 %v5844_v45  ;;  %v5845_v40 = vunpack.i.l.bf16 %v5844_v45  ;;  %v1345_v61 = vsel %vm1334_vm11, %v8896_v55, %v5755_v6  ;;  %v1346_v32 = vsel %vm1334_vm11, %v8900_v15, %v5756_v28 }
 0x158   :  { %5287 = vmatprep.mubr.msk.bf16.mxu0 %vm1471_vm14, %v1436_v25  ;;  %v5765_v34 = vunpack.i.l.bf16 %v8689_v53  ;;  %v5760_v20 = vunpack.i.l.bf16 %v8695_v41  ;;  %v5761_v55 = vunpack.i.h.bf16 %v8695_v41  ;;  %v1378_v49 = vsel %vm1367_vm12, %v1345_v61, %v5850_v0 }
 0x159   :  { %v5859_v27 = vpop.permute.xlu1 %5858  ;;  %v1376_v44 = vsel %vm1367_vm12, %v1343_v33, %v5845_v40  ;;  %v1377_v2 = vsel %vm1367_vm12, %v1344_v62, %v5846_v16  ;;  %v1379_v15 = vsel %vm1367_vm12, %v1346_v32, %v5851_v30  ;;  %v1319_v46 = vsel %vm1301_vm10, %v8815_v42, %v5691_v5 }
 0x15a   :  { %v5854_v52 = vpop.permute.xlu0 %5853  ;;  %v5861_v47 = vunpack.i.h.bf16 %v5859_v27  ;;  %v5860_v56 = vunpack.i.l.bf16 %v5859_v27  ;;  %v5706_v26 = vunpack.i.h.bf16 %v8431_v51  ;;  %v5705_v39 = vunpack.i.l.bf16 %v8431_v51 }
 0x15b   :  { %v5856_v50 = vunpack.i.h.bf16 %v5854_v52  ;;  %v5855_v8 = vunpack.i.l.bf16 %v5854_v52  ;;  %v5766_v59 = vunpack.i.h.bf16 %v8689_v53  ;;  %v5701_v25 = vunpack.i.h.bf16 %v8437_v19 }
 0x15c   :  { %5288 = vmatmul.mubr.msk.bf16.gmra.mrb[4].mxu0 %vm1471_vm14, %v1437_v17  ;;  %v1411_v12 = vsel %vm1400_vm13, %v1378_v49, %v5860_v56  ;;  %v1412_v48 = vsel %vm1400_vm13, %v1379_v15, %v5861_v47  ;;  %v5700_v7 = vunpack.i.l.bf16 %v8437_v19  ;;  %v1349_v42 = vsel %vm1334_vm11, %v8918_v43, %v5765_v34 }
 0x15d   :  { %v1409_v58 = vsel %vm1400_vm13, %v1376_v44, %v5855_v8  ;;  %v1410_v23 = vsel %vm1400_vm13, %v1377_v2, %v5856_v50  ;;  %v5869_v35 = vpop.permute.xlu1 %5868  ;;  %v1347_v5 = vsel %vm1334_vm11, %v8931_v10, %v5760_v20  ;;  %v1348_v11 = vsel %vm1334_vm11, %v1315_v29, %v5761_v55 }
 0x15e   :  { %v5864_v36 = vpop.permute.xlu0 %5863  ;;  %v1438_v63 = vpack.c.bf16 %v1410_v23, %v1409_v58  ;;  %v5871_v51 = vunpack.i.h.bf16 %v5869_v35  ;;  %v5870_v28 = vunpack.i.l.bf16 %v5869_v35  ;;  %v1439_v6 = vpack.c.bf16 %v1412_v48, %v1411_v12  ;;  %v12941_v48 = vld [vmem:[#allocation24_spill] sm:$0xff] }
 0x15f   :  { %v5866_v41 = vunpack.i.h.bf16 %v5864_v36  ;;  %v5865_v45 = vunpack.i.l.bf16 %v5864_v36  ;;  %v1350_v19 = vsel %vm1334_vm11, %v8927_v9, %v5766_v59  ;;  %v5776_v62 = vunpack.i.h.bf16 %v8715_v37 }
 0x160   :  { %5291 = vmatprep.mubr.msk.bf16.mxu0 %vm1471_vm14, %v1438_v63  ;;  %v5775_v29 = vunpack.i.l.bf16 %v8715_v37  ;;  %v5770_v30 = vunpack.i.l.bf16 %v8733_v4  ;;  %v5771_v47 = vunpack.i.h.bf16 %v8733_v4  ;;  %v1382_v9 = vsel %vm1367_vm12, %v1349_v42, %v5870_v28 }
 0x161   :  { %v5879_v1 = vpop.permute.xlu1 %5878  ;;  %v1380_v43 = vsel %vm1367_vm12, %v1347_v5, %v5865_v45  ;;  %v1381_v10 = vsel %vm1367_vm12, %v1348_v11, %v5866_v41  ;;  %v1383_v56 = vsel %vm1367_vm12, %v1350_v19, %v5871_v51  ;;  %v1324_v61 = vsel %vm1301_vm10, %v8819_v13, %v5705_v39 }
 0x162   :  { %v5874_v53 = vpop.permute.xlu0 %5873  ;;  %v5881_v16 = vunpack.i.h.bf16 %v5879_v1  ;;  %v5880_v40 = vunpack.i.l.bf16 %v5879_v1  ;;  %v1325_v37 = vsel %vm1301_vm10, %v8825_v24, %v5706_v26  ;;  %v1322_v2 = vsel %vm1301_vm10, %v8829_v21, %v5700_v7 }
 0x163   :  { %v5876_v33 = vunpack.i.h.bf16 %v5874_v53  ;;  %v5875_v27 = vunpack.i.l.bf16 %v5874_v53  ;;  %v1323_v4 = vsel %vm1301_vm10, %v8833_v22, %v5701_v25  ;;  %v5716_v58 = vunpack.i.h.bf16 %v8452_v18 }
 0x164   :  { %5292 = vmatmul.mubr.msk.bf16.gmra.mrb[8].mxu0 %vm1471_vm14, %v1439_v6  ;;  %v1415_v32 = vsel %vm1400_vm13, %v1382_v9, %v5880_v40  ;;  %v1416_v44 = vsel %vm1400_vm13, %v1383_v56, %v5881_v16  ;;  %v1353_v13 = vsel %vm1334_vm11, %v8974_v57, %v5775_v29  ;;  %v1354_v24 = vsel %vm1334_vm11, %v8978_v31, %v5776_v62  ;;  %v12943_v40 = vld [vmem:[#allocation58_spill] sm:$0xff] }
 0x165   :  { %v1413_v0 = vsel %vm1400_vm13, %v1380_v43, %v5875_v27  ;;  %v1414_v52 = vsel %vm1400_vm13, %v1381_v10, %v5876_v33  ;;  %v5889_v17 = vpop.permute.xlu1 %5888  ;;  %v1351_v23 = vsel %vm1334_vm11, %v8982_v54, %v5770_v30  ;;  %v1352_v21 = vsel %vm1334_vm11, %v1319_v46, %v5771_v47  ;;  %v12942_v54 = vld [vmem:[#allocation16_spill] sm:$0xff] }
 0x166   :  { %v5884_v50 = vpop.permute.xlu0 %5883  ;;  %v1440_v8 = vpack.c.bf16 %v1414_v52, %v1413_v0  ;;  %v5891_v55 = vunpack.i.h.bf16 %v5889_v17  ;;  %v5890_v22 = vunpack.i.l.bf16 %v5889_v17  ;;  %v1441_v15 = vpack.c.bf16 %v1416_v44, %v1415_v32 }
 0x167   :  { %v5886_v34 = vunpack.i.h.bf16 %v5884_v50  ;;  %v5885_v20 = vunpack.i.l.bf16 %v5884_v50  ;;  %v5786_v39 = vunpack.i.h.bf16 %v12941_v48  ;;  %v5785_v57 = vunpack.i.l.bf16 %v12941_v48 }
 0x168   :  { %5295 = vmatprep.mubr.msk.bf16.mxu0 %vm1471_vm14, %v1440_v8  ;;  %v5781_v46 = vunpack.i.h.bf16 %v12942_v54  ;;  %v5780_v41 = vunpack.i.l.bf16 %v12942_v54  ;;  %v5715_v42 = vunpack.i.l.bf16 %v8452_v18  ;;  %v1386_v5 = vsel %vm1367_vm12, %v1353_v13, %v5890_v22  ;;  %v12947_v18 = vld [vmem:[#allocation19_spill] sm:$0xff] }
 0x169   :  { %v5899_v35 = vpop.permute.xlu1 %5898  ;;  %v1384_v31 = vsel %vm1367_vm12, %v1351_v23, %v5885_v20  ;;  %v1385_v59 = vsel %vm1367_vm12, %v1352_v21, %v5886_v34  ;;  %v1387_v1 = vsel %vm1367_vm12, %v1354_v24, %v5891_v55  ;;  %v5711_v33 = vunpack.i.h.bf16 %v12943_v40 }
 0x16a   :  { %v5894_v49 = vpop.permute.xlu0 %5893  ;;  %v5901_v36 = vunpack.i.h.bf16 %v5899_v35  ;;  %v5900_v63 = vunpack.i.l.bf16 %v5899_v35  ;;  %v5710_v27 = vunpack.i.l.bf16 %v12943_v40  ;;  %v1357_v43 = vsel %vm1334_vm11, %v1324_v61, %v5785_v57 }
 0x16b   :  { %v5896_v26 = vunpack.i.h.bf16 %v5894_v49  ;;  %v5895_v12 = vunpack.i.l.bf16 %v5894_v49  ;;  %v1358_v10 = vsel %vm1334_vm11, %v1325_v37, %v5786_v39  ;;  %v1355_v30 = vsel %vm1334_vm11, %v1322_v2, %v5780_v41 }
 0x16c   :  { %5296 = vmatmul.mubr.msk.bf16.gmra.mrb[12].mxu0 %vm1471_vm14, %v1441_v15  ;;  %v1419_v28 = vsel %vm1400_vm13, %v1386_v5, %v5900_v63  ;;  %v1420_v53 = vsel %vm1400_vm13, %v1387_v1, %v5901_v36  ;;  %v1356_v0 = vsel %vm1334_vm11, %v1323_v4, %v5781_v46  ;;  %v5796_v52 = vunpack.i.h.bf16 %v8803_v3  ;;  %v12944_v15 = vld [vmem:[#allocation30_spill] sm:$0xff] }
 0x16d   :  { %v1417_v45 = vsel %vm1400_vm13, %v1384_v31, %v5895_v12  ;;  %v1418_v25 = vsel %vm1400_vm13, %v1385_v59, %v5896_v26  ;;  %v5909_v7 = vpop.permute.xlu1 %5908  ;;  %v1443_v56 = vpack.c.bf16 %v1420_v53, %v1419_v28  ;;  %v5795_v34 = vunpack.i.l.bf16 %v8803_v3  ;;  %v12945_v12 = vld [vmem:[#allocation28_spill] sm:$0xff] }
 0x16e   :  { %v5904_v11 = vpop.permute.xlu0 %5903  ;;  %v1442_v51 = vpack.c.bf16 %v1418_v25, %v1417_v45  ;;  %v5911_v6 = vunpack.i.h.bf16 %v5909_v7  ;;  %v5910_v16 = vunpack.i.l.bf16 %v5909_v7  ;;  %v1328_v35 = vsel %vm1301_vm10, %v8838_v38, %v5715_v42  ;;  %v12946_v38 = vld [vmem:[#allocation8_spill] sm:$0xff] }
 0x16f   :  { %v5906_v19 = vunpack.i.h.bf16 %v5904_v11  ;;  %v5905_v62 = vunpack.i.l.bf16 %v5904_v11  ;;  %v5791_v21 = vunpack.i.h.bf16 %v8821_v14  ;;  %v5790_v55 = vunpack.i.l.bf16 %v8821_v14 }
 0x170   :  { %5299 = vmatprep.mubr.msk.bf16.mxu0 %vm1471_vm14, %v1442_v51  ;;  %v1390_v50 = vsel %vm1367_vm12, %v1357_v43, %v5910_v16  ;;  %v1391_v8 = vsel %vm1367_vm12, %v1358_v10, %v5911_v6  ;;  %v1329_v3 = vsel %vm1301_vm10, %v8842_v60, %v5716_v58  ;;  %v1326_v36 = vsel %vm1301_vm10, %v12944_v15, %v5710_v27  ;;  %v12950_v10 = vld [vmem:[#allocation21_spill] sm:$0xff] }
 0x171   :  { %v5919_v29 = vpop.permute.xlu1 %5918  ;;  %v1388_v2 = vsel %vm1367_vm12, %v1355_v30, %v5905_v62  ;;  %v1389_v4 = vsel %vm1367_vm12, %v1356_v0, %v5906_v19  ;;  %v1327_v48 = vsel %vm1301_vm10, %v12945_v12, %v5711_v33  ;;  %v5726_v39 = vunpack.i.h.bf16 %v12946_v38  ;;  %v12948_v62 = vld [vmem:[#allocation50_spill] sm:$0xff]  ;;  %v12951_v30 = vld [vmem:[#allocation23_spill] sm:$0xff]  ;;  %v12964_v12 = vld [vmem:[#allocation32_spill] sm:$0xff] }
 0x172   :  { %v5921_v17 = vunpack.i.h.bf16 %v5919_v29  ;;  %v5920_v47 = vunpack.i.l.bf16 %v5919_v29  ;;  %v5914_v9 = vpop.permute.xlu0 %5913  ;;  %v5725_v14 = vunpack.i.l.bf16 %v12946_v38  ;;  %v5721_v59 = vunpack.i.h.bf16 %v12947_v18 }
 0x173   :  { %v5916_v32 = vunpack.i.h.bf16 %v5914_v9  ;;  %v5915_v44 = vunpack.i.l.bf16 %v5914_v9  ;;  %v1361_v60 = vsel %vm1334_vm11, %v1328_v35, %v5795_v34  ;;  %v1362_v58 = vsel %vm1334_vm11, %v1329_v3, %v5796_v52  ;;  %v12952_v9 = vld [vmem:[#allocation56_spill] sm:$0xff] }
 0x174   :  { %v1423_v61 = vsel %vm1400_vm13, %v1390_v50, %v5920_v47  ;;  %v1424_v37 = vsel %vm1400_vm13, %v1391_v8, %v5921_v17  ;;  %5300 = vmatmul.mubr.msk.bf16.gmra.mrb[16].mxu0 %vm1471_vm14, %v1443_v56  ;;  %v1359_v46 = vsel %vm1334_vm11, %v1326_v36, %v5790_v55  ;;  %v1360_v41 = vsel %vm1334_vm11, %v1327_v48, %v5791_v21  ;;  %v12954_v50 = vld [vmem:[#allocation12_spill] sm:$0xff] }
 0x175   :  { %v5929_v20 = vpop.permute.xlu1 %5928  ;;  %v1421_v13 = vsel %vm1400_vm13, %v1388_v2, %v5915_v44  ;;  %v1422_v24 = vsel %vm1400_vm13, %v1389_v4, %v5916_v32  ;;  %v1445_v23 = vpack.c.bf16 %v1424_v37, %v1423_v61  ;;  %v5720_v16 = vunpack.i.l.bf16 %v12947_v18  ;;  %v12956_v44 = vld [vmem:[#allocation22_spill] sm:$0xff] }
 0x176   :  { %v5924_v22 = vpop.permute.xlu0 %5923  ;;  %v1444_v49 = vpack.c.bf16 %v1422_v24, %v1421_v13  ;;  %v5931_v63 = vunpack.i.h.bf16 %v5929_v20  ;;  %v5930_v26 = vunpack.i.l.bf16 %v5929_v20  ;;  %v12949_v43 = vunpack.i.l.bf16 %v12948_v62  ;;  %v12957_v37 = vld [vmem:[#allocation70_spill] sm:$0xff]  ;;  %v12960_v20 = vld [vmem:[#allocation7_spill] sm:$0xff] }
 0x177   :  { %v5926_v57 = vunpack.i.h.bf16 %v5924_v22  ;;  %v5925_v31 = vunpack.i.l.bf16 %v5924_v22  ;;  %v5801_v0 = vunpack.i.h.bf16 %v12951_v30  ;;  %v5800_v52 = vunpack.i.l.bf16 %v12951_v30  ;;  %v12961_v24 = vld [vmem:[#allocation71_spill] sm:$0xff] }
 0x178   :  { %5303 = vmatprep.mubr.msk.bf16.mxu1 %vm1471_vm14, %v1444_v49  ;;  %v1394_v42 = vsel %vm1367_vm12, %v1361_v60, %v5930_v26  ;;  %v1395_v5 = vsel %vm1367_vm12, %v1362_v58, %v5931_v63  ;;  %v1266_v29 = vsel %vm1235_vm8, %v12950_v10, %v12949_v43  ;;  %v12953_v56 = vunpack.i.l.bf16 %v12952_v9 }
 0x179   :  { %5304 = vmatmul.mubr.msk.bf16.vlgmr.msra.gmra.mrb[0].mxu1 %vm1471_vm14, %v1445_v23  ;;  %v5939_v54 = vpop.permute.xlu1 %5938  ;;  %v1392_v51 = vsel %vm1367_vm12, %v1359_v46, %v5925_v31  ;;  %v1393_v28 = vsel %vm1367_vm12, %v1360_v41, %v5926_v57  ;;  %v12955_v32 = vunpack.i.h.bf16 %v12952_v9  ;;  %v12958_v2 = vunpack.i.l.bf16 %v12957_v37 }
 0x17a   :  { %v5941_v45 = vunpack.i.h.bf16 %v5939_v54  ;;  %v5940_v25 = vunpack.i.l.bf16 %v5939_v54  ;;  %v5934_v7 = vpop.permute.xlu0 %5933  ;;  %v1264_v8 = vsel %vm1235_vm8, %v12954_v50, %v12953_v56  ;;  %v12959_v34 = vunpack.i.h.bf16 %v12957_v37 }
 0x17b   :  { %v5936_v1 = vunpack.i.h.bf16 %v5934_v7  ;;  %v5935_v11 = vunpack.i.l.bf16 %v5934_v7  ;;  %v1265_v61 = vsel %vm1235_vm8, %v12956_v44, %v12955_v32  ;;  %v1299_v4 = vsel %vm1268_vm9, %v1266_v29, %v12958_v2 }
 0x17c   :  { %v1427_v53 = vsel %vm1400_vm13, %v1394_v42, %v5940_v25  ;;  %v1428_v6 = vsel %vm1400_vm13, %v1395_v5, %v5941_v45  ;;  %v1300_v13 = vsel %vm1268_vm9, %v12960_v20, %v12959_v34  ;;  %v12962_v23 = vunpack.i.l.bf16 %v12961_v24  ;;  %v9163_v5 = vld [vmem:[%s12428_s2] ss:$0 sm:$0xff]  ;;  %s7064_s2 = smov 96  }
 0x17d   :  { %v1425_v40 = vsel %vm1400_vm13, %v1392_v51, %v5935_v11  ;;  %v1426_v33 = vsel %vm1400_vm13, %v1393_v28, %v5936_v1  ;;  %v1046_v27 = vpop.permute.xlu1 %1045  ;;  %v1447_v19 = vpack.c.bf16 %v1428_v6, %v1427_v53  ;;  %v12963_v21 = vunpack.i.h.bf16 %v12961_v24 }
 0x17e   :  { %v5944_v17 = vpop.permute.xlu0 %5943  ;;  %v1446_v47 = vpack.c.bf16 %v1426_v33, %v1425_v40  ;;  %v1297_v35 = vsel %vm1268_vm9, %v1264_v8, %v12962_v23  ;;  %v1332_v36 = vsel %vm1301_vm10, %v1299_v4, %v5725_v14  ;;  %v1333_v63 = vsel %vm1301_vm10, %v1300_v13, %v5726_v39 }
 0x17f   :  { %v1298_v55 = vsel %vm1268_vm9, %v1265_v61, %v12963_v21  ;;  %v5946_v22 = vunpack.i.h.bf16 %v5944_v17  ;;  %v5945_v49 = vunpack.i.l.bf16 %v5944_v17  ;;  %v1330_v3 = vsel %vm1301_vm10, %v1297_v35, %v5720_v16 }
 0x180   :  { %5307 = vmatprep.mubr.msk.bf16.mxu1 %vm1471_vm14, %v1446_v47  ;;  %v1331_v15 = vsel %vm1301_vm10, %v1298_v55, %v5721_v59  ;;  %v1365_v48 = vsel %vm1334_vm11, %v1332_v36, %v12964_v12  ;;  %v1366_v38 = vsel %vm1334_vm11, %v1333_v63, %v12964_v12  ;;  %v1363_v57 = vsel %vm1334_vm11, %v1330_v3, %v5800_v52 }
 0x181   :  { %5308 = vmatmul.mubr.msk.bf16.gmra.mrb[4].mxu1 %vm1471_vm14, %v1447_v19  ;;  %v1139_v26 = vpop.permute.xlu1 %1138  ;;  %v1364_v31 = vsel %vm1334_vm11, %v1331_v15, %v5801_v0  ;;  %v1398_v59 = vsel %vm1367_vm12, %v1365_v48, %v1046_v27  ;;  %v1399_v14 = vsel %vm1367_vm12, %v1366_v38, %v1046_v27  ;;  %v1396_v58 = vsel %vm1367_vm12, %v1363_v57, %v5945_v49 }
 0x182   :  { %v5949_v18 = vpop.permute.xlu0 %5948  ;;  %v1397_v54 = vsel %vm1367_vm12, %v1364_v31, %v5946_v22  ;;  %v1431_v46 = vsel %vm1400_vm13, %v1398_v59, %v1139_v26  ;;  %v1432_v41 = vsel %vm1400_vm13, %v1399_v14, %v1139_v26  ;;  %vm2891_vm7 = vcmask 654336  }
 0x183   :  { %v5951_v60 = vunpack.i.h.bf16 %v5949_v18  ;;  %v5950_v39 = vunpack.i.l.bf16 %v5949_v18  ;;  %v1449_v42 = vpack.c.bf16 %v1432_v41, %v1431_v46  ;;  %vm2924_vm8 = vcmask 785408  }
 0x184   :  { %vm2957_vm9 = vcmask 916480  }
 0x185   :  { %v1429_v45 = vsel %vm1400_vm13, %v1396_v58, %v5950_v39  ;;  %v1430_v25 = vsel %vm1400_vm13, %v1397_v54, %v5951_v60 }
 0x186   :  { %v1448_v7 = vpack.c.bf16 %v1430_v25, %v1429_v45 }
 0x188   :  { %5311 = vmatprep.mubr.msk.bf16.mxu1 %vm1471_vm14, %v1448_v7 }
 0x189   :  { %5312 = vmatmul.mubr.msk.bf16.gmra.mrb[8].mxu1 %vm1471_vm14, %v1449_v42 }
 0x227   :  { %v5285_v1 = vpop.f32.mrb[0].mxu0 }
 0x228   :  { %v9166_v11 = vadd.f32 %v5285_v1, %v9163_v5  ;;  %v1560_v51 = vpop.f32.mrb[1].mxu0 }
 0x229   :  { %v5286_v28 = vpop.f32.mrb[2].mxu0  ;;  %v9178_v27 = vadd.f32 %v9163_v5, %v1560_v51 }
 0x22a   :  { %12965 = vst [vmem:[#allocation40_spill] sm:$0xff] %v9166_v11  ;;  %v12573_v53 = vmax.f32 %v9166_v11, 0.0  ;;  %v9170_v6 = vadd.f32 %v5286_v28, %v9163_v5  ;;  %v1563_v16 = vpop.f32.mrb[3].mxu0 }
 0x22b   :  { %v9173_v40 = vadd.f32 %v9163_v5, %v1563_v16  ;;  %12968 = vst [vmem:[#allocation31_spill] sm:$0xff] %v9178_v27  ;;  %v12575_v30 = vmax.f32 %v9178_v27, 0.0 }
 0x22c   :  { %12966 = vst [vmem:[#allocation38_spill] sm:$0xff] %v9170_v6  ;;  %v1754_v33 = vrot.slane %v12573_v53, 7  ;;  %v12572_v19 = vmax.f32 %v9170_v6, 0.0 }
 0x22d   :  { %12967 = vst [vmem:[#allocation35_spill] sm:$0xff] %v9173_v40  ;;  %v12574_v43 = vmax.f32 %v9173_v40, 0.0  ;;  %v1751_v37 = vrot.slane %v12575_v30, 7 }
 0x22e   :  { %v1755_v62 = vrot.slane %v12572_v19, 7  ;;  %v9185_v29 = vsel %vm91_vm1, 0.0, %v1754_v33 }
 0x22f   :  { %v5289_v10 = vpop.f32.mrb[4].mxu0  ;;  %12969 = vst [vmem:[#allocation6_spill] sm:$0xff] %v9185_v29  ;;  %v9198_v50 = vrot.slane %v12574_v43, 7  ;;  %v1988_v61 = vrot.slane %v9185_v29, 2  ;;  %v9232_v21 = vsel %vm91_vm1, 0.0, %v1751_v37 }
 0x230   :  { %v9189_v0 = vsel %vm91_vm1, %v1754_v33, %v1755_v62  ;;  %v9192_v52 = vsel %vm91_vm1, %v1755_v62, 0.0  ;;  %v1576_v17 = vpop.f32.mrb[5].mxu0  ;;  %v9201_v8 = vadd.f32 %v5289_v10, %v9163_v5  ;;  %12976 = vst [vmem:[#allocation20_spill] sm:$0xff] %v9232_v21 }
 0x231   :  { %12970 = vst [vmem:[#allocation46_spill] sm:$0xff] %v9189_v0  ;;  %v1989_v47 = vrot.slane %v9189_v0, 2  ;;  %v1991_v9 = vrot.slane %v9192_v52, 2  ;;  %v5290_v56 = vpop.f32.mrb[6].mxu0  ;;  %v9204_v32 = vadd.f32 %v9163_v5, %v1576_v17  ;;  %v5957_v34 = vpack.i.bf16 %v9189_v0, %v9185_v29 }
 0x232   :  { %12971 = vst [vmem:[#allocation44_spill] sm:$0xff] %v9201_v8  ;;  %v1579_v44 = vpop.f32.mrb[7].mxu0  ;;  %v9210_v2 = vadd.f32 %v5290_v56, %v9163_v5  ;;  %v9225_v24 = vsel %vm91_vm1, %v1751_v37, %v9198_v50  ;;  %v12570_v16 = vmax.f32 %v9201_v8, 0.0 }
 0x233   :  { %12972 = vst [vmem:[#allocation10_spill] sm:$0xff] %v9204_v32  ;;  %v9213_v4 = vadd.f32 %v9163_v5, %v1579_v44  ;;  %v9218_v20 = vsel %vm328_vm4, %v1988_v61, %v1989_v47  ;;  %v9221_v13 = vsel %vm328_vm4, %v1989_v47, %v1991_v9  ;;  %12975 = vst [vmem:[#allocation48_spill] sm:$0xff] %v9225_v24  ;;  %5958 = vrot.lane.b32.xlu0 %v5957_v34, %s7064_s2 }
 0x234   :  { %12973 = vst [vmem:[#allocation18_spill] sm:$0xff] %v9210_v2  ;;  %5953 = vrot.lane.b32.xlu1 %v5957_v34, %s7065_s21  ;;  %v2992_v23 = vpack.c.bf16 %v9221_v13, %v9218_v20  ;;  %v5962_v22 = vpack.i.bf16 %v9225_v24, %v9232_v21  ;;  %v12571_v17 = vmax.f32 %v9204_v32, 0.0  ;;  %v1913_v61 = vrot.slane %v9185_v29, 1 }
 0x235   :  { %12974 = vst [vmem:[#allocation29_spill] sm:$0xff] %v9213_v4 }
 0x236   :  { %5219 = vmatprep.mubr.msk.bf16.mxu1 %vm2761_vm0, %v2992_v23 }
 0x237   :  { %v5293_v35 = vpop.f32.mrb[8].mxu0  ;;  %5963 = vrot.lane.b32.xlu0 %v5962_v22, %s7065_s21  ;;  %v1760_v22 = vrot.slane %v12570_v16, 7 }
 0x238   :  { %v1592_v55 = vpop.f32.mrb[9].mxu0  ;;  %v9239_v15 = vadd.f32 %v5293_v35, %v9163_v5 }
 0x239   :  { %v5294_v49 = vpop.f32.mrb[10].mxu0  ;;  %v9242_v36 = vadd.f32 %v9163_v5, %v1592_v55  ;;  %v1914_v55 = vrot.slane %v9189_v0, 1 }
 0x23a   :  { %v1595_v3 = vpop.f32.mrb[11].mxu0  ;;  %12977 = vst [vmem:[#allocation39_spill] sm:$0xff] %v9239_v15  ;;  %v9245_v63 = vadd.f32 %v5294_v49, %v9163_v5 }
 0x23b   :  { %12978 = vst [vmem:[#allocation5_spill] sm:$0xff] %v9242_v36  ;;  %v9248_v26 = vadd.f32 %v9163_v5, %v1595_v3  ;;  %v9351_v53 = vsel %vm250_vm2, %v1913_v61, %v1914_v55 }
 0x23c   :  { %12979 = vst [vmem:[#allocation54_spill] sm:$0xff] %v9245_v63 }
 0x23d   :  { %12980 = vst [vmem:[#allocation51_spill] sm:$0xff] %v9248_v26 }
 0x23f   :  { %v5297_v12 = vpop.f32.mrb[12].mxu0 }
 0x240   :  { %v9251_v48 = vadd.f32 %v5297_v12, %v9163_v5  ;;  %v1608_v38 = vpop.f32.mrb[13].mxu0  ;;  %v9302_v12 = vsel %vm91_vm1, %v9198_v50, 0.0 }
 0x241   :  { %v5298_v57 = vpop.f32.mrb[14].mxu0  ;;  %v9254_v31 = vadd.f32 %v9163_v5, %v1608_v38  ;;  %v1757_v38 = vrot.slane %v12571_v17, 7 }
 0x242   :  { %12981 = vst [vmem:[#allocation47_spill] sm:$0xff] %v9251_v48  ;;  %v9257_v18 = vadd.f32 %v5298_v57, %v9163_v5  ;;  %v1611_v59 = vpop.f32.mrb[15].mxu0  ;;  %v12576_v57 = vmax.f32 %v9210_v2, 0.0  ;;  %v13018_v2 = vld [vmem:[#allocation2_spill] sm:$0xff] }
 0x243   :  { %12982 = vst [vmem:[#allocation17_spill] sm:$0xff] %v9254_v31  ;;  %v9260_v60 = vadd.f32 %v9163_v5, %v1611_v59  ;;  %v9344_v16 = vsel %vm91_vm1, 0.0, %v1757_v38 }
 0x244   :  { %12983 = vst [vmem:[#allocation26_spill] sm:$0xff] %v9257_v18  ;;  %12999 = vst [vmem:[#allocation60_spill] sm:$0xff] %v9344_v16  ;;  %v1761_v17 = vrot.slane %v12576_v57, 7 }
 0x245   :  { %12984 = vst [vmem:[#allocation27_spill] sm:$0xff] %v9260_v60 }
 0x246   :  { %v9383_v57 = vsel %vm91_vm1, %v1760_v22, %v1761_v17 }
 0x247   :  { %v5301_v14 = vpop.f32.mrb[16].mxu0  ;;  %13006 = vst [vmem:[#allocation67_spill] sm:$0xff] %v9383_v57  ;;  %v13050_v27 = vrot.slane %v9383_v57, 1 }
 0x248   :  { %v1624_v39 = vpop.f32.mrb[17].mxu0  ;;  %v9263_v58 = vadd.f32 %v5301_v14, %v9163_v5  ;;  %v12577_v14 = vmax.f32 %v9213_v4, 0.0  ;;  %v13022_v4 = vrot.slane %v9232_v21, 2 }
 0x249   :  { %v9266_v54 = vadd.f32 %v9163_v5, %v1624_v39  ;;  %v5302_v46 = vpop.f32.mrb[18].mxu0 }
 0x24a   :  { %12985 = vst [vmem:[#allocation25_spill] sm:$0xff] %v9263_v58  ;;  %v9269_v41 = vadd.f32 %v5302_v46, %v9163_v5  ;;  %v1627_v45 = vpop.f32.mrb[19].mxu0  ;;  %v1758_v19 = vrot.slane %v12577_v14, 7  ;;  %v13033_v6 = vmax.f32 %v9263_v58, 0.0 }
 0x24b   :  { %12986 = vst [vmem:[#allocation34_spill] sm:$0xff] %v9266_v54  ;;  %v9272_v51 = vadd.f32 %v9163_v5, %v1627_v45 }
 0x24c   :  { %12987 = vst [vmem:[#allocation36_spill] sm:$0xff] %v9269_v41  ;;  %v5305_v25 = vpop.f32.mrb[0].mxu1 }
 0x24d   :  { %v1640_v7 = vpop.f32.mrb[1].mxu1  ;;  %12988 = vst [vmem:[#allocation45_spill] sm:$0xff] %v9272_v51  ;;  %v9275_v28 = vadd.f32 %v5305_v25, %v9163_v5  ;;  %v1916_v25 = vrot.slane %v9192_v52, 1 }
 0x24e   :  { %v5306_v42 = vpop.f32.mrb[2].mxu1  ;;  %v9279_v33 = vadd.f32 %v9163_v5, %v1640_v7 }
 0x24f   :  { %v1643_v1 = vpop.f32.mrb[3].mxu1  ;;  %12989 = vst [vmem:[#allocation37_spill] sm:$0xff] %v9275_v28  ;;  %v9282_v62 = vadd.f32 %v5306_v42, %v9163_v5  ;;  %v12568_v34 = vmax.f32 %v9275_v28, 0.0 }
 0x250   :  { %12990 = vst [vmem:[#allocation33_spill] sm:$0xff] %v9279_v33  ;;  %v9286_v47 = vadd.f32 %v9163_v5, %v1643_v1  ;;  %v12569_v23 = vmax.f32 %v9279_v33, 0.0  ;;  %v1909_v1 = vrot.slane %v9225_v24, 1  ;;  %v9410_v33 = vsel %vm91_vm1, %v1758_v19, 0.0 }
 0x251   :  { %12991 = vst [vmem:[#allocation42_spill] sm:$0xff] %v9282_v62  ;;  %v12566_v49 = vmax.f32 %v9282_v62, 0.0  ;;  %v1784_v7 = vrot.slane %v12568_v34, 7  ;;  %v9379_v62 = vsel %vm250_vm2, %v1914_v55, %v1916_v25  ;;  %v9396_v55 = vsel %vm91_vm1, %v1761_v17, 0.0 }
 0x252   :  { %12992 = vst [vmem:[#allocation52_spill] sm:$0xff] %v9286_v47  ;;  %v12567_v3 = vmax.f32 %v9286_v47, 0.0  ;;  %v1781_v42 = vrot.slane %v12569_v23, 7  ;;  %v9399_v25 = vsel %vm91_vm1, %v1757_v38, %v1758_v19  ;;  %v13011_v47 = vmax.f32 %v9242_v36, 0.0 }
 0x253   :  { %v9313_v39 = vrot.slane %v12566_v49, 7  ;;  %13009 = vst [vmem:[#allocation72_spill] sm:$0xff] %v9399_v25  ;;  %v13013_v19 = vmax.f32 %v9245_v63, 0.0  ;;  %v13017_v17 = vmax.f32 %v9248_v26, 0.0  ;;  %v13020_v63 = vmax.f32 %v9254_v31, 0.0 }
 0x254   :  { %v5309_v10 = vpop.f32.mrb[4].mxu1  ;;  %v9317_v46 = vrot.slane %v12567_v3, 7  ;;  %v9355_v3 = vsel %vm91_vm1, 0.0, %v1784_v7  ;;  %v9358_v45 = vsel %vm91_vm1, 0.0, %v1781_v42  ;;  %v13029_v26 = vrot.slane %v9302_v12, 2 }
 0x255   :  { %v9289_v9 = vadd.f32 %v5309_v10, %v9163_v5  ;;  %v1656_v56 = vpop.f32.mrb[5].mxu1  ;;  %v1911_v10 = vrot.slane %v9302_v12, 1  ;;  %v9337_v52 = vsel %vm91_vm1, %v1784_v7, %v9313_v39  ;;  %13000 = vst [vmem:[#allocation61_spill] sm:$0xff] %v9355_v3  ;;  %13001 = vst [vmem:[#allocation62_spill] sm:$0xff] %v9358_v45  ;;  %v1767_v38 = vrot.slane %v13013_v19, 7 }
 0x256   :  { %v5310_v44 = vpop.f32.mrb[6].mxu1  ;;  %v9308_v59 = vadd.f32 %v9163_v5, %v1656_v56  ;;  %v9331_v56 = vsel %vm91_vm1, 0.0, %v1760_v22  ;;  %12997 = vst [vmem:[#allocation57_spill] sm:$0xff] %v9337_v52  ;;  %v9341_v34 = vsel %vm91_vm1, %v1781_v42, %v9317_v46  ;;  %v9367_v61 = vpack.i.bf16 %v9337_v52, %v9355_v3 }
 0x257   :  { %12993 = vst [vmem:[#allocation43_spill] sm:$0xff] %v9289_v9  ;;  %v1659_v35 = vpop.f32.mrb[7].mxu1  ;;  %v9320_v50 = vadd.f32 %v5310_v44, %v9163_v5  ;;  %12996 = vst [vmem:[#allocation49_spill] sm:$0xff] %v9331_v56  ;;  %v9371_v30 = vpack.i.bf16 %v9341_v34, %v9358_v45  ;;  %v13010_v42 = vmax.f32 %v9239_v15, 0.0  ;;  %v13012_v22 = vrot.slane %v9232_v21, 1 }
 0x258   :  { %12994 = vst [vmem:[#allocation41_spill] sm:$0xff] %v9308_v59  ;;  %12998 = vst [vmem:[#allocation59_spill] sm:$0xff] %v9341_v34  ;;  %v9361_v44 = vadd.f32 %v9163_v5, %v1659_v35  ;;  %5968 = vrot.lane.b32.xlu1 %v9367_v61, %s7065_s21  ;;  %v1912_v15 = vsel %vm250_vm2, %v1909_v1, %v1911_v10  ;;  %v9447_v8 = vrot.slane %v13020_v63, 7  ;;  %v13021_v10 = vrot.slane %v9225_v24, 2 }
 0x259   :  { %12995 = vst [vmem:[#allocation53_spill] sm:$0xff] %v9320_v50  ;;  %13003 = vst [vmem:[#allocation64_spill] sm:$0xff] %v9367_v61  ;;  %5973 = vrot.lane.b32.xlu0 %v9371_v30, %s7065_s21  ;;  %v1766_v28 = vrot.slane %v13010_v42, 7  ;;  %v9417_v14 = vsel %vm250_vm2, %v13012_v22, %v1909_v1  ;;  %v5987_v42 = vpack.i.bf16 %v9221_v13, %v9218_v20  ;;  %v1872_v11 = vsel %vm91_vm1, %v9317_v46, 0.0 }
 0x25a   :  { %13002 = vst [vmem:[#allocation63_spill] sm:$0xff] %v9361_v44  ;;  %13004 = vst [vmem:[#allocation65_spill] sm:$0xff] %v9371_v30  ;;  %v5992_v19 = vpack.i.bf16 %v9417_v14, %v13018_v2  ;;  %v9455_v32 = vsel %vm328_vm4, %v13022_v4, %v13021_v10  ;;  %v9468_v4 = vsel %vm91_vm1, %v1767_v38, 0.0  ;;  %v5997_v10 = vpack.i.bf16 %v9351_v53, %v1912_v15 }
 0x25b   :  { %v9465_v1 = vsel %vm91_vm1, %v1766_v28, %v1767_v38  ;;  %v6012_v46 = vpack.i.bf16 %v1912_v15, %v9417_v14  ;;  %v13036_v15 = vrot.slane %v9337_v52, 1  ;;  %v13059_v2 = vrot.slane %v9399_v25, 1 }
 0x25c   :  { %v5313_v49 = vpop.f32.mrb[8].mxu1  ;;  %13023 = vst [vmem:[#allocation15_spill] sm:$0xff] %v9465_v1  ;;  %v13064_v30 = vrot.slane %v9383_v57, 2  ;;  %v13069_v21 = vrot.slane %v9344_v16, 2 }
 0x25d   :  { %v1672_v23 = vpop.f32.mrb[9].mxu1  ;;  %v9376_v35 = vadd.f32 %v5313_v49, %v9163_v5 }
 0x25e   :  { %v5314_v43 = vpop.f32.mrb[10].mxu1  ;;  %v9390_v7 = vadd.f32 %v9163_v5, %v1672_v23  ;;  %v1763_v23 = vrot.slane %v13011_v47, 7  ;;  %v9434_v47 = vsel %vm91_vm1, 0.0, %v1766_v28  ;;  %v9485_v28 = vsel %vm91_vm1, 0.0, %v9447_v8 }
 0x25f   :  { %v1675_v37 = vpop.f32.mrb[11].mxu1  ;;  %13005 = vst [vmem:[#allocation66_spill] sm:$0xff] %v9376_v35  ;;  %v9393_v49 = vadd.f32 %v5314_v43, %v9163_v5  ;;  %v5977_v43 = vpack.i.bf16 %v9379_v62, %v9351_v53  ;;  %13015 = vst [vmem:[#allocation9_spill] sm:$0xff] %v9434_v47  ;;  %v13028_v53 = vmax.f32 %v9257_v18, 0.0  ;;  %v1963_v18 = vrot.slane %v9355_v3, 1 }
 0x260   :  { %13007 = vst [vmem:[#allocation68_spill] sm:$0xff] %v9390_v7  ;;  %v9428_v22 = vadd.f32 %v9163_v5, %v1675_v37  ;;  %v9437_v36 = vsel %vm91_vm1, 0.0, %v1763_v23  ;;  %v13019_v5 = vmax.f32 %v9251_v48, 0.0  ;;  %v13025_v48 = vld [vmem:[#allocation55_spill] sm:$0xff]  ;;  %13027 = vst [vmem:[#allocation4_spill] sm:$0xff] %v9485_v28  ;;  %v13061_v0 = vmax.f32 %v9376_v35, 0.0 }
 0x261   :  { %13008 = vst [vmem:[#allocation69_spill] sm:$0xff] %v9393_v49  ;;  %5978 = vrot.lane.b32.xlu1 %v5977_v43, %s7066_s22  ;;  %5983 = vrot.lane.b32.xlu0 %v5977_v43, %s7067_s23  ;;  %13016 = vst [vmem:[#allocation3_spill] sm:$0xff] %v9437_v36  ;;  %v1764_v43 = vrot.slane %v13017_v17, 7  ;;  %v1773_v38 = vrot.slane %v13028_v53, 7  ;;  %v1961_v53 = vrot.slane %v1872_v11, 1  ;;  %v13032_v17 = vmax.f32 %v9260_v60, 0.0 }
 0x262   :  { %13014 = vst [vmem:[#allocation73_spill] sm:$0xff] %v9428_v22  ;;  %v1772_v37 = vrot.slane %v13019_v5, 7  ;;  %v13043_v60 = vrot.slane %v9341_v34, 2  ;;  %v13063_v61 = vmax.f32 %v9393_v49, 0.0 }
 0x263   :  { %v9473_v5 = vsel %vm91_vm1, %v1763_v23, %v1764_v43  ;;  %v13030_v23 = vrot.slane %v9225_v24, 2  ;;  %v9525_v14 = vsel %vm91_vm1, %v1773_v38, 0.0  ;;  %v13066_v24 = vrot.slane %v9396_v55, 2 }
 0x264   :  { %13024 = vst [vmem:[#allocation14_spill] sm:$0xff] %v9473_v5  ;;  %v9481_v63 = vsel %vm91_vm1, 0.0, %v1772_v37 }
 0x265   :  { %5988 = vrot.lane.b32.xlu1 %v5987_v42, %s7068_s24  ;;  %5993 = vrot.lane.b32.xlu0 %v5992_v19, %s7069_s25  ;;  %v9476_v42 = vsel %vm91_vm1, %v1764_v43, 0.0  ;;  %v6002_v19 = vpack.i.bf16 %v9455_v32, %v13025_v48  ;;  %13026 = vst [vmem:[#allocation13_spill] sm:$0xff] %v9481_v63  ;;  %v1987_v43 = vsel %vm328_vm4, %v13030_v23, %v13029_v26  ;;  %v1770_v23 = vrot.slane %v13032_v17, 7 }
 0x266   :  { %v6007_v31 = vpack.i.bf16 %v9218_v20, %v1987_v43  ;;  %v1778_v20 = vrot.slane %v13033_v6, 7  ;;  %v12595_v17 = vmov 0   ;;  %v2036_v26 = vrot.slane %v1872_v11, 2 }
 0x267   :  { %3149 = vmatprep.subr.bf16.mxu1 %v12595_v17  ;;  %v13035_v17 = vrot.slane %v9341_v34, 1  ;;  %v9559_v58 = vsel %vm91_vm1, %v1770_v23, 0.0 }
 0x268   :  { %v9562_v11 = vsel %vm91_vm1, 0.0, %v1778_v20 }
 0x269   :  { %5998 = vrot.lane.b32.xlu1 %v5997_v10, %s7069_s25  ;;  %6003 = vrot.lane.b32.xlu0 %v6002_v19, %s7070_s26  ;;  %v7034_v10 = vld [vmem:[%s12429_s3] sm:$0xff]   ;;  %v9513_v19 = vsel %vm91_vm1, %v1772_v37, %v1773_v38  ;;  %v13034_v37 = vmax.f32 %v9266_v54, 0.0  ;;  %v9537_v38 = vpack.i.bf16 %v9383_v57, %v9331_v56  ;;  %v9546_v6 = vsel %vm250_vm2, %v13035_v17, %v1961_v53 }
 0x26a   :  { %13031 = vst [vmem:[#allocation11_spill] sm:$0xff] %v9513_v19  ;;  %3150 = vmatpush1.bf16.msra.mxu1 %v7034_v10  ;;  %v9556_v10 = vsel %vm91_vm1, %v9447_v8, %v1770_v23  ;;  %13039 = vst [vmem:[#allocation16_spill] sm:$0xff] %v9562_v11  ;;  %v13040_v53 = vmax.f32 %v9269_v41, 0.0  ;;  %v13042_v8 = vmax.f32 %v9272_v51, 0.0  ;;  %v2038_v23 = vrot.slane %v9355_v3, 2 }
 0x26b   :  { %v1775_v12 = vrot.slane %v13034_v37, 7  ;;  %13038 = vst [vmem:[#allocation24_spill] sm:$0xff] %v9556_v10  ;;  %v6042_v54 = vpack.i.bf16 %v9399_v25, %v9344_v16  ;;  %v9591_v41 = vsel %vm328_vm4, %v13043_v60, %v2036_v26 }
 0x26c   :  { %v1779_v17 = vrot.slane %v13040_v53, 7  ;;  %v13044_v53 = vrot.slane %v9337_v52, 2 }
 0x26d   :  { %6008 = vrot.lane.b32.xlu1 %v6007_v31, %s7070_s26  ;;  %6013 = vrot.lane.b32.xlu0 %v6012_v46, %s7067_s23  ;;  %v6017_v31 = vpack.i.bf16 %v1987_v43, %v9455_v32  ;;  %v7035_v46 = vld [vmem:[%s12429_s3 + $0x8] sm:$0xff]   ;;  %v9551_v32 = vsel %vm250_vm2, %v1963_v18, %v13036_v15  ;;  %v13037_v43 = vmov 0   ;;  %v9570_v18 = vsel %vm91_vm1, 0.0, %v1775_v12 }
 0x26e   :  { %3151 = vmatprep.subr.bf16.mxu1 %v13037_v43  ;;  %13041 = vst [vmem:[#allocation58_spill] sm:$0xff] %v9570_v18  ;;  %v1776_v15 = vrot.slane %v13042_v8, 7  ;;  %4746 = vmatprep.subr.bf16.mxu0 %v13037_v43  ;;  %v7036_v8 = vld [vmem:[%s12429_s3 + $0x10] sm:$0xff]   ;;  %v9596_v40 = vsel %vm328_vm4, %v2038_v23, %v13044_v53  ;;  %v9603_v37 = vsel %vm91_vm1, %v1778_v20, %v1779_v17  ;;  %v9608_v60 = vsel %vm91_vm1, %v1779_v17, 0.0 }
 0x26f   :  { %3152 = vmatpush1.bf16.msra.mxu1 %v7035_v46  ;;  %13045 = vst [vmem:[#allocation30_spill] sm:$0xff] %v9603_v37  ;;  %v13047_v23 = vmax.f32 %v9289_v9, 0.0  ;;  %v13048_v20 = vmax.f32 %v9308_v59, 0.0  ;;  %v13056_v17 = vmax.f32 %v9320_v50, 0.0 }
 0x270   :  { %3153 = vmatprep.subr.bf16.mxu1 %v13037_v43  ;;  %v9611_v26 = vsel %vm91_vm1, %v1775_v12, %v1776_v15  ;;  %v9617_v51 = vsel %vm91_vm1, %v1776_v15, 0.0  ;;  %v7037_v12 = vld [vmem:[%s12429_s3 + $0x18] sm:$0xff]   ;;  %v13051_v15 = vrot.slane %v9331_v56, 1 }
 0x271   :  { %6018 = vrot.lane.b32.xlu1 %v6017_v31, %s7068_s24  ;;  %6038 = vrot.lane.b32.xlu0 %v9537_v38, %s7064_s2  ;;  %v6022_v31 = vpack.i.bf16 %v9551_v32, %v9546_v6  ;;  %13046 = vst [vmem:[#allocation28_spill] sm:$0xff] %v9611_v26  ;;  %v1790_v53 = vrot.slane %v13047_v23, 7  ;;  %v1787_v46 = vrot.slane %v13048_v20, 7  ;;  %v13049_v23 = vmax.f32 %v9361_v44, 0.0 }
 0x272   :  { %v9634_v59 = vsel %vm250_vm2, %v13051_v15, %v13050_v27  ;;  %v13052_v20 = vrot.slane %v9396_v55, 1  ;;  %v9648_v44 = vsel %vm91_vm1, %v9313_v39, 0.0 }
 0x273   :  { %3154 = vmatpush1.bf16.msra.mxu1 %v7036_v8  ;;  %v1788_v9 = vrot.slane %v13049_v23, 7  ;;  %v13053_v8 = vmov %v13050_v27  ;;  %v1791_v23 = vrot.slane %v13056_v17, 7  ;;  %v9662_v39 = vsel %vm91_vm1, 0.0, %v1787_v46 }
 0x274   :  { %v9641_v48 = vsel %vm250_vm2, %v13053_v8, %v13052_v20  ;;  %3155 = vmatprep.subr.bf16.mxu1 %v13037_v43  ;;  %v9656_v8 = vsel %vm91_vm1, 0.0, %v1790_v53  ;;  %13057 = vst [vmem:[#allocation50_spill] sm:$0xff] %v9662_v39  ;;  %v1966_v15 = vrot.slane %v9648_v44, 1  ;;  %v13060_v27 = vrot.slane %v9344_v16, 1 }
 0x275   :  { %6023 = vrot.lane.b32.xlu1 %v6022_v31, %s7069_s25  ;;  %6043 = vrot.lane.b32.xlu0 %v6042_v54, %s7065_s21  ;;  %v6027_v31 = vpack.i.bf16 %v9596_v40, %v9591_v41  ;;  %13054 = vst [vmem:[#allocation8_spill] sm:$0xff] %v9641_v48  ;;  %13055 = vst [vmem:[#allocation19_spill] sm:$0xff] %v9656_v8  ;;  %v9671_v20 = vsel %vm91_vm1, %v1787_v46, %v1788_v9  ;;  %v1973_v3 = vrot.slane %v9656_v8, 1 }
 0x276   :  { %13058 = vst [vmem:[#allocation21_spill] sm:$0xff] %v9671_v20  ;;  %v1920_v50 = vsel %vm250_vm2, %v13060_v27, %v13059_v2  ;;  %v2048_v29 = vrot.slane %v9656_v8, 2  ;;  %v1796_v46 = vrot.slane %v13061_v0, 7  ;;  %v1968_v17 = vrot.slane %v9662_v39, 1 }
 0x277   :  { %3156 = vmatpush1.bf16.msra.mxu1 %v7037_v12  ;;  %v2041_v12 = vrot.slane %v9648_v44, 2  ;;  %v9690_v2 = vsel %vm91_vm1, %v1790_v53, %v1791_v23  ;;  %v9693_v27 = vsel %vm91_vm1, %v1791_v23, 0.0  ;;  %v1874_v44 = vsel %vm91_vm1, %v1788_v9, 0.0 }
 0x278   :  { %3157 = vmatprep.subr.bf16.mxu1 %v13037_v43  ;;  %13062 = vst [vmem:[#allocation23_spill] sm:$0xff] %v9690_v2  ;;  %v1969_v8 = vrot.slane %v9671_v20, 1  ;;  %v2044_v35 = vrot.slane %v9671_v20, 2  ;;  %v6067_v0 = vpack.i.bf16 %v1920_v50, %v9379_v62  ;;  %v1797_v53 = vrot.slane %v13063_v61, 7 }
 0x279   :  { %6028 = vrot.lane.b32.xlu1 %v6027_v31, %s7070_s26  ;;  %6048 = vrot.lane.b32.xlu0 %v6042_v54, %s7064_s2  ;;  %v6057_v31 = vpack.i.bf16 %v9641_v48, %v9634_v59  ;;  %v7038_v54 = vld [vmem:[%s12429_s3 + $0x20] sm:$0xff]   ;;  %v13065_v23 = vrot.slane %v9331_v56, 2  ;;  %v13067_v20 = vmov %v13064_v30  ;;  %v2043_v49 = vrot.slane %v9662_v39, 2 }
 0x27a   :  { %v9716_v62 = vsel %vm328_vm4, %v13067_v20, %v13066_v24  ;;  %v1976_v55 = vrot.slane %v9693_v27, 1  ;;  %v2049_v24 = vrot.slane %v9690_v2, 2  ;;  %v1971_v20 = vrot.slane %v1874_v44, 1 }
 0x27b   :  { %3158 = vmatpush1.bf16.msra.mxu1 %v7038_v54  ;;  %v9709_v9 = vsel %vm328_vm4, %v13065_v23, %v13064_v30  ;;  %v13068_v54 = vrot.slane %v9399_v25, 2  ;;  %v1974_v30 = vrot.slane %v9690_v2, 1  ;;  %v9730_v23 = vsel %vm91_vm1, 0.0, %v1796_v46 }
 0x27c   :  { %3159 = vmatprep.subr.bf16.mxu1 %v13037_v43  ;;  %v13071_v56 = vrot.slane %v9399_v25, 1  ;;  %v6062_v16 = vpack.i.bf16 %v9716_v62, %v9709_v9  ;;  %v9758_v7 = vsel %vm91_vm1, %v1796_v46, %v1797_v53  ;;  %v1972_v48 = vsel %vm250_vm2, %v1969_v8, %v1971_v20 }
 0x27d   :  { %6033 = vrot.lane.b32.xlu1 %v9537_v38, %s7065_s21  ;;  %6058 = vrot.lane.b32.xlu0 %v6057_v31, %s7067_s23  ;;  %v7039_v38 = vld [vmem:[%s12429_s3 + $0x28] sm:$0xff]   ;;  %v9723_v61 = vsel %vm328_vm4, %v13069_v21, %v13068_v54  ;;  %v2051_v21 = vrot.slane %v9693_v27, 2  ;;  %v13070_v54 = vrot.slane %v9410_v33, 1  ;;  %v1970_v27 = vsel %vm250_vm2, %v1968_v17, %v1969_v8  ;;  %13074 = vst [vmem:[#allocation56_spill] sm:$0xff] %v9758_v7 }
 0x27e   :  { %v6077_v39 = vpack.i.bf16 %v9723_v61, %v9221_v13  ;;  %v9761_v13 = vsel %vm328_vm4, %v2043_v49, %v2044_v35  ;;  %v13083_v8 = vrot.slane %v9434_v47, 2 }
 0x27f   :  { %v1922_v57 = vsel %vm250_vm2, %v13071_v56, %v13070_v54  ;;  %3160 = vmatpush1.bf16.msra.mxu1 %v7039_v38  ;;  %v7040_v56 = vld [vmem:[%s12429_s3 + $0x30] sm:$0xff]   ;;  %v2046_v54 = vrot.slane %v1874_v44, 2  ;;  %v13076_v38 = vrot.slane %v9337_v52, 1 }
 0x280   :  { %3161 = vmatprep.subr.bf16.mxu1 %v13037_v43  ;;  %v6072_v17 = vpack.i.bf16 %v9634_v59, %v1922_v57  ;;  %v6092_v44 = vpack.i.bf16 %v1922_v57, %v1920_v50  ;;  %v13079_v57 = vrot.slane %v9358_v45, 1  ;;  %v13080_v50 = vrot.slane %v9341_v34, 2 }
 0x281   :  { %6053 = vrot.lane.b32.xlu1 %v6057_v31, %s7066_s22  ;;  %6068 = vrot.lane.b32.xlu0 %v6067_v0, %s7069_s25  ;;  %v13072_v31 = vrot.slane %v9410_v33, 2  ;;  %v13073_v0 = vrot.slane %v9399_v25, 2  ;;  %v9765_v33 = vsel %vm91_vm1, %v1797_v53, 0.0  ;;  %v1967_v46 = vsel %vm250_vm2, %v13076_v38, %v1966_v15 }
 0x282   :  { %13075 = vst [vmem:[#allocation12_spill] sm:$0xff] %v9765_v33  ;;  %v13081_v15 = vrot.slane %v9358_v45, 2  ;;  %v13103_v45 = vrot.slane %v9570_v18, 2 }
 0x283   :  { %v9750_v2 = vsel %vm328_vm4, %v13073_v0, %v13072_v31  ;;  %v6102_v31 = vpack.i.bf16 %v1970_v27, %v1967_v46  ;;  %v13077_v0 = vrot.slane %v9337_v52, 2  ;;  %3162 = vmatpush1.bf16.msra.mxu1 %v7040_v56  ;;  %v9807_v52 = vsel %vm328_vm4, %v2048_v29, %v2049_v24 }
 0x284   :  { %v6082_v49 = vpack.i.bf16 %v9709_v9, %v9750_v2  ;;  %v9794_v38 = vsel %vm328_vm4, %v13081_v15, %v13080_v50  ;;  %3163 = vmatprep.subr.bf16.mxu1 %v13037_v43  ;;  %v2066_v56 = vrot.slane %v9758_v7, 2  ;;  %v13082_v50 = vrot.slane %v9465_v1, 2 }
 0x285   :  { %6063 = vrot.lane.b32.xlu1 %v6062_v16, %s7068_s24  ;;  %6078 = vrot.lane.b32.xlu0 %v6077_v39, %s7070_s26  ;;  %v9778_v53 = vsel %vm328_vm4, %v13077_v0, %v2041_v12  ;;  %v13078_v39 = vrot.slane %v9341_v34, 1  ;;  %v7041_v12 = vld [vmem:[%s12429_s3 + $0x38] sm:$0xff]   ;;  %v13086_v29 = vrot.slane %v9437_v36, 2  ;;  %v9835_v0 = vsel %vm250_vm2, %v1974_v30, %v1976_v55 }
 0x286   :  { %v6112_v16 = vpack.i.bf16 %v9761_v13, %v9778_v53  ;;  %v13090_v55 = vrot.slane %v9465_v1, 2  ;;  %v13104_v34 = vrot.slane %v9617_v51, 2 }
 0x287   :  { %v9787_v59 = vsel %vm250_vm2, %v13079_v57, %v13078_v39  ;;  %v1975_v39 = vsel %vm250_vm2, %v1973_v3, %v1974_v30  ;;  %v9804_v57 = vsel %vm328_vm4, %v2044_v35, %v2046_v54  ;;  %v9818_v3 = vsel %vm328_vm4, %v13083_v8, %v13082_v50  ;;  %3164 = vmatpush1.bf16.msra.mxu1 %v7041_v12 }
 0x288   :  { %13084 = vst [vmem:[#allocation22_spill] sm:$0xff] %v9818_v3  ;;  %v13085_v35 = vrot.slane %v9473_v5, 2  ;;  %v13087_v54 = vrot.slane %v9476_v42, 2  ;;  %v9839_v50 = vpack.i.bf16 %v9546_v6, %v9787_v59  ;;  %v13089_v6 = vrot.slane %v9468_v4, 2  ;;  %3165 = vmatprep.subr.bf16.mxu1 %v13037_v43 }
 0x289   :  { %6073 = vrot.lane.b32.xlu1 %v6072_v17, %s7069_s25  ;;  %6093 = vrot.lane.b32.xlu0 %v6092_v44, %s7067_s23  ;;  %v13093_v12 = vrot.slane %v9485_v28, 2 }
 0x28a   :  { %v9825_v20 = vsel %vm328_vm4, %v13086_v29, %v13085_v35  ;;  %v13088_v17 = vmov %v13085_v35  ;;  %v9844_v35 = vsel %vm328_vm4, %v2049_v24, %v2051_v21  ;;  %v7042_v29 = vld [vmem:[%s12429_s3 + $0x40] sm:$0xff]   ;;  %v9864_v21 = vpack.i.bf16 %v1972_v48, %v1970_v27 }
 0x28b   :  { %v9832_v15 = vsel %vm328_vm4, %v13088_v17, %v13087_v54  ;;  %v9850_v54 = vpack.i.bf16 %v1967_v46, %v9551_v32  ;;  %v9859_v17 = vsel %vm328_vm4, %v13090_v55, %v13089_v6  ;;  %v2068_v32 = vrot.slane %v9765_v33, 2  ;;  %3166 = vmatpush1.bf16.msra.mxu1 %v7042_v29 }
 0x28c   :  { %13091 = vst [vmem:[#allocation70_spill] sm:$0xff] %v9859_v17  ;;  %v13092_v46 = vrot.slane %v9556_v10, 2  ;;  %v13095_v24 = vrot.slane %v9559_v58, 2  ;;  %v13099_v55 = vrot.slane %v9481_v63, 2  ;;  %v13100_v27 = vrot.slane %v9525_v14, 2 }
 0x28d   :  { %6083 = vrot.lane.b32.xlu1 %v6082_v49, %s7070_s26  ;;  %6103 = vrot.lane.b32.xlu0 %v6102_v31, %s7069_s25  ;;  %v9888_v31 = vpack.i.bf16 %v9835_v0, %v1975_v39 }
 0x28e   :  { %v9874_v6 = vsel %vm328_vm4, %v13093_v12, %v13092_v46  ;;  %v13096_v30 = vmov %v13092_v46  ;;  %v13098_v12 = vrot.slane %v9513_v19, 2 }
 0x28f   :  { %13094 = vst [vmem:[#allocation7_spill] sm:$0xff] %v9874_v6  ;;  %v9885_v49 = vsel %vm328_vm4, %v13096_v30, %v13095_v24  ;;  %v13102_v24 = vrot.slane %v9611_v26, 2 }
 0x290   :  { %13097 = vst [vmem:[#allocation71_spill] sm:$0xff] %v9885_v49  ;;  %v9897_v8 = vsel %vm328_vm4, %v13099_v55, %v13098_v12  ;;  %v13101_v43 = vmov %v13098_v12  ;;  %v13106_v12 = vrot.slane %v9608_v60, 2 }
 0x291   :  { %v9904_v30 = vsel %vm328_vm4, %v13101_v43, %v13100_v27  ;;  %v9911_v46 = vsel %vm328_vm4, %v13103_v45, %v13102_v24  ;;  %v13105_v33 = vmov %v13102_v24  ;;  %v13107_v43 = vrot.slane %v9603_v37, 2  ;;  %6088 = vrot.lane.b32.xlu1 %v6092_v44, %s7066_s22  ;;  %6113 = vrot.lane.b32.xlu0 %v6112_v16, %s7070_s26 }
 0x292   :  { %v9918_v55 = vsel %vm328_vm4, %v13105_v33, %v13104_v34  ;;  %v13109_v45 = vrot.slane %v9562_v11, 2  ;;  %v6097_v34 = vpack.i.bf16 %v9750_v2, %v9723_v61  ;;  %v13110_v33 = vrot.slane %v9730_v23, 2 }
 0x293   :  { %v9925_v27 = vsel %vm328_vm4, %v13107_v43, %v13106_v12  ;;  %v13108_v7 = vmov %v13107_v43  ;;  %v9946_v12 = vsel %vm328_vm4, %v2066_v56, %v2068_v32  ;;  %v1934_v16 = vrot.slane %v9465_v1, 1 }
 0x294   :  { %v9932_v24 = vsel %vm328_vm4, %v13109_v45, %v13108_v7  ;;  %v9943_v29 = vsel %vm328_vm4, %v13110_v33, %v2066_v56  ;;  %13112 = vst [vmem:[#allocation74_spill] sm:$0xff] %v9946_v12  ;;  %v6127_v7 = vpack.i.bf16 %v9465_v1, %v9434_v47  ;;  %v6107_v45 = vpack.i.bf16 %v1975_v39, %v1972_v48 }
 0x295   :  { %13111 = vst [vmem:[#allocation32_spill] sm:$0xff] %v9943_v29  ;;  %6098 = vrot.lane.b32.xlu1 %v6097_v34, %s7068_s24  ;;  %v6132_v33 = vpack.i.bf16 %v9473_v5, %v9437_v36  ;;  %v1936_v56 = vrot.slane %v9468_v4, 1  ;;  %v1933_v43 = vrot.slane %v9434_v47, 1  ;;  %v6117_v44 = vpack.i.bf16 %v9807_v52, %v9804_v57 }
 0x296   :  { %6128 = vrot.lane.b32.xlu0 %v6127_v7, %s7064_s2  ;;  %v1929_v34 = vrot.slane %v9473_v5, 1  ;;  %v12641_v32 = vmax.f32 %v9428_v22, 0.0  ;;  %v1928_v4 = vrot.slane %v9437_v36, 1  ;;  %v6257_v36 = vpack.i.bf16 %v9794_v38, %v9925_v27 }
 0x297   :  { %v1935_v48 = vsel %vm250_vm2, %v1933_v43, %v1934_v16  ;;  %v1937_v39 = vsel %vm250_vm2, %v1934_v16, %v1936_v56 }
 0x298   :  { %v6147_v47 = vpack.i.bf16 %v1937_v39, %v1935_v48  ;;  %v1930_v1 = vsel %vm250_vm2, %v1928_v4, %v1929_v34  ;;  %v1794_v5 = vrot.slane %v12641_v32, 7  ;;  %v6167_v32 = vpack.i.bf16 %v9825_v20, %v9716_v62 }
 0x299   :  { %6108 = vrot.lane.b32.xlu1 %v6107_v45, %s7069_s25  ;;  %v13113_v45 = vld [vmem:[#allocation68_spill] sm:$0xff] }
 0x29a   :  { %6133 = vrot.lane.b32.xlu0 %v6132_v33, %s7065_s21  ;;  %v12642_v25 = vmax.f32 %v13113_v45, 0.0 }
 0x29c   :  { %v1793_v43 = vrot.slane %v12642_v25, 7 }
 0x29d   :  { %6118 = vrot.lane.b32.xlu1 %v6117_v44, %s7070_s26  ;;  %v13114_v44 = vld [vmem:[#allocation8_spill] sm:$0xff] }
 0x29e   :  { %6138 = vrot.lane.b32.xlu0 %v6132_v33, %s7064_s2  ;;  %v6157_v16 = vpack.i.bf16 %v1930_v1, %v13114_v44  ;;  %v1931_v33 = vrot.slane %v9476_v42, 1  ;;  %v9997_v56 = vsel %vm91_vm1, %v1793_v43, %v1794_v5  ;;  %v10002_v4 = vsel %vm91_vm1, 0.0, %v1793_v43 }
 0x29f   :  { %13115 = vst [vmem:[#allocation8_spill] sm:$0xff] %v9997_v56  ;;  %13116 = vst [vmem:[#allocation75_spill] sm:$0xff] %v10002_v4  ;;  %v1979_v44 = vrot.slane %v9997_v56, 1  ;;  %v2054_v43 = vrot.slane %v9997_v56, 2  ;;  %v2053_v45 = vrot.slane %v10002_v4, 2 }
 0x2a0   :  { %v1932_v42 = vsel %vm250_vm2, %v1929_v34, %v1931_v33  ;;  %v6172_v34 = vpack.i.bf16 %v9818_v3, %v9832_v15  ;;  %v1876_v33 = vsel %vm91_vm1, %v1794_v5, 0.0 }
 0x2a1   :  { %6123 = vrot.lane.b32.xlu1 %v6127_v7, %s7065_s21  ;;  %v6152_v7 = vpack.i.bf16 %v9859_v17, %v9818_v3  ;;  %v6182_v25 = vpack.i.bf16 %v1932_v42, %v1930_v1  ;;  %v2056_v5 = vrot.slane %v1876_v33, 2 }
 0x2a2   :  { %6148 = vrot.lane.b32.xlu0 %v6147_v47, %s7067_s23 }
 0x2a5   :  { %6143 = vrot.lane.b32.xlu1 %v6147_v47, %s7066_s22  ;;  %v1978_v47 = vrot.slane %v10002_v4, 1 }
 0x2a6   :  { %6158 = vrot.lane.b32.xlu0 %v6157_v16, %s7069_s25  ;;  %v6162_v16 = vpack.i.bf16 %v1935_v48, %v1932_v42  ;;  %v10025_v48 = vsel %vm328_vm4, %v2053_v45, %v2054_v43  ;;  %v1939_v45 = vrot.slane %v9556_v10, 1  ;;  %v1981_v42 = vrot.slane %v1876_v33, 1 }
 0x2a7   :  { %v10015_v22 = vsel %vm250_vm2, %v1978_v47, %v1979_v44  ;;  %v6197_v1 = vpack.i.bf16 %v10025_v48, %v9844_v35  ;;  %v1938_v47 = vrot.slane %v9485_v28, 1  ;;  %v10060_v33 = vpack.i.bf16 %v9513_v19, %v9481_v63 }
 0x2a9   :  { %6153 = vrot.lane.b32.xlu1 %v6152_v7, %s7068_s24  ;;  %v6187_v7 = vpack.i.bf16 %v9832_v15, %v9825_v20 }
 0x2aa   :  { %6168 = vrot.lane.b32.xlu0 %v6167_v32, %s7070_s26  ;;  %v6192_v32 = vpack.i.bf16 %v10015_v22, %v9835_v0  ;;  %v6207_v0 = vpack.i.bf16 %v9556_v10, %v9485_v28 }
 0x2ad   :  { %6163 = vrot.lane.b32.xlu1 %v6162_v16, %s7069_s25  ;;  %v1940_v16 = vsel %vm250_vm2, %v1938_v47, %v1939_v45  ;;  %v1956_v47 = vrot.slane %v9608_v60, 1  ;;  %v6232_v60 = vpack.i.bf16 %v9897_v8, %v9885_v49 }
 0x2ae   :  { %6183 = vrot.lane.b32.xlu0 %v6182_v25, %s7067_s23 }
 0x2b1   :  { %6173 = vrot.lane.b32.xlu1 %v6172_v34, %s7070_s26  ;;  %v6217_v34 = vpack.i.bf16 %v1940_v16, %v1937_v39  ;;  %v6227_v39 = vpack.i.bf16 %v9874_v6, %v9859_v17 }
 0x2b2   :  { %6193 = vrot.lane.b32.xlu0 %v6192_v32, %s7069_s25  ;;  %v1944_v32 = vrot.slane %v9513_v19, 1  ;;  %v1949_v19 = vrot.slane %v9611_v26, 1 }
 0x2b5   :  { %6178 = vrot.lane.b32.xlu1 %v6182_v25, %s7066_s22  ;;  %v10043_v25 = vsel %vm250_vm2, %v1979_v44, %v1981_v42  ;;  %v1943_v44 = vrot.slane %v9481_v63, 1  ;;  %v1954_v42 = vrot.slane %v9603_v37, 1 }
 0x2b6   :  { %6198 = vrot.lane.b32.xlu0 %v6197_v1, %s7070_s26  ;;  %v1941_v1 = vrot.slane %v9559_v58, 1 }
 0x2b7   :  { %v10066_v58 = vsel %vm250_vm2, %v1943_v44, %v1944_v32 }
 0x2b9   :  { %6188 = vrot.lane.b32.xlu1 %v6187_v7, %s7068_s24  ;;  %v10052_v7 = vsel %vm328_vm4, %v2054_v43, %v2056_v5  ;;  %v10068_v43 = vpop.permute.xlu0 %5958 }
 0x2ba   :  { %6208 = vrot.lane.b32.xlu0 %v6207_v0, %s7065_s21 }
 0x2bd   :  { %2161 = vrot.lane.b32.xlu1 %v10043_v25, %s7069_s25  ;;  %v5964_v44 = vpop.permute.xlu0 %5963 }
 0x2be   :  { %6213 = vrot.lane.b32.xlu0 %v6207_v0, %s7064_s2  ;;  %v1942_v0 = vsel %vm250_vm2, %v1939_v45, %v1941_v1  ;;  %v10084_v45 = vsel %vm250_vm2, %v1954_v42, %v1956_v47  ;;  %v10086_v1 = vpop.permute.xlu1 %5953  ;;  %v1948_v47 = vrot.slane %v9570_v18, 1 }
 0x2bf   :  { %v6222_v5 = vpack.i.bf16 %v10066_v58, %v1942_v0  ;;  %v6237_v28 = vpack.i.bf16 %v1942_v0, %v1940_v16  ;;  %v10117_v16 = vpack.i.bf16 %v9603_v37, %v9562_v11 }
 0x2c1   :  { %2254 = vrot.lane.b32.xlu1 %v10052_v7, %s7070_s26 }
 0x2c2   :  { %6218 = vrot.lane.b32.xlu0 %v6217_v34, %s7069_s25  ;;  %v10078_v34 = vpack.i.bf16 %v9611_v26, %v9570_v18  ;;  %v10105_v26 = vsel %vm250_vm2, %v1948_v47, %v1949_v19 }
 0x2c5   :  { %6203 = vrot.lane.b32.xlu1 %v10060_v33, %s7065_s21 }
 0x2c6   :  { %6228 = vrot.lane.b32.xlu0 %v6227_v39, %s7070_s26  ;;  %v6252_v39 = vpack.i.bf16 %v9787_v59, %v10084_v45  ;;  %v1951_v59 = vrot.slane %v9617_v51, 1 }
 0x2c8   :  { %v10121_v0 = vsel %vm250_vm2, %v1949_v19, %v1951_v59  ;;  %v6282_v59 = vpack.i.bf16 %v9932_v24, %v9918_v55 }
 0x2c9   :  { %6223 = vrot.lane.b32.xlu1 %v6222_v5, %s7069_s25  ;;  %v1946_v5 = vrot.slane %v9525_v14, 1  ;;  %v1953_v14 = vrot.slane %v9562_v11, 1  ;;  %v6272_v11 = vpack.i.bf16 %v9911_v46, %v9904_v30 }
 0x2ca   :  { %6248 = vrot.lane.b32.xlu0 %v10078_v34, %s7065_s21  ;;  %v10097_v63 = vpop.permute.xlu1 %5968 }
 0x2cb   :  { %13117 = vst [vmem:[#allocation76_spill] sm:$0xff] %v10097_v63  ;;  %v10099_v10 = vpop.permute.xlu0 %5973  ;;  %v10124_v47 = vsel %vm250_vm2, %v1953_v14, %v1954_v42 }
 0x2cc   :  { %13118 = vst [vmem:[#allocation77_spill] sm:$0xff] %v10099_v10 }
 0x2cd   :  { %6233 = vrot.lane.b32.xlu1 %v6232_v60, %s7070_s26  ;;  %v1947_v60 = vsel %vm250_vm2, %v1944_v32, %v1946_v5  ;;  %v6267_v5 = vpack.i.bf16 %v10124_v47, %v10121_v0 }
 0x2ce   :  { %6253 = vrot.lane.b32.xlu0 %v6252_v39, %s7069_s25  ;;  %v6262_v51 = vpack.i.bf16 %v10105_v26, %v1947_v60 }
 0x2d1   :  { %6238 = vrot.lane.b32.xlu1 %v6237_v28, %s7066_s22 }
 0x2d2   :  { %6258 = vrot.lane.b32.xlu0 %v6257_v36, %s7070_s26 }
 0x2d3   :  { %v10111_v39 = vpop.permute.xlu1 %5978  ;;  %v10113_v63 = vpop.permute.xlu0 %5983 }
 0x2d5   :  { %6243 = vrot.lane.b32.xlu1 %v10117_v16, %s7065_s21 }
 0x2d6   :  { %6263 = vrot.lane.b32.xlu0 %v6262_v51, %s7069_s25 }
 0x2d7   :  { %v10129_v36 = vpop.permute.xlu1 %5988  ;;  %v10131_v32 = vpop.permute.xlu0 %5993 }
 0x2d8   :  { %v5995_v14 = vunpack.i.l.bf16 %v10131_v32 }
 0x2d9   :  { %6268 = vrot.lane.b32.xlu1 %v6267_v5, %s7069_s25 }
 0x2da   :  { %6273 = vrot.lane.b32.xlu0 %v6272_v11, %s7070_s26  ;;  %v6287_v11 = vpack.i.bf16 %v9885_v49, %v9874_v6  ;;  %v2762_v10 = vsel %vm2761_vm0, 0.0, %v5995_v14  ;;  %v6297_v14 = vpack.i.bf16 %v1947_v60, %v10066_v58  ;;  %v5981_v58 = vunpack.i.h.bf16 %v10111_v39 }
 0x2db   :  { %v10139_v19 = vpop.permute.xlu1 %5998  ;;  %v10141_v42 = vpop.permute.xlu0 %6003  ;;  %v5980_v60 = vunpack.i.l.bf16 %v10111_v39 }
 0x2dc   :  { %v6005_v51 = vunpack.i.l.bf16 %v10141_v42 }
 0x2dd   :  { %6283 = vrot.lane.b32.xlu1 %v6282_v59, %s7070_s26  ;;  %v5965_v59 = vunpack.i.l.bf16 %v5964_v44 }
 0x2de   :  { %6278 = vrot.lane.b32.xlu0 %v6237_v28, %s7067_s23  ;;  %v10155_v18 = vsel %vm2793_vm15, %v2762_v10, %v6005_v51  ;;  %v5966_v28 = vunpack.i.h.bf16 %v5964_v44  ;;  %v5960_v44 = vunpack.i.l.bf16 %v10068_v43 }
 0x2df   :  { %v10149_v37 = vpop.permute.xlu1 %6008  ;;  %v6014_v5 = vpop.permute.xlu0 %6013  ;;  %13119 = vst [vmem:[#allocation78_spill] sm:$0xff] %v10155_v18  ;;  %v2826_v10 = vsel %vm2825_vm5, %v10155_v18, %v5965_v59 }
 0x2e0   :  { %v6016_v12 = vunpack.i.h.bf16 %v6014_v5  ;;  %v6015_v29 = vunpack.i.l.bf16 %v6014_v5  ;;  %v2827_v51 = vsel %vm2825_vm5, %v10155_v18, %v5966_v28 }
 0x2e1   :  { %6288 = vrot.lane.b32.xlu1 %v6287_v11, %s7068_s24 }
 0x2e2   :  { %6293 = vrot.lane.b32.xlu0 %v10060_v33, %s7064_s2  ;;  %v5961_v33 = vunpack.i.h.bf16 %v10068_v43  ;;  %v2859_v3 = vsel %vm2858_vm6, %v2826_v10, %v6015_v29  ;;  %v2860_v17 = vsel %vm2858_vm6, %v2827_v51, %v6016_v12  ;;  %v6307_v12 = vpack.i.bf16 %v9904_v30, %v9897_v8 }
 0x2e3   :  { %v6019_v6 = vpop.permute.xlu1 %6018  ;;  %v10160_v49 = vpop.permute.xlu0 %6038  ;;  %v6317_v51 = vpack.i.bf16 %v10121_v0, %v10105_v26  ;;  %v5996_v0 = vunpack.i.h.bf16 %v10131_v32  ;;  %v13122_v32 = vld [vmem:[#allocation48_spill] sm:$0xff] }
 0x2e4   :  { %v6021_v5 = vunpack.i.h.bf16 %v6019_v6  ;;  %v6020_v11 = vunpack.i.l.bf16 %v6019_v6 }
 0x2e5   :  { %6298 = vrot.lane.b32.xlu1 %v6297_v14, %s7066_s22 }
 0x2e6   :  { %6303 = vrot.lane.b32.xlu0 %v6297_v14, %s7067_s23  ;;  %v2892_v28 = vsel %vm2891_vm7, %v2859_v3, %v6020_v11  ;;  %v2893_v6 = vsel %vm2891_vm7, %v2860_v17, %v6021_v5  ;;  %v13120_v5 = vpack.c.bf16 %v9750_v2, %v9723_v61  ;;  %v6337_v61 = vpack.i.bf16 %v10084_v45, %v10124_v47  ;;  %v13121_v45 = vld [vmem:[#allocation20_spill] sm:$0xff] }
 0x2e7   :  { %v2925_v59 = vsel %vm2924_vm8, %v2892_v28, %v5960_v44  ;;  %v2926_v43 = vsel %vm2924_vm8, %v2893_v6, %v5961_v33  ;;  %v10179_v18 = vpop.permute.xlu1 %6023  ;;  %v10181_v29 = vpop.permute.xlu0 %6043  ;;  %v6327_v33 = vpack.i.bf16 %v9918_v55, %v9911_v46  ;;  %v6000_v44 = vunpack.i.l.bf16 %v10139_v19 }
 0x2e8   :  { %v2958_v14 = vsel %vm2957_vm9, %v2925_v59, %v5980_v60  ;;  %v2959_v10 = vsel %vm2957_vm9, %v2926_v43, %v5981_v58  ;;  %v6006_v58 = vunpack.i.h.bf16 %v10141_v42  ;;  %v6010_v60 = vunpack.i.l.bf16 %v10149_v37  ;;  %v13123_v43 = vld [vmem:[#allocation65_spill] sm:$0xff] }
 0x2e9   :  { %6308 = vrot.lane.b32.xlu1 %v6307_v12, %s7068_s24  ;;  %v2991_v3 = vpack.c.bf16 %v2959_v10, %v2958_v14  ;;  %v6347_v6 = vpack.i.bf16 %v9925_v27, %v9932_v24  ;;  %v2763_v47 = vsel %vm2761_vm0, %v13121_v45, %v5996_v0  ;;  %v2764_v59 = vsel %vm2761_vm0, %v13122_v32, %v6000_v44 }
 0x2ea   :  { %6313 = vrot.lane.b32.xlu0 %v10078_v34, %s7064_s2  ;;  %v2795_v42 = vsel %vm2793_vm15, %v2763_v47, %v6006_v58  ;;  %v2796_v12 = vsel %vm2793_vm15, %v2764_v59, %v6010_v60  ;;  %v5956_v14 = vunpack.i.h.bf16 %v10086_v1  ;;  %v5955_v10 = vunpack.i.l.bf16 %v10086_v1 }
 0x2eb   :  { %v10190_v17 = vpop.permute.xlu1 %6028  ;;  %3182 = vmatmul.mubr.bf16.vlgmr.msra.gmra.mrb[12].mxu1 %v2991_v3  ;;  %v10192_v39 = vpop.permute.xlu0 %6048  ;;  %v5985_v0 = vunpack.i.l.bf16 %v10113_v63  ;;  %v5991_v47 = vunpack.i.h.bf16 %v10129_v36  ;;  %v13125_v59 = vpack.i.bf16 %v9591_v41, %v9794_v38 }
 0x2ec   :  { %5220 = vmatprep.mubr.msk.bf16.mxu1 %vm2761_vm0, %v13120_v5  ;;  %v2828_v5 = vsel %vm2825_vm5, %v2795_v42, %v5955_v10  ;;  %v6050_v58 = vunpack.i.l.bf16 %v10192_v39  ;;  %v6051_v32 = vunpack.i.h.bf16 %v10192_v39  ;;  %v6001_v42 = vunpack.i.h.bf16 %v10139_v19 }
 0x2ed   :  { %6318 = vrot.lane.b32.xlu1 %v6317_v51, %s7066_s22 }
 0x2ee   :  { %6323 = vrot.lane.b32.xlu0 %v6317_v51, %s7067_s23 }
 0x2ef   :  { %v10202_v11 = vpop.permute.xlu1 %6033  ;;  %v10204_v34 = vpop.permute.xlu0 %6058 }
 0x2f1   :  { %6328 = vrot.lane.b32.xlu1 %v6327_v33, %s7068_s24  ;;  %v2829_v33 = vsel %vm2825_vm5, %v2796_v12, %v5956_v14  ;;  %v6011_v12 = vunpack.i.h.bf16 %v10149_v37  ;;  %v6045_v14 = vunpack.i.l.bf16 %v10181_v29 }
 0x2f2   :  { %6333 = vrot.lane.b32.xlu0 %v10117_v16, %s7064_s2 }
 0x2f3   :  { %v10211_v26 = vpop.permute.xlu1 %6053  ;;  %v10213_v2 = vpop.permute.xlu0 %6068 }
 0x2f4   :  { %v6070_v60 = vunpack.i.l.bf16 %v10213_v2 }
 0x2f5   :  { %6338 = vrot.lane.b32.xlu1 %v6337_v61, %s7066_s22 }
 0x2f6   :  { %6343 = vrot.lane.b32.xlu0 %v6337_v61, %s7067_s23  ;;  %v5986_v61 = vunpack.i.h.bf16 %v10113_v63 }
 0x2f7   :  { %v10223_v16 = vpop.permute.xlu1 %6063  ;;  %v10225_v28 = vpop.permute.xlu0 %6078 }
 0x2f8   :  { %v2862_v45 = vsel %vm2858_vm6, %v2829_v33, %v5986_v61  ;;  %v6080_v63 = vunpack.i.l.bf16 %v10225_v28  ;;  %v13127_v33 = vld [vmem:[#allocation46_spill] sm:$0xff] }
 0x2f9   :  { %6348 = vrot.lane.b32.xlu1 %v6347_v6, %s7068_s24  ;;  %v2861_v6 = vsel %vm2858_vm6, %v2828_v5, %v5985_v0  ;;  %v2895_v5 = vsel %vm2891_vm7, %v2862_v45, %v5991_v47  ;;  %v2766_v61 = vsel %vm2761_vm0, %v13127_v33, %v6070_v60  ;;  %v13128_v45 = vld [vmem:[#allocation6_spill] sm:$0xff]  ;;  %v6046_v60 = vunpack.i.h.bf16 %v10181_v29 }
 0x2fa   :  { %6353 = vrot.lane.b32.xlu0 %v13123_v43, %s7064_s2  ;;  %v13126_v43 = vld [vmem:[#allocation64_spill] sm:$0xff]  ;;  %v2798_v19 = vsel %vm2793_vm15, %v2766_v61, %v6080_v63  ;;  %v2765_v47 = vsel %vm2761_vm0, %v13128_v45, %v6001_v42  ;;  %v13129_v33 = vld [vmem:[#allocation50_spill] sm:$0xff]  ;;  %v13130_v61 = vld [vmem:[#allocation21_spill] sm:$0xff]  ;;  %v6041_v29 = vunpack.i.h.bf16 %v10160_v49 }
 0x2fb   :  { %v10240_v3 = vpop.permute.xlu1 %6073  ;;  %v6094_v51 = vpop.permute.xlu0 %6093  ;;  %v2797_v63 = vsel %vm2793_vm15, %v2765_v47, %v6011_v12 }
 0x2fc   :  { %v6095_v37 = vunpack.i.l.bf16 %v6094_v51 }
 0x2fd   :  { %6358 = vrot.lane.b32.xlu1 %v9839_v50, %s7066_s22 }
 0x2fe   :  { %6363 = vrot.lane.b32.xlu0 %v9839_v50, %s7067_s23  ;;  %v5990_v50 = vunpack.i.l.bf16 %v10129_v36 }
 0x2ff   :  { %v10250_v44 = vpop.permute.xlu1 %6083  ;;  %v10252_v1 = vpop.permute.xlu0 %6103 }
 0x300   :  { %13124 = vst [vmem:[#allocation20_spill] sm:$0xff] %v10252_v1  ;;  %v2894_v39 = vsel %vm2891_vm7, %v2861_v6, %v5990_v50  ;;  %v6096_v1 = vunpack.i.h.bf16 %v6094_v51  ;;  %v2928_v6 = vsel %vm2924_vm8, %v2895_v5, %v6051_v32  ;;  %v2830_v32 = vsel %vm2825_vm5, %v2797_v63, %v6045_v14 }
 0x301   :  { %6368 = vrot.lane.b32.xlu1 %v13125_v59, %s7068_s24  ;;  %v2831_v5 = vsel %vm2825_vm5, %v2798_v19, %v6046_v60 }
 0x302   :  { %6373 = vrot.lane.b32.xlu0 %v13126_v43, %s7064_s2  ;;  %v2927_v43 = vsel %vm2924_vm8, %v2894_v39, %v6050_v58  ;;  %v2864_v12 = vsel %vm2858_vm6, %v2831_v5, %v6096_v1  ;;  %v6055_v1 = vunpack.i.l.bf16 %v10211_v26  ;;  %v13135_v5 = vld [vmem:[#allocation19_spill] sm:$0xff] }
 0x303   :  { %v6089_v10 = vpop.permute.xlu1 %6088  ;;  %v10271_v36 = vpop.permute.xlu0 %6113 }
 0x304   :  { %v6091_v0 = vunpack.i.h.bf16 %v6089_v10  ;;  %v6090_v59 = vunpack.i.l.bf16 %v6089_v10 }
 0x305   :  { %6378 = vrot.lane.b32.xlu1 %v9850_v54, %s7066_s22 }
 0x306   :  { %6383 = vrot.lane.b32.xlu0 %v9850_v54, %s7067_s23  ;;  %v2960_v50 = vsel %vm2957_vm9, %v2927_v43, %v6090_v59  ;;  %v2961_v58 = vsel %vm2957_vm9, %v2928_v6, %v6091_v0  ;;  %v6392_v54 = vpack.i.bf16 %v13130_v61, %v13129_v33  ;;  %v6040_v59 = vunpack.i.l.bf16 %v10160_v49 }
 0x307   :  { %v6099_v51 = vpop.permute.xlu1 %6098  ;;  %v2993_v39 = vpack.c.bf16 %v2961_v58, %v2960_v50  ;;  %v2863_v0 = vsel %vm2858_vm6, %v2830_v32, %v6095_v37  ;;  %v13131_v43 = vpack.i.bf16 %v9778_v53, %v9596_v40  ;;  %v13132_v6 = vpack.c.bf16 %v9716_v62, %v9709_v9 }
 0x308   :  { %v10290_v10 = vpop.permute.xlu0 %6128  ;;  %v6101_v42 = vunpack.i.h.bf16 %v6099_v51  ;;  %v6100_v45 = vunpack.i.l.bf16 %v6099_v51  ;;  %v6056_v49 = vunpack.i.h.bf16 %v10211_v26  ;;  %v13133_v51 = vpack.i.bf16 %v9804_v57, %v9761_v13 }
 0x309   :  { %6388 = vrot.lane.b32.xlu1 %v13131_v43, %s7068_s24  ;;  %3190 = vmatmul.mubr.bf16.gmra.mrb[16].mxu1 %v2993_v39  ;;  %v13134_v39 = vpack.c.bf16 %v9832_v15, %v9825_v20  ;;  %v6071_v20 = vunpack.i.h.bf16 %v10213_v2  ;;  %v6075_v15 = vunpack.i.l.bf16 %v10240_v3 }
 0x30a   :  { %v2896_v14 = vsel %vm2891_vm7, %v2863_v0, %v6100_v45  ;;  %v2897_v19 = vsel %vm2891_vm7, %v2864_v12, %v6101_v42  ;;  %6393 = vrot.lane.b32.xlu0 %v6392_v54, %s7064_s2  ;;  %5221 = vmatprep.mubr.msk.bf16.mxu1 %vm2761_vm0, %v13132_v6  ;;  %v13136_v42 = vld [vmem:[#allocation23_spill] sm:$0xff]  ;;  %v6085_v0 = vunpack.i.l.bf16 %v10250_v44  ;;  %v13138_v6 = vld [vmem:[#allocation72_spill] sm:$0xff] }
 0x30b   :  { %v10313_v37 = vpop.permute.xlu1 %6108  ;;  %v2929_v60 = vsel %vm2924_vm8, %v2896_v14, %v6040_v59  ;;  %v2930_v50 = vsel %vm2924_vm8, %v2897_v19, %v6041_v29  ;;  %v6417_v45 = vpack.i.bf16 %v13136_v42, %v13135_v5  ;;  %v6081_v59 = vunpack.i.h.bf16 %v10225_v28  ;;  %v13137_v19 = vld [vmem:[#allocation60_spill] sm:$0xff] }
 0x30c   :  { %v10315_v47 = vpop.permute.xlu0 %6133  ;;  %v2962_v58 = vsel %vm2957_vm9, %v2929_v60, %v6055_v1  ;;  %v2963_v9 = vsel %vm2957_vm9, %v2930_v50, %v6056_v49  ;;  %v6442_v14 = vpack.i.bf16 %v9997_v56, %v10002_v4  ;;  %v2767_v2 = vsel %vm2761_vm0, %v13137_v19, %v6071_v20  ;;  %v13140_v1 = vld [vmem:[#allocation56_spill] sm:$0xff] }
 0x30d   :  { %6398 = vrot.lane.b32.xlu1 %v9864_v21, %s7066_s22  ;;  %v2995_v63 = vpack.c.bf16 %v2963_v9, %v2962_v58  ;;  %v2768_v49 = vsel %vm2761_vm0, %v13138_v6, %v6075_v15  ;;  %v13139_v28 = vpack.i.bf16 %v9844_v35, %v9807_v52  ;;  %v2799_v60 = vsel %vm2793_vm15, %v2767_v2, %v6081_v59  ;;  %v13141_v58 = vld [vmem:[#allocation12_spill] sm:$0xff] }
 0x30e   :  { %6403 = vrot.lane.b32.xlu0 %v6392_v54, %s7065_s21  ;;  %v2800_v50 = vsel %vm2793_vm15, %v2768_v49, %v6085_v0  ;;  %v2063_v9 = vrot.slane %v13141_v58, 1  ;;  %v2060_v15 = vrot.slane %v9730_v23, 1  ;;  %v6061_v19 = vunpack.i.h.bf16 %v10204_v34 }
 0x30f   :  { %v10324_v62 = vpop.permute.xlu1 %6118  ;;  %v6060_v2 = vunpack.i.l.bf16 %v10204_v34  ;;  %v6065_v58 = vunpack.i.l.bf16 %v10223_v16 }
 0x310   :  { %v10326_v26 = vpop.permute.xlu0 %6138 }
 0x311   :  { %6408 = vrot.lane.b32.xlu1 %v9864_v21, %s7067_s23  ;;  %3198 = vmatmul.mubr.bf16.gmra.mrb[20].mxu1 %v2995_v63  ;;  %v6447_v63 = vpack.i.bf16 %v10043_v25, %v10015_v22  ;;  %v6462_v22 = vpack.i.bf16 %v10052_v7, %v10025_v48 }
 0x312   :  { %6413 = vrot.lane.b32.xlu0 %v13133_v51, %s7068_s24  ;;  %5222 = vmatprep.mubr.msk.bf16.mxu1 %vm2761_vm0, %v13134_v39  ;;  %v6036_v51 = vunpack.i.h.bf16 %v10202_v11  ;;  %v6035_v39 = vunpack.i.l.bf16 %v10202_v11 }
 0x313   :  { %v10338_v54 = vpop.permute.xlu1 %6123 }
 0x314   :  { %v10340_v32 = vpop.permute.xlu0 %6148  ;;  %v2832_v59 = vsel %vm2825_vm5, %v2799_v60, %v6035_v39  ;;  %v2833_v0 = vsel %vm2825_vm5, %v2800_v50, %v6036_v51  ;;  %v6141_v51 = vunpack.i.h.bf16 %v10326_v26 }
 0x315   :  { %6418 = vrot.lane.b32.xlu1 %v6417_v45, %s7064_s2  ;;  %v2865_v50 = vsel %vm2858_vm6, %v2832_v59, %v6060_v2  ;;  %v2866_v34 = vsel %vm2858_vm6, %v2833_v0, %v6061_v19  ;;  %v6086_v59 = vunpack.i.h.bf16 %v10250_v44  ;;  %v6135_v0 = vunpack.i.l.bf16 %v10315_v47 }
 0x316   :  { %6423 = vrot.lane.b32.xlu0 %v9888_v31, %s7066_s22 }
 0x317   :  { %v10347_v21 = vpop.permute.xlu1 %6143 }
 0x318   :  { %v10349_v29 = vpop.permute.xlu0 %6158 }
 0x319   :  { %6428 = vrot.lane.b32.xlu1 %v6417_v45, %s7065_s21  ;;  %v6160_v60 = vunpack.i.l.bf16 %v10349_v29 }
 0x31a   :  { %6433 = vrot.lane.b32.xlu0 %v9888_v31, %s7067_s23  ;;  %v2061_v31 = vrot.slane %v13140_v1, 1 }
 0x31b   :  { %v10358_v12 = vpop.permute.xlu1 %6153 }
 0x31c   :  { %v10360_v43 = vpop.permute.xlu0 %6168  ;;  %v2062_v6 = vsel %vm250_vm2, %v2060_v15, %v2061_v31  ;;  %v2064_v49 = vsel %vm250_vm2, %v2061_v31, %v2063_v9  ;;  %v6076_v31 = vunpack.i.h.bf16 %v10240_v3  ;;  %v6467_v9 = vpack.i.bf16 %v13140_v1, %v9730_v23 }
 0x31d   :  { %6438 = vrot.lane.b32.xlu1 %v13139_v28, %s7068_s24  ;;  %v6140_v28 = vunpack.i.l.bf16 %v10326_v26  ;;  %v6170_v39 = vunpack.i.l.bf16 %v10360_v43  ;;  %v6472_v15 = vpack.i.bf16 %v2064_v49, %v2062_v6  ;;  %v2898_v26 = vsel %vm2891_vm7, %v2865_v50, %v6065_v58  ;;  %v13143_v49 = vld [vmem:[#allocation49_spill] sm:$0xff] }
 0x31e   :  { %6443 = vrot.lane.b32.xlu0 %v6442_v14, %s7064_s2  ;;  %v2769_v50 = vsel %vm2761_vm0, %v13143_v49, %v6076_v31 }
 0x31f   :  { %v10381_v45 = vpop.permute.xlu1 %6163  ;;  %v2931_v4 = vsel %vm2924_vm8, %v2898_v26, %v6140_v28  ;;  %v2801_v28 = vsel %vm2793_vm15, %v2769_v50, %v6086_v59  ;;  %v6145_v59 = vunpack.i.l.bf16 %v10347_v21 }
 0x320   :  { %v6184_v20 = vpop.permute.xlu0 %6183 }
 0x321   :  { %6448 = vrot.lane.b32.xlu1 %v6447_v63, %s7066_s22  ;;  %v6186_v1 = vunpack.i.h.bf16 %v6184_v20  ;;  %v6185_v44 = vunpack.i.l.bf16 %v6184_v20 }
 0x322   :  { %6453 = vrot.lane.b32.xlu0 %v6442_v14, %s7065_s21  ;;  %v6066_v14 = vunpack.i.h.bf16 %v10223_v16 }
 0x323   :  { %v10392_v25 = vpop.permute.xlu1 %6173 }
 0x324   :  { %v10394_v11 = vpop.permute.xlu0 %6193  ;;  %v2899_v2 = vsel %vm2891_vm7, %v2866_v34, %v6066_v14  ;;  %v6136_v34 = vunpack.i.h.bf16 %v10315_v47  ;;  %v6131_v47 = vunpack.i.h.bf16 %v10290_v10 }
 0x325   :  { %6458 = vrot.lane.b32.xlu1 %v6447_v63, %s7067_s23  ;;  %v13142_v63 = vld [vmem:[#allocation67_spill] sm:$0xff]  ;;  %v2932_v6 = vsel %vm2924_vm8, %v2899_v2, %v6141_v51  ;;  %v6130_v2 = vunpack.i.l.bf16 %v10290_v10  ;;  %v6146_v10 = vunpack.i.h.bf16 %v10347_v21 }
 0x326   :  { %6463 = vrot.lane.b32.xlu0 %v6462_v22, %s7068_s24  ;;  %v2770_v3 = vsel %vm2761_vm0, %v13142_v63, %v6160_v60 }
 0x327   :  { %v6179_v19 = vpop.permute.xlu1 %6178  ;;  %v2802_v23 = vsel %vm2793_vm15, %v2770_v3, %v6170_v39  ;;  %v13144_v3 = vld [vmem:[#allocation70_spill] sm:$0xff] }
 0x328   :  { %v10413_v16 = vpop.permute.xlu0 %6198  ;;  %v6181_v56 = vunpack.i.h.bf16 %v6179_v19  ;;  %v6180_v22 = vunpack.i.l.bf16 %v6179_v19  ;;  %v2834_v19 = vsel %vm2825_vm5, %v2801_v28, %v6135_v0  ;;  %v2835_v51 = vsel %vm2825_vm5, %v2802_v23, %v6136_v34 }
 0x329   :  { %6468 = vrot.lane.b32.xlu1 %v6467_v9, %s7064_s2 }
 0x32a   :  { %6473 = vrot.lane.b32.xlu0 %v6472_v15, %s7066_s22  ;;  %v2964_v60 = vsel %vm2957_vm9, %v2931_v4, %v6180_v22  ;;  %v2965_v14 = vsel %vm2957_vm9, %v2932_v6, %v6181_v56  ;;  %v2867_v4 = vsel %vm2858_vm6, %v2834_v19, %v6185_v44  ;;  %v2868_v56 = vsel %vm2858_vm6, %v2835_v51, %v6186_v1  ;;  %v13145_v22 = vld [vmem:[#allocation22_spill] sm:$0xff]  ;;  %v13149_v19 = vld [vmem:[#allocation71_spill] sm:$0xff] }
 0x32b   :  { %v6189_v58 = vpop.permute.xlu1 %6188  ;;  %v2997_v20 = vpack.c.bf16 %v2965_v14, %v2964_v60  ;;  %v13146_v23 = vpack.c.bf16 %v13144_v3, %v13145_v22  ;;  %v13148_v6 = vld [vmem:[#allocation74_spill] sm:$0xff]  ;;  %v13150_v51 = vld [vmem:[#allocation7_spill] sm:$0xff] }
 0x32c   :  { %v10430_v39 = vpop.permute.xlu0 %6208  ;;  %v6191_v26 = vunpack.i.h.bf16 %v6189_v58  ;;  %v6190_v31 = vunpack.i.l.bf16 %v6189_v58  ;;  %v6161_v58 = vunpack.i.h.bf16 %v10349_v29 }
 0x32d   :  { %6478 = vrot.lane.b32.xlu1 %v6467_v9, %s7065_s21  ;;  %3206 = vmatmul.mubr.bf16.gmra.mrb[24].mxu1 %v2997_v20  ;;  %v13147_v9 = vld [vmem:[#allocation32_spill] sm:$0xff]  ;;  %v6165_v20 = vunpack.i.l.bf16 %v10381_v45 }
 0x32e   :  { %v2900_v63 = vsel %vm2891_vm7, %v2867_v4, %v6190_v31  ;;  %v2901_v0 = vsel %vm2891_vm7, %v2868_v56, %v6191_v26  ;;  %6483 = vrot.lane.b32.xlu0 %v6472_v15, %s7067_s23  ;;  %5223 = vmatprep.mubr.msk.bf16.mxu1 %vm2761_vm0, %v13146_v23  ;;  %v6487_v49 = vpack.i.bf16 %v13148_v6, %v13147_v9  ;;  %v6171_v31 = vunpack.i.h.bf16 %v10360_v43  ;;  %v13152_v56 = vld [vmem:[#allocation3_spill] sm:$0xff] }
 0x32f   :  { %v10448_v44 = vpop.permute.xlu1 %2161  ;;  %v2933_v50 = vsel %vm2924_vm8, %v2900_v63, %v6130_v2  ;;  %v2934_v34 = vsel %vm2924_vm8, %v2901_v0, %v6131_v47  ;;  %v13151_v26 = vpack.c.bf16 %v13149_v19, %v13150_v51  ;;  %v6175_v47 = vunpack.i.l.bf16 %v10392_v25  ;;  %v13153_v63 = vld [vmem:[#allocation14_spill] sm:$0xff] }
 0x330   :  { %v6214_v1 = vpop.permute.xlu0 %6213  ;;  %v2966_v60 = vsel %vm2957_vm9, %v2933_v50, %v6145_v59  ;;  %v2967_v15 = vsel %vm2957_vm9, %v2934_v34, %v6146_v10  ;;  %v2771_v59 = vsel %vm2761_vm0, %v13152_v56, %v6161_v58  ;;  %v2772_v29 = vsel %vm2761_vm0, %v13153_v63, %v6165_v20 }
 0x331   :  { %6488 = vrot.lane.b32.xlu1 %v6487_v49, %s7068_s24  ;;  %v2999_v21 = vpack.c.bf16 %v2967_v15, %v2966_v60  ;;  %v2803_v0 = vsel %vm2793_vm15, %v2771_v59, %v6171_v31  ;;  %v2804_v3 = vsel %vm2793_vm15, %v2772_v29, %v6175_v47  ;;  %v6126_v43 = vunpack.i.h.bf16 %v10338_v54 }
 0x332   :  { %v6125_v10 = vunpack.i.l.bf16 %v10338_v54  ;;  %v6151_v34 = vunpack.i.h.bf16 %v10340_v32  ;;  %v6150_v60 = vunpack.i.l.bf16 %v10340_v32  ;;  %v6216_v58 = vunpack.i.h.bf16 %v6214_v1 }
 0x333   :  { %v10457_v14 = vpop.permute.xlu1 %2254  ;;  %v2837_v50 = vsel %vm2825_vm5, %v2804_v3, %v6126_v43  ;;  %v6215_v20 = vunpack.i.l.bf16 %v6214_v1  ;;  %v6156_v54 = vunpack.i.h.bf16 %v10358_v12 }
 0x334   :  { %v10459_v28 = vpop.permute.xlu0 %6218  ;;  %v2836_v49 = vsel %vm2825_vm5, %v2803_v0, %v6125_v10  ;;  %v2870_v51 = vsel %vm2858_vm6, %v2837_v50, %v6151_v34 }
 0x335   :  { %3214 = vmatmul.mubr.bf16.gmra.mrb[28].mxu1 %v2999_v21  ;;  %v2869_v19 = vsel %vm2858_vm6, %v2836_v49, %v6150_v60  ;;  %v2903_v63 = vsel %vm2891_vm7, %v2870_v51, %v6156_v54  ;;  %v13154_v49 = vpack.c.bf16 %v9904_v30, %v9897_v8  ;;  %v6220_v60 = vunpack.i.l.bf16 %v10459_v28  ;;  %v13155_v8 = vld [vmem:[#allocation15_spill] sm:$0xff] }
 0x336   :  { %5224 = vmatprep.mubr.msk.bf16.mxu1 %vm2761_vm0, %v13151_v26  ;;  %v6155_v26 = vunpack.i.l.bf16 %v10358_v12  ;;  %v2936_v1 = vsel %vm2924_vm8, %v2903_v63, %v6216_v58  ;;  %v6166_v58 = vunpack.i.h.bf16 %v10381_v45  ;;  %v6210_v51 = vunpack.i.l.bf16 %v10430_v39 }
 0x337   :  { %v10469_v2 = vpop.permute.xlu1 %6203  ;;  %v2774_v30 = vsel %vm2761_vm0, %v13155_v8, %v6220_v60 }
 0x338   :  { %v10471_v4 = vpop.permute.xlu0 %6228  ;;  %v2902_v32 = vsel %vm2891_vm7, %v2869_v19, %v6155_v26  ;;  %v6176_v19 = vunpack.i.h.bf16 %v10392_v25 }
 0x339   :  { %v2935_v29 = vsel %vm2924_vm8, %v2902_v32, %v6215_v20  ;;  %v6230_v20 = vunpack.i.l.bf16 %v10471_v4 }
 0x33b   :  { %v10479_v22 = vpop.permute.xlu1 %6223 }
 0x33c   :  { %v10481_v23 = vpop.permute.xlu0 %6248 }
 0x33f   :  { %v10489_v15 = vpop.permute.xlu1 %6233 }
 0x340   :  { %v10491_v21 = vpop.permute.xlu0 %6253  ;;  %v6235_v60 = vunpack.i.l.bf16 %v10489_v15 }
 0x343   :  { %v6239_v31 = vpop.permute.xlu1 %6238 }
 0x344   :  { %v10497_v47 = vpop.permute.xlu0 %6258  ;;  %v6241_v56 = vunpack.i.h.bf16 %v6239_v31  ;;  %v6240_v59 = vunpack.i.l.bf16 %v6239_v31  ;;  %v13156_v31 = vld [vmem:[#allocation9_spill] sm:$0xff] }
 0x346   :  { %v2968_v0 = vsel %vm2957_vm9, %v2935_v29, %v6240_v59  ;;  %v2969_v3 = vsel %vm2957_vm9, %v2936_v1, %v6241_v56  ;;  %v2773_v56 = vsel %vm2761_vm0, %v13156_v31, %v6166_v58  ;;  %v2806_v59 = vsel %vm2793_vm15, %v2774_v30, %v6230_v20  ;;  %v13157_v30 = vld [vmem:[#allocation4_spill] sm:$0xff] }
 0x347   :  { %v10505_v43 = vpop.permute.xlu1 %6243  ;;  %v3001_v10 = vpack.c.bf16 %v2969_v3, %v2968_v0  ;;  %v2805_v45 = vsel %vm2793_vm15, %v2773_v56, %v6176_v19  ;;  %v6211_v29 = vunpack.i.h.bf16 %v10430_v39  ;;  %v6221_v1 = vunpack.i.h.bf16 %v10459_v28 }
 0x348   :  { %v10507_v12 = vpop.permute.xlu0 %6263  ;;  %v2838_v25 = vsel %vm2825_vm5, %v2805_v45, %v6210_v51  ;;  %v6231_v0 = vunpack.i.h.bf16 %v10471_v4  ;;  %v6225_v3 = vunpack.i.l.bf16 %v10479_v22  ;;  %v6205_v56 = vunpack.i.l.bf16 %v10469_v2  ;;  %v13158_v45 = vld [vmem:[#allocation24_spill] sm:$0xff] }
 0x349   :  { %3222 = vmatmul.mubr.bf16.gmra.mrb[32].mxu1 %v3001_v10  ;;  %v2839_v58 = vsel %vm2825_vm5, %v2806_v59, %v6211_v29  ;;  %v2775_v31 = vsel %vm2761_vm0, %v13157_v30, %v6221_v1  ;;  %v6206_v1 = vunpack.i.h.bf16 %v10469_v2 }
 0x34a   :  { %5225 = vmatprep.mubr.msk.bf16.mxu1 %vm2761_vm0, %v13154_v49  ;;  %v2776_v59 = vsel %vm2761_vm0, %v13158_v45, %v6225_v3 }
 0x34b   :  { %v10513_v50 = vpop.permute.xlu1 %6268 }
 0x34c   :  { %v10515_v34 = vpop.permute.xlu0 %6273 }
 0x34f   :  { %v10522_v54 = vpop.permute.xlu1 %6283 }
 0x350   :  { %v6279_v26 = vpop.permute.xlu0 %6278 }
 0x351   :  { %v6281_v32 = vunpack.i.h.bf16 %v6279_v26  ;;  %v6280_v63 = vunpack.i.l.bf16 %v6279_v26 }
 0x353   :  { %v6289_v10 = vpop.permute.xlu1 %6288  ;;  %v2871_v19 = vsel %vm2858_vm6, %v2838_v25, %v6280_v63  ;;  %v2872_v39 = vsel %vm2858_vm6, %v2839_v58, %v6281_v32  ;;  %v2807_v63 = vsel %vm2793_vm15, %v2775_v31, %v6231_v0  ;;  %v2808_v32 = vsel %vm2793_vm15, %v2776_v59, %v6235_v60 }
 0x354   :  { %v6294_v49 = vpop.permute.xlu0 %6293  ;;  %v6291_v20 = vunpack.i.h.bf16 %v6289_v10  ;;  %v6290_v26 = vunpack.i.l.bf16 %v6289_v10  ;;  %v6236_v0 = vunpack.i.h.bf16 %v10489_v15  ;;  %v6265_v60 = vunpack.i.l.bf16 %v10507_v12  ;;  %v13159_v15 = vld [vmem:[#allocation13_spill] sm:$0xff] }
 0x355   :  { %v6296_v8 = vunpack.i.h.bf16 %v6294_v49  ;;  %v6295_v51 = vunpack.i.l.bf16 %v6294_v49  ;;  %v2840_v31 = vsel %vm2825_vm5, %v2807_v63, %v6205_v56 }
 0x356   :  { %v2904_v28 = vsel %vm2891_vm7, %v2871_v19, %v6290_v26  ;;  %v2905_v4 = vsel %vm2891_vm7, %v2872_v39, %v6291_v20  ;;  %v6226_v39 = vunpack.i.h.bf16 %v10479_v22 }
 0x357   :  { %v6299_v29 = vpop.permute.xlu1 %6298  ;;  %v2937_v20 = vsel %vm2924_vm8, %v2904_v28, %v6295_v51  ;;  %v2938_v19 = vsel %vm2924_vm8, %v2905_v4, %v6296_v8  ;;  %v6275_v51 = vunpack.i.l.bf16 %v10515_v34  ;;  %v2841_v8 = vsel %vm2825_vm5, %v2808_v32, %v6206_v1 }
 0x358   :  { %v6304_v10 = vpop.permute.xlu0 %6303  ;;  %v6301_v25 = vunpack.i.h.bf16 %v6299_v29  ;;  %v6300_v49 = vunpack.i.l.bf16 %v6299_v29 }
 0x359   :  { %v6306_v58 = vunpack.i.h.bf16 %v6304_v10  ;;  %v6305_v26 = vunpack.i.l.bf16 %v6304_v10 }
 0x35a   :  { %v2970_v3 = vsel %vm2957_vm9, %v2937_v20, %v6300_v49  ;;  %v2971_v30 = vsel %vm2957_vm9, %v2938_v19, %v6301_v25  ;;  %v2777_v49 = vsel %vm2761_vm0, %v13159_v15, %v6226_v39  ;;  %v13160_v20 = vpack.c.bf16 %v9918_v55, %v9911_v46 }
 0x35b   :  { %v6309_v45 = vpop.permute.xlu1 %6308  ;;  %v3003_v29 = vpack.c.bf16 %v2971_v30, %v2970_v3  ;;  %v2874_v22 = vsel %vm2858_vm6, %v2841_v8, %v6306_v58  ;;  %v2873_v4 = vsel %vm2858_vm6, %v2840_v31, %v6305_v26  ;;  %v2809_v32 = vsel %vm2793_vm15, %v2777_v49, %v6236_v0  ;;  %v13161_v58 = vld [vmem:[#allocation11_spill] sm:$0xff] }
 0x35c   :  { %v6314_v59 = vpop.permute.xlu0 %6313  ;;  %v6311_v2 = vunpack.i.h.bf16 %v6309_v45  ;;  %v6310_v28 = vunpack.i.l.bf16 %v6309_v45  ;;  %v2778_v26 = vsel %vm2761_vm0, %v13161_v58, %v6265_v60  ;;  %v6250_v3 = vunpack.i.l.bf16 %v10481_v23 }
 0x35d   :  { %v6316_v10 = vunpack.i.h.bf16 %v6314_v59  ;;  %v6315_v25 = vunpack.i.l.bf16 %v6314_v59  ;;  %3230 = vmatmul.mubr.bf16.gmra.mrb[36].mxu1 %v3003_v29  ;;  %v2810_v39 = vsel %vm2793_vm15, %v2778_v26, %v6275_v51  ;;  %v6251_v55 = vunpack.i.h.bf16 %v10481_v23 }
 0x35e   :  { %v2906_v56 = vsel %vm2891_vm7, %v2873_v4, %v6310_v28  ;;  %v2907_v63 = vsel %vm2891_vm7, %v2874_v22, %v6311_v2  ;;  %5226 = vmatprep.mubr.msk.bf16.mxu1 %vm2761_vm0, %v13160_v20  ;;  %v2842_v0 = vsel %vm2825_vm5, %v2809_v32, %v6250_v3  ;;  %v6266_v2 = vunpack.i.h.bf16 %v10507_v12  ;;  %v13164_v3 = vld [vmem:[#allocation28_spill] sm:$0xff] }
 0x35f   :  { %v6319_v19 = vpop.permute.xlu1 %6318  ;;  %v2939_v29 = vsel %vm2924_vm8, %v2906_v56, %v6315_v25  ;;  %v2940_v46 = vsel %vm2924_vm8, %v2907_v63, %v6316_v10  ;;  %v6270_v51 = vunpack.i.l.bf16 %v10513_v50  ;;  %v6276_v28 = vunpack.i.h.bf16 %v10515_v34 }
 0x360   :  { %v6324_v1 = vpop.permute.xlu0 %6323  ;;  %v6321_v30 = vunpack.i.h.bf16 %v6319_v19  ;;  %v6320_v31 = vunpack.i.l.bf16 %v6319_v19  ;;  %v6285_v25 = vunpack.i.l.bf16 %v10522_v54  ;;  %v2843_v10 = vsel %vm2825_vm5, %v2810_v39, %v6251_v55  ;;  %v13163_v19 = vld [vmem:[#allocation58_spill] sm:$0xff] }
 0x361   :  { %v6326_v45 = vunpack.i.h.bf16 %v6324_v1  ;;  %v6325_v59 = vunpack.i.l.bf16 %v6324_v1  ;;  %v13162_v58 = vpack.c.bf16 %v9925_v27, %v9932_v24  ;;  %v6245_v26 = vunpack.i.l.bf16 %v10505_v43 }
 0x362   :  { %v2972_v60 = vsel %vm2957_vm9, %v2939_v29, %v6320_v31  ;;  %v2973_v8 = vsel %vm2957_vm9, %v2940_v46, %v6321_v30  ;;  %v2779_v1 = vsel %vm2761_vm0, %v13163_v19, %v6266_v2  ;;  %v2780_v39 = vsel %vm2761_vm0, %v13164_v3, %v6270_v51  ;;  %v13167_v19 = vld [vmem:[#allocation30_spill] sm:$0xff]  ;;  %v13168_v3 = vld [vmem:[#allocation16_spill] sm:$0xff] }
 0x363   :  { %v6329_v22 = vpop.permute.xlu1 %6328  ;;  %v3005_v15 = vpack.c.bf16 %v2973_v8, %v2972_v60  ;;  %v2875_v56 = vsel %vm2858_vm6, %v2842_v0, %v6325_v59  ;;  %v2876_v63 = vsel %vm2858_vm6, %v2843_v10, %v6326_v45  ;;  %v2811_v45 = vsel %vm2793_vm15, %v2779_v1, %v6276_v28 }
 0x364   :  { %v6334_v4 = vpop.permute.xlu0 %6333  ;;  %v6331_v23 = vunpack.i.h.bf16 %v6329_v22  ;;  %v6330_v49 = vunpack.i.l.bf16 %v6329_v22  ;;  %v2812_v59 = vsel %vm2793_vm15, %v2780_v39, %v6285_v25  ;;  %v6255_v60 = vunpack.i.l.bf16 %v10491_v21 }
 0x365   :  { %v6336_v20 = vunpack.i.h.bf16 %v6334_v4  ;;  %v6335_v32 = vunpack.i.l.bf16 %v6334_v4  ;;  %3238 = vmatmul.mubr.bf16.gmra.mrb[40].mxu1 %v3005_v15  ;;  %v6246_v8 = vunpack.i.h.bf16 %v10505_v43  ;;  %v6260_v28 = vunpack.i.l.bf16 %v10497_v47 }
 0x366   :  { %v2908_v12 = vsel %vm2891_vm7, %v2875_v56, %v6330_v49  ;;  %v2909_v34 = vsel %vm2891_vm7, %v2876_v63, %v6331_v23  ;;  %5227 = vmatprep.mubr.msk.bf16.mxu1 %vm2761_vm0, %v13162_v58  ;;  %v6271_v22 = vunpack.i.h.bf16 %v10513_v50  ;;  %v2844_v4 = vsel %vm2825_vm5, %v2811_v45, %v6245_v26 }
 0x367   :  { %v6339_v30 = vpop.permute.xlu1 %6338  ;;  %v2941_v24 = vsel %vm2924_vm8, %v2908_v12, %v6335_v32  ;;  %v2942_v0 = vsel %vm2924_vm8, %v2909_v34, %v6336_v20  ;;  %v6286_v23 = vunpack.i.h.bf16 %v10522_v54  ;;  %v2845_v49 = vsel %vm2825_vm5, %v2812_v59, %v6246_v8  ;;  %v13166_v54 = vld [vmem:[#allocation77_spill] sm:$0xff] }
 0x368   :  { %v6344_v31 = vpop.permute.xlu0 %6343  ;;  %v6341_v29 = vunpack.i.h.bf16 %v6339_v30  ;;  %v6340_v46 = vunpack.i.l.bf16 %v6339_v30  ;;  %v13165_v58 = vpack.c.bf16 %v9591_v41, %v9794_v38  ;;  %v5976_v26 = vunpack.i.h.bf16 %v13166_v54 }
 0x369   :  { %v6346_v55 = vunpack.i.h.bf16 %v6344_v31  ;;  %v6345_v27 = vunpack.i.l.bf16 %v6344_v31  ;;  %v2782_v1 = vsel %vm2761_vm0, %v13167_v19, %v6255_v60  ;;  %v2781_v39 = vsel %vm2761_vm0, %v13168_v3, %v6271_v22 }
 0x36a   :  { %v2974_v2 = vsel %vm2957_vm9, %v2941_v24, %v6340_v46  ;;  %v2975_v51 = vsel %vm2957_vm9, %v2942_v0, %v6341_v29  ;;  %v2814_v45 = vsel %vm2793_vm15, %v2782_v1, %v6260_v28  ;;  %v2813_v59 = vsel %vm2793_vm15, %v2781_v39, %v6286_v23 }
 0x36b   :  { %v6349_v15 = vpop.permute.xlu1 %6348  ;;  %v3007_v10 = vpack.c.bf16 %v2975_v51, %v2974_v2  ;;  %v2878_v43 = vsel %vm2858_vm6, %v2845_v49, %v6346_v55  ;;  %v2877_v20 = vsel %vm2858_vm6, %v2844_v4, %v6345_v27  ;;  %v5975_v24 = vunpack.i.l.bf16 %v13166_v54 }
 0x36c   :  { %v6354_v25 = vpop.permute.xlu0 %6353  ;;  %v6351_v56 = vunpack.i.h.bf16 %v6349_v15  ;;  %v6350_v63 = vunpack.i.l.bf16 %v6349_v15  ;;  %v6025_v0 = vunpack.i.l.bf16 %v10179_v18  ;;  %v6030_v2 = vunpack.i.l.bf16 %v10190_v17 }
 0x36d   :  { %v6356_v32 = vunpack.i.h.bf16 %v6354_v25  ;;  %v6355_v12 = vunpack.i.l.bf16 %v6354_v25  ;;  %3246 = vmatmul.mubr.bf16.gmra.mrb[44].mxu1 %v3007_v10  ;;  %v6256_v51 = vunpack.i.h.bf16 %v10491_v21  ;;  %v6261_v28 = vunpack.i.h.bf16 %v10497_v47 }
 0x36e   :  { %v2910_v50 = vsel %vm2891_vm7, %v2877_v20, %v6350_v63  ;;  %v2911_v34 = vsel %vm2891_vm7, %v2878_v43, %v6351_v56  ;;  %5228 = vmatprep.mubr.msk.bf16.mxu1 %vm2761_vm0, %v13165_v58  ;;  %v2846_v25 = vsel %vm2825_vm5, %v2813_v59, %v5975_v24  ;;  %v2847_v10 = vsel %vm2825_vm5, %v2814_v45, %v5976_v26  ;;  %v13172_v45 = vld [vmem:[#allocation76_spill] sm:$0xff] }
 0x36f   :  { %v6359_v30 = vpop.permute.xlu1 %6358  ;;  %v2943_v38 = vsel %vm2924_vm8, %v2910_v50, %v6355_v12  ;;  %v2944_v27 = vsel %vm2924_vm8, %v2911_v34, %v6356_v32  ;;  %v13169_v32 = vpack.c.bf16 %v9778_v53, %v9596_v40  ;;  %v13170_v12 = vld [vmem:[#allocation59_spill] sm:$0xff]  ;;  %v13171_v34 = vld [vmem:[#allocation62_spill] sm:$0xff]  ;;  %v5971_v59 = vunpack.i.h.bf16 %v13172_v45 }
 0x370   :  { %v6364_v31 = vpop.permute.xlu0 %6363  ;;  %v6361_v29 = vunpack.i.h.bf16 %v6359_v30  ;;  %v6360_v46 = vunpack.i.l.bf16 %v6359_v30  ;;  %v2784_v50 = vsel %vm2761_vm0, %v13170_v12, %v6025_v0  ;;  %v2783_v58 = vsel %vm2761_vm0, %v13171_v34, %v6256_v51  ;;  %v13175_v34 = vld [vmem:[#allocation61_spill] sm:$0xff] }
 0x371   :  { %v6366_v55 = vunpack.i.h.bf16 %v6364_v31  ;;  %v6365_v41 = vunpack.i.l.bf16 %v6364_v31  ;;  %v2816_v19 = vsel %vm2793_vm15, %v2784_v50, %v6030_v2  ;;  %v2815_v1 = vsel %vm2793_vm15, %v2783_v58, %v6261_v28 }
 0x372   :  { %v2976_v60 = vsel %vm2957_vm9, %v2943_v38, %v6360_v46  ;;  %v2977_v8 = vsel %vm2957_vm9, %v2944_v27, %v6361_v29  ;;  %v5970_v29 = vunpack.i.l.bf16 %v13172_v45  ;;  %v2849_v27 = vsel %vm2825_vm5, %v2816_v19, %v5971_v59 }
 0x373   :  { %v6369_v22 = vpop.permute.xlu1 %6368  ;;  %v3009_v15 = vpack.c.bf16 %v2977_v8, %v2976_v60  ;;  %v2879_v56 = vsel %vm2858_vm6, %v2846_v25, %v6365_v41  ;;  %v2880_v63 = vsel %vm2858_vm6, %v2847_v10, %v6366_v55  ;;  %v13173_v25 = vpack.c.bf16 %v9804_v57, %v9761_v13 }
 0x374   :  { %v6374_v4 = vpop.permute.xlu0 %6373  ;;  %v6371_v23 = vunpack.i.h.bf16 %v6369_v22  ;;  %v6370_v49 = vunpack.i.l.bf16 %v6369_v22  ;;  %v2848_v24 = vsel %vm2825_vm5, %v2815_v1, %v5970_v29  ;;  %v6026_v10 = vunpack.i.h.bf16 %v10179_v18 }
 0x375   :  { %v6376_v43 = vunpack.i.h.bf16 %v6374_v4  ;;  %v6375_v20 = vunpack.i.l.bf16 %v6374_v4  ;;  %3254 = vmatmul.mubr.bf16.gmra.mrb[48].mxu1 %v3009_v15 }
 0x376   :  { %v2912_v21 = vsel %vm2891_vm7, %v2879_v56, %v6370_v49  ;;  %v2913_v47 = vsel %vm2891_vm7, %v2880_v63, %v6371_v23  ;;  %5229 = vmatprep.mubr.msk.bf16.mxu1 %vm2761_vm0, %v13169_v32  ;;  %v13174_v23 = vld [vmem:[#allocation20_spill] sm:$0xff]  ;;  %v6031_v63 = vunpack.i.h.bf16 %v10190_v17  ;;  %v2785_v58 = vsel %vm2761_vm0, %v13175_v34, %v6026_v10 }
 0x377   :  { %v6379_v54 = vpop.permute.xlu1 %6378  ;;  %v2945_v40 = vsel %vm2924_vm8, %v2912_v21, %v6375_v20  ;;  %v2946_v53 = vsel %vm2924_vm8, %v2913_v47, %v6376_v43  ;;  %v6105_v49 = vunpack.i.l.bf16 %v13174_v23  ;;  %v6115_v43 = vunpack.i.l.bf16 %v10271_v36 }
 0x378   :  { %v6384_v26 = vpop.permute.xlu0 %6383  ;;  %v6381_v3 = vunpack.i.h.bf16 %v6379_v54  ;;  %v6380_v39 = vunpack.i.l.bf16 %v6379_v54  ;;  %v13176_v54 = vld [vmem:[#allocation57_spill] sm:$0xff]  ;;  %v2817_v1 = vsel %vm2793_vm15, %v2785_v58, %v6031_v63 }
 0x379   :  { %v6386_v30 = vunpack.i.h.bf16 %v6384_v26  ;;  %v6385_v31 = vunpack.i.l.bf16 %v6384_v26  ;;  %v2786_v17 = vsel %vm2761_vm0, %v13176_v54, %v6105_v49 }
 0x37a   :  { %v2978_v46 = vsel %vm2957_vm9, %v2945_v40, %v6380_v39  ;;  %v2979_v55 = vsel %vm2957_vm9, %v2946_v53, %v6381_v3  ;;  %v2818_v3 = vsel %vm2793_vm15, %v2786_v17, %v6115_v43 }
 0x37b   :  { %v6389_v41 = vpop.permute.xlu1 %6388  ;;  %v3011_v38 = vpack.c.bf16 %v2979_v55, %v2978_v46  ;;  %v2882_v2 = vsel %vm2858_vm6, %v2849_v27, %v6386_v30  ;;  %v2881_v51 = vsel %vm2858_vm6, %v2848_v24, %v6385_v31  ;;  %v13177_v55 = vpack.c.bf16 %v9844_v35, %v9807_v52 }
 0x37c   :  { %v6391_v0 = vunpack.i.h.bf16 %v6389_v41  ;;  %v6390_v60 = vunpack.i.l.bf16 %v6389_v41  ;;  %v6394_v8 = vpop.permute.xlu0 %6393  ;;  %v6106_v41 = vunpack.i.h.bf16 %v13174_v23  ;;  %v6110_v24 = vunpack.i.l.bf16 %v10313_v37 }
 0x37d   :  { %v6396_v28 = vunpack.i.h.bf16 %v6394_v8  ;;  %v6395_v22 = vunpack.i.l.bf16 %v6394_v8  ;;  %3262 = vmatmul.mubr.bf16.gmra.mrb[52].mxu1 %v3011_v38  ;;  %v6116_v38 = vunpack.i.h.bf16 %v10271_v36  ;;  %v3018_v36 = vpack.c.bf16 %v10052_v7, %v10025_v48 }
 0x37e   :  { %v2914_v4 = vsel %vm2891_vm7, %v2881_v51, %v6390_v60  ;;  %v2915_v15 = vsel %vm2891_vm7, %v2882_v2, %v6391_v0  ;;  %5230 = vmatprep.mubr.msk.bf16.mxu1 %vm2761_vm0, %v13173_v25  ;;  %v6120_v0 = vunpack.i.l.bf16 %v10324_v62  ;;  %v2788_v49 = vsel %vm2761_vm0, %v13130_v61, %v6110_v24 }
 0x37f   :  { %v6399_v56 = vpop.permute.xlu1 %6398  ;;  %v2947_v50 = vsel %vm2924_vm8, %v2914_v4, %v6395_v22  ;;  %v2948_v13 = vsel %vm2924_vm8, %v2915_v15, %v6396_v28  ;;  %v2787_v15 = vsel %vm2761_vm0, %v13129_v33, %v6106_v41 }
 0x380   :  { %v6401_v20 = vunpack.i.h.bf16 %v6399_v56  ;;  %v6400_v21 = vunpack.i.l.bf16 %v6399_v56  ;;  %v6404_v47 = vpop.permute.xlu0 %6403 }
 0x381   :  { %v6406_v32 = vunpack.i.h.bf16 %v6404_v47  ;;  %v6405_v12 = vunpack.i.l.bf16 %v6404_v47  ;;  %v2820_v47 = vsel %vm2793_vm15, %v2788_v49, %v6120_v0 }
 0x382   :  { %v2980_v57 = vsel %vm2957_vm9, %v2947_v50, %v6400_v21  ;;  %v2981_v18 = vsel %vm2957_vm9, %v2948_v13, %v6401_v20  ;;  %v2819_v21 = vsel %vm2793_vm15, %v2787_v15, %v6116_v38 }
 0x383   :  { %v6409_v26 = vpop.permute.xlu1 %6408  ;;  %v3013_v19 = vpack.c.bf16 %v2981_v18, %v2980_v57  ;;  %v2850_v40 = vsel %vm2825_vm5, %v2817_v1, %v6405_v12  ;;  %v2851_v53 = vsel %vm2825_vm5, %v2818_v3, %v6406_v32  ;;  %v6121_v3 = vunpack.i.h.bf16 %v10324_v62 }
 0x384   :  { %v6411_v39 = vunpack.i.h.bf16 %v6409_v26  ;;  %v6410_v30 = vunpack.i.l.bf16 %v6409_v26  ;;  %v6414_v31 = vpop.permute.xlu0 %6413  ;;  %v6111_v26 = vunpack.i.h.bf16 %v10313_v37 }
 0x385   :  { %v6416_v45 = vunpack.i.h.bf16 %v6414_v31  ;;  %v6415_v59 = vunpack.i.l.bf16 %v6414_v31  ;;  %3270 = vmatmul.mubr.bf16.gmra.mrb[56].mxu1 %v3013_v19  ;;  %v6195_v19 = vunpack.i.l.bf16 %v10394_v11 }
 0x386   :  { %v2883_v29 = vsel %vm2858_vm6, %v2850_v40, %v6410_v30  ;;  %v2884_v46 = vsel %vm2858_vm6, %v2851_v53, %v6411_v39  ;;  %5231 = vmatprep.mubr.msk.bf16.mxu1 %vm2761_vm0, %v13177_v55  ;;  %v6200_v39 = vunpack.i.l.bf16 %v10413_v16  ;;  %v2789_v55 = vsel %vm2761_vm0, %v13135_v5, %v6111_v26 }
 0x387   :  { %v6419_v27 = vpop.permute.xlu1 %6418  ;;  %v2916_v51 = vsel %vm2891_vm7, %v2883_v29, %v6415_v59  ;;  %v2917_v28 = vsel %vm2891_vm7, %v2884_v46, %v6416_v45  ;;  %v2790_v62 = vsel %vm2761_vm0, %v13136_v42, %v6195_v19 }
 0x388   :  { %v6421_v60 = vunpack.i.h.bf16 %v6419_v27  ;;  %v6420_v8 = vunpack.i.l.bf16 %v6419_v27  ;;  %v6424_v2 = vpop.permute.xlu0 %6423  ;;  %v2821_v27 = vsel %vm2793_vm15, %v2789_v55, %v6121_v3  ;;  %v2822_v24 = vsel %vm2793_vm15, %v2790_v62, %v6200_v39 }
 0x389   :  { %v6426_v22 = vunpack.i.h.bf16 %v6424_v2  ;;  %v6425_v52 = vunpack.i.l.bf16 %v6424_v2 }
 0x38a   :  { %v2949_v35 = vsel %vm2924_vm8, %v2916_v51, %v6420_v8  ;;  %v2950_v4 = vsel %vm2924_vm8, %v2917_v28, %v6421_v60 }
 0x38b   :  { %v6429_v25 = vpop.permute.xlu1 %6428  ;;  %v2982_v10 = vsel %vm2957_vm9, %v2949_v35, %v6425_v52  ;;  %v2983_v23 = vsel %vm2957_vm9, %v2950_v4, %v6426_v22  ;;  %v13178_v52 = vpack.c.bf16 %v13148_v6, %v13147_v9 }
 0x38c   :  { %v6431_v56 = vunpack.i.h.bf16 %v6429_v25  ;;  %v6430_v63 = vunpack.i.l.bf16 %v6429_v25  ;;  %v6434_v43 = vpop.permute.xlu0 %6433  ;;  %v3015_v20 = vpack.c.bf16 %v2983_v23, %v2982_v10 }
 0x38d   :  { %v6436_v48 = vunpack.i.h.bf16 %v6434_v43  ;;  %v6435_v7 = vunpack.i.l.bf16 %v6434_v43 }
 0x38e   :  { %v2852_v33 = vsel %vm2825_vm5, %v2819_v21, %v6430_v63  ;;  %v2853_v32 = vsel %vm2825_vm5, %v2820_v47, %v6431_v56  ;;  %3278 = vmatmul.mubr.bf16.gmra.mrb[60].mxu1 %v3015_v20  ;;  %v10745_v20 = vld [vmem:[%s12430_s4] ss:$0 sm:$0xff] }
 0x38f   :  { %v6439_v12 = vpop.permute.xlu1 %6438  ;;  %5232 = vmatprep.mubr.msk.bf16.mxu1 %vm2761_vm0, %v3018_v36  ;;  %v2886_v57 = vsel %vm2858_vm6, %v2853_v32, %v6436_v48  ;;  %v2885_v18 = vsel %vm2858_vm6, %v2852_v33, %v6435_v7 }
 0x390   :  { %v6441_v50 = vunpack.i.h.bf16 %v6439_v12  ;;  %v6440_v61 = vunpack.i.l.bf16 %v6439_v12  ;;  %v6444_v13 = vpop.permute.xlu0 %6443 }
 0x391   :  { %v6446_v34 = vunpack.i.h.bf16 %v6444_v13  ;;  %v6445_v58 = vunpack.i.l.bf16 %v6444_v13 }
 0x392   :  { %v2918_v54 = vsel %vm2891_vm7, %v2885_v18, %v6440_v61  ;;  %v2919_v17 = vsel %vm2891_vm7, %v2886_v57, %v6441_v50 }
 0x393   :  { %v6449_v1 = vpop.permute.xlu1 %6448  ;;  %v2951_v59 = vsel %vm2924_vm8, %v2918_v54, %v6445_v58  ;;  %v2952_v29 = vsel %vm2924_vm8, %v2919_v17, %v6446_v34 }
 0x394   :  { %v6451_v30 = vunpack.i.h.bf16 %v6449_v1  ;;  %v6450_v31 = vunpack.i.l.bf16 %v6449_v1  ;;  %v6454_v40 = vpop.permute.xlu0 %6453 }
 0x395   :  { %v6456_v53 = vunpack.i.h.bf16 %v6454_v40  ;;  %v6455_v45 = vunpack.i.l.bf16 %v6454_v40 }
 0x396   :  { %v2984_v46 = vsel %vm2957_vm9, %v2951_v59, %v6450_v31  ;;  %v2985_v37 = vsel %vm2957_vm9, %v2952_v29, %v6451_v30 }
 0x397   :  { %v6459_v41 = vpop.permute.xlu1 %6458  ;;  %v3017_v38 = vpack.c.bf16 %v2985_v37, %v2984_v46  ;;  %v2854_v2 = vsel %vm2825_vm5, %v2821_v27, %v6455_v45  ;;  %v2855_v51 = vsel %vm2825_vm5, %v2822_v24, %v6456_v53 }
 0x398   :  { %v6461_v0 = vunpack.i.h.bf16 %v6459_v41  ;;  %v6460_v60 = vunpack.i.l.bf16 %v6459_v41  ;;  %v6464_v8 = vpop.permute.xlu0 %6463  ;;  %v13179_v41 = vmov 0.0  }
 0x399   :  { %v6466_v28 = vunpack.i.h.bf16 %v6464_v8  ;;  %v6465_v22 = vunpack.i.l.bf16 %v6464_v8  ;;  %3286 = vmatmul.mubr.bf16.gmra.mrb[64].mxu1 %v3017_v38 }
 0x39a   :  { %v2887_v5 = vsel %vm2858_vm6, %v2854_v2, %v6460_v60  ;;  %v2888_v42 = vsel %vm2858_vm6, %v2855_v51, %v6461_v0  ;;  %5233 = vmatprep.mubr.msk.bf16.mxu1 %vm2761_vm0, %v13178_v52  ;;  %v7043_v52 = vld [vmem:[%s12431_s5] sm:$0xff]  }
 0x39b   :  { %v6469_v35 = vpop.permute.xlu1 %6468  ;;  %v2920_v25 = vsel %vm2891_vm7, %v2887_v5, %v6465_v22  ;;  %v2921_v10 = vsel %vm2891_vm7, %v2888_v42, %v6466_v28  ;;  %4747 = vmatpush1.bf16.msra.mxu0 %v7043_v52 }
 0x39c   :  { %v6471_v4 = vunpack.i.h.bf16 %v6469_v35  ;;  %v6470_v36 = vunpack.i.l.bf16 %v6469_v35  ;;  %v6474_v15 = vpop.permute.xlu0 %6473 }
 0x39d   :  { %v6476_v23 = vunpack.i.h.bf16 %v6474_v15  ;;  %v6475_v49 = vunpack.i.l.bf16 %v6474_v15 }
 0x39e   :  { %v2953_v56 = vsel %vm2924_vm8, %v2920_v25, %v6470_v36  ;;  %v2954_v63 = vsel %vm2924_vm8, %v2921_v10, %v6471_v4 }
 0x39f   :  { %v2986_v43 = vsel %vm2957_vm9, %v2953_v56, %v6475_v49  ;;  %v2987_v9 = vsel %vm2957_vm9, %v2954_v63, %v6476_v23  ;;  %v7044_v49 = vld [vmem:[%s12431_s5 + $0x8] sm:$0xff]  }
 0x3a0   :  { %v3019_v6 = vpack.c.bf16 %v2987_v9, %v2986_v43  ;;  %v13180_v9 = vld [vmem:[#allocation2_spill] sm:$0xff] }
 0x3a2   :  { %3294 = vmatmul.mubr.bf16.gmra.mrb[68].mxu1 %v3019_v6 }
 0x3be   :  { %v3183_v21 = vpop.f32.mrb[12].mxu1 }
 0x3bf   :  { %v3184_v47 = vadd.f32 %v10745_v20, %v3183_v21  ;;  %v3185_v48 = vpop.f32.mrb[13].mxu1  ;;  %v13181_v21 = vmov 0  }
 0x3c0   :  { %v3186_v7 = vpop.f32.mrb[14].mxu1  ;;  %4748 = vmatprep.subr.bf16.mxu0 %v13181_v21 }
 0x3c1   :  { %v3310_v33 = vmax.f32 %v3184_v47, 0.0  ;;  %v3187_v32 = vadd.f32 %v10745_v20, %v3186_v7  ;;  %v3188_v12 = vpop.f32.mrb[15].mxu1  ;;  %v13182_v7 = vld [vmem:[#allocation55_spill] sm:$0xff]  ;;  %4749 = vmatpush1.bf16.msra.mxu0 %v7044_v49 }
 0x3c2   :  { %4750 = vmatprep.subr.bf16.mxu0 %v13181_v21 }
 0x3c3   :  { %v3311_v50 = vmax.f32 %v3187_v32, 0.0  ;;  %v3374_v61 = vrot.slane %v3310_v33, 7  ;;  %v10799_v33 = vpack.c.bf16 %v13182_v7, %v13182_v7 }
 0x3c5   :  { %v3375_v13 = vrot.slane %v3311_v50, 7  ;;  %v10755_v26 = vsel %vm91_vm1, 0.0, %v3374_v61  ;;  %13183 = vst [vmem:[#allocation48_spill] sm:$0xff] %v10799_v33  ;;  %5234 = vmatprep.mubr.msk.bf16.mxu1 %vm2761_vm0, %v10799_v33 }
 0x3c6   :  { %v3531_v53 = vrot.slane %v10755_v26, 1  ;;  %v3606_v45 = vrot.slane %v10755_v26, 2 }
 0x3c7   :  { %v10750_v57 = vsel %vm91_vm1, %v3374_v61, %v3375_v13  ;;  %v3485_v54 = vsel %vm91_vm1, %v3375_v13, 0.0 }
 0x3c8   :  { %v3532_v39 = vrot.slane %v10750_v57, 1  ;;  %v3534_v30 = vrot.slane %v3485_v54, 1  ;;  %v3607_v59 = vrot.slane %v10750_v57, 2  ;;  %v3609_v37 = vrot.slane %v3485_v54, 2 }
 0x3c9   :  { %v6507_v32 = vpack.i.bf16 %v10750_v57, %v10755_v26 }
 0x3ca   :  { %v3533_v27 = vsel %vm250_vm2, %v3531_v53, %v3532_v39  ;;  %v3535_v2 = vsel %vm250_vm2, %v3532_v39, %v3534_v30  ;;  %v3608_v12 = vsel %vm328_vm4, %v3606_v45, %v3607_v59  ;;  %v3610_v13 = vsel %vm328_vm4, %v3607_v59, %v3609_v37  ;;  %v7046_v39 = vld [vmem:[%s12431_s5 + $0x18] sm:$0xff]   ;;  %v7047_v53 = vld [vmem:[%s12431_s5 + $0x20] sm:$0xff]  }
 0x3cb   :  { %v6502_v25 = vpack.i.bf16 %v3535_v2, %v3533_v27 }
 0x3dc   :  { %v3191_v18 = vpop.f32.mrb[16].mxu1 }
 0x3dd   :  { %v3192_v34 = vadd.f32 %v10745_v20, %v3191_v18  ;;  %v3193_v58 = vpop.f32.mrb[17].mxu1  ;;  %v7045_v18 = vld [vmem:[%s12431_s5 + $0x10] sm:$0xff]  }
 0x3de   :  { %v3194_v17 = vpop.f32.mrb[18].mxu1  ;;  %4751 = vmatpush1.bf16.msra.mxu0 %v7045_v18 }
 0x3df   :  { %v3312_v19 = vmax.f32 %v3192_v34, 0.0  ;;  %v3195_v1 = vadd.f32 %v10745_v20, %v3194_v17  ;;  %v3196_v3 = vpop.f32.mrb[19].mxu1  ;;  %4752 = vmatprep.subr.bf16.mxu0 %v13181_v21 }
 0x3e1   :  { %v3377_v31 = vrot.slane %v3312_v19, 7  ;;  %v3313_v40 = vmax.f32 %v3195_v1, 0.0  ;;  %v6517_v1 = vpack.i.bf16 %v3610_v13, %v3608_v12 }
 0x3e2   :  { %4753 = vmatpush1.bf16.msra.mxu0 %v7046_v39 }
 0x3e3   :  { %v10763_v29 = vsel %vm91_vm1, 0.0, %v3377_v31  ;;  %v3378_v46 = vrot.slane %v3313_v40, 7  ;;  %4754 = vmatprep.subr.bf16.mxu0 %v13181_v21 }
 0x3e4   :  { %v3536_v55 = vrot.slane %v10763_v29, 1  ;;  %v3199_v62 = vpop.f32.mrb[20].mxu1  ;;  %v6492_v38 = vpack.i.bf16 %v10763_v29, %v13179_v41  ;;  %v3611_v51 = vrot.slane %v10763_v29, 2 }
 0x3e5   :  { %v10770_v24 = vsel %vm91_vm1, %v3377_v31, %v3378_v46  ;;  %v3486_v0 = vsel %vm91_vm1, %v3378_v46, 0.0  ;;  %v3200_v60 = vadd.f32 %v10745_v20, %v3199_v62  ;;  %v3201_v8 = vpop.f32.mrb[21].mxu1  ;;  %v7048_v46 = vld [vmem:[%s12431_s5 + $0x28] sm:$0xff]  }
 0x3e6   :  { %v3537_v28 = vrot.slane %v10770_v24, 1  ;;  %v3612_v22 = vrot.slane %v10770_v24, 2  ;;  %v3614_v5 = vrot.slane %v3486_v0, 2  ;;  %v3202_v42 = vpop.f32.mrb[22].mxu1  ;;  %6493 = vrot.lane.b32.xlu0 %v6492_v38, %s7064_s2  ;;  %v3539_v34 = vrot.slane %v3486_v0, 1  ;;  %4755 = vmatpush1.bf16.msra.mxu0 %v7047_v53  ;;  %v7049_v38 = vld [vmem:[%s12431_s5 + $0x30] sm:$0xff]  }
 0x3e7   :  { %v3314_v35 = vmax.f32 %v3200_v60, 0.0  ;;  %v3203_v4 = vadd.f32 %v10745_v20, %v3202_v42  ;;  %v3204_v36 = vpop.f32.mrb[23].mxu1  ;;  %v6527_v40 = vpack.i.bf16 %v10770_v24, %v10763_v29  ;;  %4756 = vmatprep.subr.bf16.mxu0 %v13181_v21 }
 0x3e8   :  { %v3615_v15 = vsel %vm328_vm4, %v3612_v22, %v3614_v5  ;;  %v3613_v10 = vsel %vm328_vm4, %v3611_v51, %v3612_v22  ;;  %v3538_v23 = vsel %vm250_vm2, %v3536_v55, %v3537_v28  ;;  %v3540_v30 = vsel %vm250_vm2, %v3537_v28, %v3539_v34  ;;  %v7050_v22 = vld [vmem:[%s12431_s5 + $0x38] sm:$0xff]   ;;  %v7051_v36 = vld [vmem:[%s12431_s5 + $0x40] sm:$0xff]  }
 0x3e9   :  { %v3380_v56 = vrot.slane %v3314_v35, 7  ;;  %v3315_v63 = vmax.f32 %v3203_v4, 0.0  ;;  %v4593_v43 = vpack.c.bf16 %v3615_v15, %v3613_v10  ;;  %v6497_v6 = vpack.i.bf16 %v3538_v23, %v13180_v9 }
 0x3ea   :  { %6503 = vrot.lane.b32.xlu0 %v6502_v25, %s7069_s25  ;;  %v6532_v45 = vpack.i.bf16 %v3540_v30, %v3538_v23  ;;  %v6542_v59 = vpack.i.bf16 %v3615_v15, %v3613_v10  ;;  %4757 = vmatpush1.bf16.msra.mxu0 %v7048_v46 }
 0x3eb   :  { %v10793_v47 = vsel %vm91_vm1, 0.0, %v3380_v56  ;;  %v3381_v48 = vrot.slane %v3315_v63, 7  ;;  %5245 = vmatprep.mubr.msk.bf16.mxu0 %vm2761_vm0, %v4593_v43  ;;  %6498 = vrot.lane.b32.xlu1 %v6497_v6, %s7066_s22 }
 0x3ec   :  { %v3616_v58 = vrot.slane %v10793_v47, 2  ;;  %v3541_v62 = vrot.slane %v10793_v47, 1  ;;  %4758 = vmatprep.subr.bf16.mxu0 %v13181_v21  ;;  %v6552_v28 = vpack.i.bf16 %v10793_v47, %v10770_v24 }
 0x3ed   :  { %v10805_v50 = vsel %vm91_vm1, %v3380_v56, %v3381_v48  ;;  %v3487_v61 = vsel %vm91_vm1, %v3381_v48, 0.0 }
 0x3ee   :  { %v3617_v54 = vrot.slane %v10805_v50, 2  ;;  %v3619_v17 = vrot.slane %v3487_v61, 2  ;;  %6508 = vrot.lane.b32.xlu0 %v6507_v32, %s7065_s21  ;;  %v3542_v37 = vrot.slane %v10805_v50, 1  ;;  %v3544_v55 = vrot.slane %v3487_v61, 1  ;;  %4759 = vmatpush1.bf16.msra.mxu0 %v7049_v38 }
 0x3ef   :  { %6513 = vrot.lane.b32.xlu1 %v6502_v25, %s7067_s23  ;;  %v6557_v41 = vpack.i.bf16 %v10805_v50, %v10793_v47  ;;  %4760 = vmatprep.subr.bf16.mxu0 %v13181_v21 }
 0x3f0   :  { %v10820_v19 = vsel %vm328_vm4, %v3617_v54, %v3619_v17  ;;  %v10823_v3 = vsel %vm328_vm4, %v3616_v58, %v3617_v54  ;;  %v10856_v27 = vsel %vm250_vm2, %v3542_v37, %v3544_v55  ;;  %v3543_v0 = vsel %vm250_vm2, %v3541_v62, %v3542_v37 }
 0x3f1   :  { %v6562_v8 = vpack.i.bf16 %v10856_v27, %v3543_v0  ;;  %v6567_v4 = vpack.i.bf16 %v3543_v0, %v3540_v30  ;;  %v6577_v56 = vpack.i.bf16 %v10820_v19, %v10823_v3 }
 0x3f2   :  { %6518 = vrot.lane.b32.xlu0 %v6517_v1, %s7068_s24  ;;  %4761 = vmatpush1.bf16.msra.mxu0 %v7050_v22 }
 0x3f3   :  { %6523 = vrot.lane.b32.xlu1 %v6517_v1, %s7070_s26  ;;  %4762 = vmatprep.subr.bf16.mxu0 %v13181_v21 }
 0x3f6   :  { %6528 = vrot.lane.b32.xlu0 %v6527_v40, %s7065_s21  ;;  %4763 = vmatpush1.bf16.msra.mxu0 %v7051_v36 }
 0x3f7   :  { %6533 = vrot.lane.b32.xlu1 %v6532_v45, %s7069_s25 }
 0x3fa   :  { %6543 = vrot.lane.b32.xlu0 %v6542_v59, %s7068_s24 }
 0x3fb   :  { %6538 = vrot.lane.b32.xlu1 %v6532_v45, %s7067_s23 }
 0x3fe   :  { %6558 = vrot.lane.b32.xlu0 %v6557_v41, %s7065_s21 }
 0x3ff   :  { %6548 = vrot.lane.b32.xlu1 %v6542_v59, %s7070_s26 }
 0x400   :  { %v3207_v60 = vpop.f32.mrb[24].mxu1 }
 0x401   :  { %v3208_v2 = vadd.f32 %v10745_v20, %v3207_v60  ;;  %v3209_v51 = vpop.f32.mrb[25].mxu1 }
 0x402   :  { %v3210_v5 = vpop.f32.mrb[26].mxu1  ;;  %6563 = vrot.lane.b32.xlu0 %v6562_v8, %s7069_s25 }
 0x403   :  { %v3316_v42 = vmax.f32 %v3208_v2, 0.0  ;;  %v3211_v52 = vadd.f32 %v10745_v20, %v3210_v5  ;;  %v3212_v35 = vpop.f32.mrb[27].mxu1  ;;  %6553 = vrot.lane.b32.xlu1 %v6552_v28, %s7064_s2 }
 0x405   :  { %v3383_v15 = vrot.slane %v3316_v42, 7  ;;  %v3317_v25 = vmax.f32 %v3211_v52, 0.0 }
 0x406   :  { %6568 = vrot.lane.b32.xlu0 %v6567_v4, %s7066_s22 }
 0x407   :  { %v10879_v10 = vsel %vm91_vm1, 0.0, %v3383_v15  ;;  %v3384_v23 = vrot.slane %v3317_v25, 7  ;;  %6573 = vrot.lane.b32.xlu1 %v6562_v8, %s7067_s23 }
 0x408   :  { %v3215_v49 = vpop.f32.mrb[28].mxu1  ;;  %v3621_v63 = vrot.slane %v10879_v10, 2  ;;  %v3546_v13 = vrot.slane %v10879_v10, 1  ;;  %v6587_v40 = vpack.i.bf16 %v10879_v10, %v10805_v50 }
 0x409   :  { %v10886_v43 = vsel %vm91_vm1, %v3383_v15, %v3384_v23  ;;  %v3488_v9 = vsel %vm91_vm1, %v3384_v23, 0.0  ;;  %v3216_v6 = vadd.f32 %v10745_v20, %v3215_v49  ;;  %v3217_v21 = vpop.f32.mrb[29].mxu1 }
 0x40a   :  { %v3547_v48 = vrot.slane %v10886_v43, 1  ;;  %v3549_v7 = vrot.slane %v3488_v9, 1  ;;  %v3622_v32 = vrot.slane %v10886_v43, 2  ;;  %v3624_v12 = vrot.slane %v3488_v9, 2  ;;  %v3218_v61 = vpop.f32.mrb[30].mxu1  ;;  %6578 = vrot.lane.b32.xlu0 %v6577_v56, %s7068_s24 }
 0x40b   :  { %v3318_v18 = vmax.f32 %v3216_v6, 0.0  ;;  %v3219_v34 = vadd.f32 %v10745_v20, %v3218_v61  ;;  %v3220_v58 = vpop.f32.mrb[31].mxu1  ;;  %6583 = vrot.lane.b32.xlu1 %v6577_v56, %s7070_s26  ;;  %v6592_v17 = vpack.i.bf16 %v10886_v43, %v10879_v10 }
 0x40c   :  { %v10897_v54 = vsel %vm328_vm4, %v3622_v32, %v3624_v12  ;;  %v10902_v1 = vsel %vm328_vm4, %v3621_v63, %v3622_v32  ;;  %v3548_v53 = vsel %vm250_vm2, %v3546_v13, %v3547_v48  ;;  %v3550_v45 = vsel %vm250_vm2, %v3547_v48, %v3549_v7 }
 0x40d   :  { %v3386_v39 = vrot.slane %v3318_v18, 7  ;;  %v3319_v30 = vmax.f32 %v3219_v34, 0.0  ;;  %v6602_v55 = vpack.i.bf16 %v3548_v53, %v10856_v27  ;;  %v6597_v38 = vpack.i.bf16 %v3550_v45, %v3548_v53 }
 0x40e   :  { %6593 = vrot.lane.b32.xlu0 %v6592_v17, %s7065_s21  ;;  %v6612_v27 = vpack.i.bf16 %v10897_v54, %v10902_v1 }
 0x40f   :  { %v10912_v46 = vsel %vm91_vm1, 0.0, %v3386_v39  ;;  %v3387_v37 = vrot.slane %v3319_v30, 7  ;;  %6588 = vrot.lane.b32.xlu1 %v6587_v40, %s7064_s2 }
 0x410   :  { %13184 = vst [vmem:[#allocation65_spill] sm:$0xff] %v10912_v46  ;;  %v3626_v0 = vrot.slane %v10912_v46, 2  ;;  %v3551_v42 = vrot.slane %v10912_v46, 1  ;;  %v6622_v49 = vpack.i.bf16 %v10912_v46, %v10886_v43 }
 0x411   :  { %v10917_v62 = vsel %vm91_vm1, %v3386_v39, %v3387_v37  ;;  %v3489_v41 = vsel %vm91_vm1, %v3387_v37, 0.0 }
 0x412   :  { %v3627_v60 = vrot.slane %v10917_v62, 2  ;;  %v3629_v8 = vrot.slane %v3489_v41, 2  ;;  %6603 = vrot.lane.b32.xlu0 %v6602_v55, %s7066_s22  ;;  %v3552_v28 = vrot.slane %v10917_v62, 1  ;;  %v3554_v22 = vrot.slane %v3489_v41, 1 }
 0x413   :  { %6598 = vrot.lane.b32.xlu1 %v6597_v38, %s7069_s25  ;;  %v6627_v52 = vpack.i.bf16 %v10917_v62, %v10912_v46 }
 0x414   :  { %v10925_v2 = vsel %vm328_vm4, %v3627_v60, %v3629_v8  ;;  %v10930_v51 = vsel %vm328_vm4, %v3626_v0, %v3627_v60  ;;  %v3555_v35 = vsel %vm250_vm2, %v3552_v28, %v3554_v22  ;;  %v3553_v4 = vsel %vm250_vm2, %v3551_v42, %v3552_v28 }
 0x415   :  { %v6632_v15 = vpack.i.bf16 %v3555_v35, %v3553_v4  ;;  %v6637_v21 = vpack.i.bf16 %v3553_v4, %v3550_v45  ;;  %v6647_v61 = vpack.i.bf16 %v10925_v2, %v10930_v51 }
 0x416   :  { %6613 = vrot.lane.b32.xlu0 %v6612_v27, %s7068_s24 }
 0x417   :  { %6608 = vrot.lane.b32.xlu1 %v6597_v38, %s7067_s23 }
 0x41a   :  { %6628 = vrot.lane.b32.xlu0 %v6627_v52, %s7065_s21 }
 0x41b   :  { %6618 = vrot.lane.b32.xlu1 %v6612_v27, %s7070_s26 }
 0x41c   :  { %v3223_v36 = vpop.f32.mrb[32].mxu1 }
 0x41d   :  { %v3224_v25 = vadd.f32 %v10745_v20, %v3223_v36  ;;  %v3225_v23 = vpop.f32.mrb[33].mxu1 }
 0x41e   :  { %v3226_v56 = vpop.f32.mrb[34].mxu1  ;;  %6633 = vrot.lane.b32.xlu0 %v6632_v15, %s7069_s25 }
 0x41f   :  { %v3320_v63 = vmax.f32 %v3224_v25, 0.0  ;;  %v3227_v9 = vadd.f32 %v10745_v20, %v3226_v56  ;;  %v3228_v6 = vpop.f32.mrb[35].mxu1  ;;  %6623 = vrot.lane.b32.xlu1 %v6622_v49, %s7064_s2 }
 0x421   :  { %v3389_v48 = vrot.slane %v3320_v63, 7  ;;  %v3321_v7 = vmax.f32 %v3227_v9, 0.0 }
 0x422   :  { %6638 = vrot.lane.b32.xlu0 %v6637_v21, %s7066_s22 }
 0x423   :  { %v10952_v32 = vsel %vm91_vm1, 0.0, %v3389_v48  ;;  %v3390_v12 = vrot.slane %v3321_v7, 7  ;;  %6643 = vrot.lane.b32.xlu1 %v6632_v15, %s7067_s23 }
 0x424   :  { %13185 = vst [vmem:[#allocation64_spill] sm:$0xff] %v10952_v32  ;;  %v3631_v13 = vrot.slane %v10952_v32, 2  ;;  %v3556_v40 = vrot.slane %v10952_v32, 1  ;;  %v6657_v55 = vpack.i.bf16 %v10952_v32, %v10917_v62 }
 0x425   :  { %v10959_v18 = vsel %vm91_vm1, %v3389_v48, %v3390_v12  ;;  %v3490_v34 = vsel %vm91_vm1, %v3390_v12, 0.0 }
 0x426   :  { %13186 = vst [vmem:[#allocation46_spill] sm:$0xff] %v10959_v18  ;;  %v3557_v58 = vrot.slane %v10959_v18, 1  ;;  %v3559_v17 = vrot.slane %v3490_v34, 1  ;;  %v3632_v39 = vrot.slane %v10959_v18, 2  ;;  %v3634_v30 = vrot.slane %v3490_v34, 2  ;;  %6648 = vrot.lane.b32.xlu0 %v6647_v61, %s7068_s24 }
 0x427   :  { %6653 = vrot.lane.b32.xlu1 %v6647_v61, %s7070_s26  ;;  %v6662_v45 = vpack.i.bf16 %v10959_v18, %v10952_v32 }
 0x428   :  { %v10968_v53 = vsel %vm328_vm4, %v3632_v39, %v3634_v30  ;;  %v10973_v37 = vsel %vm328_vm4, %v3631_v13, %v3632_v39  ;;  %v3558_v41 = vsel %vm250_vm2, %v3556_v40, %v3557_v58  ;;  %v3560_v38 = vsel %vm250_vm2, %v3557_v58, %v3559_v17 }
 0x429   :  { %v6672_v60 = vpack.i.bf16 %v3558_v41, %v3555_v35  ;;  %v6667_v8 = vpack.i.bf16 %v3560_v38, %v3558_v41  ;;  %v6682_v28 = vpack.i.bf16 %v10968_v53, %v10973_v37 }
 0x42a   :  { %6663 = vrot.lane.b32.xlu0 %v6662_v45, %s7065_s21 }
 0x42b   :  { %6658 = vrot.lane.b32.xlu1 %v6657_v55, %s7064_s2 }
 0x42e   :  { %6673 = vrot.lane.b32.xlu0 %v6672_v60, %s7066_s22 }
 0x42f   :  { %6668 = vrot.lane.b32.xlu1 %v6667_v8, %s7069_s25 }
 0x430   :  { %v3231_v27 = vpop.f32.mrb[36].mxu1 }
 0x431   :  { %v3232_v22 = vadd.f32 %v10745_v20, %v3231_v27  ;;  %v3233_v42 = vpop.f32.mrb[37].mxu1 }
 0x432   :  { %v3234_v52 = vpop.f32.mrb[38].mxu1  ;;  %6683 = vrot.lane.b32.xlu0 %v6682_v28, %s7068_s24 }
 0x433   :  { %v3322_v4 = vmax.f32 %v3232_v22, 0.0  ;;  %v3235_v36 = vadd.f32 %v10745_v20, %v3234_v52  ;;  %v3236_v15 = vpop.f32.mrb[39].mxu1  ;;  %6678 = vrot.lane.b32.xlu1 %v6667_v8, %s7067_s23 }
 0x435   :  { %v3392_v35 = vrot.slane %v3322_v4, 7  ;;  %v3323_v25 = vmax.f32 %v3235_v36, 0.0 }
 0x437   :  { %v10992_v23 = vsel %vm91_vm1, 0.0, %v3392_v35  ;;  %v3393_v49 = vrot.slane %v3323_v25, 7  ;;  %6688 = vrot.lane.b32.xlu1 %v6682_v28, %s7070_s26 }
 0x438   :  { %13187 = vst [vmem:[#allocation6_spill] sm:$0xff] %v10992_v23  ;;  %v3561_v56 = vrot.slane %v10992_v23, 1  ;;  %v3239_v63 = vpop.f32.mrb[40].mxu1  ;;  %v6692_v9 = vpack.i.bf16 %v10992_v23, %v10959_v18  ;;  %v3636_v6 = vrot.slane %v10992_v23, 2 }
 0x439   :  { %v11000_v21 = vsel %vm91_vm1, %v3392_v35, %v3393_v49  ;;  %v3491_v48 = vsel %vm91_vm1, %v3393_v49, 0.0  ;;  %v3240_v7 = vadd.f32 %v10745_v20, %v3239_v63  ;;  %v3241_v12 = vpop.f32.mrb[41].mxu1 }
 0x43a   :  { %13188 = vst [vmem:[#allocation50_spill] sm:$0xff] %v11000_v21  ;;  %v3562_v61 = vrot.slane %v11000_v21, 1  ;;  %v3564_v13 = vrot.slane %v3491_v48, 1  ;;  %v3637_v34 = vrot.slane %v11000_v21, 2  ;;  %v3639_v58 = vrot.slane %v3491_v48, 2  ;;  %v3242_v17 = vpop.f32.mrb[42].mxu1 }
 0x43b   :  { %v3324_v39 = vmax.f32 %v3240_v7, 0.0  ;;  %v3243_v30 = vadd.f32 %v10745_v20, %v3242_v17  ;;  %v3244_v40 = vpop.f32.mrb[43].mxu1  ;;  %6693 = vrot.lane.b32.xlu1 %v6692_v9, %s7064_s2  ;;  %v6697_v45 = vpack.i.bf16 %v11000_v21, %v10992_v23 }
 0x43c   :  { %v11011_v55 = vsel %vm250_vm2, %v3562_v61, %v3564_v13  ;;  %v11014_v41 = vsel %vm328_vm4, %v3637_v34, %v3639_v58  ;;  %v3563_v60 = vsel %vm250_vm2, %v3561_v56, %v3562_v61  ;;  %v11018_v8 = vsel %vm328_vm4, %v3636_v6, %v3637_v34 }
 0x43d   :  { %13189 = vst [vmem:[#allocation21_spill] sm:$0xff] %v11014_v41  ;;  %13190 = vst [vmem:[#allocation19_spill] sm:$0xff] %v11018_v8  ;;  %v3395_v27 = vrot.slane %v3324_v39, 7  ;;  %v3325_v28 = vmax.f32 %v3243_v30, 0.0  ;;  %6698 = vrot.lane.b32.xlu0 %v6697_v45, %s7065_s21  ;;  %v6707_v22 = vpack.i.bf16 %v11011_v55, %v3563_v60  ;;  %v6702_v42 = vpack.i.bf16 %v3563_v60, %v3560_v38 }
 0x43e   :  { %v6712_v61 = vpack.i.bf16 %v11014_v41, %v11018_v8 }
 0x43f   :  { %v11025_v4 = vsel %vm91_vm1, 0.0, %v3395_v27  ;;  %v3396_v36 = vrot.slane %v3325_v28, 7  ;;  %6708 = vrot.lane.b32.xlu1 %v6707_v22, %s7067_s23 }
 0x440   :  { %13191 = vst [vmem:[#allocation23_spill] sm:$0xff] %v11025_v4  ;;  %v3247_v15 = vpop.f32.mrb[44].mxu1  ;;  %v3641_v56 = vrot.slane %v11025_v4, 2  ;;  %v6727_v30 = vpack.i.bf16 %v11025_v4, %v11000_v21  ;;  %v3566_v40 = vrot.slane %v11025_v4, 1 }
 0x441   :  { %v11029_v35 = vsel %vm91_vm1, %v3395_v27, %v3396_v36  ;;  %v3492_v25 = vsel %vm91_vm1, %v3396_v36, 0.0  ;;  %v3248_v49 = vadd.f32 %v10745_v20, %v3247_v15  ;;  %6703 = vrot.lane.b32.xlu0 %v6702_v42, %s7066_s22  ;;  %v3249_v38 = vpop.f32.mrb[45].mxu1 }
 0x442   :  { %13192 = vst [vmem:[#allocation60_spill] sm:$0xff] %v11029_v35  ;;  %v3642_v63 = vrot.slane %v11029_v35, 2  ;;  %v3644_v9 = vrot.slane %v3492_v25, 2  ;;  %v3250_v6 = vpop.f32.mrb[46].mxu1  ;;  %v3567_v13 = vrot.slane %v11029_v35, 1  ;;  %v3569_v28 = vrot.slane %v3492_v25, 1 }
 0x443   :  { %v3326_v48 = vmax.f32 %v3248_v49, 0.0  ;;  %v3251_v7 = vadd.f32 %v10745_v20, %v3250_v6  ;;  %v3252_v12 = vpop.f32.mrb[47].mxu1  ;;  %6718 = vrot.lane.b32.xlu1 %v6707_v22, %s7069_s25 }
 0x444   :  { %v11042_v34 = vsel %vm328_vm4, %v3642_v63, %v3644_v9  ;;  %v11045_v58 = vsel %vm328_vm4, %v3641_v56, %v3642_v63  ;;  %v3568_v42 = vsel %vm250_vm2, %v3566_v40, %v3567_v13  ;;  %v6732_v56 = vpack.i.bf16 %v11029_v35, %v11025_v4 }
 0x445   :  { %13193 = vst [vmem:[#allocation72_spill] sm:$0xff] %v11042_v34  ;;  %13194 = vst [vmem:[#allocation56_spill] sm:$0xff] %v11045_v58  ;;  %v3398_v17 = vrot.slane %v3326_v48, 7  ;;  %v3327_v39 = vmax.f32 %v3251_v7, 0.0  ;;  %6713 = vrot.lane.b32.xlu0 %v6712_v61, %s7068_s24 }
 0x447   :  { %v11054_v60 = vsel %vm91_vm1, 0.0, %v3398_v17  ;;  %v3399_v27 = vrot.slane %v3327_v39, 7  ;;  %6728 = vrot.lane.b32.xlu1 %v6727_v30, %s7064_s2 }
 0x448   :  { %13195 = vst [vmem:[#allocation12_spill] sm:$0xff] %v11054_v60  ;;  %v3255_v22 = vpop.f32.mrb[48].mxu1  ;;  %v3646_v63 = vrot.slane %v11054_v60, 2 }
 0x449   :  { %v11059_v36 = vsel %vm91_vm1, %v3398_v17, %v3399_v27  ;;  %v3493_v15 = vsel %vm91_vm1, %v3399_v27, 0.0  ;;  %v3256_v49 = vadd.f32 %v10745_v20, %v3255_v22  ;;  %6723 = vrot.lane.b32.xlu0 %v6712_v61, %s7070_s26  ;;  %v3257_v38 = vpop.f32.mrb[49].mxu1  ;;  %v6737_v17 = vpack.i.bf16 %v3568_v42, %v11011_v55 }
 0x44a   :  { %13196 = vst [vmem:[#allocation67_spill] sm:$0xff] %v11059_v36  ;;  %v3647_v25 = vrot.slane %v11059_v36, 2  ;;  %v3649_v9 = vrot.slane %v3493_v15, 2  ;;  %v3258_v6 = vpop.f32.mrb[50].mxu1  ;;  %v11072_v61 = vsel %vm250_vm2, %v3567_v13, %v3569_v28  ;;  %v6747_v22 = vpack.i.bf16 %v11042_v34, %v11045_v58 }
 0x44b   :  { %v3328_v48 = vmax.f32 %v3256_v49, 0.0  ;;  %v3259_v7 = vadd.f32 %v10745_v20, %v3258_v6  ;;  %v3260_v12 = vpop.f32.mrb[51].mxu1  ;;  %6733 = vrot.lane.b32.xlu1 %v6732_v56, %s7065_s21  ;;  %v6742_v28 = vpack.i.bf16 %v11072_v61, %v3568_v42  ;;  %v3572_v56 = vrot.slane %v11059_v36, 1 }
 0x44c   :  { %v11075_v39 = vsel %vm328_vm4, %v3647_v25, %v3649_v9  ;;  %v11078_v30 = vsel %vm328_vm4, %v3646_v63, %v3647_v25 }
 0x44d   :  { %13197 = vst [vmem:[#allocation49_spill] sm:$0xff] %v11075_v39  ;;  %13198 = vst [vmem:[#allocation70_spill] sm:$0xff] %v11078_v30  ;;  %v3401_v40 = vrot.slane %v3328_v48, 7  ;;  %v3329_v27 = vmax.f32 %v3259_v7, 0.0  ;;  %6738 = vrot.lane.b32.xlu0 %v6737_v17, %s7066_s22  ;;  %v3574_v48 = vrot.slane %v3493_v15, 1 }
 0x44f   :  { %v11086_v55 = vsel %vm91_vm1, 0.0, %v3401_v40  ;;  %v3402_v13 = vrot.slane %v3329_v27, 7  ;;  %6748 = vrot.lane.b32.xlu1 %v6747_v22, %s7068_s24  ;;  %v6479_v27 = vpop.permute.xlu1 %6478 }
 0x450   :  { %13199 = vst [vmem:[#allocation22_spill] sm:$0xff] %v11086_v55  ;;  %v3263_v38 = vpop.f32.mrb[52].mxu1  ;;  %v3651_v7 = vrot.slane %v11086_v55, 2 }
 0x451   :  { %v11092_v63 = vsel %vm91_vm1, %v3401_v40, %v3402_v13  ;;  %v11095_v25 = vsel %vm91_vm1, %v3402_v13, 0.0  ;;  %v3264_v9 = vadd.f32 %v10745_v20, %v3263_v38  ;;  %6743 = vrot.lane.b32.xlu0 %v6742_v28, %s7067_s23  ;;  %v3265_v6 = vpop.f32.mrb[53].mxu1  ;;  %v6196_v13 = vunpack.i.h.bf16 %v10394_v11  ;;  %v6484_v38 = vpop.permute.xlu0 %6483 }
 0x452   :  { %13200 = vst [vmem:[#allocation32_spill] sm:$0xff] %v11092_v63  ;;  %v3652_v12 = vrot.slane %v11092_v63, 2  ;;  %v3654_v42 = vrot.slane %v11095_v25, 2  ;;  %v3266_v17 = vpop.f32.mrb[54].mxu1  ;;  %v3571_v6 = vrot.slane %v11054_v60, 1  ;;  %v6486_v31 = vunpack.i.h.bf16 %v6484_v38 }
 0x453   :  { %v3330_v49 = vmax.f32 %v3264_v9, 0.0  ;;  %v3267_v40 = vadd.f32 %v10745_v20, %v3266_v17  ;;  %v3268_v45 = vpop.f32.mrb[55].mxu1  ;;  %6758 = vrot.lane.b32.xlu1 %v6747_v22, %s7070_s26  ;;  %v6762_v9 = vpack.i.bf16 %v11054_v60, %v11029_v35  ;;  %v11117_v22 = vsel %vm250_vm2, %v3572_v56, %v3574_v48 }
 0x454   :  { %v11107_v15 = vsel %vm328_vm4, %v3652_v12, %v3654_v42  ;;  %v11110_v52 = vsel %vm328_vm4, %v3651_v7, %v3652_v12  ;;  %v6201_v45 = vunpack.i.h.bf16 %v10413_v16  ;;  %v3573_v11 = vsel %vm250_vm2, %v3571_v6, %v3572_v56  ;;  %v13203_v12 = vld [vmem:[#allocation75_spill] sm:$0xff]  ;;  %v13204_v56 = vld [vmem:[#allocation8_spill] sm:$0xff] }
 0x455   :  { %13201 = vst [vmem:[#allocation74_spill] sm:$0xff] %v11107_v15  ;;  %13202 = vst [vmem:[#allocation71_spill] sm:$0xff] %v11110_v52  ;;  %v3331_v0 = vmax.f32 %v3267_v40, 0.0  ;;  %6753 = vrot.lane.b32.xlu0 %v6742_v28, %s7069_s25  ;;  %v6481_v17 = vunpack.i.h.bf16 %v6479_v27  ;;  %v11122_v5 = vrot.slane %v3330_v49, 7  ;;  %v6767_v28 = vpack.i.bf16 %v11059_v36, %v11054_v60  ;;  %v6489_v49 = vpop.permute.xlu1 %6488 }
 0x456   :  { %v2791_v16 = vsel %vm2761_vm0, %v13203_v12, %v6196_v13  ;;  %v6480_v48 = vunpack.i.l.bf16 %v6479_v27  ;;  %v2792_v6 = vsel %vm2761_vm0, %v13204_v56, %v10448_v44  ;;  %v6777_v27 = vpack.i.bf16 %v11117_v22, %v3573_v11 }
 0x457   :  { %v11124_v7 = vrot.slane %v3331_v0, 7  ;;  %6763 = vrot.lane.b32.xlu1 %v6762_v9, %s7064_s2  ;;  %v2823_v13 = vsel %vm2793_vm15, %v2791_v16, %v6201_v45  ;;  %v2824_v12 = vsel %vm2793_vm15, %v2792_v6, %v10457_v14  ;;  %v6485_v44 = vunpack.i.l.bf16 %v6484_v38 }
 0x458   :  { %v3271_v40 = vpop.f32.mrb[56].mxu1  ;;  %v11131_v59 = vpop.permute.xlu0 %6493  ;;  %v2857_v33 = vsel %vm2825_vm5, %v2824_v12, %v6481_v17  ;;  %v6490_v45 = vunpack.i.l.bf16 %v6489_v49  ;;  %v3577_v6 = vrot.slane %v11092_v63, 1 }
 0x459   :  { %v11139_v0 = vsel %vm91_vm1, %v11122_v5, %v11124_v7  ;;  %v3272_v9 = vadd.f32 %v10745_v20, %v3271_v40  ;;  %6768 = vrot.lane.b32.xlu0 %v6767_v28, %s7065_s21  ;;  %v3273_v42 = vpop.f32.mrb[57].mxu1  ;;  %v2856_v28 = vsel %vm2825_vm5, %v2823_v13, %v6480_v48  ;;  %v6491_v40 = vunpack.i.h.bf16 %v6489_v49 }
 0x45a   :  { %v3274_v56 = vpop.f32.mrb[58].mxu1  ;;  %v6772_v42 = vpack.i.bf16 %v3573_v11, %v11072_v61  ;;  %v11155_v14 = vunpack.i.l.bf16 %v11131_v59  ;;  %v2889_v11 = vsel %vm2858_vm6, %v2856_v28, %v6485_v44 }
 0x45b   :  { %v3332_v60 = vmax.f32 %v3272_v9, 0.0  ;;  %v3275_v35 = vadd.f32 %v10745_v20, %v3274_v56  ;;  %v3276_v4 = vpop.f32.mrb[59].mxu1  ;;  %6778 = vrot.lane.b32.xlu1 %v6777_v27, %s7067_s23  ;;  %v2922_v9 = vsel %vm2891_vm7, %v2889_v11, %v6490_v45 }
 0x45c   :  { %v11152_v16 = vpop.permute.xlu0 %6503  ;;  %13205 = vst [vmem:[#allocation7_spill] sm:$0xff] %v11155_v14  ;;  %v2890_v4 = vsel %vm2858_vm6, %v2857_v33, %v6486_v31  ;;  %v3576_v31 = vrot.slane %v11086_v55, 1  ;;  %v2955_v44 = vsel %vm2924_vm8, %v2922_v9, %v11155_v14  ;;  %v3579_v9 = vrot.slane %v11095_v25, 1 }
 0x45d   :  { %v3333_v38 = vmax.f32 %v3275_v35, 0.0  ;;  %6773 = vrot.lane.b32.xlu0 %v6772_v42, %s7066_s22  ;;  %v11158_v17 = vpop.permute.xlu1 %6498  ;;  %v11166_v48 = vrot.slane %v3332_v60, 7  ;;  %v6782_v35 = vpack.i.bf16 %v11075_v39, %v11078_v30  ;;  %v2923_v33 = vsel %vm2891_vm7, %v2890_v4, %v6491_v40 }
 0x45e   :  { %v11163_v61 = vunpack.i.l.bf16 %v11158_v17  ;;  %v2956_v56 = vsel %vm2924_vm8, %v2923_v33, %v11155_v14  ;;  %v6802_v42 = vpack.i.bf16 %v11092_v63, %v11086_v55  ;;  %v6797_v25 = vpack.i.bf16 %v11086_v55, %v11059_v36 }
 0x45f   :  { %v11168_v49 = vrot.slane %v3333_v38, 7  ;;  %6788 = vrot.lane.b32.xlu1 %v6777_v27, %s7069_s25  ;;  %v3578_v38 = vsel %vm250_vm2, %v3576_v31, %v3577_v6 }
 0x460   :  { %13206 = vst [vmem:[#allocation3_spill] sm:$0xff] %v11163_v61  ;;  %v11176_v13 = vpop.permute.xlu0 %6508  ;;  %v2988_v40 = vsel %vm2957_vm9, %v2955_v44, %v11163_v61  ;;  %v2989_v45 = vsel %vm2957_vm9, %v2956_v56, %v11163_v61  ;;  %v6807_v31 = vpack.i.bf16 %v3578_v38, %v11117_v22 }
 0x461   :  { %v11181_v60 = vsel %vm91_vm1, %v11166_v48, %v11168_v49  ;;  %6783 = vrot.lane.b32.xlu0 %v6782_v35, %s7068_s24  ;;  %v3279_v12 = vpop.f32.mrb[60].mxu1  ;;  %v11184_v27 = vpop.permute.xlu1 %6513  ;;  %v3021_v21 = vpack.c.bf16 %v2989_v45, %v2988_v40 }
 0x462   :  { %v3281_v28 = vpop.f32.mrb[61].mxu1  ;;  %v3280_v4 = vadd.f32 %v10745_v20, %v3279_v12  ;;  %v11211_v12 = vsel %vm250_vm2, %v3577_v6, %v3579_v9  ;;  %v3495_v6 = vsel %vm91_vm1, %v11124_v7, 0.0  ;;  %v11237_v9 = vsel %vm91_vm1, 0.0, %v11122_v5 }
 0x463   :  { %v3282_v11 = vpop.f32.mrb[62].mxu1  ;;  %6803 = vrot.lane.b32.xlu1 %v6802_v42, %s7065_s21  ;;  %3302 = vmatmul.mubr.bf16.gmra.mrb[72].mxu1 %v3021_v21  ;;  %v6817_v21 = vpack.i.bf16 %v11107_v15, %v11110_v52  ;;  %v6812_v45 = vpack.i.bf16 %v11211_v12, %v3578_v38  ;;  %13207 = vst [vmem:[#allocation14_spill] sm:$0xff] %v11237_v9  ;;  %v3582_v7 = vrot.slane %v11139_v0, 1  ;;  %v3581_v5 = vrot.slane %v11237_v9, 1 }
 0x464   :  { %v3283_v33 = vadd.f32 %v10745_v20, %v3282_v11  ;;  %v3284_v14 = vpop.f32.mrb[63].mxu1  ;;  %v11201_v23 = vpop.permute.xlu0 %6518  ;;  %v3334_v28 = vmax.f32 %v3280_v4, 0.0  ;;  %v6511_v52 = vunpack.i.h.bf16 %v11176_v13 }
 0x465   :  { %6793 = vrot.lane.b32.xlu0 %v6782_v35, %s7070_s26  ;;  %v11204_v44 = vpop.permute.xlu1 %6523  ;;  %v6520_v39 = vunpack.i.l.bf16 %v11201_v23 }
 0x466   :  { %v3335_v56 = vmax.f32 %v3283_v33, 0.0  ;;  %v11213_v14 = vrot.slane %v3334_v28, 7  ;;  %v6510_v33 = vunpack.i.l.bf16 %v11176_v13  ;;  %v3657_v13 = vrot.slane %v11139_v0, 2 }
 0x467   :  { %6808 = vrot.lane.b32.xlu1 %v6807_v31, %s7066_s22 }
 0x468   :  { %v11215_v42 = vrot.slane %v3335_v56, 7  ;;  %v11217_v40 = vpop.permute.xlu0 %6528 }
 0x469   :  { %6798 = vrot.lane.b32.xlu0 %v6797_v25, %s7064_s2  ;;  %v11220_v35 = vpop.permute.xlu1 %6533  ;;  %v3584_v25 = vrot.slane %v3495_v6, 1 }
 0x46a   :  { %v11227_v22 = vsel %vm91_vm1, %v11213_v14, %v11215_v42 }
 0x46b   :  { %6818 = vrot.lane.b32.xlu1 %v6817_v21, %s7068_s24 }
 0x46c   :  { %v3287_v4 = vpop.f32.mrb[64].mxu1  ;;  %v11233_v11 = vpop.permute.xlu0 %6543 }
 0x46d   :  { %v3288_v28 = vadd.f32 %v10745_v20, %v3287_v4  ;;  %6813 = vrot.lane.b32.xlu0 %v6812_v45, %s7067_s23  ;;  %v3289_v31 = vpop.f32.mrb[65].mxu1  ;;  %v11242_v56 = vpop.permute.xlu1 %6538  ;;  %v6515_v4 = vunpack.i.l.bf16 %v11184_v27 }
 0x46e   :  { %v3290_v38 = vpop.f32.mrb[66].mxu1  ;;  %v13208_v31 = vld [vmem:[#allocation78_spill] sm:$0xff] }
 0x46f   :  { %v3336_v61 = vmax.f32 %v3288_v28, 0.0  ;;  %v3291_v55 = vadd.f32 %v10745_v20, %v3290_v38  ;;  %v3292_v36 = vpop.f32.mrb[67].mxu1  ;;  %6828 = vrot.lane.b32.xlu1 %v6817_v21, %s7070_s26  ;;  %v4431_v30 = vsel %vm2825_vm5, %v13208_v31, %v6510_v33  ;;  %v11261_v21 = vsel %vm250_vm2, %v3582_v7, %v3584_v25 }
 0x470   :  { %v11250_v15 = vpop.permute.xlu0 %6558  ;;  %v6832_v36 = vpack.i.bf16 %v11237_v9, %v11092_v63  ;;  %v3659_v28 = vrot.slane %v3495_v6, 2  ;;  %v3583_v38 = vsel %vm250_vm2, %v3581_v5, %v3582_v7  ;;  %v4432_v25 = vsel %vm2825_vm5, %v13208_v31, %v6511_v52 }
 0x471   :  { %v3337_v32 = vmax.f32 %v3291_v55, 0.0  ;;  %6823 = vrot.lane.b32.xlu0 %v6812_v45, %s7069_s25  ;;  %v11256_v20 = vpop.permute.xlu1 %6548  ;;  %v11265_v18 = vrot.slane %v3336_v61, 7  ;;  %v6837_v55 = vpack.i.bf16 %v11139_v0, %v11237_v9  ;;  %v3656_v45 = vrot.slane %v11237_v9, 2 }
 0x472   :  { %v6516_v63 = vunpack.i.h.bf16 %v11184_v27  ;;  %v4463_v6 = vsel %vm2858_vm6, %v4431_v30, %v6515_v4  ;;  %v6521_v61 = vunpack.i.h.bf16 %v11201_v23  ;;  %v6847_v52 = vpack.i.bf16 %v11261_v21, %v3583_v38 }
 0x473   :  { %v11267_v33 = vrot.slane %v3337_v32, 7  ;;  %6833 = vrot.lane.b32.xlu1 %v6832_v36, %s7064_s2  ;;  %v4495_v32 = vsel %vm2891_vm7, %v4463_v6, %v6520_v39  ;;  %v11291_v30 = vsel %vm328_vm4, %v3657_v13, %v3659_v28  ;;  %v6496_v27 = vunpack.i.h.bf16 %v11131_v59  ;;  %v7052_v6 = vld [vmem:[%s12430_s4] ss:$0 sm:$0xff] }
 0x474   :  { %v11277_v58 = vpop.permute.xlu0 %6563  ;;  %v6506_v23 = vunpack.i.h.bf16 %v11152_v16  ;;  %v11296_v4 = vsel %vm328_vm4, %v3656_v45, %v3657_v13  ;;  %v6505_v31 = vunpack.i.l.bf16 %v11152_v16  ;;  %v6842_v59 = vpack.i.bf16 %v3583_v38, %v11211_v12 }
 0x475   :  { %v11284_v7 = vsel %vm91_vm1, %v11265_v18, %v11267_v33  ;;  %6838 = vrot.lane.b32.xlu0 %v6837_v55, %s7065_s21  ;;  %v3295_v5 = vpop.f32.mrb[68].mxu1  ;;  %v11287_v36 = vpop.permute.xlu1 %6553  ;;  %v6501_v55 = vunpack.i.h.bf16 %v11158_v17  ;;  %v4464_v28 = vsel %vm2858_vm6, %v4432_v25, %v6516_v63  ;;  %v11317_v63 = vsel %vm91_vm1, 0.0, %v11166_v48 }
 0x476   :  { %v3297_v39 = vpop.f32.mrb[69].mxu1  ;;  %v3296_v9 = vadd.f32 %v7052_v6, %v3295_v5  ;;  %v6555_v13 = vunpack.i.l.bf16 %v11287_v36  ;;  %v4496_v17 = vsel %vm2891_vm7, %v4464_v28, %v6521_v61  ;;  %v3496_v12 = vsel %vm91_vm1, %v11168_v49, 0.0 }
 0x477   :  { %v3298_v34 = vpop.f32.mrb[70].mxu1  ;;  %6848 = vrot.lane.b32.xlu1 %v6847_v52, %s7067_s23  ;;  %v4527_v39 = vsel %vm2924_vm8, %v4495_v32, %v6496_v27  ;;  %v6526_v25 = vunpack.i.h.bf16 %v11204_v44  ;;  %v6852_v32 = vpack.i.bf16 %v11291_v30, %v11296_v4  ;;  %v6525_v48 = vunpack.i.l.bf16 %v11204_v44 }
 0x478   :  { %v3299_v45 = vadd.f32 %v7052_v6, %v3298_v34  ;;  %v3300_v16 = vpop.f32.mrb[71].mxu1  ;;  %v11308_v8 = vpop.permute.xlu0 %6568  ;;  %v3338_v41 = vmax.f32 %v3296_v9, 0.0  ;;  %v4528_v34 = vsel %vm2924_vm8, %v4496_v17, %v6555_v13  ;;  %v4559_v9 = vsel %vm2957_vm9, %v4527_v39, %v6501_v55 }
 0x479   :  { %6843 = vrot.lane.b32.xlu0 %v6842_v59, %s7066_s22  ;;  %v6570_v5 = vunpack.i.l.bf16 %v11308_v8  ;;  %v11313_v46 = vpop.permute.xlu1 %6573  ;;  %v4372_v28 = vsel %vm2761_vm0, %v10750_v57, %v6506_v23  ;;  %v6531_v55 = vunpack.i.h.bf16 %v11217_v40  ;;  %v6530_v39 = vunpack.i.l.bf16 %v11217_v40 }
 0x47a   :  { %v3339_v38 = vmax.f32 %v3299_v45, 0.0  ;;  %v11329_v27 = vrot.slane %v3338_v41, 7  ;;  %v6872_v41 = vpack.i.bf16 %v11181_v60, %v11317_v63  ;;  %v4371_v44 = vsel %vm2761_vm0, %v10755_v26, %v6505_v31 }
 0x47b   :  { %v4560_v61 = vsel %vm2957_vm9, %v4528_v34, %v6570_v5  ;;  %6858 = vrot.lane.b32.xlu1 %v6847_v52, %s7069_s25  ;;  %v6541_v13 = vunpack.i.h.bf16 %v11242_v56  ;;  %v6540_v45 = vunpack.i.l.bf16 %v11242_v56  ;;  %v3586_v40 = vrot.slane %v11317_v63, 1 }
 0x47c   :  { %v11331_v6 = vrot.slane %v3339_v38, 7  ;;  %v4592_v49 = vpack.c.bf16 %v4560_v61, %v4559_v9  ;;  %v11333_v59 = vpop.permute.xlu0 %6578  ;;  %v3587_v23 = vrot.slane %v11181_v60, 1  ;;  %v3589_v16 = vrot.slane %v3496_v12, 1 }
 0x47d   :  { %6853 = vrot.lane.b32.xlu0 %v6852_v32, %s7068_s24  ;;  %v11340_v52 = vpop.permute.xlu1 %6583  ;;  %v13209_v26 = vpack.c.bf16 %v10820_v19, %v10823_v3  ;;  %v3662_v56 = vrot.slane %v11181_v60, 2  ;;  %v3664_v31 = vrot.slane %v3496_v12, 2  ;;  %v4401_v17 = vsel %vm2793_vm15, %v4371_v44, %v6525_v48 }
 0x47e   :  { %v11351_v57 = vsel %vm91_vm1, %v11329_v27, %v11331_v6  ;;  %4779 = vmatmul.mubr.bf16.vlgmr.msra.gmra.mrb[20].mxu0 %v4592_v49  ;;  %v4402_v5 = vsel %vm2793_vm15, %v4372_v28, %v6526_v25  ;;  %v3661_v38 = vrot.slane %v11317_v63, 2  ;;  %v4433_v9 = vsel %vm2825_vm5, %v4401_v17, %v6530_v39 }
 0x47f   :  { %6873 = vrot.lane.b32.xlu1 %v6872_v41, %s7065_s21  ;;  %5246 = vmatprep.mubr.msk.bf16.mxu0 %vm2761_vm0, %v13209_v26  ;;  %v4434_v61 = vsel %vm2825_vm5, %v4402_v5, %v6531_v55  ;;  %v6546_v49 = vunpack.i.h.bf16 %v11233_v11  ;;  %v4465_v3 = vsel %vm2858_vm6, %v4433_v9, %v6540_v45  ;;  %v6556_v25 = vunpack.i.h.bf16 %v11287_v36 }
 0x480   :  { %v11363_v34 = vpop.permute.xlu0 %6593  ;;  %v4466_v12 = vsel %vm2858_vm6, %v4434_v61, %v6541_v13  ;;  %v6545_v28 = vunpack.i.l.bf16 %v11233_v11  ;;  %v6571_v39 = vunpack.i.h.bf16 %v11308_v8  ;;  %v3588_v55 = vsel %vm250_vm2, %v3586_v40, %v3587_v23 }
 0x481   :  { %6863 = vrot.lane.b32.xlu0 %v6852_v32, %s7070_s26  ;;  %v11370_v19 = vpop.permute.xlu1 %6588  ;;  %v6867_v41 = vpack.i.bf16 %v11317_v63, %v11139_v0  ;;  %v11382_v32 = vsel %vm250_vm2, %v3587_v23, %v3589_v16  ;;  %v11385_v44 = vsel %vm328_vm4, %v3662_v56, %v3664_v31  ;;  %v3497_v36 = vsel %vm91_vm1, %v11215_v42, 0.0 }
 0x482   :  { %v6590_v48 = vunpack.i.l.bf16 %v11370_v19  ;;  %v6877_v13 = vpack.i.bf16 %v3588_v55, %v11261_v21  ;;  %v4497_v8 = vsel %vm2891_vm7, %v4465_v3, %v6545_v28  ;;  %v4498_v11 = vsel %vm2891_vm7, %v4466_v12, %v6546_v49 }
 0x483   :  { %v11399_v16 = vsel %vm328_vm4, %v3661_v38, %v3662_v56  ;;  %v4529_v26 = vsel %vm2924_vm8, %v4497_v8, %v6556_v25  ;;  %v11406_v21 = vsel %vm91_vm1, 0.0, %v11213_v14  ;;  %v6882_v31 = vpack.i.bf16 %v11382_v32, %v3588_v55 }
 0x484   :  { %v11390_v45 = vpop.permute.xlu0 %6603  ;;  %v4530_v42 = vsel %vm2924_vm8, %v4498_v11, %v6590_v48  ;;  %6878 = vrot.lane.b32.xlu1 %v6877_v13, %s7066_s22  ;;  %v4561_v17 = vsel %vm2957_vm9, %v4529_v26, %v6571_v39  ;;  %v3592_v9 = vrot.slane %v11227_v22, 1  ;;  %v3594_v56 = vrot.slane %v3497_v36, 1 }
 0x485   :  { %6868 = vrot.lane.b32.xlu0 %v6867_v41, %s7064_s2  ;;  %v6605_v40 = vunpack.i.l.bf16 %v11390_v45  ;;  %v11396_v23 = vpop.permute.xlu1 %6598  ;;  %v6887_v38 = vpack.i.bf16 %v11385_v44, %v11399_v16  ;;  %v3667_v3 = vrot.slane %v11227_v22, 2  ;;  %v3669_v12 = vrot.slane %v3497_v36, 2 }
 0x486   :  { %v6535_v14 = vunpack.i.l.bf16 %v11220_v35  ;;  %v11420_v25 = vsel %vm91_vm1, %v11267_v33, 0.0  ;;  %v6536_v28 = vunpack.i.h.bf16 %v11220_v35  ;;  %v6550_v39 = vunpack.i.l.bf16 %v11256_v20 }
 0x487   :  { %v4562_v5 = vsel %vm2957_vm9, %v4530_v42, %v6605_v40  ;;  %v3591_v55 = vrot.slane %v11406_v21, 1  ;;  %v6551_v41 = vunpack.i.h.bf16 %v11256_v20  ;;  %v13210_v36 = vpack.c.bf16 %v10897_v54, %v10902_v1 }
 0x488   :  { %v11414_v61 = vpop.permute.xlu0 %6613  ;;  %v4594_v49 = vpack.c.bf16 %v4562_v5, %v4561_v17  ;;  %6888 = vrot.lane.b32.xlu1 %v6887_v38, %s7068_s24  ;;  %v11436_v33 = vsel %vm91_vm1, 0.0, %v11265_v18  ;;  %v3672_v35 = vrot.slane %v11284_v7, 2  ;;  %v3674_v13 = vrot.slane %v11420_v25, 2 }
 0x489   :  { %6883 = vrot.lane.b32.xlu0 %v6882_v31, %s7067_s23  ;;  %v11423_v48 = vpop.permute.xlu1 %6608  ;;  %v3666_v11 = vrot.slane %v11406_v21, 2  ;;  %v11444_v40 = vsel %vm250_vm2, %v3592_v9, %v3594_v56  ;;  %v11447_v20 = vsel %vm328_vm4, %v3667_v3, %v3669_v12  ;;  %v4373_v54 = vsel %vm2761_vm0, %v10763_v29, %v6535_v14 }
 0x48a   :  { %4787 = vmatmul.mubr.bf16.gmra.mrb[24].mxu0 %v4594_v49  ;;  %v4374_v18 = vsel %vm2761_vm0, %v10770_v24, %v6536_v28  ;;  %v6561_v26 = vunpack.i.h.bf16 %v11250_v15  ;;  %v6560_v42 = vunpack.i.l.bf16 %v11250_v15  ;;  %v4403_v17 = vsel %vm2793_vm15, %v4373_v54, %v6550_v39 }
 0x48b   :  { %5247 = vmatprep.mubr.msk.bf16.mxu0 %vm2761_vm0, %v13210_v36  ;;  %v3671_v5 = vrot.slane %v11436_v33, 2  ;;  %v4404_v56 = vsel %vm2793_vm15, %v4374_v18, %v6551_v41  ;;  %v6575_v29 = vunpack.i.l.bf16 %v11313_v46  ;;  %v11466_v49 = vsel %vm328_vm4, %v3672_v35, %v3674_v13 }
 0x48c   :  { %v11440_v8 = vpop.permute.xlu0 %6628  ;;  %6898 = vrot.lane.b32.xlu1 %v6887_v38, %s7070_s26  ;;  %v6576_v24 = vunpack.i.h.bf16 %v11313_v46  ;;  %v6902_v15 = vpack.i.bf16 %v11406_v21, %v11181_v60  ;;  %v3593_v38 = vsel %vm250_vm2, %v3591_v55, %v3592_v9  ;;  %v4435_v14 = vsel %vm2825_vm5, %v4403_v17, %v6560_v42 }
 0x48d   :  { %6893 = vrot.lane.b32.xlu0 %v6882_v31, %s7069_s25  ;;  %v11452_v1 = vpop.permute.xlu1 %6618  ;;  %v6907_v31 = vpack.i.bf16 %v11227_v22, %v11406_v21  ;;  %v6581_v28 = vunpack.i.h.bf16 %v11333_v59  ;;  %v6580_v39 = vunpack.i.l.bf16 %v11333_v59  ;;  %v11481_v36 = vsel %vm328_vm4, %v3666_v11, %v3667_v3 }
 0x48e   :  { %v4436_v46 = vsel %vm2825_vm5, %v4404_v56, %v6561_v26  ;;  %v6591_v13 = vunpack.i.h.bf16 %v11370_v19  ;;  %v11488_v55 = vsel %vm328_vm4, %v3671_v5, %v3672_v35  ;;  %v4467_v59 = vsel %vm2858_vm6, %v4435_v14, %v6575_v29 }
 0x48f   :  { %v6606_v54 = vunpack.i.h.bf16 %v11390_v45  ;;  %v6912_v18 = vpack.i.bf16 %v3593_v38, %v11382_v32  ;;  %v4611_v3 = vpack.c.bf16 %v11291_v30, %v11296_v4  ;;  %v4468_v11 = vsel %vm2858_vm6, %v4436_v46, %v6576_v24 }
 0x490   :  { %v11471_v12 = vpop.permute.xlu0 %6633  ;;  %6903 = vrot.lane.b32.xlu1 %v6902_v15, %s7064_s2  ;;  %v6917_v19 = vpack.i.bf16 %v11444_v40, %v3593_v38  ;;  %v4613_v42 = vpack.c.bf16 %v11385_v44, %v11399_v16  ;;  %v4615_v35 = vpack.c.bf16 %v11447_v20, %v11481_v36  ;;  %v4499_v17 = vsel %vm2891_vm7, %v4467_v59, %v6580_v39 }
 0x491   :  { %6908 = vrot.lane.b32.xlu0 %v6907_v31, %s7065_s21  ;;  %v11478_v41 = vpop.permute.xlu1 %6623  ;;  %v4500_v45 = vsel %vm2891_vm7, %v4468_v11, %v6581_v28  ;;  %v4617_v56 = vpack.c.bf16 %v11466_v49, %v11488_v55  ;;  %v6566_v29 = vunpack.i.h.bf16 %v11277_v58  ;;  %v4531_v31 = vsel %vm2924_vm8, %v4499_v17, %v6591_v13 }
 0x492   :  { %v6625_v9 = vunpack.i.l.bf16 %v11478_v41  ;;  %v6565_v15 = vunpack.i.l.bf16 %v11277_v58  ;;  %v6922_v38 = vpack.i.bf16 %v11447_v20, %v11481_v36  ;;  %v4563_v14 = vsel %vm2957_vm9, %v4531_v31, %v6606_v54 }
 0x493   :  { %v6586_v39 = vunpack.i.h.bf16 %v11340_v52  ;;  %v6585_v46 = vunpack.i.l.bf16 %v11340_v52  ;;  %v6595_v58 = vunpack.i.l.bf16 %v11363_v34  ;;  %v6611_v54 = vunpack.i.h.bf16 %v11423_v48 }
 0x494   :  { %v11497_v26 = vpop.permute.xlu0 %6638  ;;  %v4532_v24 = vsel %vm2924_vm8, %v4500_v45, %v6625_v9  ;;  %6918 = vrot.lane.b32.xlu1 %v6917_v19, %s7067_s23  ;;  %v3597_v9 = vrot.slane %v11284_v7, 1  ;;  %v6610_v17 = vunpack.i.l.bf16 %v11423_v48  ;;  %v3596_v52 = vrot.slane %v11436_v33, 1 }
 0x495   :  { %6913 = vrot.lane.b32.xlu0 %v6912_v18, %s7066_s22  ;;  %v6640_v32 = vunpack.i.l.bf16 %v11497_v26  ;;  %v11507_v5 = vpop.permute.xlu1 %6643  ;;  %v6596_v18 = vunpack.i.h.bf16 %v11363_v34  ;;  %v4376_v45 = vsel %vm2761_vm0, %v10805_v50, %v6566_v29  ;;  %v13211_v34 = vpack.c.bf16 %v10925_v2, %v10930_v51 }
 0x496   :  { %v3599_v31 = vrot.slane %v11420_v25, 1  ;;  %v3598_v51 = vsel %vm250_vm2, %v3596_v52, %v3597_v9 }
 0x497   :  { %v4564_v28 = vsel %vm2957_vm9, %v4532_v24, %v6640_v32  ;;  %v4375_v32 = vsel %vm2761_vm0, %v10793_v47, %v6565_v15  ;;  %v6942_v24 = vpack.i.bf16 %v11284_v7, %v11436_v33  ;;  %v6626_v15 = vunpack.i.h.bf16 %v11478_v41 }
 0x498   :  { %v11522_v59 = vpop.permute.xlu0 %6648  ;;  %v4596_v13 = vpack.c.bf16 %v4564_v28, %v4563_v14  ;;  %6928 = vrot.lane.b32.xlu1 %v6917_v19, %s7069_s25  ;;  %v4405_v48 = vsel %vm2793_vm15, %v4375_v32, %v6585_v46  ;;  %v4406_v19 = vsel %vm2793_vm15, %v4376_v45, %v6586_v39  ;;  %v6616_v39 = vunpack.i.h.bf16 %v11414_v61 }
 0x499   :  { %6923 = vrot.lane.b32.xlu0 %v6922_v38, %s7068_s24  ;;  %v11528_v11 = vpop.permute.xlu1 %6653  ;;  %v4437_v50 = vsel %vm2825_vm5, %v4405_v48, %v6595_v58  ;;  %v4438_v47 = vsel %vm2825_vm5, %v4406_v19, %v6596_v18  ;;  %v6615_v46 = vunpack.i.l.bf16 %v11414_v61  ;;  %v3600_v18 = vsel %vm250_vm2, %v3597_v9, %v3599_v31 }
 0x49a   :  { %4795 = vmatmul.mubr.bf16.gmra.mrb[28].mxu0 %v4596_v13  ;;  %v4469_v25 = vsel %vm2858_vm6, %v4437_v50, %v6610_v17  ;;  %v4470_v29 = vsel %vm2858_vm6, %v4438_v47, %v6611_v54  ;;  %v6937_v13 = vpack.i.bf16 %v11436_v33, %v11227_v22  ;;  %v6947_v58 = vpack.i.bf16 %v3598_v51, %v11444_v40 }
 0x49b   :  { %5248 = vmatprep.mubr.msk.bf16.mxu0 %vm2761_vm0, %v13211_v34  ;;  %v4501_v41 = vsel %vm2891_vm7, %v4469_v25, %v6615_v46  ;;  %v4502_v17 = vsel %vm2891_vm7, %v4470_v29, %v6616_v39  ;;  %v11580_v40 = vsel %vm91_vm1, 0.0, %v11329_v27  ;;  %v6952_v9 = vpack.i.bf16 %v3600_v18, %v3598_v51 }
 0x49c   :  { %v11547_v14 = vpop.permute.xlu0 %6663  ;;  %6943 = vrot.lane.b32.xlu1 %v6942_v24, %s7065_s21  ;;  %v3602_v31 = vrot.slane %v11351_v57, 1  ;;  %v6957_v48 = vpack.i.bf16 %v11466_v49, %v11488_v55  ;;  %v3601_v50 = vrot.slane %v11580_v40, 1  ;;  %v11593_v27 = vsel %vm91_vm1, %v11331_v6, 0.0 }
 0x49d   :  { %6933 = vrot.lane.b32.xlu0 %v6922_v38, %s7070_s26  ;;  %v11552_v2 = vpop.permute.xlu1 %6658  ;;  %v6641_v38 = vunpack.i.h.bf16 %v11497_v26  ;;  %v4533_v26 = vsel %vm2924_vm8, %v4501_v41, %v6626_v15  ;;  %v13212_v47 = vpack.c.bf16 %v10968_v53, %v10973_v37  ;;  %v3604_v25 = vrot.slane %v11593_v27, 1 }
 0x49e   :  { %v6660_v28 = vunpack.i.l.bf16 %v11552_v2  ;;  %v3603_v51 = vsel %vm250_vm2, %v3601_v50, %v3602_v31  ;;  %v6600_v29 = vunpack.i.l.bf16 %v11396_v23  ;;  %v6601_v6 = vunpack.i.h.bf16 %v11396_v23 }
 0x49f   :  { %v4565_v32 = vsel %vm2957_vm9, %v4533_v26, %v6641_v38  ;;  %v6621_v53 = vunpack.i.h.bf16 %v11452_v1  ;;  %v6977_v39 = vpack.i.bf16 %v3603_v51, %v3600_v18  ;;  %v6972_v46 = vpack.i.bf16 %v11580_v40, %v11284_v7 }
 0x4a0   :  { %v11567_v54 = vpop.permute.xlu0 %6673  ;;  %v4534_v45 = vsel %vm2924_vm8, %v4502_v17, %v6660_v28  ;;  %6948 = vrot.lane.b32.xlu1 %v6947_v58, %s7066_s22  ;;  %v6620_v28 = vunpack.i.l.bf16 %v11452_v1  ;;  %v11615_v38 = vsel %vm250_vm2, %v3602_v31, %v3604_v25  ;;  %v4378_v58 = vsel %vm2761_vm0, %v10886_v43, %v6601_v6 }
 0x4a1   :  { %6938 = vrot.lane.b32.xlu0 %v6937_v13, %s7064_s2  ;;  %v6675_v52 = vunpack.i.l.bf16 %v11567_v54  ;;  %v11573_v61 = vpop.permute.xlu1 %6668  ;;  %v4377_v13 = vsel %vm2761_vm0, %v10879_v10, %v6600_v29  ;;  %v6631_v1 = vunpack.i.h.bf16 %v11440_v8  ;;  %v4408_v41 = vsel %vm2793_vm15, %v4378_v58, %v6621_v53 }
 0x4a2   :  { %v4407_v18 = vsel %vm2793_vm15, %v4377_v13, %v6620_v28  ;;  %v6646_v17 = vunpack.i.h.bf16 %v11507_v5  ;;  %v6982_v26 = vpack.i.bf16 %v11351_v57, %v11580_v40  ;;  %v6651_v43 = vunpack.i.h.bf16 %v11522_v59 }
 0x4a3   :  { %v4566_v34 = vsel %vm2957_vm9, %v4534_v45, %v6675_v52  ;;  %v6645_v52 = vunpack.i.l.bf16 %v11507_v5  ;;  %v6630_v45 = vunpack.i.l.bf16 %v11440_v8  ;;  %v6676_v8 = vunpack.i.h.bf16 %v11567_v54 }
 0x4a4   :  { %v4598_v19 = vpack.c.bf16 %v4566_v34, %v4565_v32  ;;  %6958 = vrot.lane.b32.xlu1 %v6957_v48, %s7068_s24  ;;  %v11610_v37 = vpop.permute.xlu0 %6683  ;;  %v11638_v32 = vpack.i.bf16 %v11615_v38, %v3603_v51  ;;  %v6661_v34 = vunpack.i.h.bf16 %v11552_v2  ;;  %v6636_v54 = vunpack.i.h.bf16 %v11471_v12 }
 0x4a5   :  { %6953 = vrot.lane.b32.xlu0 %v6952_v9, %s7067_s23  ;;  %v11588_v24 = vpop.permute.xlu1 %6678  ;;  %v6635_v53 = vunpack.i.l.bf16 %v11471_v12  ;;  %v6656_v13 = vunpack.i.h.bf16 %v11528_v11  ;;  %v6655_v58 = vunpack.i.l.bf16 %v11528_v11  ;;  %v13214_v11 = vld [vmem:[#allocation21_spill] sm:$0xff] }
 0x4a6   :  { %4803 = vmatmul.mubr.bf16.gmra.mrb[32].mxu0 %v4598_v19  ;;  %v4440_v19 = vsel %vm2825_vm5, %v4408_v41, %v6631_v1  ;;  %v6666_v41 = vunpack.i.h.bf16 %v11547_v14 }
 0x4a7   :  { %5249 = vmatprep.mubr.msk.bf16.mxu0 %vm2761_vm0, %v13212_v47  ;;  %v4472_v50 = vsel %vm2858_vm6, %v4440_v19, %v6646_v17  ;;  %v6665_v17 = vunpack.i.l.bf16 %v11547_v14 }
 0x4a8   :  { %6968 = vrot.lane.b32.xlu1 %v6957_v48, %s7070_s26  ;;  %v4439_v48 = vsel %vm2825_vm5, %v4407_v18, %v6630_v45  ;;  %v4504_v51 = vsel %vm2891_vm7, %v4472_v50, %v6651_v43  ;;  %v4380_v45 = vsel %vm2761_vm0, %v10917_v62, %v6636_v54  ;;  %v13213_v43 = vld [vmem:[#allocation65_spill] sm:$0xff] }
 0x4a9   :  { %6963 = vrot.lane.b32.xlu0 %v6952_v9, %s7069_s25  ;;  %v11604_v15 = vpop.permute.xlu1 %6688  ;;  %v6650_v9 = vunpack.i.l.bf16 %v11522_v59  ;;  %v4471_v59 = vsel %vm2858_vm6, %v4439_v48, %v6645_v52  ;;  %v6681_v52 = vunpack.i.h.bf16 %v11588_v24  ;;  %v4410_v14 = vsel %vm2793_vm15, %v4380_v45, %v6656_v13 }
 0x4ab   :  { %v4503_v47 = vsel %vm2891_vm7, %v4471_v59, %v6650_v9  ;;  %v4379_v9 = vsel %vm2761_vm0, %v13213_v43, %v6635_v53 }
 0x4ac   :  { %6973 = vrot.lane.b32.xlu1 %v6972_v46, %s7064_s2  ;;  %v4535_v29 = vsel %vm2924_vm8, %v4503_v47, %v6661_v34  ;;  %v13215_v34 = vld [vmem:[#allocation19_spill] sm:$0xff]  ;;  %v4409_v48 = vsel %vm2793_vm15, %v4379_v9, %v6655_v58  ;;  %v6671_v9 = vunpack.i.h.bf16 %v11573_v61 }
 0x4ad   :  { %6978 = vrot.lane.b32.xlu0 %v6977_v39, %s7066_s22  ;;  %v11620_v23 = vpop.permute.xlu1 %6693  ;;  %v4567_v39 = vsel %vm2957_vm9, %v4535_v29, %v6676_v8  ;;  %v4442_v8 = vsel %vm2825_vm5, %v4410_v14, %v6666_v41  ;;  %v6685_v29 = vunpack.i.l.bf16 %v11610_v37 }
 0x4ae   :  { %v6695_v31 = vunpack.i.l.bf16 %v11620_v23  ;;  %v4474_v59 = vsel %vm2858_vm6, %v4442_v8, %v6681_v52  ;;  %v6696_v50 = vunpack.i.h.bf16 %v11620_v23  ;;  %v13217_v52 = vld [vmem:[#allocation72_spill] sm:$0xff] }
 0x4af   :  { %v11630_v10 = vpop.permute.xlu0 %6698 }
 0x4b0   :  { %6988 = vrot.lane.b32.xlu1 %v11638_v32, %s7067_s23  ;;  %v4536_v6 = vsel %vm2924_vm8, %v4504_v51, %v6695_v31  ;;  %v13216_v31 = vpack.c.bf16 %v13214_v11, %v13215_v34  ;;  %v6670_v11 = vunpack.i.l.bf16 %v11573_v61  ;;  %v6691_v34 = vunpack.i.h.bf16 %v11604_v15  ;;  %v13221_v61 = vld [vmem:[#allocation64_spill] sm:$0xff] }
 0x4b1   :  { %6983 = vrot.lane.b32.xlu0 %v6982_v26, %s7065_s21  ;;  %v11643_v5 = vpop.permute.xlu1 %6708  ;;  %v6680_v26 = vunpack.i.l.bf16 %v11588_v24  ;;  %v4441_v24 = vsel %vm2825_vm5, %v4409_v48, %v6665_v17  ;;  %v6701_v14 = vunpack.i.h.bf16 %v11630_v10 }
 0x4b2   :  { %v6711_v8 = vunpack.i.h.bf16 %v11643_v5 }
 0x4b3   :  { %v6704_v2 = vpop.permute.xlu0 %6703  ;;  %v4473_v62 = vsel %vm2858_vm6, %v4441_v24, %v6680_v26  ;;  %v13218_v26 = vld [vmem:[#allocation56_spill] sm:$0xff]  ;;  %v6700_v24 = vunpack.i.l.bf16 %v11630_v10 }
 0x4b4   :  { %v6705_v25 = vunpack.i.l.bf16 %v6704_v2  ;;  %v4505_v53 = vsel %vm2891_vm7, %v4473_v62, %v6685_v29  ;;  %v13219_v45 = vpack.c.bf16 %v13217_v52, %v13218_v26  ;;  %v6710_v62 = vunpack.i.l.bf16 %v11643_v5 }
 0x4b5   :  { %v11656_v28 = vpop.permute.xlu1 %6718  ;;  %v4537_v13 = vsel %vm2924_vm8, %v4505_v53, %v6696_v50  ;;  %v13220_v50 = vld [vmem:[#allocation46_spill] sm:$0xff] }
 0x4b6   :  { %v4568_v46 = vsel %vm2957_vm9, %v4536_v6, %v6705_v25  ;;  %v6686_v25 = vunpack.i.h.bf16 %v11610_v37  ;;  %v6706_v6 = vunpack.i.h.bf16 %v6704_v2 }
 0x4b7   :  { %v11664_v1 = vpop.permute.xlu0 %6713  ;;  %v4600_v18 = vpack.c.bf16 %v4568_v46, %v4567_v39 }
 0x4b8   :  { %v4506_v39 = vsel %vm2891_vm7, %v4474_v59, %v6686_v25  ;;  %v4569_v23 = vsel %vm2957_vm9, %v4537_v13, %v6706_v6  ;;  %v4381_v25 = vsel %vm2761_vm0, %v13221_v61, %v6670_v11  ;;  %v6715_v29 = vunpack.i.l.bf16 %v11664_v1 }
 0x4b9   :  { %4811 = vmatmul.mubr.bf16.gmra.mrb[36].mxu0 %v4600_v18  ;;  %v6729_v12 = vpop.permute.xlu1 %6728 }
 0x4ba   :  { %5250 = vmatprep.mubr.msk.bf16.mxu0 %vm2761_vm0, %v13216_v31  ;;  %v6730_v47 = vunpack.i.l.bf16 %v6729_v12  ;;  %v6690_v31 = vunpack.i.l.bf16 %v11604_v15  ;;  %v6716_v15 = vunpack.i.h.bf16 %v11664_v1  ;;  %v6731_v53 = vunpack.i.h.bf16 %v6729_v12 }
 0x4bb   :  { %v11680_v19 = vpop.permute.xlu0 %6723 }
 0x4bc   :  { %v4538_v58 = vsel %vm2924_vm8, %v4506_v39, %v6730_v47  ;;  %v4382_v47 = vsel %vm2761_vm0, %v13220_v50, %v6671_v9  ;;  %v4411_v6 = vsel %vm2793_vm15, %v4381_v25, %v6690_v31  ;;  %v6720_v31 = vunpack.i.l.bf16 %v11656_v28 }
 0x4bd   :  { %v11687_v51 = vpop.permute.xlu1 %6733  ;;  %v4412_v10 = vsel %vm2793_vm15, %v4382_v47, %v6691_v34  ;;  %v4443_v13 = vsel %vm2825_vm5, %v4411_v6, %v6700_v24  ;;  %v6721_v34 = vunpack.i.h.bf16 %v11656_v28  ;;  %v13223_v28 = vld [vmem:[#allocation70_spill] sm:$0xff] }
 0x4be   :  { %v6736_v50 = vunpack.i.h.bf16 %v11687_v51  ;;  %v6735_v47 = vunpack.i.l.bf16 %v11687_v51 }
 0x4bf   :  { %v6739_v54 = vpop.permute.xlu0 %6738 }
 0x4c0   :  { %v6740_v46 = vunpack.i.l.bf16 %v6739_v54 }
 0x4c1   :  { %v11695_v18 = vpop.permute.xlu1 %6748 }
 0x4c2   :  { %v4570_v41 = vsel %vm2957_vm9, %v4538_v58, %v6740_v46  ;;  %v4444_v46 = vsel %vm2825_vm5, %v4412_v10, %v6701_v14  ;;  %v6741_v58 = vunpack.i.h.bf16 %v6739_v54  ;;  %v13225_v10 = vld [vmem:[#allocation50_spill] sm:$0xff] }
 0x4c3   :  { %v11699_v17 = vpop.permute.xlu0 %6743  ;;  %v4602_v37 = vpack.c.bf16 %v4570_v41, %v4569_v23  ;;  %v4475_v23 = vsel %vm2858_vm6, %v4443_v13, %v6710_v62  ;;  %v4476_v41 = vsel %vm2858_vm6, %v4444_v46, %v6711_v8  ;;  %v6726_v8 = vunpack.i.h.bf16 %v11680_v19 }
 0x4c4   :  { %v4507_v1 = vsel %vm2891_vm7, %v4475_v23, %v6715_v29  ;;  %v4508_v52 = vsel %vm2891_vm7, %v4476_v41, %v6716_v15  ;;  %v6725_v62 = vunpack.i.l.bf16 %v11680_v19  ;;  %v6746_v25 = vunpack.i.h.bf16 %v11699_v17  ;;  %v13222_v29 = vld [vmem:[#allocation49_spill] sm:$0xff]  ;;  %v13226_v19 = vld [vmem:[#allocation6_spill] sm:$0xff] }
 0x4c5   :  { %4819 = vmatmul.mubr.bf16.gmra.mrb[40].mxu0 %v4602_v37  ;;  %v11701_v2 = vpop.permute.xlu1 %6758  ;;  %v4539_v12 = vsel %vm2924_vm8, %v4507_v1, %v6731_v53  ;;  %v6745_v15 = vunpack.i.l.bf16 %v11699_v17  ;;  %v13224_v6 = vpack.c.bf16 %v13222_v29, %v13223_v28  ;;  %v4384_v53 = vsel %vm2761_vm0, %v13225_v10, %v6721_v34  ;;  %v13228_v10 = vld [vmem:[#allocation71_spill] sm:$0xff] }
 0x4c6   :  { %5251 = vmatprep.mubr.msk.bf16.mxu0 %vm2761_vm0, %v13219_v45  ;;  %v4571_v11 = vsel %vm2957_vm9, %v4539_v12, %v6741_v58  ;;  %v4414_v51 = vsel %vm2793_vm15, %v4384_v53, %v6726_v8  ;;  %v6750_v12 = vunpack.i.l.bf16 %v11695_v18 }
 0x4c7   :  { %v11707_v43 = vpop.permute.xlu0 %6753  ;;  %v4446_v17 = vsel %vm2825_vm5, %v4414_v51, %v6736_v50 }
 0x4c8   :  { %v4478_v1 = vsel %vm2858_vm6, %v4446_v17, %v6746_v25  ;;  %v6756_v29 = vunpack.i.h.bf16 %v11707_v43 }
 0x4c9   :  { %v11713_v48 = vpop.permute.xlu1 %6763 }
 0x4ca   :  { %v6765_v39 = vunpack.i.l.bf16 %v11713_v48 }
 0x4cb   :  { %v11719_v59 = vpop.permute.xlu0 %6768 }
 0x4cc   :  { %v4540_v45 = vsel %vm2924_vm8, %v4508_v52, %v6765_v39  ;;  %v4383_v39 = vsel %vm2761_vm0, %v13226_v19, %v6720_v31  ;;  %v6766_v52 = vunpack.i.h.bf16 %v11713_v48  ;;  %v13230_v19 = vld [vmem:[#allocation23_spill] sm:$0xff]  ;;  %v6770_v51 = vunpack.i.l.bf16 %v11719_v59 }
 0x4cd   :  { %v11730_v5 = vpop.permute.xlu1 %6778  ;;  %v4413_v13 = vsel %vm2793_vm15, %v4383_v39, %v6725_v62 }
 0x4ce   :  { %v4445_v58 = vsel %vm2825_vm5, %v4413_v13, %v6735_v47  ;;  %v6760_v13 = vunpack.i.l.bf16 %v11701_v2 }
 0x4cf   :  { %v6774_v37 = vpop.permute.xlu0 %6773  ;;  %v4477_v41 = vsel %vm2858_vm6, %v4445_v58, %v6745_v15  ;;  %v6780_v58 = vunpack.i.l.bf16 %v11730_v5 }
 0x4d0   :  { %v6775_v26 = vunpack.i.l.bf16 %v6774_v37  ;;  %v4509_v34 = vsel %vm2891_vm7, %v4477_v41, %v6750_v12  ;;  %v13231_v41 = vld [vmem:[#allocation60_spill] sm:$0xff] }
 0x4d1   :  { %v11740_v9 = vpop.permute.xlu1 %6788  ;;  %v4541_v62 = vsel %vm2924_vm8, %v4509_v34, %v6766_v52 }
 0x4d2   :  { %v4572_v54 = vsel %vm2957_vm9, %v4540_v45, %v6775_v26  ;;  %v6751_v26 = vunpack.i.h.bf16 %v11695_v18  ;;  %v6776_v45 = vunpack.i.h.bf16 %v6774_v37  ;;  %v6755_v37 = vunpack.i.l.bf16 %v11707_v43 }
 0x4d3   :  { %v11746_v14 = vpop.permute.xlu0 %6783  ;;  %v4604_v24 = vpack.c.bf16 %v4572_v54, %v4571_v11  ;;  %v4386_v43 = vsel %vm2761_vm0, %v13231_v41, %v6756_v29 }
 0x4d4   :  { %v4573_v48 = vsel %vm2957_vm9, %v4541_v62, %v6776_v45  ;;  %v4385_v39 = vsel %vm2761_vm0, %v13230_v19, %v6755_v37  ;;  %v6785_v52 = vunpack.i.l.bf16 %v11746_v14  ;;  %v6781_v45 = vunpack.i.h.bf16 %v11730_v5 }
 0x4d5   :  { %4827 = vmatmul.mubr.bf16.gmra.mrb[44].mxu0 %v4604_v24  ;;  %v11752_v61 = vpop.permute.xlu1 %6803  ;;  %v4510_v24 = vsel %vm2891_vm7, %v4478_v1, %v6751_v26  ;;  %v6771_v1 = vunpack.i.h.bf16 %v11719_v59  ;;  %v6761_v26 = vunpack.i.h.bf16 %v11701_v2  ;;  %v4415_v12 = vsel %vm2793_vm15, %v4385_v39, %v6760_v13 }
 0x4d6   :  { %5252 = vmatprep.mubr.msk.bf16.mxu0 %vm2761_vm0, %v13224_v6  ;;  %v13227_v6 = vld [vmem:[#allocation74_spill] sm:$0xff] }
 0x4d7   :  { %v11764_v46 = vpop.permute.xlu0 %6793  ;;  %v13229_v53 = vpack.c.bf16 %v13227_v6, %v13228_v10  ;;  %v4416_v62 = vsel %vm2793_vm15, %v4386_v43, %v6761_v26  ;;  %v6791_v6 = vunpack.i.h.bf16 %v11740_v9  ;;  %v6790_v10 = vunpack.i.l.bf16 %v11740_v9  ;;  %v13232_v43 = vld [vmem:[#allocation67_spill] sm:$0xff] }
 0x4d8   :  { %v4448_v2 = vsel %vm2825_vm5, %v4416_v62, %v6771_v1  ;;  %v6796_v39 = vunpack.i.h.bf16 %v11764_v46 }
 0x4d9   :  { %v6809_v23 = vpop.permute.xlu1 %6808  ;;  %v4480_v5 = vsel %vm2858_vm6, %v4448_v2, %v6781_v45  ;;  %v4388_v1 = vsel %vm2761_vm0, %v13232_v43, %v6791_v6 }
 0x4da   :  { %v6810_v31 = vunpack.i.l.bf16 %v6809_v23  ;;  %v6811_v29 = vunpack.i.h.bf16 %v6809_v23  ;;  %v4418_v26 = vsel %vm2793_vm15, %v4388_v1, %v6796_v39 }
 0x4db   :  { %v6799_v11 = vpop.permute.xlu0 %6798 }
 0x4dc   :  { %v6800_v54 = vunpack.i.l.bf16 %v6799_v11 }
 0x4dd   :  { %v11777_v8 = vpop.permute.xlu1 %6818 }
 0x4de   :  { %v4542_v50 = vsel %vm2924_vm8, %v4510_v24, %v6800_v54  ;;  %v6801_v54 = vunpack.i.h.bf16 %v6799_v11  ;;  %v6786_v24 = vunpack.i.h.bf16 %v11746_v14  ;;  %v6820_v30 = vunpack.i.l.bf16 %v11777_v8 }
 0x4df   :  { %v11781_v47 = vpop.permute.xlu0 %6813  ;;  %v4574_v18 = vsel %vm2957_vm9, %v4542_v50, %v6810_v31  ;;  %v4447_v31 = vsel %vm2825_vm5, %v4415_v12, %v6770_v51  ;;  %v6795_v51 = vunpack.i.l.bf16 %v11764_v46 }
 0x4e0   :  { %v4606_v25 = vpack.c.bf16 %v4574_v18, %v4573_v48  ;;  %v4479_v50 = vsel %vm2858_vm6, %v4447_v31, %v6780_v58  ;;  %v6816_v46 = vunpack.i.h.bf16 %v11781_v47  ;;  %v6815_v45 = vunpack.i.l.bf16 %v11781_v47 }
 0x4e1   :  { %v11786_v15 = vpop.permute.xlu1 %6828  ;;  %v4511_v18 = vsel %vm2891_vm7, %v4479_v50, %v6785_v52  ;;  %v13233_v52 = vld [vmem:[#allocation12_spill] sm:$0xff]  ;;  %v6806_v31 = vunpack.i.h.bf16 %v11752_v61 }
 0x4e2   :  { %4835 = vmatmul.mubr.bf16.gmra.mrb[48].mxu0 %v4606_v25  ;;  %v4543_v11 = vsel %vm2924_vm8, %v4511_v18, %v6801_v54  ;;  %v4512_v25 = vsel %vm2891_vm7, %v4480_v5, %v6786_v24  ;;  %v4387_v9 = vsel %vm2761_vm0, %v13233_v52, %v6790_v10  ;;  %v6805_v24 = vunpack.i.l.bf16 %v11752_v61 }
 0x4e3   :  { %v11789_v28 = vpop.permute.xlu0 %6823  ;;  %5253 = vmatprep.mubr.msk.bf16.mxu0 %vm2761_vm0, %v13229_v53  ;;  %v4575_v13 = vsel %vm2957_vm9, %v4543_v11, %v6811_v29  ;;  %v4417_v12 = vsel %vm2793_vm15, %v4387_v9, %v6795_v51  ;;  %v6821_v5 = vunpack.i.h.bf16 %v11777_v8  ;;  %v6830_v9 = vunpack.i.l.bf16 %v11786_v15 }
 0x4e4   :  { %v4449_v50 = vsel %vm2825_vm5, %v4417_v12, %v6805_v24  ;;  %v6825_v8 = vunpack.i.l.bf16 %v11789_v28  ;;  %v6831_v44 = vunpack.i.h.bf16 %v11786_v15 }
 0x4e5   :  { %v6834_v17 = vpop.permute.xlu1 %6833  ;;  %v4481_v2 = vsel %vm2858_vm6, %v4449_v50, %v6815_v45 }
 0x4e6   :  { %v6835_v59 = vunpack.i.l.bf16 %v6834_v17  ;;  %v6836_v18 = vunpack.i.h.bf16 %v6834_v17  ;;  %v4513_v61 = vsel %vm2891_vm7, %v4481_v2, %v6820_v30 }
 0x4e7   :  { %v11807_v34 = vpop.permute.xlu0 %6838 }
 0x4e8   :  { %v4544_v53 = vsel %vm2924_vm8, %v4512_v25, %v6835_v59  ;;  %v4450_v59 = vsel %vm2825_vm5, %v4418_v26, %v6806_v31  ;;  %v4545_v6 = vsel %vm2924_vm8, %v4513_v61, %v6836_v18  ;;  %v6840_v1 = vunpack.i.l.bf16 %v11807_v34  ;;  %v13235_v26 = vld [vmem:[#allocation32_spill] sm:$0xff] }
 0x4e9   :  { %v11813_v48 = vpop.permute.xlu1 %6848  ;;  %v4482_v47 = vsel %vm2858_vm6, %v4450_v59, %v6816_v46  ;;  %v6841_v12 = vunpack.i.h.bf16 %v11807_v34 }
 0x4ea   :  { %v6850_v46 = vunpack.i.l.bf16 %v11813_v48  ;;  %v6851_v16 = vunpack.i.h.bf16 %v11813_v48 }
 0x4eb   :  { %v6844_v37 = vpop.permute.xlu0 %6843 }
 0x4ec   :  { %v6845_v14 = vunpack.i.l.bf16 %v6844_v37  ;;  %v6846_v4 = vunpack.i.h.bf16 %v6844_v37 }
 0x4ed   :  { %v11823_v19 = vpop.permute.xlu1 %6858 }
 0x4ee   :  { %v4576_v58 = vsel %vm2957_vm9, %v4544_v53, %v6845_v14  ;;  %v4514_v14 = vsel %vm2891_vm7, %v4482_v47, %v6821_v5  ;;  %v4577_v17 = vsel %vm2957_vm9, %v4545_v6, %v6846_v4  ;;  %v6860_v30 = vunpack.i.l.bf16 %v11823_v19 }
 0x4ef   :  { %v11829_v41 = vpop.permute.xlu0 %6853  ;;  %v4608_v23 = vpack.c.bf16 %v4576_v58, %v4575_v13  ;;  %v6826_v13 = vunpack.i.h.bf16 %v11789_v28 }
 0x4f0   :  { %v6856_v31 = vunpack.i.h.bf16 %v11829_v41 }
 0x4f1   :  { %4843 = vmatmul.mubr.bf16.gmra.mrb[52].mxu0 %v4608_v23  ;;  %v11839_v54 = vpop.permute.xlu1 %6873  ;;  %v13234_v23 = vld [vmem:[#allocation22_spill] sm:$0xff]  ;;  %v4390_v28 = vsel %vm2761_vm0, %v13235_v26, %v6826_v13 }
 0x4f2   :  { %5254 = vmatprep.mubr.msk.bf16.mxu0 %vm2761_vm0, %v4611_v3  ;;  %v4389_v43 = vsel %vm2761_vm0, %v13234_v23, %v6825_v8  ;;  %v4420_v59 = vsel %vm2793_vm15, %v4390_v28, %v6831_v44  ;;  %v6876_v26 = vunpack.i.h.bf16 %v11839_v54  ;;  %v6875_v28 = vunpack.i.l.bf16 %v11839_v54 }
 0x4f3   :  { %v11847_v62 = vpop.permute.xlu0 %6863  ;;  %v4419_v45 = vsel %vm2793_vm15, %v4389_v43, %v6830_v9  ;;  %v4452_v47 = vsel %vm2825_vm5, %v4420_v59, %v6841_v12 }
 0x4f4   :  { %v4451_v2 = vsel %vm2825_vm5, %v4419_v45, %v6840_v1  ;;  %v4484_v18 = vsel %vm2858_vm6, %v4452_v47, %v6851_v16  ;;  %v6866_v61 = vunpack.i.h.bf16 %v11847_v62 }
 0x4f5   :  { %v4483_v15 = vsel %vm2858_vm6, %v4451_v2, %v6850_v46  ;;  %v4516_v4 = vsel %vm2891_vm7, %v4484_v18, %v6856_v31 }
 0x4f6   :  { %v6879_v11 = vpop.permute.xlu1 %6878 }
 0x4f7   :  { %v6869_v3 = vpop.permute.xlu0 %6868  ;;  %v6880_v29 = vunpack.i.l.bf16 %v6879_v11 }
 0x4f8   :  { %v6870_v25 = vunpack.i.l.bf16 %v6869_v3  ;;  %v6871_v24 = vunpack.i.h.bf16 %v6869_v3 }
 0x4fa   :  { %v4546_v10 = vsel %vm2924_vm8, %v4514_v14, %v6870_v25  ;;  %v11864_v37 = vpop.permute.xlu1 %6888  ;;  %v6881_v14 = vunpack.i.h.bf16 %v6879_v11 }
 0x4fb   :  { %v11859_v53 = vpop.permute.xlu0 %6883  ;;  %v4578_v39 = vsel %vm2957_vm9, %v4546_v10, %v6880_v29  ;;  %v6865_v29 = vunpack.i.l.bf16 %v11847_v62  ;;  %v6891_v45 = vunpack.i.h.bf16 %v11864_v37  ;;  %v6890_v18 = vunpack.i.l.bf16 %v11864_v37 }
 0x4fc   :  { %v4610_v51 = vpack.c.bf16 %v4578_v39, %v4577_v17  ;;  %v6885_v1 = vunpack.i.l.bf16 %v11859_v53  ;;  %v3676_v37 = vrot.slane %v11580_v40, 2 }
 0x4fe   :  { %4851 = vmatmul.mubr.bf16.gmra.mrb[56].mxu0 %v4610_v51  ;;  %v11876_v52 = vpop.permute.xlu1 %6898  ;;  %v13236_v51 = vld [vmem:[#allocation14_spill] sm:$0xff] }
 0x4ff   :  { %v11867_v58 = vpop.permute.xlu0 %6893  ;;  %5255 = vmatprep.mubr.msk.bf16.mxu0 %vm2761_vm0, %v4613_v42  ;;  %v6855_v42 = vunpack.i.l.bf16 %v11829_v41  ;;  %v6861_v41 = vunpack.i.h.bf16 %v11823_v19  ;;  %v4391_v13 = vsel %vm2761_vm0, %v13236_v51, %v6860_v30 }
 0x500   :  { %v4421_v11 = vsel %vm2793_vm15, %v4391_v13, %v6865_v29 }
 0x501   :  { %v4515_v5 = vsel %vm2891_vm7, %v4483_v15, %v6855_v42  ;;  %v4392_v19 = vsel %vm2761_vm0, %v11139_v0, %v6861_v41  ;;  %v6886_v0 = vunpack.i.h.bf16 %v11859_v53  ;;  %v4453_v44 = vsel %vm2825_vm5, %v4421_v11, %v6875_v28 }
 0x502   :  { %v11892_v34 = vpop.permute.xlu1 %6903  ;;  %v4547_v3 = vsel %vm2924_vm8, %v4515_v5, %v6871_v24  ;;  %v4422_v62 = vsel %vm2793_vm15, %v4392_v19, %v6866_v61  ;;  %v4485_v31 = vsel %vm2858_vm6, %v4453_v44, %v6885_v1  ;;  %v6901_v1 = vunpack.i.h.bf16 %v11876_v52 }
 0x503   :  { %v11888_v50 = vpop.permute.xlu0 %6908  ;;  %v6905_v48 = vunpack.i.l.bf16 %v11892_v34  ;;  %v4579_v39 = vsel %vm2957_vm9, %v4547_v3, %v6881_v14  ;;  %v4454_v16 = vsel %vm2825_vm5, %v4422_v62, %v6876_v26  ;;  %v6906_v47 = vunpack.i.h.bf16 %v11892_v34 }
 0x504   :  { %v4486_v2 = vsel %vm2858_vm6, %v4454_v16, %v6886_v0  ;;  %v4517_v34 = vsel %vm2891_vm7, %v4485_v31, %v6890_v18 }
 0x505   :  { %v4548_v17 = vsel %vm2924_vm8, %v4516_v4, %v6905_v48  ;;  %v4518_v29 = vsel %vm2891_vm7, %v4486_v2, %v6891_v45  ;;  %v4549_v14 = vsel %vm2924_vm8, %v4517_v34, %v6906_v47 }
 0x506   :  { %v11905_v6 = vpop.permute.xlu1 %6918 }
 0x507   :  { %v6914_v25 = vpop.permute.xlu0 %6913  ;;  %v6920_v44 = vunpack.i.l.bf16 %v11905_v6 }
 0x508   :  { %v6915_v10 = vunpack.i.l.bf16 %v6914_v25  ;;  %v6916_v5 = vunpack.i.h.bf16 %v6914_v25  ;;  %v6896_v25 = vunpack.i.h.bf16 %v11867_v58 }
 0x50a   :  { %v4580_v8 = vsel %vm2957_vm9, %v4548_v17, %v6915_v10  ;;  %v6929_v9 = vpop.permute.xlu1 %6928  ;;  %v3677_v17 = vrot.slane %v11351_v57, 2  ;;  %v4581_v19 = vsel %vm2957_vm9, %v4549_v14, %v6916_v5 }
 0x50b   :  { %v11914_v23 = vpop.permute.xlu0 %6923  ;;  %v4612_v43 = vpack.c.bf16 %v4580_v8, %v4579_v39  ;;  %v6931_v12 = vunpack.i.h.bf16 %v6929_v9  ;;  %v6930_v46 = vunpack.i.l.bf16 %v6929_v9  ;;  %v3679_v39 = vrot.slane %v11593_v27, 2 }
 0x50c   :  { %v6900_v9 = vunpack.i.l.bf16 %v11876_v52  ;;  %v4394_v27 = vsel %vm2761_vm0, %v11181_v60, %v6896_v25  ;;  %v6925_v45 = vunpack.i.l.bf16 %v11914_v23  ;;  %v3678_v25 = vsel %vm328_vm4, %v3676_v37, %v3677_v17 }
 0x50d   :  { %4859 = vmatmul.mubr.bf16.gmra.mrb[60].mxu0 %v4612_v43  ;;  %v4396_v53 = vsel %vm2761_vm0, %v11227_v22, %v6931_v12  ;;  %v4395_v20 = vsel %vm2761_vm0, %v11406_v21, %v6930_v46  ;;  %v6895_v21 = vunpack.i.l.bf16 %v11867_v58  ;;  %v6910_v12 = vunpack.i.l.bf16 %v11888_v50 }
 0x50e   :  { %5256 = vmatprep.mubr.msk.bf16.mxu0 %vm2761_vm0, %v4615_v35  ;;  %v6944_v54 = vpop.permute.xlu1 %6943  ;;  %v3680_v34 = vsel %vm328_vm4, %v3677_v17, %v3679_v39  ;;  %v7053_v39 = vld [vmem:[%s12430_s4] ss:$0 sm:$0xff] }
 0x50f   :  { %v6934_v42 = vpop.permute.xlu0 %6933  ;;  %v6946_v36 = vunpack.i.h.bf16 %v6944_v54  ;;  %v6945_v35 = vunpack.i.l.bf16 %v6944_v54  ;;  %v4393_v13 = vsel %vm2761_vm0, %v11317_v63, %v6895_v21 }
 0x510   :  { %v6936_v24 = vunpack.i.h.bf16 %v6934_v42  ;;  %v6935_v59 = vunpack.i.l.bf16 %v6934_v42  ;;  %v4423_v63 = vsel %vm2793_vm15, %v4393_v13, %v6900_v9  ;;  %v6911_v42 = vunpack.i.h.bf16 %v11888_v50 }
 0x511   :  { %v4455_v55 = vsel %vm2825_vm5, %v4423_v63, %v6910_v12 }
 0x512   :  { %v4426_v15 = vsel %vm2793_vm15, %v4396_v53, %v6936_v24  ;;  %v4425_v48 = vsel %vm2793_vm15, %v4395_v20, %v6935_v59  ;;  %v11944_v4 = vpop.permute.xlu1 %6948  ;;  %v6921_v59 = vunpack.i.h.bf16 %v11905_v6  ;;  %v4487_v2 = vsel %vm2858_vm6, %v4455_v55, %v6920_v44 }
 0x513   :  { %v11939_v41 = vpop.permute.xlu0 %6938  ;;  %v4457_v22 = vsel %vm2825_vm5, %v4425_v48, %v6945_v35  ;;  %v4458_v30 = vsel %vm2825_vm5, %v4426_v15, %v6946_v36  ;;  %v6950_v61 = vunpack.i.l.bf16 %v11944_v4  ;;  %v4424_v35 = vsel %vm2793_vm15, %v4394_v27, %v6901_v1 }
 0x514   :  { %v6940_v3 = vunpack.i.l.bf16 %v11939_v41  ;;  %v6941_v53 = vunpack.i.h.bf16 %v11939_v41  ;;  %v4456_v48 = vsel %vm2825_vm5, %v4424_v35, %v6911_v42  ;;  %v6997_v42 = vpack.i.bf16 %v3680_v34, %v3678_v25 }
 0x516   :  { %v4550_v10 = vsel %vm2924_vm8, %v4518_v29, %v6940_v3  ;;  %v6959_v43 = vpop.permute.xlu1 %6958  ;;  %v6951_v3 = vunpack.i.h.bf16 %v11944_v4 }
 0x517   :  { %v6954_v8 = vpop.permute.xlu0 %6953  ;;  %v4582_v51 = vsel %vm2957_vm9, %v4550_v10, %v6950_v61  ;;  %v6961_v26 = vunpack.i.h.bf16 %v6959_v43  ;;  %v6960_v28 = vunpack.i.l.bf16 %v6959_v43 }
 0x518   :  { %v6956_v62 = vunpack.i.h.bf16 %v6954_v8  ;;  %v6955_v11 = vunpack.i.l.bf16 %v6954_v8  ;;  %v4614_v58 = vpack.c.bf16 %v4582_v51, %v4581_v19  ;;  %v4619_v51 = vpack.c.bf16 %v3680_v34, %v3678_v25 }
 0x51a   :  { %v4489_v46 = vsel %vm2858_vm6, %v4457_v22, %v6955_v11  ;;  %v4490_v0 = vsel %vm2858_vm6, %v4458_v30, %v6956_v62  ;;  %4867 = vmatmul.mubr.bf16.gmra.mrb[64].mxu0 %v4614_v58  ;;  %v6969_v31 = vpop.permute.xlu1 %6968 }
 0x51b   :  { %v6964_v16 = vpop.permute.xlu0 %6963  ;;  %5257 = vmatprep.mubr.msk.bf16.mxu0 %vm2761_vm0, %v4617_v56  ;;  %v4521_v52 = vsel %vm2891_vm7, %v4489_v46, %v6960_v28  ;;  %v11975_v60 = vsel %vm2891_vm7, %v4490_v0, %v6961_v26  ;;  %v6971_v20 = vunpack.i.h.bf16 %v6969_v31  ;;  %v6970_v49 = vunpack.i.l.bf16 %v6969_v31 }
 0x51c   :  { %v6966_v54 = vunpack.i.h.bf16 %v6964_v16  ;;  %v6965_v24 = vunpack.i.l.bf16 %v6964_v16  ;;  %v6926_v56 = vunpack.i.h.bf16 %v11914_v23  ;;  %v4519_v23 = vsel %vm2891_vm7, %v4487_v2, %v6925_v45  ;;  %v13237_v2 = vld [vmem:[#allocation31_spill] sm:$0xff] }
 0x51d   :  { %v4551_v41 = vsel %vm2924_vm8, %v4519_v23, %v6941_v53 }
 0x51e   :  { %v4398_v36 = vsel %vm2761_vm0, %v11284_v7, %v6966_v54  ;;  %v4397_v50 = vsel %vm2761_vm0, %v11436_v33, %v6965_v24  ;;  %v6974_v18 = vpop.permute.xlu1 %6973  ;;  %v4488_v33 = vsel %vm2858_vm6, %v4456_v48, %v6921_v59  ;;  %v4583_v14 = vsel %vm2957_vm9, %v4551_v41, %v6951_v3 }
 0x51f   :  { %v6979_v47 = vpop.permute.xlu0 %6978  ;;  %v11990_v6 = vsel %vm2793_vm15, %v4397_v50, %v6970_v49  ;;  %v11993_v15 = vsel %vm2793_vm15, %v4398_v36, %v6971_v20  ;;  %v6976_v22 = vunpack.i.h.bf16 %v6974_v18  ;;  %v6975_v30 = vunpack.i.l.bf16 %v6974_v18 }
 0x520   :  { %v6981_v7 = vunpack.i.h.bf16 %v6979_v47  ;;  %v6980_v5 = vunpack.i.l.bf16 %v6979_v47  ;;  %v4520_v21 = vsel %vm2891_vm7, %v4488_v33, %v6926_v56  ;;  %v12039_v56 = vld [vmem:[%s12432_s6] ss:$0 sm:$0xff]  ;;  %v13238_v47 = vmax.f32 %v13237_v2, 0.0 }
 0x521   :  { %v4552_v61 = vsel %vm2924_vm8, %v4520_v21, %v6975_v30  ;;  %v4553_v29 = vsel %vm2924_vm8, %v4521_v52, %v6976_v22 }
 0x522   :  { %v4584_v10 = vsel %vm2957_vm9, %v4552_v61, %v6980_v5  ;;  %v12008_v8 = vsel %vm2957_vm9, %v4553_v29, %v6981_v7  ;;  %v13239_v5 = vld [vmem:[#allocation35_spill] sm:$0xff] }
 0x523   :  { %v4616_v19 = vpack.c.bf16 %v4584_v10, %v4583_v14  ;;  %v13240_v33 = vmax.f32 %v13239_v5, 0.0  ;;  %v13241_v10 = vld [vmem:[#allocation40_spill] sm:$0xff] }
 0x525   :  { %4875 = vmatmul.mubr.bf16.gmra.mrb[68].mxu0 %v4616_v19  ;;  %v13242_v19 = vmax.f32 %v13241_v10, 0.0 }
 0x526   :  { %5258 = vmatprep.mubr.msk.bf16.mxu0 %vm2761_vm0, %v4619_v51 }
 0x536   :  { %v3303_v4 = vpop.f32.mrb[72].mxu1 }
 0x537   :  { %v3304_v13 = vadd.f32 %v7053_v39, %v3303_v4  ;;  %v3305_v43 = vpop.f32.mrb[73].mxu1 }
 0x538   :  { %v3306_v37 = vpop.f32.mrb[74].mxu1  ;;  %v13243_v43 = vld [vmem:[#allocation38_spill] sm:$0xff] }
 0x539   :  { %v3340_v17 = vmax.f32 %v3304_v13, 0.0  ;;  %v3307_v62 = vadd.f32 %v7053_v39, %v3306_v37  ;;  %v3308_v11 = vpop.f32.mrb[75].mxu1  ;;  %v13244_v37 = vmax.f32 %v13243_v43, 0.0 }
 0x53b   :  { %v3419_v58 = vrot.slane %v3340_v17, 7  ;;  %v3341_v1 = vmax.f32 %v3307_v62, 0.0 }
 0x53d   :  { %v3484_v9 = vsel %vm91_vm1, 0.0, %v3419_v58  ;;  %v3420_v26 = vrot.slane %v3341_v1, 7 }
 0x53e   :  { %v6992_v28 = vpack.i.bf16 %v3484_v9, %v11351_v57  ;;  %v3683_v27 = vrot.slane %v3484_v9, 1  ;;  %v3688_v12 = vrot.slane %v3484_v9, 2 }
 0x53f   :  { %v3421_v46 = vsel %vm91_vm1, %v3419_v58, %v3420_v26  ;;  %v3500_v0 = vsel %vm91_vm1, %v3420_v26, 0.0 }
 0x540   :  { %v3684_v63 = vrot.slane %v3421_v46, 1  ;;  %v3686_v44 = vrot.slane %v3500_v0, 1  ;;  %v3689_v16 = vrot.slane %v3421_v46, 2  ;;  %v3691_v52 = vrot.slane %v3500_v0, 2  ;;  %6993 = vrot.lane.b32.xlu0 %v6992_v28, %s7064_s2  ;;  %v13245_v0 = vld [vmem:[#allocation10_spill] sm:$0xff] }
 0x541   :  { %v7017_v45 = vpack.i.bf16 %v3421_v46, %v3484_v9 }
 0x542   :  { %v3685_v31 = vsel %vm250_vm2, %v3683_v27, %v3684_v63  ;;  %v3687_v54 = vsel %vm250_vm2, %v3684_v63, %v3686_v44  ;;  %v12022_v24 = vsel %vm328_vm4, %v3688_v12, %v3689_v16  ;;  %v12025_v59 = vsel %vm328_vm4, %v3689_v16, %v3691_v52 }
 0x543   :  { %v7002_v53 = vpack.i.bf16 %v3685_v31, %v11615_v38  ;;  %v7022_v20 = vpack.i.bf16 %v3687_v54, %v3685_v31  ;;  %v7027_v49 = vpack.i.bf16 %v12025_v59, %v12022_v24  ;;  %v4621_v55 = vpack.c.bf16 %v12025_v59, %v12022_v24 }
 0x544   :  { %6998 = vrot.lane.b32.xlu0 %v6997_v42, %s7068_s24  ;;  %v13246_v63 = vmax.f32 %v13245_v0, 0.0 }
 0x545   :  { %7003 = vrot.lane.b32.xlu1 %v7002_v53, %s7066_s22 }
 0x548   :  { %4339 = vrot.lane.b32.xlu0 %v3687_v54, %s7066_s22 }
 0x549   :  { %4249 = vrot.lane.b32.xlu1 %v3421_v46, %s7064_s2 }
 0x54c   :  { %7013 = vrot.lane.b32.xlu0 %v6997_v42, %s7070_s26 }
 0x54d   :  { %7008 = vrot.lane.b32.xlu1 %v11638_v32, %s7069_s25 }
 0x550   :  { %7023 = vrot.lane.b32.xlu0 %v7022_v20, %s7067_s23 }
 0x551   :  { %v4780_v38 = vpop.f32.mrb[20].mxu0  ;;  %7018 = vrot.lane.b32.xlu1 %v7017_v45, %s7065_s21  ;;  %v13247_v45 = vld [vmem:[#allocation29_spill] sm:$0xff] }
 0x552   :  { %v4781_v36 = vadd.f32 %v12039_v56, %v4780_v38  ;;  %v4782_v50 = vpop.f32.mrb[21].mxu0  ;;  %v13248_v31 = vmax.f32 %v13247_v45, 0.0 }
 0x553   :  { %v4783_v35 = vpop.f32.mrb[22].mxu0 }
 0x554   :  { %v4907_v48 = vadd.f32 %v4781_v36, %v13238_v47  ;;  %v4784_v23 = vadd.f32 %v12039_v56, %v4783_v35  ;;  %v4785_v18 = vpop.f32.mrb[23].mxu0 }
 0x555   :  { %7028 = vrot.lane.b32.xlu1 %v7027_v49, %s7068_s24 }
 0x556   :  { %v4939_v7 = vmax.f32 %v4907_v48, 0.0  ;;  %v4908_v41 = vadd.f32 %v4784_v23, %v13240_v33  ;;  %v13249_v23 = vld [vmem:[#allocation44_spill] sm:$0xff] }
 0x557   :  { %v13250_v18 = vmax.f32 %v13249_v23, 0.0 }
 0x558   :  { %v5003_v32 = vrot.slane %v4939_v7, 7  ;;  %v4940_v22 = vmax.f32 %v4908_v41, 0.0 }
 0x55a   :  { %v5099_v30 = vsel %vm91_vm1, 0.0, %v5003_v32  ;;  %v5004_v21 = vrot.slane %v4940_v22, 7 }
 0x55b   :  { %5135 = vst.msk [vmem:[%s12426_s7 + $0x18] sm:$0xff] %vm2761_vm0, %v5099_v30 }
 0x55c   :  { %v5005_v3 = vsel %vm91_vm1, %v5003_v32, %v5004_v21  ;;  %v5115_v34 = vsel %vm91_vm1, %v5004_v21, 0.0  ;;  %v13251_v32 = vld [vmem:[#allocation18_spill] sm:$0xff] }
 0x55d   :  { %5136 = vst.msk [vmem:[%s12426_s7 + $0x20] sm:$0xff] %vm2761_vm0, %v5005_v3  ;;  %v4788_v61 = vpop.f32.mrb[24].mxu0  ;;  %v13252_v22 = vmax.f32 %v13251_v32, 0.0 }
 0x55e   :  { %5137 = vst.msk [vmem:[%s12426_s7 + $0x28] sm:$0x3] %vm5133_vm3, %v5115_v34  ;;  %v4789_v29 = vadd.f32 %v12039_v56, %v4788_v61  ;;  %v4790_v25 = vpop.f32.mrb[25].mxu0 }
 0x55f   :  { %v4791_v14 = vpop.f32.mrb[26].mxu0 }
 0x560   :  { %v4909_v51 = vadd.f32 %v4789_v29, %v13242_v19  ;;  %v4792_v4 = vadd.f32 %v12039_v56, %v4791_v14  ;;  %v4793_v39 = vpop.f32.mrb[27].mxu0 }
 0x562   :  { %v4941_v13 = vmax.f32 %v4909_v51, 0.0  ;;  %v4910_v17 = vadd.f32 %v4792_v4, %v13244_v37  ;;  %v13253_v4 = vld [vmem:[#allocation5_spill] sm:$0xff] }
 0x563   :  { %v13254_v39 = vmax.f32 %v13253_v4, 0.0 }
 0x564   :  { %v5006_v62 = vrot.slane %v4941_v13, 7  ;;  %v4942_v11 = vmax.f32 %v4910_v17, 0.0 }
 0x566   :  { %v5100_v58 = vsel %vm91_vm1, 0.0, %v5006_v62  ;;  %v5007_v1 = vrot.slane %v4942_v11, 7 }
 0x567   :  { %5138 = vst.msk [vmem:[%s12426_s7 + $0x30] sm:$0xff] %vm2761_vm0, %v5100_v58 }
 0x568   :  { %v5008_v9 = vsel %vm91_vm1, %v5006_v62, %v5007_v1  ;;  %v5116_v26 = vsel %vm91_vm1, %v5007_v1, 0.0  ;;  %v13255_v62 = vld [vmem:[#allocation51_spill] sm:$0xff] }
 0x569   :  { %5139 = vst.msk [vmem:[%s12426_s7 + $0x38] sm:$0xff] %vm2761_vm0, %v5008_v9  ;;  %v13256_v11 = vmax.f32 %v13255_v62, 0.0 }
 0x56a   :  { %5140 = vst.msk [vmem:[%s12426_s7 + $0x40] sm:$0x3] %vm5133_vm3, %v5116_v26 }
 0x56d   :  { %v4796_v28 = vpop.f32.mrb[28].mxu0 }
 0x56e   :  { %v4797_v27 = vadd.f32 %v12039_v56, %v4796_v28  ;;  %v4798_v12 = vpop.f32.mrb[29].mxu0 }
 0x56f   :  { %v4799_v46 = vpop.f32.mrb[30].mxu0 }
 0x570   :  { %v4911_v44 = vadd.f32 %v4797_v27, %v13246_v63  ;;  %v4800_v16 = vadd.f32 %v12039_v56, %v4799_v46  ;;  %v4801_v52 = vpop.f32.mrb[31].mxu0 }
 0x572   :  { %v4943_v42 = vmax.f32 %v4911_v44, 0.0  ;;  %v4912_v54 = vadd.f32 %v4800_v16, %v13248_v31  ;;  %v13257_v16 = vld [vmem:[#allocation39_spill] sm:$0xff] }
 0x573   :  { %v13258_v52 = vmax.f32 %v13257_v16, 0.0  ;;  %v13267_v16 = vld [vmem:[#allocation26_spill] sm:$0xff] }
 0x574   :  { %v5009_v53 = vrot.slane %v4943_v42, 7  ;;  %v4944_v20 = vmax.f32 %v4912_v54, 0.0 }
 0x576   :  { %v5101_v49 = vsel %vm91_vm1, 0.0, %v5009_v53  ;;  %v5010_v38 = vrot.slane %v4944_v20, 7 }
 0x577   :  { %5141 = vst.msk [vmem:[%s12426_s7 + $0x48] sm:$0xff] %vm2761_vm0, %v5101_v49 }
 0x578   :  { %v5011_v36 = vsel %vm91_vm1, %v5009_v53, %v5010_v38  ;;  %v5117_v50 = vsel %vm91_vm1, %v5010_v38, 0.0  ;;  %v13259_v53 = vld [vmem:[#allocation54_spill] sm:$0xff] }
 0x579   :  { %5142 = vst.msk [vmem:[%s12426_s7 + $0x50] sm:$0xff] %vm2761_vm0, %v5011_v36  ;;  %v4804_v35 = vpop.f32.mrb[32].mxu0  ;;  %v13260_v20 = vmax.f32 %v13259_v53, 0.0 }
 0x57a   :  { %5143 = vst.msk [vmem:[%s12426_s7 + $0x58] sm:$0x3] %vm5133_vm3, %v5117_v50  ;;  %v4805_v2 = vadd.f32 %v12039_v56, %v4804_v35  ;;  %v4806_v47 = vpop.f32.mrb[33].mxu0 }
 0x57b   :  { %v4807_v48 = vpop.f32.mrb[34].mxu0 }
 0x57c   :  { %v4913_v7 = vadd.f32 %v4805_v2, %v13250_v18  ;;  %v4808_v5 = vadd.f32 %v12039_v56, %v4807_v48  ;;  %v4809_v33 = vpop.f32.mrb[35].mxu0 }
 0x57e   :  { %v4945_v41 = vmax.f32 %v4913_v7, 0.0  ;;  %v4914_v30 = vadd.f32 %v4808_v5, %v13252_v22  ;;  %v13261_v5 = vld [vmem:[#allocation17_spill] sm:$0xff] }
 0x57f   :  { %v13262_v33 = vmax.f32 %v13261_v5, 0.0 }
 0x580   :  { %v5012_v21 = vrot.slane %v4945_v41, 7  ;;  %v4946_v3 = vmax.f32 %v4914_v30, 0.0 }
 0x582   :  { %v5102_v34 = vsel %vm91_vm1, 0.0, %v5012_v21  ;;  %v5013_v61 = vrot.slane %v4946_v3, 7 }
 0x583   :  { %5144 = vst.msk [vmem:[%s12426_s7 + $0x60] sm:$0xff] %vm2761_vm0, %v5102_v34 }
 0x584   :  { %v5014_v29 = vsel %vm91_vm1, %v5012_v21, %v5013_v61  ;;  %v5118_v25 = vsel %vm91_vm1, %v5013_v61, 0.0  ;;  %v13263_v21 = vld [vmem:[#allocation27_spill] sm:$0xff] }
 0x585   :  { %5145 = vst.msk [vmem:[%s12426_s7 + $0x68] sm:$0xff] %vm2761_vm0, %v5014_v29  ;;  %v13264_v3 = vmax.f32 %v13263_v21, 0.0 }
 0x586   :  { %5146 = vst.msk [vmem:[%s12426_s7 + $0x70] sm:$0x3] %vm5133_vm3, %v5118_v25  ;;  %v6984_v25 = vpop.permute.xlu0 %6983 }
 0x587   :  { %v6985_v4 = vunpack.i.l.bf16 %v6984_v25 }
 0x58c   :  { %v4812_v14 = vpop.f32.mrb[36].mxu0 }
 0x58d   :  { %v4813_v10 = vadd.f32 %v12039_v56, %v4812_v14  ;;  %v4814_v19 = vpop.f32.mrb[37].mxu0 }
 0x58e   :  { %v4815_v51 = vpop.f32.mrb[38].mxu0 }
 0x58f   :  { %v4915_v13 = vadd.f32 %v4813_v10, %v13254_v39  ;;  %v4816_v43 = vadd.f32 %v12039_v56, %v4815_v51  ;;  %v4817_v37 = vpop.f32.mrb[39].mxu0  ;;  %v6989_v39 = vpop.permute.xlu1 %6988 }
 0x591   :  { %v4947_v17 = vmax.f32 %v4915_v13, 0.0  ;;  %v4916_v58 = vadd.f32 %v4816_v43, %v13256_v11  ;;  %v6986_v43 = vunpack.i.h.bf16 %v6984_v25 }
 0x593   :  { %v5015_v1 = vrot.slane %v4947_v17, 7  ;;  %v4948_v9 = vmax.f32 %v4916_v58, 0.0  ;;  %v4459_v58 = vsel %vm2825_vm5, %v11990_v6, %v6985_v4 }
 0x595   :  { %v5103_v26 = vsel %vm91_vm1, 0.0, %v5015_v1  ;;  %v5016_v28 = vrot.slane %v4948_v9, 7 }
 0x596   :  { %5147 = vst.msk [vmem:[%s12426_s7 + $0x78] sm:$0xff] %vm2761_vm0, %v5103_v26 }
 0x597   :  { %v5017_v27 = vsel %vm91_vm1, %v5015_v1, %v5016_v28  ;;  %v5119_v12 = vsel %vm91_vm1, %v5016_v28, 0.0  ;;  %v13265_v1 = vld [vmem:[#allocation47_spill] sm:$0xff] }
 0x598   :  { %5148 = vst.msk [vmem:[%s12426_s7 + $0x80] sm:$0xff] %vm2761_vm0, %v5017_v27  ;;  %v4820_v46 = vpop.f32.mrb[40].mxu0  ;;  %v13266_v9 = vmax.f32 %v13265_v1, 0.0 }
 0x599   :  { %5149 = vst.msk [vmem:[%s12426_s7 + $0x88] sm:$0x3] %vm5133_vm3, %v5119_v12  ;;  %v4821_v0 = vadd.f32 %v12039_v56, %v4820_v46  ;;  %v4822_v63 = vpop.f32.mrb[41].mxu0  ;;  %v6990_v12 = vunpack.i.l.bf16 %v6989_v39 }
 0x59a   :  { %v4823_v44 = vpop.f32.mrb[42].mxu0 }
 0x59b   :  { %v4917_v42 = vadd.f32 %v4821_v0, %v13258_v52  ;;  %v4824_v45 = vadd.f32 %v12039_v56, %v4823_v44  ;;  %v4825_v31 = vpop.f32.mrb[43].mxu0  ;;  %v4460_v0 = vsel %vm2825_vm5, %v11993_v15, %v6986_v43  ;;  %v13268_v52 = vmax.f32 %v13267_v16, 0.0 }
 0x59c   :  { %v4491_v6 = vsel %vm2858_vm6, %v4459_v58, %v6990_v12 }
 0x59d   :  { %v4949_v54 = vmax.f32 %v4917_v42, 0.0  ;;  %v4918_v49 = vadd.f32 %v4824_v45, %v13260_v20  ;;  %v6991_v45 = vunpack.i.h.bf16 %v6989_v39 }
 0x59f   :  { %v5018_v38 = vrot.slane %v4949_v54, 7  ;;  %v4950_v36 = vmax.f32 %v4918_v49, 0.0 }
 0x5a1   :  { %v5104_v50 = vsel %vm91_vm1, 0.0, %v5018_v38  ;;  %v5019_v35 = vrot.slane %v4950_v36, 7 }
 0x5a2   :  { %5150 = vst.msk [vmem:[%s12426_s7 + $0x90] sm:$0xff] %vm2761_vm0, %v5104_v50 }
 0x5a3   :  { %v5020_v2 = vsel %vm91_vm1, %v5018_v38, %v5019_v35  ;;  %v5120_v47 = vsel %vm91_vm1, %v5019_v35, 0.0 }
 0x5a4   :  { %5151 = vst.msk [vmem:[%s12426_s7 + $0x98] sm:$0xff] %vm2761_vm0, %v5020_v2  ;;  %v4492_v2 = vsel %vm2858_vm6, %v4460_v0, %v6991_v45 }
 0x5a5   :  { %5152 = vst.msk [vmem:[%s12426_s7 + $0xa0] sm:$0x3] %vm5133_vm3, %v5120_v47 }
 0x5a8   :  { %v4828_v48 = vpop.f32.mrb[44].mxu0 }
 0x5a9   :  { %v4829_v23 = vadd.f32 %v12039_v56, %v4828_v48  ;;  %v4830_v18 = vpop.f32.mrb[45].mxu0 }
 0x5aa   :  { %v4831_v7 = vpop.f32.mrb[46].mxu0 }
 0x5ab   :  { %v4919_v41 = vadd.f32 %v4829_v23, %v13262_v33  ;;  %v4832_v32 = vadd.f32 %v12039_v56, %v4831_v7  ;;  %v4833_v22 = vpop.f32.mrb[47].mxu0 }
 0x5ad   :  { %v4951_v30 = vmax.f32 %v4919_v41, 0.0  ;;  %v4920_v34 = vadd.f32 %v4832_v32, %v13264_v3 }
 0x5af   :  { %v5021_v61 = vrot.slane %v4951_v30, 7  ;;  %v4952_v29 = vmax.f32 %v4920_v34, 0.0 }
 0x5b1   :  { %v5105_v14 = vsel %vm91_vm1, 0.0, %v5021_v61  ;;  %v5022_v10 = vrot.slane %v4952_v29, 7 }
 0x5b2   :  { %5153 = vst.msk [vmem:[%s12426_s7 + $0xa8] sm:$0xff] %vm2761_vm0, %v5105_v14  ;;  %v6994_v37 = vpop.permute.xlu0 %6993 }
 0x5b3   :  { %v5023_v19 = vsel %vm91_vm1, %v5021_v61, %v5022_v10  ;;  %v5121_v51 = vsel %vm91_vm1, %v5022_v10, 0.0  ;;  %v6995_v46 = vunpack.i.l.bf16 %v6994_v37  ;;  %v6996_v20 = vunpack.i.h.bf16 %v6994_v37 }
 0x5b4   :  { %5154 = vst.msk [vmem:[%s12426_s7 + $0xb0] sm:$0xff] %vm2761_vm0, %v5023_v19 }
 0x5b5   :  { %5155 = vst.msk [vmem:[%s12426_s7 + $0xb8] sm:$0x3] %vm5133_vm3, %v5121_v51  ;;  %v4836_v13 = vpop.f32.mrb[48].mxu0  ;;  %v4554_v50 = vsel %vm2924_vm8, %v11975_v60, %v6995_v46  ;;  %v13273_v46 = vld [vmem:[#allocation48_spill] sm:$0xff] }
 0x5b6   :  { %v4837_v17 = vadd.f32 %v12039_v56, %v4836_v13  ;;  %v4838_v62 = vpop.f32.mrb[49].mxu0  ;;  %v6999_v44 = vpop.permute.xlu0 %6998 }
 0x5b7   :  { %v4839_v11 = vpop.f32.mrb[50].mxu0  ;;  %v7001_v31 = vunpack.i.h.bf16 %v6999_v44  ;;  %v7000_v54 = vunpack.i.l.bf16 %v6999_v44  ;;  %v7004_v53 = vpop.permute.xlu1 %7003 }
 0x5b8   :  { %v4921_v26 = vadd.f32 %v4837_v17, %v13266_v9  ;;  %v4840_v28 = vadd.f32 %v12039_v56, %v4839_v11  ;;  %v4841_v27 = vpop.f32.mrb[51].mxu0  ;;  %v7005_v36 = vunpack.i.l.bf16 %v7004_v53  ;;  %v7006_v35 = vunpack.i.h.bf16 %v7004_v53  ;;  %v13269_v17 = vld [vmem:[#allocation34_spill] sm:$0xff] }
 0x5b9   :  { %v4523_v15 = vsel %vm2891_vm7, %v4491_v6, %v7000_v54  ;;  %v4524_v60 = vsel %vm2891_vm7, %v4492_v2, %v7001_v31  ;;  %v13270_v62 = vmax.f32 %v13269_v17, 0.0  ;;  %v13275_v2 = vld [vmem:[#allocation3_spill] sm:$0xff] }
 0x5ba   :  { %v4953_v63 = vmax.f32 %v4921_v26, 0.0  ;;  %v4922_v42 = vadd.f32 %v4840_v28, %v13268_v52  ;;  %v4340_v23 = vpop.permute.xlu0 %4339  ;;  %v4586_v18 = vsel %vm2957_vm9, %v4554_v50, %v7005_v36  ;;  %v4555_v7 = vsel %vm2924_vm8, %v4523_v15, %v6996_v20  ;;  %v13271_v28 = vld [vmem:[#allocation45_spill] sm:$0xff] }
 0x5bb   :  { %v4250_v5 = vpop.permute.xlu1 %4249  ;;  %v4618_v33 = vpack.c.bf16 %v4586_v18, %v12008_v8  ;;  %v4587_v8 = vsel %vm2957_vm9, %v4555_v7, %v7006_v35  ;;  %v13272_v27 = vmax.f32 %v13271_v28, 0.0 }
 0x5bc   :  { %v5024_v49 = vrot.slane %v4953_v63, 7  ;;  %v4954_v38 = vmax.f32 %v4922_v42, 0.0  ;;  %v4556_v22 = vsel %vm2924_vm8, %v4524_v60, %v4250_v5 }
 0x5bd   :  { %v4588_v30 = vsel %vm2957_vm9, %v4556_v22, %v4340_v23  ;;  %4883 = vmatmul.mubr.bf16.gmra.mrb[72].mxu0 %v4618_v33  ;;  %v13276_v33 = vld [vmem:[#allocation25_spill] sm:$0xff] }
 0x5be   :  { %v5106_v47 = vsel %vm91_vm1, 0.0, %v5024_v49  ;;  %v5025_v48 = vrot.slane %v4954_v38, 7  ;;  %v7014_v21 = vpop.permute.xlu0 %7013  ;;  %5259 = vmatprep.mubr.msk.bf16.mxu0 %vm2761_vm0, %v4621_v55  ;;  %v4620_v3 = vpack.c.bf16 %v4588_v30, %v4587_v8  ;;  %v13274_v38 = vld [vmem:[#allocation7_spill] sm:$0xff] }
 0x5bf   :  { %5156 = vst.msk [vmem:[%s12426_s7 + $0xc0] sm:$0xff] %vm2761_vm0, %v5106_v47  ;;  %v7009_v34 = vpop.permute.xlu1 %7008  ;;  %v7016_v39 = vunpack.i.h.bf16 %v7014_v21  ;;  %v7015_v13 = vunpack.i.l.bf16 %v7014_v21  ;;  %v13278_v21 = vld [vmem:[#allocation36_spill] sm:$0xff] }
 0x5c0   :  { %v5026_v41 = vsel %vm91_vm1, %v5024_v49, %v5025_v48  ;;  %v5122_v32 = vsel %vm91_vm1, %v5025_v48, 0.0  ;;  %v7011_v61 = vunpack.i.h.bf16 %v7009_v34  ;;  %v7010_v29 = vunpack.i.l.bf16 %v7009_v34 }
 0x5c1   :  { %5157 = vst.msk [vmem:[%s12426_s7 + $0xc8] sm:$0xff] %vm2761_vm0, %v5026_v41  ;;  %v13277_v41 = vmax.f32 %v13276_v33, 0.0  ;;  %v13290_v33 = vld [vmem:[#allocation63_spill] sm:$0xff] }
 0x5c2   :  { %5158 = vst.msk [vmem:[%s12426_s7 + $0xd0] sm:$0x3] %vm5133_vm3, %v5122_v32  ;;  %v4400_v19 = vsel %vm2761_vm0, %v11351_v57, %v7011_v61  ;;  %v4399_v51 = vsel %vm2761_vm0, %v11580_v40, %v7010_v29  ;;  %v7024_v55 = vpop.permute.xlu0 %7023 }
 0x5c3   :  { %v7019_v24 = vpop.permute.xlu1 %7018  ;;  %v4429_v1 = vsel %vm2793_vm15, %v4399_v51, %v7015_v13  ;;  %v4430_v57 = vsel %vm2793_vm15, %v4400_v19, %v7016_v39  ;;  %v7026_v0 = vunpack.i.h.bf16 %v7024_v55  ;;  %v7025_v63 = vunpack.i.l.bf16 %v7024_v55 }
 0x5c4   :  { %v4844_v25 = vpop.f32.mrb[52].mxu0  ;;  %v7021_v43 = vunpack.i.h.bf16 %v7019_v24  ;;  %v7020_v37 = vunpack.i.l.bf16 %v7019_v24  ;;  %v13280_v24 = vld [vmem:[#allocation33_spill] sm:$0xff] }
 0x5c5   :  { %v4845_v14 = vadd.f32 %v12039_v56, %v4844_v25  ;;  %v4846_v10 = vpop.f32.mrb[53].mxu0  ;;  %4891 = vmatmul.mubr.bf16.gmra.mrb[76].mxu0 %v4620_v3  ;;  %v13279_v3 = vmax.f32 %v13278_v21, 0.0 }
 0x5c6   :  { %v4847_v4 = vpop.f32.mrb[54].mxu0  ;;  %v4461_v40 = vsel %vm2825_vm5, %v4429_v1, %v7020_v37  ;;  %v4462_v9 = vsel %vm2825_vm5, %v4430_v57, %v7021_v43  ;;  %5260 = vmatprep.mubr.msk.bf16.mxu0 %vm2761_vm0, %v13273_v46 }
 0x5c7   :  { %v4849_v59 = vpop.f32.mrb[55].mxu0  ;;  %v4923_v11 = vadd.f32 %v4845_v14, %v13270_v62  ;;  %v4848_v58 = vadd.f32 %v12039_v56, %v4847_v4  ;;  %v7029_v44 = vpop.permute.xlu1 %7028  ;;  %v4493_v31 = vsel %vm2858_vm6, %v4461_v40, %v7025_v63  ;;  %v4494_v54 = vsel %vm2858_vm6, %v4462_v9, %v7026_v0  ;;  %v13282_v62 = vld [vmem:[#allocation52_spill] sm:$0xff]  ;;  %v13284_v63 = vld [vmem:[#allocation37_spill] sm:$0xff] }
 0x5c8   :  { %v7031_v42 = vunpack.i.h.bf16 %v7029_v44  ;;  %v7030_v45 = vunpack.i.l.bf16 %v7029_v44  ;;  %v13281_v59 = vmax.f32 %v13280_v24, 0.0  ;;  %v13285_v44 = vmax.f32 %v13284_v63, 0.0  ;;  %v13294_v24 = vld [vmem:[#allocation53_spill] sm:$0xff] }
 0x5c9   :  { %v4955_v26 = vmax.f32 %v4923_v11, 0.0  ;;  %v4924_v12 = vadd.f32 %v4848_v58, %v13272_v27  ;;  %v13283_v11 = vmax.f32 %v13282_v62, 0.0  ;;  %v13298_v63 = vld [vmem:[#allocation73_spill] sm:$0xff] }
 0x5ca   :  { %v4525_v20 = vsel %vm2891_vm7, %v4493_v31, %v7030_v45  ;;  %v4526_v49 = vsel %vm2891_vm7, %v4494_v54, %v7031_v42  ;;  %v13286_v31 = vld [vmem:[#allocation42_spill] sm:$0xff] }
 0x5cb   :  { %v5027_v16 = vrot.slane %v4955_v26, 7  ;;  %v4956_v52 = vmax.f32 %v4924_v12, 0.0  ;;  %v4557_v36 = vsel %vm2924_vm8, %v4525_v20, %v13274_v38  ;;  %v4558_v50 = vsel %vm2924_vm8, %v4526_v49, %v13274_v38 }
 0x5cc   :  { %v4589_v47 = vsel %vm2957_vm9, %v4557_v36, %v13275_v2  ;;  %v4590_v48 = vsel %vm2957_vm9, %v4558_v50, %v13275_v2  ;;  %v13287_v54 = vmax.f32 %v13286_v31, 0.0 }
 0x5cd   :  { %v5107_v6 = vsel %vm91_vm1, 0.0, %v5027_v16  ;;  %v5028_v53 = vrot.slane %v4956_v52, 7  ;;  %v4622_v23 = vpack.c.bf16 %v4590_v48, %v4589_v47  ;;  %v13288_v48 = vld [vmem:[#allocation41_spill] sm:$0xff] }
 0x5ce   :  { %5159 = vst.msk [vmem:[%s12426_s7 + $0xd8] sm:$0xff] %vm2761_vm0, %v5107_v6 }
 0x5cf   :  { %v5029_v15 = vsel %vm91_vm1, %v5027_v16, %v5028_v53  ;;  %v5123_v35 = vsel %vm91_vm1, %v5028_v53, 0.0  ;;  %4899 = vmatmul.mubr.bf16.gmra.mrb[80].mxu0 %v4622_v23  ;;  %v13289_v23 = vmax.f32 %v13288_v48, 0.0  ;;  %v13302_v48 = vld [vmem:[#allocation69_spill] sm:$0xff] }
 0x5d0   :  { %5160 = vst.msk [vmem:[%s12426_s7 + $0xe0] sm:$0xff] %vm2761_vm0, %v5029_v15 }
 0x5d1   :  { %5161 = vst.msk [vmem:[%s12426_s7 + $0xe8] sm:$0x3] %vm5133_vm3, %v5123_v35  ;;  %v4852_v18 = vpop.f32.mrb[56].mxu0 }
 0x5d2   :  { %v4853_v7 = vadd.f32 %v12039_v56, %v4852_v18  ;;  %v4854_v5 = vpop.f32.mrb[57].mxu0 }
 0x5d3   :  { %v4855_v60 = vpop.f32.mrb[58].mxu0 }
 0x5d4   :  { %v4925_v32 = vadd.f32 %v4853_v7, %v13277_v41  ;;  %v4856_v22 = vadd.f32 %v12039_v56, %v4855_v60  ;;  %v4857_v30 = vpop.f32.mrb[59].mxu0  ;;  %v13291_v41 = vmax.f32 %v13290_v33, 0.0 }
 0x5d6   :  { %v4957_v8 = vmax.f32 %v4925_v32, 0.0  ;;  %v4926_v34 = vadd.f32 %v4856_v22, %v13279_v3 }
 0x5d8   :  { %v5030_v61 = vrot.slane %v4957_v8, 7  ;;  %v4958_v29 = vmax.f32 %v4926_v34, 0.0 }
 0x5da   :  { %v5108_v25 = vsel %vm91_vm1, 0.0, %v5030_v61  ;;  %v5031_v14 = vrot.slane %v4958_v29, 7 }
 0x5db   :  { %5162 = vst.msk [vmem:[%s12426_s7 + $0xf0] sm:$0xff] %vm2761_vm0, %v5108_v25 }
 0x5dc   :  { %v5032_v10 = vsel %vm91_vm1, %v5030_v61, %v5031_v14  ;;  %v5124_v19 = vsel %vm91_vm1, %v5031_v14, 0.0 }
 0x5dd   :  { %5163 = vst.msk [vmem:[%s12426_s7 + $0xf8] sm:$0xff] %vm2761_vm0, %v5032_v10  ;;  %v13292_v10 = vld [vmem:[#allocation43_spill] sm:$0xff] }
 0x5de   :  { %5164 = vst.msk [vmem:[%s12426_s7 + $0x100] sm:$0x3] %vm5133_vm3, %v5124_v19  ;;  %v13293_v19 = vmax.f32 %v13292_v10, 0.0 }
 0x5e0   :  { %v4860_v51 = vpop.f32.mrb[60].mxu0 }
 0x5e1   :  { %v4861_v4 = vadd.f32 %v12039_v56, %v4860_v51  ;;  %v4862_v39 = vpop.f32.mrb[61].mxu0 }
 0x5e2   :  { %v4863_v13 = vpop.f32.mrb[62].mxu0 }
 0x5e3   :  { %v4927_v55 = vadd.f32 %v4861_v4, %v13281_v59  ;;  %v4864_v43 = vadd.f32 %v12039_v56, %v4863_v13  ;;  %v4865_v37 = vpop.f32.mrb[63].mxu0  ;;  %v13295_v59 = vmax.f32 %v13294_v24, 0.0 }
 0x5e5   :  { %v4959_v17 = vmax.f32 %v4927_v55, 0.0  ;;  %v4928_v58 = vadd.f32 %v4864_v43, %v13283_v11 }
 0x5e7   :  { %v5033_v1 = vrot.slane %v4959_v17, 7  ;;  %v4960_v57 = vmax.f32 %v4928_v58, 0.0 }
 0x5e9   :  { %v5109_v40 = vsel %vm91_vm1, 0.0, %v5033_v1  ;;  %v5034_v9 = vrot.slane %v4960_v57, 7 }
 0x5ea   :  { %5165 = vst.msk [vmem:[%s12426_s7 + $0x108] sm:$0xff] %vm2761_vm0, %v5109_v40 }
 0x5eb   :  { %v5035_v26 = vsel %vm91_vm1, %v5033_v1, %v5034_v9  ;;  %v5125_v28 = vsel %vm91_vm1, %v5034_v9, 0.0 }
 0x5ec   :  { %5166 = vst.msk [vmem:[%s12426_s7 + $0x110] sm:$0xff] %vm2761_vm0, %v5035_v26  ;;  %v13296_v26 = vld [vmem:[#allocation68_spill] sm:$0xff] }
 0x5ed   :  { %5167 = vst.msk [vmem:[%s12426_s7 + $0x118] sm:$0x3] %vm5133_vm3, %v5125_v28  ;;  %v4868_v27 = vpop.f32.mrb[64].mxu0  ;;  %v13297_v28 = vmax.f32 %v13296_v26, 0.0 }
 0x5ee   :  { %v4869_v12 = vadd.f32 %v12039_v56, %v4868_v27  ;;  %v4870_v46 = vpop.f32.mrb[65].mxu0 }
 0x5ef   :  { %v4871_v0 = vpop.f32.mrb[66].mxu0 }
 0x5f0   :  { %v4929_v16 = vadd.f32 %v4869_v12, %v13285_v44  ;;  %v4872_v52 = vadd.f32 %v12039_v56, %v4871_v0  ;;  %v4873_v42 = vpop.f32.mrb[67].mxu0  ;;  %v13299_v44 = vmax.f32 %v13298_v63, 0.0 }
 0x5f2   :  { %v4961_v45 = vmax.f32 %v4929_v16, 0.0  ;;  %v4930_v6 = vadd.f32 %v4872_v52, %v13287_v54 }
 0x5f4   :  { %v5036_v53 = vrot.slane %v4961_v45, 7  ;;  %v4962_v20 = vmax.f32 %v4930_v6, 0.0 }
 0x5f6   :  { %v5110_v49 = vsel %vm91_vm1, 0.0, %v5036_v53  ;;  %v5037_v38 = vrot.slane %v4962_v20, 7 }
 0x5f7   :  { %5168 = vst.msk [vmem:[%s12426_s7 + $0x120] sm:$0xff] %vm2761_vm0, %v5110_v49 }
 0x5f8   :  { %v5038_v36 = vsel %vm91_vm1, %v5036_v53, %v5037_v38  ;;  %v5126_v50 = vsel %vm91_vm1, %v5037_v38, 0.0  ;;  %v4876_v15 = vpop.f32.mrb[68].mxu0 }
 0x5f9   :  { %5169 = vst.msk [vmem:[%s12426_s7 + $0x128] sm:$0xff] %vm2761_vm0, %v5038_v36  ;;  %v4877_v35 = vadd.f32 %v12039_v56, %v4876_v15  ;;  %v4878_v2 = vpop.f32.mrb[69].mxu0  ;;  %v13300_v36 = vld [vmem:[#allocation66_spill] sm:$0xff] }
 0x5fa   :  { %5170 = vst.msk [vmem:[%s12426_s7 + $0x130] sm:$0x3] %vm5133_vm3, %v5126_v50  ;;  %v4879_v47 = vpop.f32.mrb[70].mxu0  ;;  %v13301_v50 = vmax.f32 %v13300_v36, 0.0 }
 0x5fb   :  { %v4931_v18 = vadd.f32 %v4877_v35, %v13289_v23  ;;  %v4880_v7 = vadd.f32 %v12039_v56, %v4879_v47  ;;  %v4881_v5 = vpop.f32.mrb[71].mxu0  ;;  %v13303_v23 = vmax.f32 %v13302_v48, 0.0 }
 0x5fd   :  { %v4963_v60 = vmax.f32 %v4931_v18, 0.0  ;;  %v4932_v32 = vadd.f32 %v4880_v7, %v13291_v41 }
 0x5ff   :  { %v5039_v22 = vrot.slane %v4963_v60, 7  ;;  %v4964_v30 = vmax.f32 %v4932_v32, 0.0 }
 0x601   :  { %v5111_v8 = vsel %vm91_vm1, 0.0, %v5039_v22  ;;  %v5040_v21 = vrot.slane %v4964_v30, 7 }
 0x602   :  { %5171 = vst.msk [vmem:[%s12426_s7 + $0x138] sm:$0xff] %vm2761_vm0, %v5111_v8 }
 0x603   :  { %v5041_v3 = vsel %vm91_vm1, %v5039_v22, %v5040_v21  ;;  %v5127_v34 = vsel %vm91_vm1, %v5040_v21, 0.0 }
 0x604   :  { %5172 = vst.msk [vmem:[%s12426_s7 + $0x140] sm:$0xff] %vm2761_vm0, %v5041_v3 }
 0x605   :  { %5173 = vst.msk [vmem:[%s12426_s7 + $0x148] sm:$0x3] %vm5133_vm3, %v5127_v34 }
 0x690   :  { %v4884_v61 = vpop.f32.mrb[72].mxu0 }
 0x691   :  { %v4885_v29 = vadd.f32 %v12039_v56, %v4884_v61  ;;  %v4886_v25 = vpop.f32.mrb[73].mxu0 }
 0x692   :  { %v4887_v14 = vpop.f32.mrb[74].mxu0 }
 0x693   :  { %v4933_v51 = vadd.f32 %v4885_v29, %v13293_v19  ;;  %v4888_v4 = vadd.f32 %v12039_v56, %v4887_v14  ;;  %v4889_v39 = vpop.f32.mrb[75].mxu0 }
 0x695   :  { %v4965_v13 = vmax.f32 %v4933_v51, 0.0  ;;  %v4934_v55 = vadd.f32 %v4888_v4, %v13295_v59 }
 0x697   :  { %v5042_v43 = vrot.slane %v4965_v13, 7  ;;  %v4966_v37 = vmax.f32 %v4934_v55, 0.0 }
 0x698   :  { %v4892_v17 = vpop.f32.mrb[76].mxu0 }
 0x699   :  { %v5112_v62 = vsel %vm91_vm1, 0.0, %v5042_v43  ;;  %v5043_v11 = vrot.slane %v4966_v37, 7  ;;  %v4893_v58 = vadd.f32 %v12039_v56, %v4892_v17  ;;  %v4894_v1 = vpop.f32.mrb[77].mxu0 }
 0x69a   :  { %5174 = vst.msk [vmem:[%s12426_s7 + $0x150] sm:$0xff] %vm2761_vm0, %v5112_v62  ;;  %v4895_v57 = vpop.f32.mrb[78].mxu0 }
 0x69b   :  { %v5044_v40 = vsel %vm91_vm1, %v5042_v43, %v5043_v11  ;;  %v5128_v9 = vsel %vm91_vm1, %v5043_v11, 0.0  ;;  %v4935_v27 = vadd.f32 %v4893_v58, %v13297_v28  ;;  %v4896_v12 = vadd.f32 %v12039_v56, %v4895_v57  ;;  %v4897_v46 = vpop.f32.mrb[79].mxu0 }
 0x69c   :  { %5175 = vst.msk [vmem:[%s12426_s7 + $0x158] sm:$0xff] %vm2761_vm0, %v5044_v40 }
 0x69d   :  { %5176 = vst.msk [vmem:[%s12426_s7 + $0x160] sm:$0x3] %vm5133_vm3, %v5128_v9  ;;  %v4967_v0 = vmax.f32 %v4935_v27, 0.0  ;;  %v4936_v16 = vadd.f32 %v4896_v12, %v13299_v44 }
 0x69f   :  { %v5045_v52 = vrot.slane %v4967_v0, 7  ;;  %v4968_v42 = vmax.f32 %v4936_v16, 0.0 }
 0x6a1   :  { %v5113_v45 = vsel %vm91_vm1, 0.0, %v5045_v52  ;;  %v5046_v31 = vrot.slane %v4968_v42, 7 }
 0x6a2   :  { %5177 = vst.msk [vmem:[%s12426_s7 + $0x168] sm:$0xff] %vm2761_vm0, %v5113_v45  ;;  %v4900_v54 = vpop.f32.mrb[80].mxu0 }
 0x6a3   :  { %v5047_v6 = vsel %vm91_vm1, %v5045_v52, %v5046_v31  ;;  %v5129_v53 = vsel %vm91_vm1, %v5046_v31, 0.0  ;;  %v4901_v20 = vadd.f32 %v12039_v56, %v4900_v54  ;;  %v4902_v49 = vpop.f32.mrb[81].mxu0 }
 0x6a4   :  { %5178 = vst.msk [vmem:[%s12426_s7 + $0x170] sm:$0xff] %vm2761_vm0, %v5047_v6  ;;  %v4903_v38 = vpop.f32.mrb[82].mxu0 }
 0x6a5   :  { %5179 = vst.msk [vmem:[%s12426_s7 + $0x178] sm:$0x3] %vm5133_vm3, %v5129_v53  ;;  %v4937_v15 = vadd.f32 %v4901_v20, %v13301_v50  ;;  %v4904_v35 = vadd.f32 %v12039_v56, %v4903_v38  ;;  %v4905_v2 = vpop.f32.mrb[83].mxu0 }
 0x6a7   :  { %v4969_v47 = vmax.f32 %v4937_v15, 0.0  ;;  %v4938_v18 = vadd.f32 %v4904_v35, %v13303_v23 }
 0x6a9   :  { %v5048_v7 = vrot.slane %v4969_v47, 7  ;;  %v4970_v5 = vmax.f32 %v4938_v18, 0.0 }
 0x6ab   :  { %v5114_v60 = vsel %vm91_vm1, 0.0, %v5048_v7  ;;  %v5049_v33 = vrot.slane %v4970_v5, 7 }
 0x6ac   :  { %5180 = vst.msk [vmem:[%s12426_s7 + $0x180] sm:$0xff] %vm2761_vm0, %v5114_v60 }
 0x6ad   :  { %v5050_v41 = vsel %vm91_vm1, %v5048_v7, %v5049_v33  ;;  %v5130_v32 = vsel %vm91_vm1, %v5049_v33, 0.0 }
 0x6ae   :  { %5181 = vst.msk [vmem:[%s12426_s7 + $0x188] sm:$0xff] %vm2761_vm0, %v5050_v41 }
 0x6af   :  { %5182 = vst.msk [vmem:[%s12426_s7 + $0x190] sm:$0x3] %vm5133_vm3, %v5130_v32 }

</bundles_post_ra>
